<compile_context>
chip_gen: v7x
topology: tpu7x:2x2x1
jax: 0.10.0
libtpu: 0.0.40
codegen_flags: <defaults>
</compile_context>

<pallas_src>
from functools import partial

import jax
import jax.numpy as jnp
from jax.experimental import pallas as pl
from jax.experimental.pallas import tpu as pltpu


# --------------------------------------------------------------------------
# Fused Pallas kernel: conv1+BN+ReLU -> grouped conv2+BN+ReLU -> conv3+BN
#                      -> SCSE -> (+ residual / 1x1 projection) -> ReLU
# --------------------------------------------------------------------------
def resblock_kernel(x_ref, w1_ref, s1_ref, t1_ref,
                    w2_ref, s2_ref, t2_ref,
                    w3_ref, s3_ref, t3_ref,
                    fc1w_ref, fc1b_ref, fc2w_ref, fc2b_ref,
                    ssew_ref, sseb_ref, pw_ref, pb_ref,
                    o_ref, padx_ref, pady_ref,
                    *, groups, has_projection):
    H, W, cin = x_ref.shape[1], x_ref.shape[2], x_ref.shape[3]
    cout = o_ref.shape[2]
    HW = H * W

    def im2col(pad_ref, c0, c1):
        # Gather the 9 shifted 3x3 taps (channels [c0:c1)) into one
        # (H*W, 9*(c1-c0)) matrix; bf16 for the MXU operands.
        c = c1 - c0
        patches = [pad_ref[ky:ky + H, kx:kx + W, c0:c1].reshape(HW, c)
                   for ky in range(3) for kx in range(3)]
        return jnp.concatenate(patches, axis=-1).astype(jnp.bfloat16)

    # ---- stage 1: conv1 + BN1 + ReLU --------------------------------------
    x_hwc = x_ref[0]                                        # (H, W, cin) f32
    padx_ref[...] = jnp.zeros_like(padx_ref)                # zero halo
    padx_ref[1:H + 1, 1:W + 1, :] = x_hwc
    acc1 = jnp.dot(im2col(padx_ref, 0, cin), w1_ref[...],
                   preferred_element_type=jnp.float32)      # (HW, cout)
    y = jnp.maximum(acc1 * s1_ref[...] + t1_ref[...], 0.0)

    # ---- stage 2: grouped conv2 + BN2 + ReLU ------------------------------
    pady_ref[...] = jnp.zeros_like(pady_ref)                # zero halo once
    pady_ref[1:H + 1, 1:W + 1, :] = y.reshape(H, W, cout)
    cpg = cout // groups
    parts = [jnp.dot(im2col(pady_ref, g * cpg, (g + 1) * cpg), w2_ref[g],
                     preferred_element_type=jnp.float32)
             for g in range(groups)]
    acc2 = parts[0] if groups == 1 else jnp.concatenate(parts, axis=-1)
    y = jnp.maximum(acc2 * s2_ref[...] + t2_ref[...], 0.0)

    # ---- stage 3: conv3 + BN3 (no ReLU before SCSE) ------------------------
    pady_ref[1:H + 1, 1:W + 1, :] = y.reshape(H, W, cout)   # halo still zero
    acc3 = jnp.dot(im2col(pady_ref, 0, cout), w3_ref[...],
                   preferred_element_type=jnp.float32)
    z = acc3 * s3_ref[...] + t3_ref[...]                    # (HW, cout) f32

    # ---- SCSE ---------------------------------------------------------------
    # cSE: global average pool -> FC -> ReLU -> FC -> sigmoid -> channel gate
    pooled = jnp.mean(z, axis=0, keepdims=True)             # (1, cout)
    h = jnp.maximum(jnp.dot(pooled, fc1w_ref[...],
                            preferred_element_type=jnp.float32) + fc1b_ref[...],
                    0.0)
    gate = jax.nn.sigmoid(jnp.dot(h, fc2w_ref[...],
                                  preferred_element_type=jnp.float32)
                          + fc2b_ref[...])                  # (1, cout)
    # sSE: 1x1 conv to 1 channel as a lane reduction (keeps the MXU free)
    smask = jax.nn.sigmoid(jnp.sum(z * ssew_ref[...], axis=-1, keepdims=True)
                           + sseb_ref[...])                 # (HW, 1)
    scse = z * gate + z * smask

    # ---- residual (+ optional 1x1 projection) + final ReLU ------------------
    x_flat = x_hwc.reshape(HW, cin)
    if has_projection:
        res = jnp.dot(x_flat.astype(jnp.bfloat16), pw_ref[...],
                      preferred_element_type=jnp.float32) + pb_ref[...]
    else:
        res = x_flat
    out = jnp.maximum(scse + res, 0.0)
    o_ref[...] = out.reshape(1, HW, cout).astype(o_ref.dtype)


# --------------------------------------------------------------------------
# Wrapper: parameter folding/reshaping + pallas_call
# --------------------------------------------------------------------------
def _bn_fold(conv_bias, gamma, beta, mean, var, eps=1e-5):
    scale = gamma / jnp.sqrt(var + eps)
    shift = beta + (conv_bias - mean) * scale
    return (scale.reshape(1, -1).astype(jnp.float32),
            shift.reshape(1, -1).astype(jnp.float32))


def resblock_pallas(x_nchw, p):
    x = jnp.transpose(x_nchw, (0, 2, 3, 1)).astype(jnp.float32)   # NHWC
    B, H, W, in_ch = x.shape
    out_ch = p['w1'].shape[-1]
    groups = out_ch // p['w2'].shape[2]
    cpg = out_ch // groups

    s1, t1 = _bn_fold(p['b1'], p['bn1_gamma'], p['bn1_beta'], p['bn1_mean'], p['bn1_var'])
    s2, t2 = _bn_fold(p['b2'], p['bn2_gamma'], p['bn2_beta'], p['bn2_mean'], p['bn2_var'])
    s3, t3 = _bn_fold(p['b3'], p['bn3_gamma'], p['bn3_beta'], p['bn3_mean'], p['bn3_var'])

    # im2col-ready weights (tap-major, channel-minor rows); bf16 MXU operands.
    w1 = p['w1'].reshape(9 * in_ch, out_ch).astype(jnp.bfloat16)
    w2 = jnp.stack([p['w2'][:, :, :, g * cpg:(g + 1) * cpg].reshape(9 * cpg, cpg)
                    for g in range(groups)], axis=0).astype(jnp.bfloat16)
    w3 = p['w3'].reshape(9 * out_ch, out_ch).astype(jnp.bfloat16)

    has_proj = p['proj_w'] is not None
    pw = (p['proj_w'] if has_proj
          else jnp.zeros((in_ch, out_ch), jnp.float32)).astype(jnp.bfloat16)
    pb = (p['proj_b'] if has_proj
          else jnp.zeros((out_ch,), jnp.float32)).reshape(1, -1)

    weights = (w1, s1, t1, w2, s2, t2, w3, s3, t3,
               p['fc1_w'], p['fc1_b'].reshape(1, -1),
               p['fc2_w'], p['fc2_b'].reshape(1, -1),
               p['sse_w'].reshape(1, -1), p['sse_b'].reshape(1, 1),
               pw, pb)

    in_specs = [pl.BlockSpec((1, H, W, in_ch), lambda b: (b, 0, 0, 0))]
    in_specs += [pl.BlockSpec(a.shape, lambda b, n=a.ndim: (0,) * n)
                 for a in weights]

    out = pl.pallas_call(
        partial(resblock_kernel, groups=groups, has_projection=has_proj),
        out_shape=jax.ShapeDtypeStruct((B, H * W, out_ch), jnp.float32),
        grid=(B,),
        in_specs=in_specs,
        out_specs=pl.BlockSpec((1, H * W, out_ch), lambda b: (b, 0, 0)),
        scratch_shapes=[pltpu.VMEM((H + 2, W + 2, in_ch), jnp.float32),
                        pltpu.VMEM((H + 2, W + 2, out_ch), jnp.float32)],
        compiler_params=pltpu.CompilerParams(
            dimension_semantics=("parallel",),
            vmem_limit_bytes=32 * 1024 * 1024),
    )(x, *weights)

    out = out.reshape(B, H, W, out_ch)
    return jnp.transpose(out, (0, 3, 1, 2))                       # back to NCHW


# --------------------------------------------------------------------------
# Parameter construction (matches the PyTorch module's structure)
# --------------------------------------------------------------------------
def init_params(key, in_ch, out_ch):
    keys = list(jax.random.split(key, 32))
    it = iter(keys)

    def nrm(shape, scale=0.2):
        return scale * jax.random.normal(next(it), shape, dtype=jnp.float32)

    hidden = out_ch // 2                 # SCSE(out_ch, r=2) -> Linear(out_ch, out_ch//2)
    groups = 2 - out_ch % 2              # nn.Conv2d(..., groups=2 - out_ch % 2)
    p = {}
    p['w1'] = nrm((3, 3, in_ch, out_ch)); p['b1'] = nrm((out_ch,), 0.05)
    p['w2'] = nrm((3, 3, out_ch // groups, out_ch)); p['b2'] = nrm((out_ch,), 0.05)
    p['w3'] = nrm((3, 3, out_ch, out_ch)); p['b3'] = nrm((out_ch,), 0.05)
    for i in (1, 2, 3):
        p[f'bn{i}_gamma'] = 1.0 + nrm((out_ch,), 0.1)
        p[f'bn{i}_beta'] = nrm((out_ch,), 0.1)
        p[f'bn{i}_mean'] = nrm((out_ch,), 0.1)
        p[f'bn{i}_var'] = 1.0 + 0.1 * jnp.abs(
            jax.random.normal(next(it), (out_ch,), dtype=jnp.float32))
    p['fc1_w'] = nrm((out_ch, hidden)); p['fc1_b'] = nrm((hidden,), 0.05)
    p['fc2_w'] = nrm((hidden, out_ch)); p['fc2_b'] = nrm((out_ch,), 0.05)
    p['sse_w'] = nrm((out_ch, 1)); p['sse_b'] = nrm((1,), 0.05)
    if in_ch != out_ch:
        p['proj_w'] = nrm((in_ch, out_ch)); p['proj_b'] = nrm((out_ch,), 0.05)
    else:
        p['proj_w'] = None; p['proj_b'] = None
    return p


# --------------------------------------------------------------------------
# Pure-JAX reference. mxu_dtype controls the conv / projection operand
# precision (bf16 mirrors the kernel's MXU policy; f32 is the exact module).
# --------------------------------------------------------------------------
def resblock_reference(x_nchw, p, eps=1e-5, mxu_dtype=jnp.float32):
    x = jnp.transpose(x_nchw, (0, 2, 3, 1)).astype(jnp.float32)
    out_ch = p['w1'].shape[-1]
    groups = out_ch // p['w2'].shape[2]
    cast = lambda a: a.astype(mxu_dtype)

    def conv(xx, w, b, g=1):
        y = jax.lax.conv_general_dilated(
            cast(xx), cast(w), (1, 1), 'SAME',
            dimension_numbers=('NHWC', 'HWIO', 'NHWC'),
            feature_group_count=g, preferred_element_type=jnp.float32)
        return y + b

    def bn(xx, gm, bt, m, v):
        return (xx - m) / jnp.sqrt(v + eps) * gm + bt

    y = jax.nn.relu(bn(conv(x, p['w1'], p['b1']),
                       p['bn1_gamma'], p['bn1_beta'], p['bn1_mean'], p['bn1_var']))
    y = jax.nn.relu(bn(conv(y, p['w2'], p['b2'], g=groups),
                       p['bn2_gamma'], p['bn2_beta'], p['bn2_mean'], p['bn2_var']))
    z = bn(conv(y, p['w3'], p['b3']),
           p['bn3_gamma'], p['bn3_beta'], p['bn3_mean'], p['bn3_var'])

    pooled = jnp.mean(z, axis=(1, 2))
    h = jax.nn.relu(pooled @ p['fc1_w'] + p['fc1_b'])
    gate = jax.nn.sigmoid(h @ p['fc2_w'] + p['fc2_b'])
    cse = z * gate[:, None, None, :]
    mask = jax.nn.sigmoid(jnp.einsum('bhwc,co->bhwo', z, p['sse_w']) + p['sse_b'])
    sse = z * mask
    scse = cse + sse

    if p['proj_w'] is not None:
        res = jnp.einsum('bhwc,co->bhwo', cast(x), cast(p['proj_w']),
                         preferred_element_type=jnp.float32) + p['proj_b']
    else:
        res = x
    out = jax.nn.relu(scse + res)
    return jnp.transpose(out, (0, 3, 1, 2))


# --------------------------------------------------------------------------
if __name__ == "__main__":
    key = jax.random.PRNGKey(0)
    B, in_ch, out_ch, H, W = 2, 4, 8, 16, 16
    kx, kp = jax.random.split(key)
    x = jax.random.normal(kx, (B, in_ch, H, W), dtype=jnp.float32)
    params = init_params(kp, in_ch, out_ch)

    out = jax.block_until_ready(resblock_pallas(x, params))
    assert out.shape == (B, out_ch, H, W), out.shape

    # Tight check vs a reference using the same bf16 MXU-operand policy.
    ref_bf16 = resblock_reference(x, params, mxu_dtype=jnp.bfloat16)
    err_bf16 = float(jnp.max(jnp.abs(out - ref_bf16)))
    assert jnp.allclose(out, ref_bf16, rtol=5e-3, atol=5e-3), \
        f"bf16-ref max abs err {err_bf16}"

    # Sanity check vs the full-f32 reference (bf16 MXU inputs => ~0.5% rel).
    ref_f32 = resblock_reference(x, params, mxu_dtype=jnp.float32)
    err_f32 = float(jnp.max(jnp.abs(out - ref_f32)))
    assert jnp.allclose(out, ref_f32, rtol=5e-2, atol=5e-2), \
        f"f32-ref max abs err {err_f32}"

    print("KERNEL_OK")
</pallas_src>

<mosaic_0001>
module attributes {stable_mosaic.version = 11 : i64} {
  func.func @resblock_kernel(%arg0: i32, %arg1: memref<1x16x16x4xf32, #tpu.memory_space<vmem>>, %arg2: memref<36x8xbf16, #tpu.memory_space<vmem>>, %arg3: memref<1x8xf32, #tpu.memory_space<vmem>>, %arg4: memref<1x8xf32, #tpu.memory_space<vmem>>, %arg5: memref<2x36x4xbf16, #tpu.memory_space<vmem>>, %arg6: memref<1x8xf32, #tpu.memory_space<vmem>>, %arg7: memref<1x8xf32, #tpu.memory_space<vmem>>, %arg8: memref<72x8xbf16, #tpu.memory_space<vmem>>, %arg9: memref<1x8xf32, #tpu.memory_space<vmem>>, %arg10: memref<1x8xf32, #tpu.memory_space<vmem>>, %arg11: memref<8x4xf32, #tpu.memory_space<vmem>>, %arg12: memref<1x4xf32, #tpu.memory_space<vmem>>, %arg13: memref<4x8xf32, #tpu.memory_space<vmem>>, %arg14: memref<1x8xf32, #tpu.memory_space<vmem>>, %arg15: memref<1x8xf32, #tpu.memory_space<vmem>>, %arg16: memref<1x1xf32, #tpu.memory_space<vmem>>, %arg17: memref<4x8xbf16, #tpu.memory_space<vmem>>, %arg18: memref<1x8xf32, #tpu.memory_space<vmem>>, %arg19: memref<1x256x8xf32, #tpu.memory_space<vmem>>, %arg20: memref<18x18x4xf32, #tpu.memory_space<vmem>>, %arg21: memref<18x18x8xf32, #tpu.memory_space<vmem>>) attributes {dimension_semantics = [#tpu.dimension_semantics<parallel>], iteration_bounds = array<i64: 2>, scalar_prefetch = 0 : i64, scratch_operands = 2 : i64, tpu.core_type = #tpu.core_type<tc>, window_params = [{transform_indices = @transform_0, window_bounds = array<i64: 1, 16, 16, 4>}, {pipeline_mode = #tpu.pipeline_mode<synchronous>, transform_indices = @transform_1, window_bounds = array<i64: 36, 8>}, {pipeline_mode = #tpu.pipeline_mode<synchronous>, transform_indices = @transform_2, window_bounds = array<i64: 1, 8>}, {pipeline_mode = #tpu.pipeline_mode<synchronous>, transform_indices = @transform_3, window_bounds = array<i64: 1, 8>}, {pipeline_mode = #tpu.pipeline_mode<synchronous>, transform_indices = @transform_4, window_bounds = array<i64: 2, 36, 4>}, {pipeline_mode = #tpu.pipeline_mode<synchronous>, transform_indices = @transform_5, window_bounds = array<i64: 1, 8>}, {pipeline_mode = #tpu.pipeline_mode<synchronous>, transform_indices = @transform_6, window_bounds = array<i64: 1, 8>}, {pipeline_mode = #tpu.pipeline_mode<synchronous>, transform_indices = @transform_7, window_bounds = array<i64: 72, 8>}, {pipeline_mode = #tpu.pipeline_mode<synchronous>, transform_indices = @transform_8, window_bounds = array<i64: 1, 8>}, {pipeline_mode = #tpu.pipeline_mode<synchronous>, transform_indices = @transform_9, window_bounds = array<i64: 1, 8>}, {pipeline_mode = #tpu.pipeline_mode<synchronous>, transform_indices = @transform_10, window_bounds = array<i64: 8, 4>}, {pipeline_mode = #tpu.pipeline_mode<synchronous>, transform_indices = @transform_11, window_bounds = array<i64: 1, 4>}, {pipeline_mode = #tpu.pipeline_mode<synchronous>, transform_indices = @transform_12, window_bounds = array<i64: 4, 8>}, {pipeline_mode = #tpu.pipeline_mode<synchronous>, transform_indices = @transform_13, window_bounds = array<i64: 1, 8>}, {pipeline_mode = #tpu.pipeline_mode<synchronous>, transform_indices = @transform_14, window_bounds = array<i64: 1, 8>}, {pipeline_mode = #tpu.pipeline_mode<synchronous>, transform_indices = @transform_15, window_bounds = array<i64: 1, 1>}, {pipeline_mode = #tpu.pipeline_mode<synchronous>, transform_indices = @transform_16, window_bounds = array<i64: 4, 8>}, {pipeline_mode = #tpu.pipeline_mode<synchronous>, transform_indices = @transform_17, window_bounds = array<i64: 1, 8>}, {transform_indices = @transform_18, window_bounds = array<i64: 1, 256, 8>}]} {
    %c0 = arith.constant 0 : index
    %c0_0 = arith.constant 0 : index
    %c0_1 = arith.constant 0 : index
    %c0_2 = arith.constant 0 : index
    %0 = vector.load %arg1[%c0, %c0_0, %c0_1, %c0_2] : memref<1x16x16x4xf32, #tpu.memory_space<vmem>>, vector<1x16x16x4xf32>
    %1 = vector.shape_cast %0 : vector<1x16x16x4xf32> to vector<16x16x4xf32>
    %cst = arith.constant 0.000000e+00 : f32
    %2 = vector.broadcast %cst : f32 to vector<18x18x4xf32>
    %c0_3 = arith.constant 0 : index
    %c0_4 = arith.constant 0 : index
    %c0_5 = arith.constant 0 : index
    %3 = vector.load %arg20[%c0_3, %c0_4, %c0_5] : memref<18x18x4xf32, #tpu.memory_space<vmem>>, vector<18x18x4xf32>
    tpu.vector_store %arg20[%c0_3, %c0_4, %c0_5], %2 {strides = array<i32>} : memref<18x18x4xf32, #tpu.memory_space<vmem>>, vector<18x18x4xf32>,
    %c1 = arith.constant 1 : index
    %c1_6 = arith.constant 1 : index
    %c0_7 = arith.constant 0 : index
    %4 = vector.load %arg20[%c1, %c1_6, %c0_7] : memref<18x18x4xf32, #tpu.memory_space<vmem>>, vector<16x16x4xf32>
    tpu.vector_store %arg20[%c1, %c1_6, %c0_7], %1 {strides = array<i32>} : memref<18x18x4xf32, #tpu.memory_space<vmem>>, vector<16x16x4xf32>,
    %c0_8 = arith.constant 0 : index
    %c0_9 = arith.constant 0 : index
    %c0_10 = arith.constant 0 : index
    %5 = vector.load %arg20[%c0_8, %c0_9, %c0_10] : memref<18x18x4xf32, #tpu.memory_space<vmem>>, vector<16x16x4xf32>
    %6 = vector.shape_cast %5 : vector<16x16x4xf32> to vector<256x4xf32>
    %c0_11 = arith.constant 0 : index
    %c1_12 = arith.constant 1 : index
    %c0_13 = arith.constant 0 : index
    %7 = vector.load %arg20[%c0_11, %c1_12, %c0_13] : memref<18x18x4xf32, #tpu.memory_space<vmem>>, vector<16x16x4xf32>
    %8 = vector.shape_cast %7 : vector<16x16x4xf32> to vector<256x4xf32>
    %c0_14 = arith.constant 0 : index
    %c2 = arith.constant 2 : index
    %c0_15 = arith.constant 0 : index
    %9 = vector.load %arg20[%c0_14, %c2, %c0_15] : memref<18x18x4xf32, #tpu.memory_space<vmem>>, vector<16x16x4xf32>
    %10 = vector.shape_cast %9 : vector<16x16x4xf32> to vector<256x4xf32>
    %c1_16 = arith.constant 1 : index
    %c0_17 = arith.constant 0 : index
    %c0_18 = arith.constant 0 : index
    %11 = vector.load %arg20[%c1_16, %c0_17, %c0_18] : memref<18x18x4xf32, #tpu.memory_space<vmem>>, vector<16x16x4xf32>
    %12 = vector.shape_cast %11 : vector<16x16x4xf32> to vector<256x4xf32>
    %c1_19 = arith.constant 1 : index
    %c1_20 = arith.constant 1 : index
    %c0_21 = arith.constant 0 : index
    %13 = vector.load %arg20[%c1_19, %c1_20, %c0_21] : memref<18x18x4xf32, #tpu.memory_space<vmem>>, vector<16x16x4xf32>
    %14 = vector.shape_cast %13 : vector<16x16x4xf32> to vector<256x4xf32>
    %c1_22 = arith.constant 1 : index
    %c2_23 = arith.constant 2 : index
    %c0_24 = arith.constant 0 : index
    %15 = vector.load %arg20[%c1_22, %c2_23, %c0_24] : memref<18x18x4xf32, #tpu.memory_space<vmem>>, vector<16x16x4xf32>
    %16 = vector.shape_cast %15 : vector<16x16x4xf32> to vector<256x4xf32>
    %c2_25 = arith.constant 2 : index
    %c0_26 = arith.constant 0 : index
    %c0_27 = arith.constant 0 : index
    %17 = vector.load %arg20[%c2_25, %c0_26, %c0_27] : memref<18x18x4xf32, #tpu.memory_space<vmem>>, vector<16x16x4xf32>
    %18 = vector.shape_cast %17 : vector<16x16x4xf32> to vector<256x4xf32>
    %c2_28 = arith.constant 2 : index
    %c1_29 = arith.constant 1 : index
    %c0_30 = arith.constant 0 : index
    %19 = vector.load %arg20[%c2_28, %c1_29, %c0_30] : memref<18x18x4xf32, #tpu.memory_space<vmem>>, vector<16x16x4xf32>
    %20 = vector.shape_cast %19 : vector<16x16x4xf32> to vector<256x4xf32>
    %c2_31 = arith.constant 2 : index
    %c2_32 = arith.constant 2 : index
    %c0_33 = arith.constant 0 : index
    %21 = vector.load %arg20[%c2_31, %c2_32, %c0_33] : memref<18x18x4xf32, #tpu.memory_space<vmem>>, vector<16x16x4xf32>
    %22 = vector.shape_cast %21 : vector<16x16x4xf32> to vector<256x4xf32>
    %23 = tpu.concatenate %6, %8, %10, %12, %14, %16, %18, %20, %22 in 1 : vector<256x4xf32>, vector<256x4xf32>, vector<256x4xf32>, vector<256x4xf32>, vector<256x4xf32>, vector<256x4xf32>, vector<256x4xf32>, vector<256x4xf32>, vector<256x4xf32> -> vector<256x36xf32>
    %24 = arith.truncf %23 : vector<256x36xf32> to vector<256x36xbf16>
    %c0_34 = arith.constant 0 : index
    %c0_35 = arith.constant 0 : index
    %25 = vector.load %arg2[%c0_34, %c0_35] : memref<36x8xbf16, #tpu.memory_space<vmem>>, vector<36x8xbf16>
    %cst_36 = arith.constant dense<0.000000e+00> : vector<256x8xf32>
    %26 = tpu.matmul %24, %25, %cst_36 {dimension_numbers = #tpu.dot_dimension_numbers<[1], [0], [0], [1], [0, 0, 1, 1], [], []>} : vector<256x36xbf16>, vector<36x8xbf16>, vector<256x8xf32> -> vector<256x8xf32>
    %c0_37 = arith.constant 0 : index
    %c0_38 = arith.constant 0 : index
    %27 = vector.load %arg3[%c0_37, %c0_38] : memref<1x8xf32, #tpu.memory_space<vmem>>, vector<1x8xf32>
    %28 = vector.broadcast %27 : vector<1x8xf32> to vector<256x8xf32>
    %29 = arith.mulf %26, %28 : vector<256x8xf32>
    %c0_39 = arith.constant 0 : index
    %c0_40 = arith.constant 0 : index
    %30 = vector.load %arg4[%c0_39, %c0_40] : memref<1x8xf32, #tpu.memory_space<vmem>>, vector<1x8xf32>
    %31 = vector.broadcast %30 : vector<1x8xf32> to vector<256x8xf32>
    %32 = arith.addf %29, %31 : vector<256x8xf32>
    %cst_41 = arith.constant 0.000000e+00 : f32
    %33 = vector.broadcast %cst_41 : f32 to vector<256x8xf32>
    %34 = arith.maximumf %32, %33 : vector<256x8xf32>
    %cst_42 = arith.constant 0.000000e+00 : f32
    %35 = vector.broadcast %cst_42 : f32 to vector<18x18x8xf32>
    %c0_43 = arith.constant 0 : index
    %c0_44 = arith.constant 0 : index
    %c0_45 = arith.constant 0 : index
    %36 = vector.load %arg21[%c0_43, %c0_44, %c0_45] : memref<18x18x8xf32, #tpu.memory_space<vmem>>, vector<18x18x8xf32>
    tpu.vector_store %arg21[%c0_43, %c0_44, %c0_45], %35 {strides = array<i32>} : memref<18x18x8xf32, #tpu.memory_space<vmem>>, vector<18x18x8xf32>,
    %37 = vector.shape_cast %34 : vector<256x8xf32> to vector<16x16x8xf32>
    %c1_46 = arith.constant 1 : index
    %c1_47 = arith.constant 1 : index
    %c0_48 = arith.constant 0 : index
    %38 = vector.load %arg21[%c1_46, %c1_47, %c0_48] : memref<18x18x8xf32, #tpu.memory_space<vmem>>, vector<16x16x8xf32>
    tpu.vector_store %arg21[%c1_46, %c1_47, %c0_48], %37 {strides = array<i32>} : memref<18x18x8xf32, #tpu.memory_space<vmem>>, vector<16x16x8xf32>,
    %c0_49 = arith.constant 0 : index
    %c0_50 = arith.constant 0 : index
    %c0_51 = arith.constant 0 : index
    %39 = vector.load %arg21[%c0_49, %c0_50, %c0_51] : memref<18x18x8xf32, #tpu.memory_space<vmem>>, vector<16x16x4xf32>
    %40 = vector.shape_cast %39 : vector<16x16x4xf32> to vector<256x4xf32>
    %c0_52 = arith.constant 0 : index
    %c1_53 = arith.constant 1 : index
    %c0_54 = arith.constant 0 : index
    %41 = vector.load %arg21[%c0_52, %c1_53, %c0_54] : memref<18x18x8xf32, #tpu.memory_space<vmem>>, vector<16x16x4xf32>
    %42 = vector.shape_cast %41 : vector<16x16x4xf32> to vector<256x4xf32>
    %c0_55 = arith.constant 0 : index
    %c2_56 = arith.constant 2 : index
    %c0_57 = arith.constant 0 : index
    %43 = vector.load %arg21[%c0_55, %c2_56, %c0_57] : memref<18x18x8xf32, #tpu.memory_space<vmem>>, vector<16x16x4xf32>
    %44 = vector.shape_cast %43 : vector<16x16x4xf32> to vector<256x4xf32>
    %c1_58 = arith.constant 1 : index
    %c0_59 = arith.constant 0 : index
    %c0_60 = arith.constant 0 : index
    %45 = vector.load %arg21[%c1_58, %c0_59, %c0_60] : memref<18x18x8xf32, #tpu.memory_space<vmem>>, vector<16x16x4xf32>
    %46 = vector.shape_cast %45 : vector<16x16x4xf32> to vector<256x4xf32>
    %c1_61 = arith.constant 1 : index
    %c1_62 = arith.constant 1 : index
    %c0_63 = arith.constant 0 : index
    %47 = vector.load %arg21[%c1_61, %c1_62, %c0_63] : memref<18x18x8xf32, #tpu.memory_space<vmem>>, vector<16x16x4xf32>
    %48 = vector.shape_cast %47 : vector<16x16x4xf32> to vector<256x4xf32>
    %c1_64 = arith.constant 1 : index
    %c2_65 = arith.constant 2 : index
    %c0_66 = arith.constant 0 : index
    %49 = vector.load %arg21[%c1_64, %c2_65, %c0_66] : memref<18x18x8xf32, #tpu.memory_space<vmem>>, vector<16x16x4xf32>
    %50 = vector.shape_cast %49 : vector<16x16x4xf32> to vector<256x4xf32>
    %c2_67 = arith.constant 2 : index
    %c0_68 = arith.constant 0 : index
    %c0_69 = arith.constant 0 : index
    %51 = vector.load %arg21[%c2_67, %c0_68, %c0_69] : memref<18x18x8xf32, #tpu.memory_space<vmem>>, vector<16x16x4xf32>
    %52 = vector.shape_cast %51 : vector<16x16x4xf32> to vector<256x4xf32>
    %c2_70 = arith.constant 2 : index
    %c1_71 = arith.constant 1 : index
    %c0_72 = arith.constant 0 : index
    %53 = vector.load %arg21[%c2_70, %c1_71, %c0_72] : memref<18x18x8xf32, #tpu.memory_space<vmem>>, vector<16x16x4xf32>
    %54 = vector.shape_cast %53 : vector<16x16x4xf32> to vector<256x4xf32>
    %c2_73 = arith.constant 2 : index
    %c2_74 = arith.constant 2 : index
    %c0_75 = arith.constant 0 : index
    %55 = vector.load %arg21[%c2_73, %c2_74, %c0_75] : memref<18x18x8xf32, #tpu.memory_space<vmem>>, vector<16x16x4xf32>
    %56 = vector.shape_cast %55 : vector<16x16x4xf32> to vector<256x4xf32>
    %57 = tpu.concatenate %40, %42, %44, %46, %48, %50, %52, %54, %56 in 1 : vector<256x4xf32>, vector<256x4xf32>, vector<256x4xf32>, vector<256x4xf32>, vector<256x4xf32>, vector<256x4xf32>, vector<256x4xf32>, vector<256x4xf32>, vector<256x4xf32> -> vector<256x36xf32>
    %58 = arith.truncf %57 : vector<256x36xf32> to vector<256x36xbf16>
    %c0_76 = arith.constant 0 : index
    %c0_77 = arith.constant 0 : index
    %c0_78 = arith.constant 0 : index
    %59 = vector.load %arg5[%c0_76, %c0_77, %c0_78] : memref<2x36x4xbf16, #tpu.memory_space<vmem>>, vector<1x36x4xbf16>
    %60 = vector.shape_cast %59 : vector<1x36x4xbf16> to vector<36x4xbf16>
    %cst_79 = arith.constant dense<0.000000e+00> : vector<256x4xf32>
    %61 = tpu.matmul %58, %60, %cst_79 {dimension_numbers = #tpu.dot_dimension_numbers<[1], [0], [0], [1], [0, 0, 1, 1], [], []>} : vector<256x36xbf16>, vector<36x4xbf16>, vector<256x4xf32> -> vector<256x4xf32>
    %c0_80 = arith.constant 0 : index
    %c0_81 = arith.constant 0 : index
    %c4 = arith.constant 4 : index
    %62 = vector.load %arg21[%c0_80, %c0_81, %c4] : memref<18x18x8xf32, #tpu.memory_space<vmem>>, vector<16x16x4xf32>
    %63 = vector.shape_cast %62 : vector<16x16x4xf32> to vector<256x4xf32>
    %c0_82 = arith.constant 0 : index
    %c1_83 = arith.constant 1 : index
    %c4_84 = arith.constant 4 : index
    %64 = vector.load %arg21[%c0_82, %c1_83, %c4_84] : memref<18x18x8xf32, #tpu.memory_space<vmem>>, vector<16x16x4xf32>
    %65 = vector.shape_cast %64 : vector<16x16x4xf32> to vector<256x4xf32>
    %c0_85 = arith.constant 0 : index
    %c2_86 = arith.constant 2 : index
    %c4_87 = arith.constant 4 : index
    %66 = vector.load %arg21[%c0_85, %c2_86, %c4_87] : memref<18x18x8xf32, #tpu.memory_space<vmem>>, vector<16x16x4xf32>
    %67 = vector.shape_cast %66 : vector<16x16x4xf32> to vector<256x4xf32>
    %c1_88 = arith.constant 1 : index
    %c0_89 = arith.constant 0 : index
    %c4_90 = arith.constant 4 : index
    %68 = vector.load %arg21[%c1_88, %c0_89, %c4_90] : memref<18x18x8xf32, #tpu.memory_space<vmem>>, vector<16x16x4xf32>
    %69 = vector.shape_cast %68 : vector<16x16x4xf32> to vector<256x4xf32>
    %c1_91 = arith.constant 1 : index
    %c1_92 = arith.constant 1 : index
    %c4_93 = arith.constant 4 : index
    %70 = vector.load %arg21[%c1_91, %c1_92, %c4_93] : memref<18x18x8xf32, #tpu.memory_space<vmem>>, vector<16x16x4xf32>
    %71 = vector.shape_cast %70 : vector<16x16x4xf32> to vector<256x4xf32>
    %c1_94 = arith.constant 1 : index
    %c2_95 = arith.constant 2 : index
    %c4_96 = arith.constant 4 : index
    %72 = vector.load %arg21[%c1_94, %c2_95, %c4_96] : memref<18x18x8xf32, #tpu.memory_space<vmem>>, vector<16x16x4xf32>
    %73 = vector.shape_cast %72 : vector<16x16x4xf32> to vector<256x4xf32>
    %c2_97 = arith.constant 2 : index
    %c0_98 = arith.constant 0 : index
    %c4_99 = arith.constant 4 : index
    %74 = vector.load %arg21[%c2_97, %c0_98, %c4_99] : memref<18x18x8xf32, #tpu.memory_space<vmem>>, vector<16x16x4xf32>
    %75 = vector.shape_cast %74 : vector<16x16x4xf32> to vector<256x4xf32>
    %c2_100 = arith.constant 2 : index
    %c1_101 = arith.constant 1 : index
    %c4_102 = arith.constant 4 : index
    %76 = vector.load %arg21[%c2_100, %c1_101, %c4_102] : memref<18x18x8xf32, #tpu.memory_space<vmem>>, vector<16x16x4xf32>
    %77 = vector.shape_cast %76 : vector<16x16x4xf32> to vector<256x4xf32>
    %c2_103 = arith.constant 2 : index
    %c2_104 = arith.constant 2 : index
    %c4_105 = arith.constant 4 : index
    %78 = vector.load %arg21[%c2_103, %c2_104, %c4_105] : memref<18x18x8xf32, #tpu.memory_space<vmem>>, vector<16x16x4xf32>
    %79 = vector.shape_cast %78 : vector<16x16x4xf32> to vector<256x4xf32>
    %80 = tpu.concatenate %63, %65, %67, %69, %71, %73, %75, %77, %79 in 1 : vector<256x4xf32>, vector<256x4xf32>, vector<256x4xf32>, vector<256x4xf32>, vector<256x4xf32>, vector<256x4xf32>, vector<256x4xf32>, vector<256x4xf32>, vector<256x4xf32> -> vector<256x36xf32>
    %81 = arith.truncf %80 : vector<256x36xf32> to vector<256x36xbf16>
    %c1_106 = arith.constant 1 : index
    %c0_107 = arith.constant 0 : index
    %c0_108 = arith.constant 0 : index
    %82 = vector.load %arg5[%c1_106, %c0_107, %c0_108] : memref<2x36x4xbf16, #tpu.memory_space<vmem>>, vector<1x36x4xbf16>
    %83 = vector.shape_cast %82 : vector<1x36x4xbf16> to vector<36x4xbf16>
    %cst_109 = arith.constant dense<0.000000e+00> : vector<256x4xf32>
    %84 = tpu.matmul %81, %83, %cst_109 {dimension_numbers = #tpu.dot_dimension_numbers<[1], [0], [0], [1], [0, 0, 1, 1], [], []>} : vector<256x36xbf16>, vector<36x4xbf16>, vector<256x4xf32> -> vector<256x4xf32>
    %85 = tpu.concatenate %61, %84 in 1 : vector<256x4xf32>, vector<256x4xf32> -> vector<256x8xf32>
    %c0_110 = arith.constant 0 : index
    %c0_111 = arith.constant 0 : index
    %86 = vector.load %arg6[%c0_110, %c0_111] : memref<1x8xf32, #tpu.memory_space<vmem>>, vector<1x8xf32>
    %87 = vector.broadcast %86 : vector<1x8xf32> to vector<256x8xf32>
    %88 = arith.mulf %85, %87 : vector<256x8xf32>
    %c0_112 = arith.constant 0 : index
    %c0_113 = arith.constant 0 : index
    %89 = vector.load %arg7[%c0_112, %c0_113] : memref<1x8xf32, #tpu.memory_space<vmem>>, vector<1x8xf32>
    %90 = vector.broadcast %89 : vector<1x8xf32> to vector<256x8xf32>
    %91 = arith.addf %88, %90 : vector<256x8xf32>
    %cst_114 = arith.constant 0.000000e+00 : f32
    %92 = vector.broadcast %cst_114 : f32 to vector<256x8xf32>
    %93 = arith.maximumf %91, %92 : vector<256x8xf32>
    %94 = vector.shape_cast %93 : vector<256x8xf32> to vector<16x16x8xf32>
    %c1_115 = arith.constant 1 : index
    %c1_116 = arith.constant 1 : index
    %c0_117 = arith.constant 0 : index
    %95 = vector.load %arg21[%c1_115, %c1_116, %c0_117] : memref<18x18x8xf32, #tpu.memory_space<vmem>>, vector<16x16x8xf32>
    tpu.vector_store %arg21[%c1_115, %c1_116, %c0_117], %94 {strides = array<i32>} : memref<18x18x8xf32, #tpu.memory_space<vmem>>, vector<16x16x8xf32>,
    %c0_118 = arith.constant 0 : index
    %c0_119 = arith.constant 0 : index
    %c0_120 = arith.constant 0 : index
    %96 = vector.load %arg21[%c0_118, %c0_119, %c0_120] : memref<18x18x8xf32, #tpu.memory_space<vmem>>, vector<16x16x8xf32>
    %97 = vector.shape_cast %96 : vector<16x16x8xf32> to vector<256x8xf32>
    %c0_121 = arith.constant 0 : index
    %c1_122 = arith.constant 1 : index
    %c0_123 = arith.constant 0 : index
    %98 = vector.load %arg21[%c0_121, %c1_122, %c0_123] : memref<18x18x8xf32, #tpu.memory_space<vmem>>, vector<16x16x8xf32>
    %99 = vector.shape_cast %98 : vector<16x16x8xf32> to vector<256x8xf32>
    %c0_124 = arith.constant 0 : index
    %c2_125 = arith.constant 2 : index
    %c0_126 = arith.constant 0 : index
    %100 = vector.load %arg21[%c0_124, %c2_125, %c0_126] : memref<18x18x8xf32, #tpu.memory_space<vmem>>, vector<16x16x8xf32>
    %101 = vector.shape_cast %100 : vector<16x16x8xf32> to vector<256x8xf32>
    %c1_127 = arith.constant 1 : index
    %c0_128 = arith.constant 0 : index
    %c0_129 = arith.constant 0 : index
    %102 = vector.load %arg21[%c1_127, %c0_128, %c0_129] : memref<18x18x8xf32, #tpu.memory_space<vmem>>, vector<16x16x8xf32>
    %103 = vector.shape_cast %102 : vector<16x16x8xf32> to vector<256x8xf32>
    %c1_130 = arith.constant 1 : index
    %c1_131 = arith.constant 1 : index
    %c0_132 = arith.constant 0 : index
    %104 = vector.load %arg21[%c1_130, %c1_131, %c0_132] : memref<18x18x8xf32, #tpu.memory_space<vmem>>, vector<16x16x8xf32>
    %105 = vector.shape_cast %104 : vector<16x16x8xf32> to vector<256x8xf32>
    %c1_133 = arith.constant 1 : index
    %c2_134 = arith.constant 2 : index
    %c0_135 = arith.constant 0 : index
    %106 = vector.load %arg21[%c1_133, %c2_134, %c0_135] : memref<18x18x8xf32, #tpu.memory_space<vmem>>, vector<16x16x8xf32>
    %107 = vector.shape_cast %106 : vector<16x16x8xf32> to vector<256x8xf32>
    %c2_136 = arith.constant 2 : index
    %c0_137 = arith.constant 0 : index
    %c0_138 = arith.constant 0 : index
    %108 = vector.load %arg21[%c2_136, %c0_137, %c0_138] : memref<18x18x8xf32, #tpu.memory_space<vmem>>, vector<16x16x8xf32>
    %109 = vector.shape_cast %108 : vector<16x16x8xf32> to vector<256x8xf32>
    %c2_139 = arith.constant 2 : index
    %c1_140 = arith.constant 1 : index
    %c0_141 = arith.constant 0 : index
    %110 = vector.load %arg21[%c2_139, %c1_140, %c0_141] : memref<18x18x8xf32, #tpu.memory_space<vmem>>, vector<16x16x8xf32>
    %111 = vector.shape_cast %110 : vector<16x16x8xf32> to vector<256x8xf32>
    %c2_142 = arith.constant 2 : index
    %c2_143 = arith.constant 2 : index
    %c0_144 = arith.constant 0 : index
    %112 = vector.load %arg21[%c2_142, %c2_143, %c0_144] : memref<18x18x8xf32, #tpu.memory_space<vmem>>, vector<16x16x8xf32>
    %113 = vector.shape_cast %112 : vector<16x16x8xf32> to vector<256x8xf32>
    %114 = tpu.concatenate %97, %99, %101, %103, %105, %107, %109, %111, %113 in 1 : vector<256x8xf32>, vector<256x8xf32>, vector<256x8xf32>, vector<256x8xf32>, vector<256x8xf32>, vector<256x8xf32>, vector<256x8xf32>, vector<256x8xf32>, vector<256x8xf32> -> vector<256x72xf32>
    %115 = arith.truncf %114 : vector<256x72xf32> to vector<256x72xbf16>
    %c0_145 = arith.constant 0 : index
    %c0_146 = arith.constant 0 : index
    %116 = vector.load %arg8[%c0_145, %c0_146] : memref<72x8xbf16, #tpu.memory_space<vmem>>, vector<72x8xbf16>
    %cst_147 = arith.constant dense<0.000000e+00> : vector<256x8xf32>
    %117 = tpu.matmul %115, %116, %cst_147 {dimension_numbers = #tpu.dot_dimension_numbers<[1], [0], [0], [1], [0, 0, 1, 1], [], []>} : vector<256x72xbf16>, vector<72x8xbf16>, vector<256x8xf32> -> vector<256x8xf32>
    %c0_148 = arith.constant 0 : index
    %c0_149 = arith.constant 0 : index
    %118 = vector.load %arg9[%c0_148, %c0_149] : memref<1x8xf32, #tpu.memory_space<vmem>>, vector<1x8xf32>
    %119 = vector.broadcast %118 : vector<1x8xf32> to vector<256x8xf32>
    %120 = arith.mulf %117, %119 : vector<256x8xf32>
    %c0_150 = arith.constant 0 : index
    %c0_151 = arith.constant 0 : index
    %121 = vector.load %arg10[%c0_150, %c0_151] : memref<1x8xf32, #tpu.memory_space<vmem>>, vector<1x8xf32>
    %122 = vector.broadcast %121 : vector<1x8xf32> to vector<256x8xf32>
    %123 = arith.addf %120, %122 : vector<256x8xf32>
    %cst_152 = arith.constant dense<0.000000e+00> : vector<8xf32>
    %124 = vector.multi_reduction <add>, %123, %cst_152 [0] : vector<256x8xf32> to vector<8xf32>
    %125 = vector.shape_cast %124 : vector<8xf32> to vector<1x8xf32>
    %cst_153 = arith.constant 2.560000e+02 : f32
    %126 = vector.broadcast %cst_153 : f32 to vector<1x8xf32>
    %127 = arith.divf %125, %126 : vector<1x8xf32>
    %c0_154 = arith.constant 0 : index
    %c0_155 = arith.constant 0 : index
    %128 = vector.load %arg11[%c0_154, %c0_155] : memref<8x4xf32, #tpu.memory_space<vmem>>, vector<8x4xf32>
    %cst_156 = arith.constant dense<0.000000e+00> : vector<1x4xf32>
    %129 = tpu.matmul %127, %128, %cst_156 {dimension_numbers = #tpu.dot_dimension_numbers<[1], [0], [0], [1], [0, 0, 1, 1], [], []>} : vector<1x8xf32>, vector<8x4xf32>, vector<1x4xf32> -> vector<1x4xf32>
    %c0_157 = arith.constant 0 : index
    %c0_158 = arith.constant 0 : index
    %130 = vector.load %arg12[%c0_157, %c0_158] : memref<1x4xf32, #tpu.memory_space<vmem>>, vector<1x4xf32>
    %131 = arith.addf %129, %130 : vector<1x4xf32>
    %cst_159 = arith.constant 0.000000e+00 : f32
    %132 = vector.broadcast %cst_159 : f32 to vector<1x4xf32>
    %133 = arith.maximumf %131, %132 : vector<1x4xf32>
    %c0_160 = arith.constant 0 : index
    %c0_161 = arith.constant 0 : index
    %134 = vector.load %arg13[%c0_160, %c0_161] : memref<4x8xf32, #tpu.memory_space<vmem>>, vector<4x8xf32>
    %cst_162 = arith.constant dense<0.000000e+00> : vector<1x8xf32>
    %135 = tpu.matmul %133, %134, %cst_162 {dimension_numbers = #tpu.dot_dimension_numbers<[1], [0], [0], [1], [0, 0, 1, 1], [], []>} : vector<1x4xf32>, vector<4x8xf32>, vector<1x8xf32> -> vector<1x8xf32>
    %c0_163 = arith.constant 0 : index
    %c0_164 = arith.constant 0 : index
    %136 = vector.load %arg14[%c0_163, %c0_164] : memref<1x8xf32, #tpu.memory_space<vmem>>, vector<1x8xf32>
    %137 = arith.addf %135, %136 : vector<1x8xf32>
    %138 = arith.negf %137 : vector<1x8xf32>
    %139 = math.exp %138 : vector<1x8xf32>
    %cst_165 = arith.constant 1.000000e+00 : f32
    %140 = vector.broadcast %cst_165 : f32 to vector<1x8xf32>
    %141 = arith.addf %140, %139 : vector<1x8xf32>
    %142 = arith.divf %140, %141 : vector<1x8xf32>
    %c0_166 = arith.constant 0 : index
    %c0_167 = arith.constant 0 : index
    %143 = vector.load %arg15[%c0_166, %c0_167] : memref<1x8xf32, #tpu.memory_space<vmem>>, vector<1x8xf32>
    %144 = vector.broadcast %143 : vector<1x8xf32> to vector<256x8xf32>
    %145 = arith.mulf %123, %144 : vector<256x8xf32>
    %cst_168 = arith.constant dense<0.000000e+00> : vector<256xf32>
    %146 = vector.multi_reduction <add>, %145, %cst_168 [1] : vector<256x8xf32> to vector<256xf32>
    %147 = vector.shape_cast %146 : vector<256xf32> to vector<256x1xf32>
    %c0_169 = arith.constant 0 : index
    %c0_170 = arith.constant 0 : index
    %148 = vector.load %arg16[%c0_169, %c0_170] : memref<1x1xf32, #tpu.memory_space<vmem>>, vector<1x1xf32>
    %149 = vector.broadcast %148 : vector<1x1xf32> to vector<256x1xf32>
    %150 = arith.addf %147, %149 : vector<256x1xf32>
    %151 = arith.negf %150 : vector<256x1xf32>
    %152 = math.exp %151 : vector<256x1xf32>
    %cst_171 = arith.constant 1.000000e+00 : f32
    %153 = vector.broadcast %cst_171 : f32 to vector<256x1xf32>
    %154 = arith.addf %153, %152 : vector<256x1xf32>
    %155 = arith.divf %153, %154 : vector<256x1xf32>
    %156 = vector.broadcast %142 : vector<1x8xf32> to vector<256x8xf32>
    %157 = arith.mulf %123, %156 : vector<256x8xf32>
    %158 = vector.broadcast %155 : vector<256x1xf32> to vector<256x8xf32>
    %159 = arith.mulf %123, %158 : vector<256x8xf32>
    %160 = arith.addf %157, %159 : vector<256x8xf32>
    %161 = vector.shape_cast %1 : vector<16x16x4xf32> to vector<256x4xf32>
    %162 = arith.truncf %161 : vector<256x4xf32> to vector<256x4xbf16>
    %c0_172 = arith.constant 0 : index
    %c0_173 = arith.constant 0 : index
    %163 = vector.load %arg17[%c0_172, %c0_173] : memref<4x8xbf16, #tpu.memory_space<vmem>>, vector<4x8xbf16>
    %cst_174 = arith.constant dense<0.000000e+00> : vector<256x8xf32>
    %164 = tpu.matmul %162, %163, %cst_174 {dimension_numbers = #tpu.dot_dimension_numbers<[1], [0], [0], [1], [0, 0, 1, 1], [], []>} : vector<256x4xbf16>, vector<4x8xbf16>, vector<256x8xf32> -> vector<256x8xf32>
    %c0_175 = arith.constant 0 : index
    %c0_176 = arith.constant 0 : index
    %165 = vector.load %arg18[%c0_175, %c0_176] : memref<1x8xf32, #tpu.memory_space<vmem>>, vector<1x8xf32>
    %166 = vector.broadcast %165 : vector<1x8xf32> to vector<256x8xf32>
    %167 = arith.addf %164, %166 : vector<256x8xf32>
    %168 = arith.addf %160, %167 : vector<256x8xf32>
    %cst_177 = arith.constant 0.000000e+00 : f32
    %169 = vector.broadcast %cst_177 : f32 to vector<256x8xf32>
    %170 = arith.maximumf %168, %169 : vector<256x8xf32>
    %171 = vector.shape_cast %170 : vector<256x8xf32> to vector<1x256x8xf32>
    %c0_178 = arith.constant 0 : index
    %c0_179 = arith.constant 0 : index
    %c0_180 = arith.constant 0 : index
    %172 = vector.load %arg19[%c0_178, %c0_179, %c0_180] : memref<1x256x8xf32, #tpu.memory_space<vmem>>, vector<1x256x8xf32>
    tpu.vector_store %arg19[%c0_178, %c0_179, %c0_180], %171 {strides = array<i32>} : memref<1x256x8xf32, #tpu.memory_space<vmem>>, vector<1x256x8xf32>,
    return
  }
  func.func @transform_0(%arg0: i32) -> (i32, i32, i32, i32) {
    %c0_i32 = arith.constant 0 : i32
    %c0_i32_0 = arith.constant 0 : i32
    %c0_i32_1 = arith.constant 0 : i32
    %c0_i32_2 = arith.constant 0 : i32
    return %arg0, %c0_i32, %c0_i32_0, %c0_i32_1 : i32, i32, i32, i32
  }
  func.func @transform_1(%arg0: i32) -> (i32, i32) {
    %c0_i32 = arith.constant 0 : i32
    %c0_i32_0 = arith.constant 0 : i32
    %c0_i32_1 = arith.constant 0 : i32
    return %c0_i32, %c0_i32_0 : i32, i32
  }
  func.func @transform_2(%arg0: i32) -> (i32, i32) {
    %c0_i32 = arith.constant 0 : i32
    %c0_i32_0 = arith.constant 0 : i32
    %c0_i32_1 = arith.constant 0 : i32
    return %c0_i32, %c0_i32_0 : i32, i32
  }
  func.func @transform_3(%arg0: i32) -> (i32, i32) {
    %c0_i32 = arith.constant 0 : i32
    %c0_i32_0 = arith.constant 0 : i32
    %c0_i32_1 = arith.constant 0 : i32
    return %c0_i32, %c0_i32_0 : i32, i32
  }
  func.func @transform_4(%arg0: i32) -> (i32, i32, i32) {
    %c0_i32 = arith.constant 0 : i32
    %c0_i32_0 = arith.constant 0 : i32
    %c0_i32_1 = arith.constant 0 : i32
    %c0_i32_2 = arith.constant 0 : i32
    return %c0_i32, %c0_i32_0, %c0_i32_1 : i32, i32, i32
  }
  func.func @transform_5(%arg0: i32) -> (i32, i32) {
    %c0_i32 = arith.constant 0 : i32
    %c0_i32_0 = arith.constant 0 : i32
    %c0_i32_1 = arith.constant 0 : i32
    return %c0_i32, %c0_i32_0 : i32, i32
  }
  func.func @transform_6(%arg0: i32) -> (i32, i32) {
    %c0_i32 = arith.constant 0 : i32
    %c0_i32_0 = arith.constant 0 : i32
    %c0_i32_1 = arith.constant 0 : i32
    return %c0_i32, %c0_i32_0 : i32, i32
  }
  func.func @transform_7(%arg0: i32) -> (i32, i32) {
    %c0_i32 = arith.constant 0 : i32
    %c0_i32_0 = arith.constant 0 : i32
    %c0_i32_1 = arith.constant 0 : i32
    return %c0_i32, %c0_i32_0 : i32, i32
  }
  func.func @transform_8(%arg0: i32) -> (i32, i32) {
    %c0_i32 = arith.constant 0 : i32
    %c0_i32_0 = arith.constant 0 : i32
    %c0_i32_1 = arith.constant 0 : i32
    return %c0_i32, %c0_i32_0 : i32, i32
  }
  func.func @transform_9(%arg0: i32) -> (i32, i32) {
    %c0_i32 = arith.constant 0 : i32
    %c0_i32_0 = arith.constant 0 : i32
    %c0_i32_1 = arith.constant 0 : i32
    return %c0_i32, %c0_i32_0 : i32, i32
  }
  func.func @transform_10(%arg0: i32) -> (i32, i32) {
    %c0_i32 = arith.constant 0 : i32
    %c0_i32_0 = arith.constant 0 : i32
    %c0_i32_1 = arith.constant 0 : i32
    return %c0_i32, %c0_i32_0 : i32, i32
  }
  func.func @transform_11(%arg0: i32) -> (i32, i32) {
    %c0_i32 = arith.constant 0 : i32
    %c0_i32_0 = arith.constant 0 : i32
    %c0_i32_1 = arith.constant 0 : i32
    return %c0_i32, %c0_i32_0 : i32, i32
  }
  func.func @transform_12(%arg0: i32) -> (i32, i32) {
    %c0_i32 = arith.constant 0 : i32
    %c0_i32_0 = arith.constant 0 : i32
    %c0_i32_1 = arith.constant 0 : i32
    return %c0_i32, %c0_i32_0 : i32, i32
  }
  func.func @transform_13(%arg0: i32) -> (i32, i32) {
    %c0_i32 = arith.constant 0 : i32
    %c0_i32_0 = arith.constant 0 : i32
    %c0_i32_1 = arith.constant 0 : i32
    return %c0_i32, %c0_i32_0 : i32, i32
  }
  func.func @transform_14(%arg0: i32) -> (i32, i32) {
    %c0_i32 = arith.constant 0 : i32
    %c0_i32_0 = arith.constant 0 : i32
    %c0_i32_1 = arith.constant 0 : i32
    return %c0_i32, %c0_i32_0 : i32, i32
  }
  func.func @transform_15(%arg0: i32) -> (i32, i32) {
    %c0_i32 = arith.constant 0 : i32
    %c0_i32_0 = arith.constant 0 : i32
    %c0_i32_1 = arith.constant 0 : i32
    return %c0_i32, %c0_i32_0 : i32, i32
  }
  func.func @transform_16(%arg0: i32) -> (i32, i32) {
    %c0_i32 = arith.constant 0 : i32
    %c0_i32_0 = arith.constant 0 : i32
    %c0_i32_1 = arith.constant 0 : i32
    return %c0_i32, %c0_i32_0 : i32, i32
  }
  func.func @transform_17(%arg0: i32) -> (i32, i32) {
    %c0_i32 = arith.constant 0 : i32
    %c0_i32_0 = arith.constant 0 : i32
    %c0_i32_1 = arith.constant 0 : i32
    return %c0_i32, %c0_i32_0 : i32, i32
  }
  func.func @transform_18(%arg0: i32) -> (i32, i32, i32) {
    %c0_i32 = arith.constant 0 : i32
    %c0_i32_0 = arith.constant 0 : i32
    %c0_i32_1 = arith.constant 0 : i32
    return %arg0, %c0_i32, %c0_i32_0 : i32, i32, i32
  }
}

</mosaic_0001>

<bundles_post_ra>
// kernel: tpu_custom_call.1
= control target key start
LH: loop header
LB: loop body
LE: loop exit
PB: predicated region body
PF: predicated region fallthrough
CT: control target
= control target key end

     0   :  { %s12757_s29 = smov 0   ;;  %s18869_s0 = inlined_call_operand.vmem [shape: f32[2,16,16,4], index: 0, kind: input, shape index: {}]   ;;  %s18870_s1 = inlined_call_operand.vmem [shape: bf16[36,8], index: 1, kind: input, shape index: {}]   ;;  %s18871_s2 = inlined_call_operand.vmem [shape: f32[1,8], index: 2, kind: input, shape index: {}]   ;;  %s18872_s3 = inlined_call_operand.vmem [shape: f32[1,8], index: 3, kind: input, shape index: {}]   ;;  %s18873_s4 = inlined_call_operand.vmem [shape: bf16[2,36,4], index: 4, kind: input, shape index: {}]   ;;  %s18874_s5 = inlined_call_operand.vmem [shape: f32[1,8], index: 5, kind: input, shape index: {}]   ;;  %s18875_s6 = inlined_call_operand.vmem [shape: f32[1,8], index: 6, kind: input, shape index: {}]   ;;  %s18876_s7 = inlined_call_operand.vmem [shape: bf16[72,8], index: 7, kind: input, shape index: {}]   ;;  %s18877_s8 = inlined_call_operand.vmem [shape: f32[1,8], index: 8, kind: input, shape index: {}]   ;;  %s18878_s9 = inlined_call_operand.vmem [shape: f32[1,8], index: 9, kind: input, shape index: {}]   ;;  %s18879_s10 = inlined_call_operand.vmem [shape: f32[8,4], index: 10, kind: input, shape index: {}]   ;;  %s18880_s11 = inlined_call_operand.vmem [shape: f32[1,4], index: 11, kind: input, shape index: {}]   ;;  %s18881_s12 = inlined_call_operand.vmem [shape: f32[4,8], index: 12, kind: input, shape index: {}]   ;;  %s18882_s13 = inlined_call_operand.vmem [shape: f32[1,8], index: 13, kind: input, shape index: {}]   ;;  %s18883_s14 = inlined_call_operand.vmem [shape: f32[1,8], index: 14, kind: input, shape index: {}]   ;;  %s18884_s15 = inlined_call_operand.<no memory space> [shape: f32[1,1], index: 15, kind: input, shape index: {}]   ;;  %s18885_s16 = inlined_call_operand.vmem [shape: bf16[4,8], index: 16, kind: input, shape index: {}]   ;;  %s18886_s17 = inlined_call_operand.vmem [shape: f32[1,8], index: 17, kind: input, shape index: {}]   ;;  %s18887_s18 = inlined_call_operand.vmem [shape: f32[2,256,8], index: 18, kind: output, shape index: {}]  }
   0x1   :  { %19146 = sst [smem:[#allocation129_spill]] %s18869_s0  ;;  %v23_v0 = vstv %s18884_s15 }
   0x2   :  { %19147 = sst [smem:[#allocation130_spill]] %s18870_s1  ;;  %24 = vst [vmem:[#allocation4] sm:$0x1] %v23_v0 }
   0x3   :  { %19148 = sst [smem:[#allocation131_spill]] %s18871_s2 }
   0x4 LB: > { %s9308_s30 = sadd.s32 4294967295, %s12641_s29   ;;  %p9312_p0 = scmp.ge.s32.totalorder %s12641_s29, 1  ;;  %s12641_s29 = sphi %s12757_s29, %s30_s29  }
   0x5   : > { %p514_p1 = scmp.lt.s32.totalorder %s12641_s29, 3 }
   0x7   : > { %p515_p2 = pnand %p9312_p0, %p514_p1 }
   0x9   : > { %518 = sbr.rel (%p515_p2) target bundleno = 2593 (0xa21), region = 92 }
  0x10   : > { %vm611_vm0 = vcmask 31744   ;;  %vm614_vm1 = vcmask 25600   ;;  %p12767_p3 = scmp.lt.s32.totalorder %s9308_s30, 1  ;;  %v18889_v1 = vmov 0.0   ;;  %s19150_s20 = sld [smem:[#allocation129_spill]]  ;;  %vm2045_vm2 = vcmask 64512  }
  0x11   : > { %612 = vst.msk [vmem:[#allocation2] sm:$0xff] %vm611_vm0, %v18889_v1  ;;  %613 = vst.msk [vmem:[#allocation2 + $0x8] sm:$0xff] %vm611_vm0, %v18889_v1  ;;  %s12644_s22 = smov 4   ;;  %s12645_s2 = smov 8   ;;  %vm2361_vm3 = vcmask 1041408   ;;  %vm2078_vm4 = vcmask 97280  }
  0x12   : > { %615 = vst.msk [vmem:[#allocation2 + $0x10] sm:$0x3] %vm614_vm1, %v18889_v1  ;;  %618 = vst.msk [vmem:[#allocation2 + $0x28] sm:$0x3] %vm614_vm1, %v18889_v1  ;;  %s19790_s30 = smov (!%p12767_p3, %s9308_s30), 1  ;;  %s12646_s23 = smov 12  }
  0x13   : > { %616 = vst.msk [vmem:[#allocation2 + $0x18] sm:$0xff] %vm611_vm0, %v18889_v1  ;;  %617 = vst.msk [vmem:[#allocation2 + $0x20] sm:$0xff] %vm611_vm0, %v18889_v1  ;;  %s18992_s0 = sshll.u32 %s19790_s30, 8  ;;  %s12647_s24 = smov 16   ;;  %vm2111_vm5 = vcmask 130048   ;;  %vm2144_vm6 = vcmask 162816  }
  0x14   : > { %619 = vst.msk [vmem:[#allocation2 + $0x30] sm:$0xff] %vm611_vm0, %v18889_v1  ;;  %620 = vst.msk [vmem:[#allocation2 + $0x38] sm:$0xff] %vm611_vm0, %v18889_v1  ;;  %s12648_s25 = smov 20   ;;  %s12649_s26 = smov 24   ;;  %vm2177_vm7 = vcmask 195584   ;;  %vm2210_vm8 = vcmask 228352  }
  0x15   : > { %621 = vst.msk [vmem:[#allocation2 + $0x40] sm:$0x3] %vm614_vm1, %v18889_v1  ;;  %624 = vst.msk [vmem:[#allocation2 + $0x58] sm:$0x3] %vm614_vm1, %v18889_v1  ;;  %s12650_s27 = smov 28   ;;  %s19215_s19 = sld [smem:[#allocation130_spill]] }
  0x16   : > { %622 = vst.msk [vmem:[#allocation2 + $0x48] sm:$0xff] %vm611_vm0, %v18889_v1  ;;  %623 = vst.msk [vmem:[#allocation2 + $0x50] sm:$0xff] %vm611_vm0, %v18889_v1  ;;  %s12891_s21 = scalar_lea.vmem %s19150_s20, %s18992_s0  ;;  %s12651_s15 = smov 32   ;;  %vm2243_vm9 = vcmask 261120   ;;  %vm2312_vm10 = vcmask 293888   ;;  %vm2638_vm11 = vcmask 58368  }
  0x17   : > { %625 = vst.msk [vmem:[#allocation2 + $0x60] sm:$0xff] %vm611_vm0, %v18889_v1  ;;  %626 = vst.msk [vmem:[#allocation2 + $0x68] sm:$0xff] %vm611_vm0, %v18889_v1  ;;  %v12894_v2 = vld [vmem:[%s12891_s21 + $0x10] sm:$0xff]  ;;  %v12897_v3 = vld [vmem:[%s12891_s21 + $0x18] sm:$0xff]  ;;  %s12652_s1 = smov 124   ;;  %vm7821_vm12 = vcmask 1043456  }
  0x18   : > { %627 = vst.msk [vmem:[#allocation2 + $0x70] sm:$0x3] %vm614_vm1, %v18889_v1  ;;  %630 = vst.msk [vmem:[#allocation2 + $0x88] sm:$0x3] %vm614_vm1, %v18889_v1  ;;  %v12900_v4 = vld [vmem:[%s12891_s21] sm:$0xff]  ;;  %v12907_v5 = vld [vmem:[%s12891_s21 + $0x8] sm:$0xff] }
  0x19   : > { %628 = vst.msk [vmem:[#allocation2 + $0x78] sm:$0xff] %vm611_vm0, %v18889_v1  ;;  %629 = vst.msk [vmem:[#allocation2 + $0x80] sm:$0xff] %vm611_vm0, %v18889_v1  ;;  %v12912_v6 = vld [vmem:[%s12891_s21 + $0x20] sm:$0xff]  ;;  %v12915_v7 = vld [vmem:[%s12891_s21 + $0x28] sm:$0xff]  ;;  %s12656_s20 = smov 64   ;;  %vm7588_vm13 = vcmask 326656  }
  0x1a   : > { %631 = vst.msk [vmem:[#allocation2 + $0x90] sm:$0xff] %vm611_vm0, %v18889_v1  ;;  %632 = vst.msk [vmem:[#allocation2 + $0x98] sm:$0xff] %vm611_vm0, %v18889_v1  ;;  %v732_v8 = vld [vmem:[#allocation2 + $0x1] sm:$0xff]  ;;  %v733_v9 = vld [vmem:[#allocation2 + $0x9] sm:$0xff]  ;;  %vm7621_vm14 = vcmask 392192   ;;  %vm7654_vm15 = vcmask 457728  }
  0x1b   : > { %633 = vst.msk [vmem:[#allocation2 + $0xa0] sm:$0x3] %vm614_vm1, %v18889_v1  ;;  %636 = vst.msk [vmem:[#allocation2 + $0xb8] sm:$0x3] %vm614_vm1, %v18889_v1  ;;  %v12924_v10 = vld [vmem:[%s12891_s21 + $0x30] sm:$0xff]  ;;  %v9800_v11 = vpack.i.bf16 %v733_v9, %v732_v8  ;;  %v12927_v12 = vld [vmem:[%s12891_s21 + $0x38] sm:$0xff] }
  0x1c   : > { %634 = vst.msk [vmem:[#allocation2 + $0xa8] sm:$0xff] %vm611_vm0, %v18889_v1  ;;  %635 = vst.msk [vmem:[#allocation2 + $0xb0] sm:$0xff] %vm611_vm0, %v18889_v1  ;;  %v12932_v13 = vld [vmem:[%s12891_s21 + $0x40] sm:$0xff]  ;;  %v12935_v14 = vld [vmem:[%s12891_s21 + $0x48] sm:$0xff] }
  0x1d   : > { %637 = vst.msk [vmem:[#allocation2 + $0xc0] sm:$0xff] %vm611_vm0, %v18889_v1  ;;  %638 = vst.msk [vmem:[#allocation2 + $0xc8] sm:$0xff] %vm611_vm0, %v18889_v1  ;;  %v12944_v15 = vld [vmem:[%s12891_s21 + $0x50] sm:$0xff]  ;;  %v12947_v16 = vld [vmem:[%s12891_s21 + $0x58] sm:$0xff]  ;;  %9801 = vrot.lane.b32.xlu0 %v9800_v11, %s12644_s22 }
  0x1e   : > { %639 = vst.msk [vmem:[#allocation2 + $0xd0] sm:$0x3] %vm614_vm1, %v18889_v1  ;;  %642 = vst.msk [vmem:[#allocation2 + $0xe8] sm:$0x3] %vm614_vm1, %v18889_v1  ;;  %v12950_v17 = vld [vmem:[%s12891_s21 + $0x60] sm:$0xff]  ;;  %v12958_v18 = vld [vmem:[%s12891_s21 + $0x68] sm:$0xff] }
  0x1f   : > { %640 = vst.msk [vmem:[#allocation2 + $0xd8] sm:$0xff] %vm611_vm0, %v18889_v1  ;;  %641 = vst.msk [vmem:[#allocation2 + $0xe0] sm:$0xff] %vm611_vm0, %v18889_v1  ;;  %v12963_v19 = vld [vmem:[%s12891_s21 + $0x70] sm:$0xff]  ;;  %v12966_v20 = vld [vmem:[%s12891_s21 + $0x78] sm:$0xff] }
  0x20   : > { %643 = vst.msk [vmem:[#allocation2 + $0xf0] sm:$0xff] %vm611_vm0, %v18889_v1  ;;  %644 = vst.msk [vmem:[#allocation2 + $0xf8] sm:$0xff] %vm611_vm0, %v18889_v1  ;;  %v12975_v21 = vld [vmem:[%s12891_s21 + $0x80] sm:$0xff]  ;;  %v12978_v22 = vld [vmem:[%s12891_s21 + $0x88] sm:$0xff] }
  0x21   : > { %645 = vst.msk [vmem:[#allocation2 + $0x100] sm:$0x3] %vm614_vm1, %v18889_v1  ;;  %648 = vst.msk [vmem:[#allocation2 + $0x118] sm:$0x3] %vm614_vm1, %v18889_v1  ;;  %v12981_v23 = vld [vmem:[%s12891_s21 + $0x90] sm:$0xff]  ;;  %v12988_v24 = vld [vmem:[%s12891_s21 + $0x98] sm:$0xff] }
  0x22   : > { %646 = vst.msk [vmem:[#allocation2 + $0x108] sm:$0xff] %vm611_vm0, %v18889_v1  ;;  %647 = vst.msk [vmem:[#allocation2 + $0x110] sm:$0xff] %vm611_vm0, %v18889_v1  ;;  %v12993_v25 = vld [vmem:[%s12891_s21 + $0xa0] sm:$0xff]  ;;  %v12996_v26 = vld [vmem:[%s12891_s21 + $0xa8] sm:$0xff] }
  0x23   : > { %649 = vst.msk [vmem:[#allocation2 + $0x120] sm:$0xff] %vm611_vm0, %v18889_v1  ;;  %650 = vst.msk [vmem:[#allocation2 + $0x128] sm:$0xff] %vm611_vm0, %v18889_v1  ;;  %v13009_v36 = vld [vmem:[%s12891_s21 + $0xb0] sm:$0xff]  ;;  %v13012_v37 = vld [vmem:[%s12891_s21 + $0xb8] sm:$0xff] }
  0x24   : > { %651 = vst.msk [vmem:[#allocation2 + $0x130] sm:$0x3] %vm614_vm1, %v18889_v1  ;;  %654 = vst.msk [vmem:[#allocation2 + $0x148] sm:$0x3] %vm614_vm1, %v18889_v1  ;;  %v13035_v51 = vld [vmem:[%s12891_s21 + $0xc0] sm:$0xff]  ;;  %v13038_v52 = vld [vmem:[%s12891_s21 + $0xc8] sm:$0xff] }
  0x25   : > { %652 = vst.msk [vmem:[#allocation2 + $0x138] sm:$0xff] %vm611_vm0, %v18889_v1  ;;  %653 = vst.msk [vmem:[#allocation2 + $0x140] sm:$0xff] %vm611_vm0, %v18889_v1  ;;  %v13041_v53 = vld [vmem:[%s12891_s21 + $0xd0] sm:$0xff]  ;;  %v13048_v54 = vld [vmem:[%s12891_s21 + $0xd8] sm:$0xff] }
  0x26   : > { %655 = vst.msk [vmem:[#allocation2 + $0x150] sm:$0xff] %vm611_vm0, %v18889_v1  ;;  %656 = vst.msk [vmem:[#allocation2 + $0x158] sm:$0xff] %vm611_vm0, %v18889_v1  ;;  %v13053_v55 = vld [vmem:[%s12891_s21 + $0xe0] sm:$0xff]  ;;  %v13056_v56 = vld [vmem:[%s12891_s21 + $0xe8] sm:$0xff] }
  0x27   : > { %657 = vst.msk [vmem:[#allocation2 + $0x160] sm:$0x3] %vm614_vm1, %v18889_v1  ;;  %660 = vst.msk [vmem:[#allocation2 + $0x178] sm:$0x3] %vm614_vm1, %v18889_v1 }
  0x28   : > { %658 = vst.msk [vmem:[#allocation2 + $0x168] sm:$0xff] %vm611_vm0, %v18889_v1  ;;  %659 = vst.msk [vmem:[#allocation2 + $0x170] sm:$0xff] %vm611_vm0, %v18889_v1 }
  0x29   : > { %661 = vst.msk [vmem:[#allocation2 + $0x180] sm:$0xff] %vm611_vm0, %v18889_v1  ;;  %662 = vst.msk [vmem:[#allocation2 + $0x188] sm:$0xff] %vm611_vm0, %v18889_v1 }
  0x2a   : > { %663 = vst.msk [vmem:[#allocation2 + $0x190] sm:$0x3] %vm614_vm1, %v18889_v1  ;;  %666 = vst.msk [vmem:[#allocation2 + $0x1a8] sm:$0x3] %vm614_vm1, %v18889_v1  ;;  %vm7687_vm1 = vcmask 523264  }
  0x2b   : > { %664 = vst.msk [vmem:[#allocation2 + $0x198] sm:$0xff] %vm611_vm0, %v18889_v1  ;;  %665 = vst.msk [vmem:[#allocation2 + $0x1a0] sm:$0xff] %vm611_vm0, %v18889_v1 }
  0x2c   : > { %19151 = vst [vmem:[#allocation5_spill] sm:$0xff] %v12894_v2  ;;  %19152 = vst [vmem:[#allocation6_spill] sm:$0xff] %v12897_v3 }
  0x2d   : > { %19153 = vst [vmem:[#allocation7_spill] sm:$0xff] %v12900_v4  ;;  %670 = vst.msk [vmem:[#allocation2 + $0x31] sm:$0xff] %vm611_vm0, %v12894_v2 }
  0x2e   : > { %671 = vst.msk [vmem:[#allocation2 + $0x39] sm:$0xff] %vm611_vm0, %v12897_v3  ;;  %19154 = vst [vmem:[#allocation8_spill] sm:$0xff] %v12907_v5 }
  0x2f   : > { %668 = vst.msk [vmem:[#allocation2 + $0x19] sm:$0xff] %vm611_vm0, %v12900_v4  ;;  %19155 = vst [vmem:[#allocation9_spill] sm:$0xff] %v12912_v6 }
  0x30   : > { %19156 = vst [vmem:[#allocation10_spill] sm:$0xff] %v12915_v7  ;;  %669 = vst.msk [vmem:[#allocation2 + $0x21] sm:$0xff] %vm611_vm0, %v12907_v5 }
  0x31   : > { %672 = vst.msk [vmem:[#allocation2 + $0x49] sm:$0xff] %vm611_vm0, %v12912_v6  ;;  %673 = vst.msk [vmem:[#allocation2 + $0x51] sm:$0xff] %vm611_vm0, %v12915_v7 }
  0x32   : > { %19157 = vst [vmem:[#allocation11_spill] sm:$0xff] %v12924_v10  ;;  %19158 = vst [vmem:[#allocation12_spill] sm:$0xff] %v12927_v12 }
  0x33   : > { %674 = vst.msk [vmem:[#allocation2 + $0x61] sm:$0xff] %vm611_vm0, %v12924_v10  ;;  %19159 = vst [vmem:[#allocation13_spill] sm:$0xff] %v12932_v13 }
  0x34   : > { %19160 = vst [vmem:[#allocation14_spill] sm:$0xff] %v12935_v14  ;;  %675 = vst.msk [vmem:[#allocation2 + $0x69] sm:$0xff] %vm611_vm0, %v12927_v12  ;;  %v736_v27 = vld [vmem:[#allocation2 + $0x31] sm:$0xff] }
  0x35   : > { %676 = vst.msk [vmem:[#allocation2 + $0x79] sm:$0xff] %vm611_vm0, %v12932_v13  ;;  %677 = vst.msk [vmem:[#allocation2 + $0x81] sm:$0xff] %vm611_vm0, %v12935_v14  ;;  %v737_v28 = vld [vmem:[#allocation2 + $0x39] sm:$0xff] }
  0x36   : > { %19161 = vst [vmem:[#allocation15_spill] sm:$0xff] %v12944_v15  ;;  %19162 = vst [vmem:[#allocation16_spill] sm:$0xff] %v12947_v16  ;;  %v734_v29 = vld [vmem:[#allocation2 + $0x19] sm:$0xff]  ;;  %v13004_v30 = vpack.i.bf16 %v737_v28, %v736_v27 }
  0x37   : > { %19163 = vst [vmem:[#allocation17_spill] sm:$0xff] %v12950_v17  ;;  %678 = vst.msk [vmem:[#allocation2 + $0x91] sm:$0xff] %vm611_vm0, %v12944_v15  ;;  %v735_v31 = vld [vmem:[#allocation2 + $0x21] sm:$0xff] }
  0x38   : > { %679 = vst.msk [vmem:[#allocation2 + $0x99] sm:$0xff] %vm611_vm0, %v12947_v16  ;;  %19164 = vst [vmem:[#allocation18_spill] sm:$0xff] %v12958_v18  ;;  %v738_v32 = vld [vmem:[#allocation2 + $0x49] sm:$0xff]  ;;  %v739_v33 = vld [vmem:[#allocation2 + $0x51] sm:$0xff]  ;;  %v13006_v34 = vpack.i.bf16 %v735_v31, %v734_v29  ;;  %9811 = vrot.lane.b32.xlu1 %v13004_v30, %s12644_s22 }
  0x39   : > { %680 = vst.msk [vmem:[#allocation2 + $0xa9] sm:$0xff] %vm611_vm0, %v12950_v17  ;;  %19165 = vst [vmem:[#allocation19_spill] sm:$0xff] %v12963_v19  ;;  %v13016_v38 = vpack.i.bf16 %v739_v33, %v738_v32 }
  0x3a   : > { %19166 = vst [vmem:[#allocation20_spill] sm:$0xff] %v12966_v20  ;;  %681 = vst.msk [vmem:[#allocation2 + $0xb1] sm:$0xff] %vm611_vm0, %v12958_v18  ;;  %v740_v35 = vld [vmem:[#allocation2 + $0x61] sm:$0xff]  ;;  %9806 = vrot.lane.b32.xlu0 %v13006_v34, %s12644_s22 }
  0x3b   : > { %682 = vst.msk [vmem:[#allocation2 + $0xc1] sm:$0xff] %vm611_vm0, %v12963_v19  ;;  %683 = vst.msk [vmem:[#allocation2 + $0xc9] sm:$0xff] %vm611_vm0, %v12966_v20  ;;  %v741_v39 = vld [vmem:[#allocation2 + $0x69] sm:$0xff] }
  0x3c   : > { %19167 = vst [vmem:[#allocation21_spill] sm:$0xff] %v12975_v21  ;;  %19168 = vst [vmem:[#allocation22_spill] sm:$0xff] %v12978_v22  ;;  %v13024_v40 = vpack.i.bf16 %v741_v39, %v740_v35  ;;  %v742_v41 = vld [vmem:[#allocation2 + $0x79] sm:$0xff]  ;;  %v743_v42 = vld [vmem:[#allocation2 + $0x81] sm:$0xff]  ;;  %9816 = vrot.lane.b32.xlu1 %v13016_v38, %s12644_s22 }
  0x3d   : > { %19169 = vst [vmem:[#allocation23_spill] sm:$0xff] %v12981_v23  ;;  %684 = vst.msk [vmem:[#allocation2 + $0xd9] sm:$0xff] %vm611_vm0, %v12975_v21  ;;  %v13028_v46 = vpack.i.bf16 %v743_v42, %v742_v41 }
  0x3e   : > { %685 = vst.msk [vmem:[#allocation2 + $0xe1] sm:$0xff] %vm611_vm0, %v12978_v22  ;;  %19170 = vst [vmem:[#allocation24_spill] sm:$0xff] %v12988_v24  ;;  %v744_v43 = vld [vmem:[#allocation2 + $0x91] sm:$0xff]  ;;  %9821 = vrot.lane.b32.xlu0 %v13024_v40, %s12644_s22 }
  0x3f   : > { %686 = vst.msk [vmem:[#allocation2 + $0xf1] sm:$0xff] %vm611_vm0, %v12981_v23  ;;  %19171 = vst [vmem:[#allocation25_spill] sm:$0xff] %v12993_v25  ;;  %v745_v44 = vld [vmem:[#allocation2 + $0x99] sm:$0xff] }
  0x40   : > { %19172 = vst [vmem:[#allocation26_spill] sm:$0xff] %v12996_v26  ;;  %687 = vst.msk [vmem:[#allocation2 + $0xf9] sm:$0xff] %vm611_vm0, %v12988_v24  ;;  %v746_v45 = vld [vmem:[#allocation2 + $0xa9] sm:$0xff]  ;;  %v13032_v50 = vpack.i.bf16 %v745_v44, %v744_v43  ;;  %9826 = vrot.lane.b32.xlu1 %v13028_v46, %s12644_s22  ;;  %v13292_v23 = vld [vmem:[#allocation2 + $0x98] sm:$0xff] }
  0x41   : > { %688 = vst.msk [vmem:[#allocation2 + $0x109] sm:$0xff] %vm611_vm0, %v12993_v25  ;;  %689 = vst.msk [vmem:[#allocation2 + $0x111] sm:$0xff] %vm611_vm0, %v12996_v26  ;;  %v747_v47 = vld [vmem:[#allocation2 + $0xb1] sm:$0xff]  ;;  %v764_v44 = vld [vmem:[#allocation2 + $0x2] sm:$0xff] }
  0x42   : > { %19173 = vst [vmem:[#allocation27_spill] sm:$0xff] %v13009_v36  ;;  %19174 = vst [vmem:[#allocation28_spill] sm:$0xff] %v13012_v37  ;;  %v748_v48 = vld [vmem:[#allocation2 + $0xc1] sm:$0xff]  ;;  %v749_v49 = vld [vmem:[#allocation2 + $0xc9] sm:$0xff]  ;;  %v13066_v57 = vpack.i.bf16 %v747_v47, %v746_v45  ;;  %9831 = vrot.lane.b32.xlu0 %v13032_v50, %s12644_s22 }
  0x43   : > { %690 = vst.msk [vmem:[#allocation2 + $0x121] sm:$0xff] %vm611_vm0, %v13009_v36  ;;  %691 = vst.msk [vmem:[#allocation2 + $0x129] sm:$0xff] %vm611_vm0, %v13012_v37  ;;  %v13070_v58 = vpack.i.bf16 %v749_v49, %v748_v48  ;;  %v765_v45 = vld [vmem:[#allocation2 + $0xa] sm:$0xff]  ;;  %v766_v49 = vld [vmem:[#allocation2 + $0x1a] sm:$0xff] }
  0x44   : > { %19175 = vst [vmem:[#allocation29_spill] sm:$0xff] %v13035_v51  ;;  %19176 = vst [vmem:[#allocation30_spill] sm:$0xff] %v13038_v52  ;;  %v750_v59 = vld [vmem:[#allocation2 + $0xd9] sm:$0xff]  ;;  %9836 = vrot.lane.b32.xlu1 %v13066_v57, %s12644_s22  ;;  %v9880_v48 = vpack.i.bf16 %v765_v45, %v764_v44  ;;  %v13272_v37 = vld [vmem:[#allocation2 + $0x68] sm:$0xff] }
  0x45   : > { %19177 = vst [vmem:[#allocation31_spill] sm:$0xff] %v13041_v53  ;;  %692 = vst.msk [vmem:[#allocation2 + $0x139] sm:$0xff] %vm611_vm0, %v13035_v51  ;;  %v751_v60 = vld [vmem:[#allocation2 + $0xe1] sm:$0xff]  ;;  %v776_v44 = vld [vmem:[#allocation2 + $0x92] sm:$0xff] }
  0x46   : > { %693 = vst.msk [vmem:[#allocation2 + $0x141] sm:$0xff] %vm611_vm0, %v13038_v52  ;;  %19178 = vst [vmem:[#allocation32_spill] sm:$0xff] %v13048_v54  ;;  %v752_v61 = vld [vmem:[#allocation2 + $0xf1] sm:$0xff]  ;;  %v13074_v63 = vpack.i.bf16 %v751_v60, %v750_v59  ;;  %9841 = vrot.lane.b32.xlu0 %v13070_v58, %s12644_s22  ;;  %v767_v59 = vld [vmem:[#allocation2 + $0x22] sm:$0xff] }
  0x47   : > { %694 = vst.msk [vmem:[#allocation2 + $0x151] sm:$0xff] %vm611_vm0, %v13041_v53  ;;  %19179 = vst [vmem:[#allocation33_spill] sm:$0xff] %v13053_v55  ;;  %v753_v62 = vld [vmem:[#allocation2 + $0xf9] sm:$0xff]  ;;  %v13257_v52 = vld [vmem:[#allocation2 + $0x50] sm:$0xff] }
  0x48   : > { %19180 = vst [vmem:[#allocation34_spill] sm:$0xff] %v13056_v56  ;;  %695 = vst.msk [vmem:[#allocation2 + $0x159] sm:$0xff] %vm611_vm0, %v13048_v54  ;;  %v13078_v0 = vpack.i.bf16 %v753_v62, %v752_v61  ;;  %v754_v8 = vld [vmem:[#allocation2 + $0x109] sm:$0xff]  ;;  %v755_v9 = vld [vmem:[#allocation2 + $0x111] sm:$0xff]  ;;  %9846 = vrot.lane.b32.xlu1 %v13074_v63, %s12644_s22  ;;  %v13176_v62 = vpack.i.bf16 %v767_v59, %v766_v49 }
  0x49   : > { %696 = vst.msk [vmem:[#allocation2 + $0x169] sm:$0xff] %vm611_vm0, %v13053_v55  ;;  %697 = vst.msk [vmem:[#allocation2 + $0x171] sm:$0xff] %vm611_vm0, %v13056_v56  ;;  %v13082_v28 = vpack.i.bf16 %v755_v9, %v754_v8  ;;  %v768_v60 = vld [vmem:[#allocation2 + $0x32] sm:$0xff]  ;;  %v769_v61 = vld [vmem:[#allocation2 + $0x3a] sm:$0xff] }
  0x4a   : > { %v756_v11 = vld [vmem:[#allocation2 + $0x121] sm:$0xff]  ;;  %v757_v27 = vld [vmem:[#allocation2 + $0x129] sm:$0xff]  ;;  %9851 = vrot.lane.b32.xlu0 %v13078_v0, %s12644_s22  ;;  %2636 = vst.msk [vmem:[#allocation3] sm:$0xff] %vm2045_vm2, %v18889_v1  ;;  %2637 = vst.msk [vmem:[#allocation3 + $0x8] sm:$0xff] %vm2045_vm2, %v18889_v1  ;;  %v13179_v8 = vpack.i.bf16 %v769_v61, %v768_v60 }
  0x4b   : > { %v13086_v29 = vpack.i.bf16 %v757_v27, %v756_v11  ;;  %2640 = vst.msk [vmem:[#allocation3 + $0x18] sm:$0xff] %vm2045_vm2, %v18889_v1  ;;  %2641 = vst.msk [vmem:[#allocation3 + $0x20] sm:$0xff] %vm2045_vm2, %v18889_v1  ;;  %v770_v9 = vld [vmem:[#allocation2 + $0x4a] sm:$0xff]  ;;  %v771_v11 = vld [vmem:[#allocation2 + $0x52] sm:$0xff] }
  0x4c   : > { %v758_v31 = vld [vmem:[#allocation2 + $0x139] sm:$0xff]  ;;  %2643 = vst.msk [vmem:[#allocation3 + $0x30] sm:$0xff] %vm2045_vm2, %v18889_v1  ;;  %2644 = vst.msk [vmem:[#allocation3 + $0x38] sm:$0xff] %vm2045_vm2, %v18889_v1  ;;  %9856 = vrot.lane.b32.xlu1 %v13082_v28, %s12644_s22  ;;  %v772_v27 = vld [vmem:[#allocation2 + $0x62] sm:$0xff] }
  0x4d   : > { %v759_v32 = vld [vmem:[#allocation2 + $0x141] sm:$0xff]  ;;  %2646 = vst.msk [vmem:[#allocation3 + $0x48] sm:$0xff] %vm2045_vm2, %v18889_v1  ;;  %2647 = vst.msk [vmem:[#allocation3 + $0x50] sm:$0xff] %vm2045_vm2, %v18889_v1  ;;  %v778_v60 = vld [vmem:[#allocation2 + $0xaa] sm:$0xff] }
  0x4e   : > { %v760_v33 = vld [vmem:[#allocation2 + $0x151] sm:$0xff]  ;;  %2649 = vst.msk [vmem:[#allocation3 + $0x60] sm:$0xff] %vm2045_vm2, %v18889_v1  ;;  %2650 = vst.msk [vmem:[#allocation3 + $0x68] sm:$0xff] %vm2045_vm2, %v18889_v1  ;;  %v13162_v39 = vpack.i.bf16 %v759_v32, %v758_v31  ;;  %9861 = vrot.lane.b32.xlu0 %v13086_v29, %s12644_s22  ;;  %v777_v45 = vld [vmem:[#allocation2 + $0x9a] sm:$0xff] }
  0x4f   : > { %v761_v35 = vld [vmem:[#allocation2 + $0x159] sm:$0xff]  ;;  %2652 = vst.msk [vmem:[#allocation3 + $0x78] sm:$0xff] %vm2045_vm2, %v18889_v1  ;;  %2653 = vst.msk [vmem:[#allocation3 + $0x80] sm:$0xff] %vm2045_vm2, %v18889_v1  ;;  %v773_v31 = vld [vmem:[#allocation2 + $0x6a] sm:$0xff]  ;;  %v13205_v59 = vpack.i.bf16 %v777_v45, %v776_v44 }
  0x50   : > { %2655 = vst.msk [vmem:[#allocation3 + $0x90] sm:$0xff] %vm2045_vm2, %v18889_v1  ;;  %2656 = vst.msk [vmem:[#allocation3 + $0x98] sm:$0xff] %vm2045_vm2, %v18889_v1  ;;  %v13166_v41 = vpack.i.bf16 %v761_v35, %v760_v33  ;;  %v762_v42 = vld [vmem:[#allocation2 + $0x169] sm:$0xff]  ;;  %v763_v43 = vld [vmem:[#allocation2 + $0x171] sm:$0xff]  ;;  %9866 = vrot.lane.b32.xlu1 %v13162_v39, %s12644_s22 }
  0x51   : > { %2658 = vst.msk [vmem:[#allocation3 + $0xa8] sm:$0xff] %vm2045_vm2, %v18889_v1  ;;  %2659 = vst.msk [vmem:[#allocation3 + $0xb0] sm:$0xff] %vm2045_vm2, %v18889_v1  ;;  %v13170_v47 = vpack.i.bf16 %v763_v43, %v762_v42  ;;  %v13182_v32 = vld [vmem:[%s12891_s21 + $0xf0] sm:$0xff]  ;;  %v13185_v33 = vld [vmem:[%s12891_s21 + $0xf8] sm:$0xff]  ;;  %v13193_v43 = vpack.i.bf16 %v771_v11, %v770_v9  ;;  %s19338_s21 = sld [smem:[#allocation131_spill]] }
  0x52   : > { %2661 = vst.msk [vmem:[#allocation3 + $0xc0] sm:$0xff] %vm2045_vm2, %v18889_v1  ;;  %2662 = vst.msk [vmem:[#allocation3 + $0xc8] sm:$0xff] %vm2045_vm2, %v18889_v1  ;;  %9871 = vrot.lane.b32.xlu0 %v13166_v41, %s12644_s22  ;;  %v774_v35 = vld [vmem:[#allocation2 + $0x7a] sm:$0xff]  ;;  %v775_v42 = vld [vmem:[#allocation2 + $0x82] sm:$0xff] }
  0x53   : > { %2664 = vst.msk [vmem:[#allocation3 + $0xd8] sm:$0xff] %vm2045_vm2, %v18889_v1  ;;  %2665 = vst.msk [vmem:[#allocation3 + $0xe0] sm:$0xff] %vm2045_vm2, %v18889_v1  ;;  %v13201_v49 = vpack.i.bf16 %v775_v42, %v774_v35  ;;  %v779_v61 = vld [vmem:[#allocation2 + $0xb2] sm:$0xff]  ;;  %v780_v9 = vld [vmem:[#allocation2 + $0xc2] sm:$0xff] }
  0x54   : > { %2667 = vst.msk [vmem:[#allocation3 + $0xf0] sm:$0xff] %vm2045_vm2, %v18889_v1  ;;  %2668 = vst.msk [vmem:[#allocation3 + $0xf8] sm:$0xff] %vm2045_vm2, %v18889_v1  ;;  %9876 = vrot.lane.b32.xlu1 %v13170_v47, %s12644_s22  ;;  %v781_v11 = vld [vmem:[#allocation2 + $0xca] sm:$0xff]  ;;  %v783_v35 = vld [vmem:[#allocation2 + $0xe2] sm:$0xff] }
  0x55   : > { %2670 = vst.msk [vmem:[#allocation3 + $0x108] sm:$0xff] %vm2045_vm2, %v18889_v1  ;;  %2671 = vst.msk [vmem:[#allocation3 + $0x110] sm:$0xff] %vm2045_vm2, %v18889_v1  ;;  %v784_v42 = vld [vmem:[#allocation2 + $0xf2] sm:$0xff]  ;;  %v789_v56 = vld [vmem:[#allocation2 + $0x12a] sm:$0xff] }
  0x56   : > { %2673 = vst.msk [vmem:[#allocation3 + $0x120] sm:$0xff] %vm2045_vm2, %v18889_v1  ;;  %2674 = vst.msk [vmem:[#allocation3 + $0x128] sm:$0xff] %vm2045_vm2, %v18889_v1  ;;  %9881 = vrot.lane.b32.xlu0 %v9880_v48, %s12645_s2  ;;  %v13197_v48 = vpack.i.bf16 %v773_v31, %v772_v27  ;;  %v13213_v27 = vpack.i.bf16 %v781_v11, %v780_v9  ;;  %v782_v31 = vld [vmem:[#allocation2 + $0xda] sm:$0xff]  ;;  %v792_v55 = vld [vmem:[#allocation2 + $0x152] sm:$0xff] }
  0x57   : > { %2676 = vst.msk [vmem:[#allocation3 + $0x138] sm:$0xff] %vm2045_vm2, %v18889_v1  ;;  %2677 = vst.msk [vmem:[#allocation3 + $0x140] sm:$0xff] %vm2045_vm2, %v18889_v1  ;;  %v13217_v44 = vpack.i.bf16 %v783_v35, %v782_v31  ;;  %v790_v31 = vld [vmem:[#allocation2 + $0x13a] sm:$0xff]  ;;  %v791_v35 = vld [vmem:[#allocation2 + $0x142] sm:$0xff] }
  0x58   : > { %2679 = vst.msk [vmem:[#allocation3 + $0x150] sm:$0xff] %vm2045_vm2, %v18889_v1  ;;  %2680 = vst.msk [vmem:[#allocation3 + $0x158] sm:$0xff] %vm2045_vm2, %v18889_v1  ;;  %9886 = vrot.lane.b32.xlu1 %v13176_v62, %s12645_s2  ;;  %v793_v54 = vld [vmem:[#allocation2 + $0x15a] sm:$0xff]  ;;  %v13290_v24 = vld [vmem:[#allocation2 + $0x90] sm:$0xff] }
  0x59   : > { %2682 = vst.msk [vmem:[#allocation3 + $0x168] sm:$0xff] %vm2045_vm2, %v18889_v1  ;;  %2683 = vst.msk [vmem:[#allocation3 + $0x170] sm:$0xff] %vm2045_vm2, %v18889_v1  ;;  %v13239_v53 = vld [vmem:[#allocation2 + $0x18] sm:$0xff]  ;;  %v13270_v51 = vld [vmem:[#allocation2 + $0x60] sm:$0xff]  ;;  %v13302_v20 = vpack.i.bf16 %v13292_v23, %v13290_v24 }
  0x5a   : > { %2685 = vst.msk [vmem:[#allocation3 + $0x180] sm:$0xff] %vm2045_vm2, %v18889_v1  ;;  %2686 = vst.msk [vmem:[#allocation3 + $0x188] sm:$0xff] %vm2045_vm2, %v18889_v1  ;;  %9891 = vrot.lane.b32.xlu0 %v13179_v8, %s12645_s2  ;;  %v13274_v36 = vld [vmem:[#allocation2 + $0x78] sm:$0xff]  ;;  %v13276_v26 = vld [vmem:[#allocation2 + $0x80] sm:$0xff]  ;;  %v13282_v25 = vpack.i.bf16 %v13272_v37, %v13270_v51 }
  0x5b   : > { %2688 = vst.msk [vmem:[#allocation3 + $0x198] sm:$0xff] %vm2045_vm2, %v18889_v1  ;;  %2689 = vst.msk [vmem:[#allocation3 + $0x1a0] sm:$0xff] %vm2045_vm2, %v18889_v1  ;;  %v13209_v1 = vpack.i.bf16 %v779_v61, %v778_v60  ;;  %v786_v60 = vld [vmem:[#allocation2 + $0x10a] sm:$0xff]  ;;  %v787_v61 = vld [vmem:[#allocation2 + $0x112] sm:$0xff] }
  0x5c   : > { %19181 = vst [vmem:[#allocation35_spill] sm:$0xff] %v13182_v32  ;;  %19182 = vst [vmem:[#allocation36_spill] sm:$0xff] %v13185_v33  ;;  %9896 = vrot.lane.b32.xlu1 %v13193_v43, %s12645_s2  ;;  %v13225_v9 = vpack.i.bf16 %v787_v61, %v786_v60  ;;  %v794_v60 = vld [vmem:[#allocation2 + $0x16a] sm:$0xff]  ;;  %v795_v61 = vld [vmem:[#allocation2 + $0x172] sm:$0xff] }
  0x5d   : > { %698 = vst.msk [vmem:[#allocation2 + $0x181] sm:$0xff] %vm611_vm0, %v13182_v32  ;;  %699 = vst.msk [vmem:[#allocation2 + $0x189] sm:$0xff] %vm611_vm0, %v13185_v33  ;;  %v785_v33 = vld [vmem:[#allocation2 + $0xfa] sm:$0xff]  ;;  %v788_v32 = vld [vmem:[#allocation2 + $0x122] sm:$0xff] }
  0x5e   : > { %9901 = vrot.lane.b32.xlu0 %v13197_v48, %s12645_s2  ;;  %v13221_v45 = vpack.i.bf16 %v785_v33, %v784_v42  ;;  %v13229_v11 = vpack.i.bf16 %v789_v56, %v788_v32  ;;  %v13233_v33 = vpack.i.bf16 %v791_v35, %v790_v31  ;;  %v13237_v42 = vpack.i.bf16 %v793_v54, %v792_v55  ;;  %v13241_v56 = vld [vmem:[#allocation2 + $0x20] sm:$0xff]  ;;  %v13251_v35 = vld [vmem:[#allocation2 + $0x30] sm:$0xff]  ;;  %v13253_v54 = vld [vmem:[#allocation2 + $0x38] sm:$0xff] }
  0x5f   : > { %v13245_v32 = vpack.i.bf16 %v795_v61, %v794_v60  ;;  %v9960_v31 = vpack.i.bf16 %v13241_v56, %v13239_v53  ;;  %v13255_v55 = vld [vmem:[#allocation2 + $0x48] sm:$0xff]  ;;  %v13263_v60 = vpack.i.bf16 %v13253_v54, %v13251_v35  ;;  %v13296_v21 = vld [vmem:[#allocation2 + $0xb0] sm:$0xff]  ;;  %v13310_v18 = vld [vmem:[#allocation2 + $0xc0] sm:$0xff] }
  0x60   : > { %9906 = vrot.lane.b32.xlu1 %v13201_v49, %s12645_s2  ;;  %v13268_v61 = vpack.i.bf16 %v13257_v52, %v13255_v55  ;;  %v13294_v22 = vld [vmem:[#allocation2 + $0xa8] sm:$0xff]  ;;  %19184 = vst [vmem:[#allocation38_spill] sm:$0xff] %v13310_v18  ;;  %v13314_v16 = vld [vmem:[#allocation2 + $0xd8] sm:$0xff]  ;;  %v13316_v15 = vld [vmem:[#allocation2 + $0xe0] sm:$0xff] }
  0x61   : > { %19183 = vst [vmem:[#allocation37_spill] sm:$0xff] %v13294_v22  ;;  %v13308_v19 = vpack.i.bf16 %v13296_v21, %v13294_v22  ;;  %v13312_v17 = vld [vmem:[#allocation2 + $0xc8] sm:$0xff]  ;;  %19186 = vst [vmem:[#allocation40_spill] sm:$0xff] %v13314_v16  ;;  %v13328_v13 = vpack.i.bf16 %v13316_v15, %v13314_v16  ;;  %v13330_v12 = vld [vmem:[#allocation2 + $0xf0] sm:$0xff] }
  0x62   : > { %9911 = vrot.lane.b32.xlu0 %v13205_v59, %s12645_s2  ;;  %19185 = vst [vmem:[#allocation39_spill] sm:$0xff] %v13312_v17  ;;  %19187 = vst [vmem:[#allocation41_spill] sm:$0xff] %v13316_v15  ;;  %v13322_v14 = vpack.i.bf16 %v13312_v17, %v13310_v18  ;;  %v13332_v10 = vld [vmem:[#allocation2 + $0xf8] sm:$0xff]  ;;  %v13334_v7 = vld [vmem:[#allocation2 + $0x108] sm:$0xff] }
  0x63   : > { %19188 = vst [vmem:[#allocation42_spill] sm:$0xff] %v13330_v12  ;;  %19189 = vst [vmem:[#allocation43_spill] sm:$0xff] %v13332_v10  ;;  %v13336_v6 = vld [vmem:[#allocation2 + $0x110] sm:$0xff]  ;;  %v13342_v3 = vpack.i.bf16 %v13332_v10, %v13330_v12  ;;  %v13350_v5 = vld [vmem:[#allocation2 + $0x120] sm:$0xff] }
  0x64   : > { %9916 = vrot.lane.b32.xlu1 %v13209_v1, %s12645_s2  ;;  %19190 = vst [vmem:[#allocation44_spill] sm:$0xff] %v13334_v7  ;;  %19191 = vst [vmem:[#allocation45_spill] sm:$0xff] %v13336_v6  ;;  %v13348_v2 = vpack.i.bf16 %v13336_v6, %v13334_v7  ;;  %v13352_v4 = vld [vmem:[#allocation2 + $0x128] sm:$0xff]  ;;  %v13354_v16 = vld [vmem:[#allocation2 + $0x138] sm:$0xff] }
  0x65   : > { %19192 = vst [vmem:[#allocation46_spill] sm:$0xff] %v13350_v5  ;;  %19193 = vst [vmem:[#allocation47_spill] sm:$0xff] %v13352_v4  ;;  %v13356_v15 = vld [vmem:[#allocation2 + $0x140] sm:$0xff]  ;;  %v13362_v12 = vpack.i.bf16 %v13352_v4, %v13350_v5  ;;  %v13370_v6 = vld [vmem:[#allocation2 + $0x150] sm:$0xff] }
  0x66   : > { %9921 = vrot.lane.b32.xlu0 %v13213_v27, %s12645_s2  ;;  %19194 = vst [vmem:[#allocation48_spill] sm:$0xff] %v13354_v16  ;;  %19195 = vst [vmem:[#allocation49_spill] sm:$0xff] %v13356_v15  ;;  %v13368_v7 = vpack.i.bf16 %v13356_v15, %v13354_v16  ;;  %v13372_v10 = vld [vmem:[#allocation2 + $0x158] sm:$0xff]  ;;  %v13374_v18 = vld [vmem:[#allocation2 + $0x168] sm:$0xff] }
  0x67   : > { %v13376_v17 = vld [vmem:[#allocation2 + $0x170] sm:$0xff]  ;;  %v13382_v5 = vpack.i.bf16 %v13372_v10, %v13370_v6  ;;  %v826_v15 = vld [vmem:[#allocation2 + $0x180] sm:$0xff]  ;;  %v827_v4 = vld [vmem:[#allocation2 + $0x188] sm:$0xff] }
  0x68   : > { %9926 = vrot.lane.b32.xlu1 %v13217_v44, %s12645_s2  ;;  %v13388_v16 = vpack.i.bf16 %v13376_v17, %v13374_v18  ;;  %v13392_v22 = vpack.i.bf16 %v827_v4, %v826_v15 }
  0x6a   : > { %9931 = vrot.lane.b32.xlu0 %v13221_v45, %s12645_s2 }
  0x6c   : > { %9936 = vrot.lane.b32.xlu1 %v13225_v9, %s12645_s2 }
  0x6e   : > { %9941 = vrot.lane.b32.xlu0 %v13229_v11, %s12645_s2 }
  0x70   : > { %9946 = vrot.lane.b32.xlu1 %v13233_v33, %s12645_s2 }
  0x72   : > { %9951 = vrot.lane.b32.xlu0 %v13237_v42, %s12645_s2 }
  0x74   : > { %9956 = vrot.lane.b32.xlu1 %v13245_v32, %s12645_s2 }
  0x76   : > { %9961 = vrot.lane.b32.xlu0 %v9960_v31, %s12646_s23  ;;  %v13288_v31 = vpack.i.bf16 %v13276_v26, %v13274_v36 }
  0x78   : > { %9966 = vrot.lane.b32.xlu1 %v13263_v60, %s12646_s23 }
  0x7a   : > { %9971 = vrot.lane.b32.xlu0 %v13268_v61, %s12646_s23 }
  0x7c   : > { %9976 = vrot.lane.b32.xlu1 %v13282_v25, %s12646_s23 }
  0x7e   : > { %9981 = vrot.lane.b32.xlu0 %v13288_v31, %s12646_s23 }
  0x80   : > { %9986 = vrot.lane.b32.xlu1 %v13302_v20, %s12646_s23 }
  0x82   : > { %9991 = vrot.lane.b32.xlu0 %v13308_v19, %s12646_s23 }
  0x84   : > { %9996 = vrot.lane.b32.xlu1 %v13322_v14, %s12646_s23 }
  0x86   : > { %10001 = vrot.lane.b32.xlu0 %v13328_v13, %s12646_s23 }
  0x88   : > { %10006 = vrot.lane.b32.xlu1 %v13342_v3, %s12646_s23 }
  0x8a   : > { %10011 = vrot.lane.b32.xlu0 %v13348_v2, %s12646_s23 }
  0x8c   : > { %10016 = vrot.lane.b32.xlu1 %v13362_v12, %s12646_s23 }
  0x8e   : > { %10021 = vrot.lane.b32.xlu0 %v13368_v7, %s12646_s23 }
  0x8f   : > { %v13416_v4 = vpop.permute.xlu0 %9801 }
  0x90   : > { %10026 = vrot.lane.b32.xlu1 %v13382_v5, %s12646_s23 }
  0x92   : > { %10031 = vrot.lane.b32.xlu0 %v13388_v16, %s12646_s23 }
  0x94   : > { %10036 = vrot.lane.b32.xlu1 %v13392_v22, %s12646_s23 }
  0x96   : > { %10041 = vrot.lane.b32.xlu0 %v13006_v34, %s12647_s24  ;;  %v858_v34 = vld [vmem:[#allocation2 + $0x181] sm:$0xff] }
  0x98   : > { %10046 = vrot.lane.b32.xlu1 %v13004_v30, %s12647_s24 }
  0x9a   : > { %10051 = vrot.lane.b32.xlu0 %v13016_v38, %s12647_s24  ;;  %v859_v38 = vld [vmem:[#allocation2 + $0x189] sm:$0xff] }
  0x9c   : > { %10056 = vrot.lane.b32.xlu1 %v13024_v40, %s12647_s24 }
  0x9e   : > { %10061 = vrot.lane.b32.xlu0 %v13028_v46, %s12647_s24 }
  0xa0   : > { %10066 = vrot.lane.b32.xlu1 %v13032_v50, %s12647_s24  ;;  %v13436_v50 = vpack.i.bf16 %v859_v38, %v858_v34 }
  0xa2   : > { %10071 = vrot.lane.b32.xlu0 %v13066_v57, %s12647_s24 }
  0xa4   : > { %10076 = vrot.lane.b32.xlu1 %v13070_v58, %s12647_s24 }
  0xa6   : > { %10081 = vrot.lane.b32.xlu0 %v13074_v63, %s12647_s24 }
  0xa8   : > { %10086 = vrot.lane.b32.xlu1 %v13078_v0, %s12647_s24 }
  0xaa   : > { %10091 = vrot.lane.b32.xlu0 %v13082_v28, %s12647_s24  ;;  %v13422_v15 = vpop.permute.xlu1 %9811 }
  0xac   : > { %v13424_v30 = vpop.permute.xlu0 %9806  ;;  %10096 = vrot.lane.b32.xlu1 %v13086_v29, %s12647_s24 }
  0xae   : > { %10101 = vrot.lane.b32.xlu0 %v13162_v39, %s12647_s24  ;;  %v13430_v40 = vpop.permute.xlu1 %9816 }
  0xb0   : > { %v13432_v46 = vpop.permute.xlu0 %9821  ;;  %10106 = vrot.lane.b32.xlu1 %v13166_v41, %s12647_s24 }
  0xb2   : > { %10111 = vrot.lane.b32.xlu0 %v13170_v47, %s12647_s24  ;;  %v13440_v57 = vpop.permute.xlu1 %9826 }
  0xb4   : > { %v13442_v58 = vpop.permute.xlu0 %9831  ;;  %10116 = vrot.lane.b32.xlu1 %v13436_v50, %s12647_s24 }
  0xb6   : > { %10121 = vrot.lane.b32.xlu0 %v13176_v62, %s12648_s25  ;;  %v13448_v63 = vpop.permute.xlu1 %9836 }
  0xb8   : > { %v13450_v0 = vpop.permute.xlu0 %9841  ;;  %10126 = vrot.lane.b32.xlu1 %v13179_v8, %s12648_s25 }
  0xba   : > { %10131 = vrot.lane.b32.xlu0 %v13193_v43, %s12648_s25  ;;  %v13456_v28 = vpop.permute.xlu1 %9846 }
  0xbc   : > { %v13458_v29 = vpop.permute.xlu0 %9851  ;;  %10136 = vrot.lane.b32.xlu1 %v13197_v48, %s12648_s25 }
  0xbe   : > { %10141 = vrot.lane.b32.xlu0 %v13201_v49, %s12648_s25  ;;  %v13464_v39 = vpop.permute.xlu1 %9856  ;;  %v890_v49 = vld [vmem:[#allocation2 + $0x182] sm:$0xff] }
  0xc0   : > { %v13466_v41 = vpop.permute.xlu0 %9861  ;;  %10146 = vrot.lane.b32.xlu1 %v13205_v59, %s12648_s25  ;;  %v891_v59 = vld [vmem:[#allocation2 + $0x18a] sm:$0xff] }
  0xc2   : > { %10151 = vrot.lane.b32.xlu0 %v13209_v1, %s12648_s25  ;;  %v13472_v47 = vpop.permute.xlu1 %9866 }
  0xc4   : > { %v13474_v62 = vpop.permute.xlu0 %9871  ;;  %10156 = vrot.lane.b32.xlu1 %v13213_v27, %s12648_s25 }
  0xc6   : > { %10161 = vrot.lane.b32.xlu0 %v13217_v44, %s12648_s25  ;;  %v13480_v8 = vpop.permute.xlu1 %9876 }
  0xc8   : > { %v13482_v43 = vpop.permute.xlu0 %9881  ;;  %10166 = vrot.lane.b32.xlu1 %v13221_v45, %s12648_s25  ;;  %v13502_v45 = vpack.i.bf16 %v891_v59, %v890_v49  ;;  %v925_v59 = vld [vmem:[#allocation2 + $0x31] sm:$0xff] }
  0xca   : > { %10171 = vrot.lane.b32.xlu0 %v13225_v9, %s12648_s25  ;;  %v13488_v1 = vpop.permute.xlu1 %9886 }
  0xcc   : > { %v13490_v48 = vpop.permute.xlu0 %9891  ;;  %10176 = vrot.lane.b32.xlu1 %v13229_v11, %s12648_s25 }
  0xce   : > { %10181 = vrot.lane.b32.xlu0 %v13233_v33, %s12648_s25  ;;  %v13496_v27 = vpop.permute.xlu1 %9896 }
  0xd0   : > { %v13498_v44 = vpop.permute.xlu0 %9901  ;;  %10186 = vrot.lane.b32.xlu1 %v13237_v42, %s12648_s25 }
  0xd2   : > { %10191 = vrot.lane.b32.xlu0 %v13245_v32, %s12648_s25  ;;  %v13506_v9 = vpop.permute.xlu1 %9906 }
  0xd4   : > { %v13508_v11 = vpop.permute.xlu0 %9911  ;;  %10196 = vrot.lane.b32.xlu1 %v13502_v45, %s12648_s25 }
  0xd6   : > { %10201 = vrot.lane.b32.xlu0 %v13263_v60, %s12649_s26  ;;  %v13514_v33 = vpop.permute.xlu1 %9916 }
  0xd8   : > { %v13516_v34 = vpop.permute.xlu0 %9921  ;;  %10206 = vrot.lane.b32.xlu1 %v13268_v61, %s12649_s26 }
  0xda   : > { %10211 = vrot.lane.b32.xlu0 %v13282_v25, %s12649_s26  ;;  %v13522_v42 = vpop.permute.xlu1 %9926 }
  0xdc   : > { %v13524_v32 = vpop.permute.xlu0 %9931  ;;  %10216 = vrot.lane.b32.xlu1 %v13288_v31, %s12649_s26 }
  0xde   : > { %10221 = vrot.lane.b32.xlu0 %v13302_v20, %s12649_s26  ;;  %v13530_v60 = vpop.permute.xlu1 %9936 }
  0xe0   : > { %v13532_v38 = vpop.permute.xlu0 %9941  ;;  %10226 = vrot.lane.b32.xlu1 %v13308_v19, %s12649_s26 }
  0xe1   : > { %19196 = vst [vmem:[#allocation50_spill] sm:$0xff] %v13532_v38  ;;  %v939_v38 = vld [vmem:[#allocation2 + $0xd9] sm:$0xff] }
  0xe2   : > { %10231 = vrot.lane.b32.xlu0 %v13322_v14, %s12649_s26  ;;  %v13538_v25 = vpop.permute.xlu1 %9946 }
  0xe3   : > { %19197 = vst [vmem:[#allocation51_spill] sm:$0xff] %v13538_v25 }
  0xe4   : > { %v13540_v61 = vpop.permute.xlu0 %9951  ;;  %10236 = vrot.lane.b32.xlu1 %v13328_v13, %s12649_s26  ;;  %v924_v13 = vld [vmem:[#allocation2 + $0x1a0] sm:$0xff] }
  0xe5   : > { %19198 = vst [vmem:[#allocation52_spill] sm:$0xff] %v13540_v61  ;;  %v930_v61 = vld [vmem:[#allocation2 + $0x69] sm:$0xff] }
  0xe6   : > { %10241 = vrot.lane.b32.xlu0 %v13342_v3, %s12649_s26  ;;  %v13546_v20 = vpop.permute.xlu1 %9956  ;;  %v923_v3 = vld [vmem:[#allocation2 + $0x198] sm:$0xff] }
  0xe7   : > { %19199 = vst [vmem:[#allocation53_spill] sm:$0xff] %v13546_v20 }
  0xe8   : > { %v13548_v31 = vpop.permute.xlu0 %9961  ;;  %10246 = vrot.lane.b32.xlu1 %v13348_v2, %s12649_s26 }
  0xe9   : > { %19200 = vst [vmem:[#allocation54_spill] sm:$0xff] %v13548_v31  ;;  %v926_v31 = vld [vmem:[#allocation2 + $0x39] sm:$0xff] }
  0xea   : > { %10251 = vrot.lane.b32.xlu0 %v13362_v12, %s12649_s26  ;;  %v13554_v14 = vpop.permute.xlu1 %9966  ;;  %v10275_v12 = vpack.i.bf16 %v924_v13, %v923_v3  ;;  %v931_v3 = vld [vmem:[#allocation2 + $0x79] sm:$0xff]  ;;  %v932_v13 = vld [vmem:[#allocation2 + $0x81] sm:$0xff] }
  0xeb   : > { %19201 = vst [vmem:[#allocation55_spill] sm:$0xff] %v13554_v14  ;;  %v928_v14 = vld [vmem:[#allocation2 + $0x51] sm:$0xff] }
  0xec   : > { %v13556_v19 = vpop.permute.xlu0 %9971  ;;  %10256 = vrot.lane.b32.xlu1 %v13368_v7, %s12649_s26  ;;  %v927_v7 = vld [vmem:[#allocation2 + $0x49] sm:$0xff] }
  0xed   : > { %19202 = vst [vmem:[#allocation56_spill] sm:$0xff] %v13556_v19  ;;  %v10280_v19 = vpack.i.bf16 %v926_v31, %v925_v59  ;;  %v934_v31 = vld [vmem:[#allocation2 + $0x99] sm:$0xff] }
  0xee   : > { %10261 = vrot.lane.b32.xlu0 %v13382_v5, %s12649_s26  ;;  %v13562_v49 = vpop.permute.xlu1 %9976  ;;  %v929_v5 = vld [vmem:[#allocation2 + $0x61] sm:$0xff] }
  0xef   : > { %19203 = vst [vmem:[#allocation57_spill] sm:$0xff] %v13562_v49  ;;  %v10285_v49 = vpack.i.bf16 %v928_v14, %v927_v7  ;;  %v936_v14 = vld [vmem:[#allocation2 + $0xb1] sm:$0xff] }
  0xf0   : > { %v13564_v2 = vpop.permute.xlu0 %9981  ;;  %10266 = vrot.lane.b32.xlu1 %v13388_v16, %s12649_s26  ;;  %v10290_v16 = vpack.i.bf16 %v930_v61, %v929_v5  ;;  %v938_v61 = vld [vmem:[#allocation2 + $0xc9] sm:$0xff] }
  0xf1   : > { %19204 = vst [vmem:[#allocation58_spill] sm:$0xff] %v13564_v2 }
  0xf2   : > { %10271 = vrot.lane.b32.xlu0 %v13392_v22, %s12649_s26  ;;  %v13570_v20 = vpop.permute.xlu1 %9986  ;;  %v933_v22 = vld [vmem:[#allocation2 + $0x91] sm:$0xff] }
  0xf3   : > { %19205 = vst [vmem:[#allocation59_spill] sm:$0xff] %v13570_v20  ;;  %v10295_v20 = vpack.i.bf16 %v932_v13, %v931_v3  ;;  %v942_v13 = vld [vmem:[#allocation2 + $0xf9] sm:$0xff] }
  0xf4   : > { %v13572_v25 = vpop.permute.xlu0 %9991  ;;  %10276 = vrot.lane.b32.xlu1 %v10275_v12, %s12649_s26  ;;  %v935_v12 = vld [vmem:[#allocation2 + $0xa9] sm:$0xff] }
  0xf5   : > { %19206 = vst [vmem:[#allocation60_spill] sm:$0xff] %v13572_v25  ;;  %v10300_v25 = vpack.i.bf16 %v934_v31, %v933_v22 }
  0xf6   : > { %10281 = vrot.lane.b32.xlu0 %v10280_v19, %s12650_s27  ;;  %v13576_v2 = vpop.permute.xlu1 %9996  ;;  %v937_v19 = vld [vmem:[#allocation2 + $0xc1] sm:$0xff] }
  0xf7   : > { %19207 = vst [vmem:[#allocation61_spill] sm:$0xff] %v13576_v2  ;;  %v10305_v2 = vpack.i.bf16 %v936_v14, %v935_v12  ;;  %v946_v14 = vld [vmem:[#allocation2 + $0x129] sm:$0xff] }
  0xf8   : > { %v13578_v59 = vpop.permute.xlu0 %10001  ;;  %10286 = vrot.lane.b32.xlu1 %v10285_v49, %s12650_s27  ;;  %v940_v49 = vld [vmem:[#allocation2 + $0xe1] sm:$0xff] }
  0xf9   : > { %19208 = vst [vmem:[#allocation62_spill] sm:$0xff] %v13578_v59  ;;  %v10310_v59 = vpack.i.bf16 %v938_v61, %v937_v19  ;;  %v10315_v31 = vpack.i.bf16 %v940_v49, %v939_v38  ;;  %v12362_v61 = vld [vmem:[%s19215_s19] sm:$0xff]  }
  0xfa   : > { %10291 = vrot.lane.b32.xlu0 %v10290_v16, %s12650_s27  ;;  %v13582_v7 = vpop.permute.xlu1 %10006  ;;  %v941_v16 = vld [vmem:[#allocation2 + $0xf1] sm:$0xff]  ;;  %9564 = vmatprep.subr.bf16.mxu0 %v12362_v61 }
  0xfb   : > { %19209 = vst [vmem:[#allocation63_spill] sm:$0xff] %v13582_v7  ;;  %v943_v7 = vld [vmem:[#allocation2 + $0x109] sm:$0xff]  ;;  %9565 = vmatpush3.bf16.msra.mxu0 %v12362_v61  ;;  %9764 = vmatprep.subr.bf16.mxu1 %v12362_v61 }
  0xfc   : > { %v13584_v5 = vpop.permute.xlu0 %10011  ;;  %10296 = vrot.lane.b32.xlu1 %v10295_v20, %s12650_s27  ;;  %v944_v20 = vld [vmem:[#allocation2 + $0x111] sm:$0xff]  ;;  %9767 = vmatpush3.bf16.msra.mxu1 %v12362_v61  ;;  %v955_v61 = vld [vmem:[#allocation2 + $0x199] sm:$0xff] }
  0xfd   : > { %19210 = vst [vmem:[#allocation64_spill] sm:$0xff] %v13584_v5  ;;  %v10320_v5 = vpack.i.bf16 %v942_v13, %v941_v16  ;;  %v949_v16 = vld [vmem:[#allocation2 + $0x151] sm:$0xff]  ;;  %v950_v13 = vld [vmem:[#allocation2 + $0x159] sm:$0xff] }
  0xfe   : > { %10301 = vrot.lane.b32.xlu0 %v10300_v25, %s12650_s27  ;;  %v13588_v3 = vpop.permute.xlu1 %10016  ;;  %v945_v25 = vld [vmem:[#allocation2 + $0x121] sm:$0xff] }
  0xff   : > { %19211 = vst [vmem:[#allocation65_spill] sm:$0xff] %v13588_v3  ;;  %v10330_v38 = vpack.i.bf16 %v946_v14, %v945_v25 }
 0x100   : > { %v13590_v22 = vpop.permute.xlu0 %10021  ;;  %10306 = vrot.lane.b32.xlu1 %v10305_v2, %s12650_s27  ;;  %v947_v2 = vld [vmem:[#allocation2 + $0x139] sm:$0xff] }
 0x101   : > { %19212 = vst [vmem:[#allocation66_spill] sm:$0xff] %v13590_v22  ;;  %v10325_v22 = vpack.i.bf16 %v944_v20, %v943_v7  ;;  %v952_v20 = vld [vmem:[#allocation2 + $0x171] sm:$0xff] }
 0x102   : > { %10311 = vrot.lane.b32.xlu0 %v10310_v59, %s12650_s27  ;;  %v13594_v12 = vpop.permute.xlu1 %10026  ;;  %v948_v59 = vld [vmem:[#allocation2 + $0x141] sm:$0xff] }
 0x103   : > { %19213 = vst [vmem:[#allocation67_spill] sm:$0xff] %v13594_v12  ;;  %v12363_v12 = vld [vmem:[%s19215_s19 + $0x8] sm:$0xff]   ;;  %v10335_v7 = vpack.i.bf16 %v948_v59, %v947_v2 }
 0x104   : > { %v13596_v19 = vpop.permute.xlu0 %10031  ;;  %10316 = vrot.lane.b32.xlu1 %v10315_v31, %s12650_s27  ;;  %v951_v31 = vld [vmem:[#allocation2 + $0x169] sm:$0xff]  ;;  %9566 = vmatprep.subr.bf16.mxu0 %v12363_v12 }
 0x105   : > { %19214 = vst [vmem:[#allocation68_spill] sm:$0xff] %v13596_v19  ;;  %9567 = vmatpush3.bf16.msra.mxu0 %v12363_v12  ;;  %9765 = vmatprep.subr.bf16.mxu1 %v12363_v12 }
 0x106   : > { %10321 = vrot.lane.b32.xlu0 %v10320_v5, %s12650_s27  ;;  %v13603_v49 = vpop.permute.xlu1 %10036  ;;  %v10340_v5 = vpack.i.bf16 %v950_v13, %v949_v16  ;;  %9768 = vmatpush3.bf16.msra.mxu1 %v12363_v12  ;;  %v957_v16 = vld [vmem:[#allocation2 + $0x32] sm:$0xff]  ;;  %v958_v13 = vld [vmem:[#allocation2 + $0x3a] sm:$0xff] }
 0x107   : > { %19216 = vst [vmem:[#allocation69_spill] sm:$0xff] %v13603_v49  ;;  %v12364_v49 = vld [vmem:[%s19215_s19 + $0x10] ss:$0 sps:$4 sm:$0x33]  }
 0x108   : > { %v13605_v19 = vpop.permute.xlu0 %10041  ;;  %10326 = vrot.lane.b32.xlu1 %v10325_v22, %s12650_s27  ;;  %v10345_v22 = vpack.i.bf16 %v952_v20, %v951_v31  ;;  %9770 = vmatprep.subr.msk.bf16.mxu0 %vm2361_vm3, %v12364_v49  ;;  %v2363_v2 = vsel %vm2361_vm3, %v12364_v49, 0  ;;  %v959_v31 = vld [vmem:[#allocation2 + $0x4a] sm:$0xff]  ;;  %v960_v20 = vld [vmem:[#allocation2 + $0x52] sm:$0xff] }
 0x109   : > { %19217 = vst [vmem:[#allocation70_spill] sm:$0xff] %v13605_v19  ;;  %9569 = vmatpush3.bf16.msra.mxu0 %v2363_v2  ;;  %9771 = vmatprep.subr.msk.bf16.mxu1 %vm2361_vm3, %v12364_v49  ;;  %v10365_v49 = vpack.i.bf16 %v960_v20, %v959_v31  ;;  %v968_v31 = vld [vmem:[#allocation2 + $0xb2] sm:$0xff] }
 0x10a   : > { %10331 = vrot.lane.b32.xlu0 %v10330_v38, %s12650_s27  ;;  %v13612_v25 = vpop.permute.xlu1 %10046  ;;  %v956_v38 = vld [vmem:[#allocation2 + $0x1a1] sm:$0xff]  ;;  %9769 = vmatpush3.bf16.msra.mxu1 %v2363_v2 }
 0x10b   : > { %19218 = vst [vmem:[#allocation71_spill] sm:$0xff] %v13612_v25  ;;  %v962_v25 = vld [vmem:[#allocation2 + $0x6a] sm:$0xff] }
 0x10c   : > { %v13614_v14 = vpop.permute.xlu0 %10051  ;;  %10336 = vrot.lane.b32.xlu1 %v10335_v7, %s12650_s27  ;;  %v10355_v7 = vpack.i.bf16 %v956_v38, %v955_v61  ;;  %v963_v61 = vld [vmem:[#allocation2 + $0x7a] sm:$0xff]  ;;  %v964_v38 = vld [vmem:[#allocation2 + $0x82] sm:$0xff] }
 0x10d   : > { %19219 = vst [vmem:[#allocation72_spill] sm:$0xff] %v13614_v14 }
 0x10e   : > { %10341 = vrot.lane.b32.xlu0 %v10340_v5, %s12650_s27  ;;  %v13623_v59 = vpop.permute.xlu1 %10056  ;;  %v10360_v5 = vpack.i.bf16 %v958_v13, %v957_v16  ;;  %v966_v16 = vld [vmem:[#allocation2 + $0x9a] sm:$0xff] }
 0x10f   : > { %19220 = vst [vmem:[#allocation73_spill] sm:$0xff] %v13623_v59  ;;  %v961_v59 = vld [vmem:[#allocation2 + $0x62] sm:$0xff] }
 0x110   : > { %v13626_v12 = vpop.permute.xlu0 %10061  ;;  %10346 = vrot.lane.b32.xlu1 %v10345_v22, %s12650_s27  ;;  %v10370_v22 = vpack.i.bf16 %v962_v25, %v961_v59  ;;  %v970_v25 = vld [vmem:[#allocation2 + $0xca] sm:$0xff] }
 0x111   : > { %19221 = vst [vmem:[#allocation74_spill] sm:$0xff] %v13626_v12  ;;  %v971_v12 = vld [vmem:[#allocation2 + $0xda] sm:$0xff] }
 0x112   : > { %10351 = vrot.lane.b32.xlu0 %v13436_v50, %s12650_s27  ;;  %v13631_v14 = vpop.permute.xlu1 %10066  ;;  %v965_v50 = vld [vmem:[#allocation2 + $0x92] sm:$0xff] }
 0x113   : > { %19222 = vst [vmem:[#allocation75_spill] sm:$0xff] %v13631_v14  ;;  %v10375_v14 = vpack.i.bf16 %v964_v38, %v963_v61  ;;  %v974_v38 = vld [vmem:[#allocation2 + $0xfa] sm:$0xff] }
 0x114   : > { %v13633_v19 = vpop.permute.xlu0 %10071  ;;  %10356 = vrot.lane.b32.xlu1 %v10355_v7, %s12650_s27  ;;  %v967_v7 = vld [vmem:[#allocation2 + $0xaa] sm:$0xff] }
 0x115   : > { %19223 = vst [vmem:[#allocation76_spill] sm:$0xff] %v13633_v19  ;;  %v10380_v19 = vpack.i.bf16 %v966_v16, %v965_v50 }
 0x116   : > { %10361 = vrot.lane.b32.xlu0 %v10360_v5, %s12651_s15  ;;  %v13637_v2 = vpop.permute.xlu1 %10076  ;;  %v969_v5 = vld [vmem:[#allocation2 + $0xc2] sm:$0xff] }
 0x117   : > { %19224 = vst [vmem:[#allocation77_spill] sm:$0xff] %v13637_v2  ;;  %v10385_v2 = vpack.i.bf16 %v968_v31, %v967_v7  ;;  %v978_v31 = vld [vmem:[#allocation2 + $0x12a] sm:$0xff] }
 0x118   : > { %v13639_v13 = vpop.permute.xlu0 %10081  ;;  %10366 = vrot.lane.b32.xlu1 %v10365_v49, %s12651_s15  ;;  %v972_v49 = vld [vmem:[#allocation2 + $0xe2] sm:$0xff] }
 0x119   : > { %19225 = vst [vmem:[#allocation78_spill] sm:$0xff] %v13639_v13  ;;  %v10390_v13 = vpack.i.bf16 %v970_v25, %v969_v5  ;;  %v10395_v16 = vpack.i.bf16 %v972_v49, %v971_v12  ;;  %v982_v49 = vld [vmem:[#allocation2 + $0x15a] sm:$0xff] }
 0x11a   : > { %10371 = vrot.lane.b32.xlu0 %v10370_v22, %s12651_s15  ;;  %v13643_v20 = vpop.permute.xlu1 %10086  ;;  %v973_v22 = vld [vmem:[#allocation2 + $0xf2] sm:$0xff] }
 0x11b   : > { %19226 = vst [vmem:[#allocation79_spill] sm:$0xff] %v13643_v20  ;;  %v975_v20 = vld [vmem:[#allocation2 + $0x10a] sm:$0xff] }
 0x11c   : > { %v13645_v59 = vpop.permute.xlu0 %10091  ;;  %10376 = vrot.lane.b32.xlu1 %v10375_v14, %s12651_s15  ;;  %v976_v14 = vld [vmem:[#allocation2 + $0x112] sm:$0xff] }
 0x11d   : > { %19227 = vst [vmem:[#allocation80_spill] sm:$0xff] %v13645_v59  ;;  %v10400_v59 = vpack.i.bf16 %v974_v38, %v973_v22  ;;  %v10405_v25 = vpack.i.bf16 %v976_v14, %v975_v20 }
 0x11e   : > { %10381 = vrot.lane.b32.xlu0 %v10380_v19, %s12651_s15  ;;  %v13649_v61 = vpop.permute.xlu1 %10096  ;;  %v977_v19 = vld [vmem:[#allocation2 + $0x122] sm:$0xff] }
 0x11f   : > { %19228 = vst [vmem:[#allocation81_spill] sm:$0xff] %v13649_v61  ;;  %v979_v61 = vld [vmem:[#allocation2 + $0x13a] sm:$0xff] }
 0x120   : > { %v13651_v50 = vpop.permute.xlu0 %10101  ;;  %10386 = vrot.lane.b32.xlu1 %v10385_v2, %s12651_s15  ;;  %v980_v2 = vld [vmem:[#allocation2 + $0x142] sm:$0xff] }
 0x121   : > { %19229 = vst [vmem:[#allocation82_spill] sm:$0xff] %v13651_v50  ;;  %v10410_v50 = vpack.i.bf16 %v978_v31, %v977_v19  ;;  %v10415_v38 = vpack.i.bf16 %v980_v2, %v979_v61  ;;  %v9804_v19 = vunpack.i.h.bf16 %v13416_v4  ;;  %v9803_v31 = vunpack.i.l.bf16 %v13416_v4  ;;  %v987_v61 = vld [vmem:[#allocation2 + $0x19a] sm:$0xff] }
 0x122   : > { %10391 = vrot.lane.b32.xlu0 %v10390_v13, %s12651_s15  ;;  %v13655_v7 = vpop.permute.xlu1 %10106  ;;  %v981_v13 = vld [vmem:[#allocation2 + $0x152] sm:$0xff]  ;;  %v700_v2 = vld [vmem:[#allocation2] sm:$0xff]  ;;  %v9818_v4 = vunpack.i.l.bf16 %v13430_v40 }
 0x123   : > { %19230 = vst [vmem:[#allocation83_spill] sm:$0xff] %v13655_v7  ;;  %v983_v7 = vld [vmem:[#allocation2 + $0x16a] sm:$0xff] }
 0x124   : > { %v13657_v5 = vpop.permute.xlu0 %10111  ;;  %10396 = vrot.lane.b32.xlu1 %v10395_v16, %s12651_s15  ;;  %v984_v16 = vld [vmem:[#allocation2 + $0x172] sm:$0xff] }
 0x125   : > { %19231 = vst [vmem:[#allocation84_spill] sm:$0xff] %v13657_v5  ;;  %v10420_v5 = vpack.i.bf16 %v982_v49, %v981_v13  ;;  %v10425_v14 = vpack.i.bf16 %v984_v16, %v983_v7  ;;  %v9814_v13 = vunpack.i.h.bf16 %v13422_v15  ;;  %v9808_v49 = vunpack.i.l.bf16 %v13424_v30 }
 0x126   : > { %10401 = vrot.lane.b32.xlu0 %v10400_v59, %s12651_s15  ;;  %v13661_v12 = vpop.permute.xlu1 %10116  ;;  %v9809_v7 = vunpack.i.h.bf16 %v13424_v30  ;;  %v9824_v16 = vunpack.i.h.bf16 %v13432_v46  ;;  %v13694_v30 = vsel %vm611_vm0, %v700_v2, %v9803_v31  ;;  %v9858_v2 = vunpack.i.l.bf16 %v13464_v39 }
 0x127   : > { %19232 = vst [vmem:[#allocation85_spill] sm:$0xff] %v13661_v12  ;;  %v9813_v12 = vunpack.i.l.bf16 %v13422_v15  ;;  %v9828_v15 = vunpack.i.l.bf16 %v13440_v57 }
 0x128   : > { %v13663_v22 = vpop.permute.xlu0 %10121  ;;  %10406 = vrot.lane.b32.xlu1 %v10405_v25, %s12651_s15  ;;  %v701_v25 = vld [vmem:[#allocation2 + $0x8] sm:$0xff] }
 0x129   : > { %19233 = vst [vmem:[#allocation86_spill] sm:$0xff] %v13663_v22  ;;  %v9829_v22 = vunpack.i.h.bf16 %v13440_v57  ;;  %v13708_v57 = vsel %vm611_vm0, %v13239_v53, %v9808_v49  ;;  %v13728_v53 = vsel %vm611_vm0, %v13272_v37, %v9824_v16  ;;  %v9838_v37 = vunpack.i.l.bf16 %v13448_v63  ;;  %v19239_v16 = vld [vmem:[#allocation38_spill] sm:$0xff] }
 0x12a   : > { %10411 = vrot.lane.b32.xlu0 %v10410_v50, %s12651_s15  ;;  %v13667_v20 = vpop.permute.xlu1 %10126  ;;  %v988_v50 = vld [vmem:[#allocation2 + $0x1a2] sm:$0xff]  ;;  %v9869_v49 = vunpack.i.h.bf16 %v13472_v47 }
 0x12b   : > { %19234 = vst [vmem:[#allocation87_spill] sm:$0xff] %v13667_v20  ;;  %v10435_v3 = vpack.i.bf16 %v988_v50, %v987_v61  ;;  %v9844_v61 = vunpack.i.h.bf16 %v13450_v0  ;;  %v9843_v50 = vunpack.i.l.bf16 %v13450_v0  ;;  %v9859_v0 = vunpack.i.h.bf16 %v13464_v39 }
 0x12c   : > { %v13669_v59 = vpop.permute.xlu0 %10131  ;;  %10416 = vrot.lane.b32.xlu1 %v10415_v38, %s12651_s15  ;;  %v9819_v38 = vunpack.i.h.bf16 %v13430_v40  ;;  %v13698_v40 = vsel %vm611_vm0, %v13251_v35, %v9813_v12  ;;  %v13716_v35 = vsel %vm611_vm0, %v13241_v56, %v9809_v7  ;;  %v13738_v56 = vsel %vm611_vm0, %v13276_v26, %v9829_v22 }
 0x12d   : > { %19235 = vst [vmem:[#allocation88_spill] sm:$0xff] %v13669_v59  ;;  %v9848_v22 = vunpack.i.l.bf16 %v13456_v28  ;;  %v9868_v7 = vunpack.i.l.bf16 %v13472_v47  ;;  %v19242_v47 = vld [vmem:[#allocation43_spill] sm:$0xff] }
 0x12e   : > { %10421 = vrot.lane.b32.xlu0 %v10420_v5, %s12651_s15  ;;  %v13678_v59 = vpop.permute.xlu1 %10136  ;;  %v9823_v5 = vunpack.i.l.bf16 %v13432_v46  ;;  %v13704_v46 = vsel %vm611_vm0, %v13253_v54, %v9814_v13  ;;  %v13724_v54 = vsel %vm611_vm0, %v13255_v55, %v9818_v4  ;;  %v9839_v55 = vunpack.i.h.bf16 %v13448_v63  ;;  %v19238_v4 = vld [vmem:[#allocation39_spill] sm:$0xff] }
 0x12f   : > { %19236 = vst [vmem:[#allocation89_spill] sm:$0xff] %v13678_v59  ;;  %v13691_v59 = vsel %vm611_vm0, %v701_v25, %v9804_v19  ;;  %v9833_v19 = vunpack.i.l.bf16 %v13442_v58  ;;  %v9853_v63 = vunpack.i.l.bf16 %v13458_v29  ;;  %v9864_v13 = vunpack.i.h.bf16 %v13466_v41 }
 0x130   : > { %v13684_v20 = vpop.permute.xlu0 %10141  ;;  %10426 = vrot.lane.b32.xlu1 %v10425_v14, %s12651_s15  ;;  %v9834_v14 = vunpack.i.h.bf16 %v13442_v58  ;;  %v13734_v58 = vsel %vm611_vm0, %v13270_v51, %v9823_v5  ;;  %v9849_v51 = vunpack.i.h.bf16 %v13456_v28  ;;  %v9863_v28 = vunpack.i.l.bf16 %v13466_v41  ;;  %v19241_v41 = vld [vmem:[#allocation40_spill] sm:$0xff] }
 0x131   : > { %v13781_v39 = vsel %vm611_vm0, %v19238_v4, %v9844_v61  ;;  %v13785_v5 = vsel %vm611_vm0, %v19239_v16, %v9843_v50  ;;  %v19244_v50 = vld [vmem:[#allocation42_spill] sm:$0xff] }
 0x132   : > { %10431 = vrot.lane.b32.xlu0 %v13502_v45, %s12651_s15  ;;  %v13712_v31 = vpop.permute.xlu1 %10146  ;;  %v13720_v45 = vsel %vm611_vm0, %v13257_v52, %v9819_v38  ;;  %v13742_v52 = vsel %vm611_vm0, %v13274_v36, %v9828_v15  ;;  %v13752_v26 = vsel %vm611_vm0, %v13292_v23, %v9834_v14  ;;  %v13756_v36 = vsel %vm611_vm0, %v13290_v24, %v9833_v19  ;;  %v19237_v38 = vld [vmem:[#allocation37_spill] sm:$0xff] }
 0x133   : > { %v13770_v24 = vsel %vm611_vm0, %v13296_v21, %v9839_v55  ;;  %v19240_v21 = vld [vmem:[#allocation41_spill] sm:$0xff]  ;;  %v13793_v14 = vsel %vm611_vm0, %v19241_v41, %v9848_v22  ;;  %v9874_v55 = vunpack.i.h.bf16 %v13474_v62  ;;  %v19246_v22 = vld [vmem:[#allocation44_spill] sm:$0xff] }
 0x134   : > { %v13730_v12 = vpop.permute.xlu0 %10151  ;;  %10436 = vrot.lane.b32.xlu1 %v10435_v3, %s12651_s15  ;;  %v9854_v3 = vunpack.i.h.bf16 %v13458_v29  ;;  %v13777_v29 = vsel %vm611_vm0, %v19237_v38, %v9838_v37  ;;  %v13789_v15 = vsel %vm611_vm0, %v19240_v21, %v9849_v51  ;;  %v9873_v37 = vunpack.i.l.bf16 %v13474_v62  ;;  %v19245_v51 = vld [vmem:[#allocation45_spill] sm:$0xff]  ;;  %v19249_v62 = vld [vmem:[#allocation46_spill] sm:$0xff] }
 0x135   : > { %v13805_v38 = vsel %vm611_vm0, %v19244_v50, %v9853_v63  ;;  %v13809_v4 = vsel %vm611_vm0, %v19245_v51, %v9859_v0  ;;  %v13813_v16 = vsel %vm611_vm0, %v19246_v22, %v9858_v2  ;;  %v19250_v63 = vld [vmem:[#allocation49_spill] sm:$0xff]  ;;  %v19251_v0 = vld [vmem:[#allocation48_spill] sm:$0xff]  ;;  %v9879_v2 = vunpack.i.h.bf16 %v13480_v8 }
 0x136   : > { %v13760_v25 = vpop.permute.xlu1 %10156  ;;  %v13797_v19 = vsel %vm611_vm0, %v19242_v47, %v9854_v3  ;;  %v19247_v3 = vld [vmem:[#allocation47_spill] sm:$0xff]  ;;  %v13823_v47 = vsel %vm611_vm0, %v19249_v62, %v9863_v28  ;;  %v13827_v50 = vsel %vm611_vm0, %v19250_v63, %v9869_v49  ;;  %v13831_v51 = vsel %vm611_vm0, %v19251_v0, %v9868_v7 }
 0x137   : > { %v13817_v21 = vsel %vm611_vm0, %v19247_v3, %v9864_v13  ;;  %v9878_v22 = vunpack.i.l.bf16 %v13480_v8  ;;  %v9884_v13 = vunpack.i.h.bf16 %v13482_v43  ;;  %v9883_v3 = vunpack.i.l.bf16 %v13482_v43 }
 0x138   : > { %v13766_v23 = vpop.permute.xlu0 %10161  ;;  %v13840_v28 = vsel %vm611_vm0, %v13372_v10, %v9874_v55  ;;  %v13844_v49 = vsel %vm611_vm0, %v13370_v6, %v9873_v37  ;;  %v9889_v7 = vunpack.i.h.bf16 %v13488_v1  ;;  %v9894_v62 = vunpack.i.h.bf16 %v13490_v48 }
 0x139   : > { %v9893_v8 = vunpack.i.l.bf16 %v13490_v48  ;;  %v9899_v43 = vunpack.i.h.bf16 %v13496_v27  ;;  %v9898_v0 = vunpack.i.l.bf16 %v13496_v27  ;;  %v13858_v6 = vsel %vm611_vm0, %v13376_v17, %v9879_v2 }
 0x13a   : > { %v13801_v61 = vpop.permute.xlu1 %10166  ;;  %v9909_v55 = vunpack.i.h.bf16 %v13506_v9  ;;  %v9908_v37 = vunpack.i.l.bf16 %v13506_v9  ;;  %v13865_v48 = vsel %vm611_vm0, %v13374_v18, %v9878_v22  ;;  %v13869_v27 = vsel %vm2045_vm2, %v13691_v59, %v9884_v13 }
 0x13b   : > { %19243 = vst [vmem:[#allocation37_spill] sm:$0xff] %v13801_v61  ;;  %v9903_v61 = vunpack.i.l.bf16 %v13498_v44  ;;  %v13885_v18 = vsel %vm2045_vm2, %v13704_v46, %v9894_v62  ;;  %v9914_v9 = vunpack.i.h.bf16 %v13508_v11  ;;  %v9913_v59 = vunpack.i.l.bf16 %v13508_v11 }
 0x13c   : > { %v13819_v41 = vpop.permute.xlu0 %10171  ;;  %v9918_v22 = vunpack.i.l.bf16 %v13514_v33  ;;  %v9929_v13 = vunpack.i.h.bf16 %v13522_v42  ;;  %v9938_v62 = vunpack.i.l.bf16 %v13530_v60 }
 0x13d   : > { %19248 = vst [vmem:[#allocation39_spill] sm:$0xff] %v13819_v41  ;;  %v9888_v41 = vunpack.i.l.bf16 %v13488_v1  ;;  %v9904_v1 = vunpack.i.h.bf16 %v13498_v44  ;;  %v13881_v44 = vsel %vm2045_vm2, %v13716_v35, %v9889_v7  ;;  %v13901_v35 = vsel %vm2045_vm2, %v13724_v54, %v9898_v0  ;;  %v19256_v0 = vld [vmem:[#allocation51_spill] sm:$0xff] }
 0x13e   : > { %v13848_v63 = vpop.permute.xlu1 %10176  ;;  %v13905_v46 = vsel %vm2045_vm2, %v13734_v58, %v9903_v61  ;;  %v9919_v54 = vunpack.i.h.bf16 %v13514_v33  ;;  %v9924_v58 = vunpack.i.h.bf16 %v13516_v34  ;;  %v9923_v61 = vunpack.i.l.bf16 %v13516_v34 }
 0x13f   : > { %v13877_v17 = vsel %vm2045_vm2, %v13708_v57, %v9888_v41  ;;  %v13897_v57 = vsel %vm2045_vm2, %v13720_v45, %v9899_v43  ;;  %v13911_v11 = vsel %vm2045_vm2, %v13728_v53, %v9904_v1  ;;  %v13919_v45 = vsel %vm2045_vm2, %v13742_v52, %v9908_v37 }
 0x140   : > { %v13854_v10 = vpop.permute.xlu0 %10181  ;;  %v13928_v53 = vsel %vm2045_vm2, %v13756_v36, %v9913_v59  ;;  %v9928_v52 = vunpack.i.l.bf16 %v13522_v42  ;;  %v9934_v7 = vunpack.i.h.bf16 %v13524_v32  ;;  %v9939_v34 = vunpack.i.h.bf16 %v13530_v60  ;;  %v19257_v59 = vld [vmem:[#allocation52_spill] sm:$0xff] }
 0x141   : > { %19252 = vst [vmem:[#allocation38_spill] sm:$0xff] %v13854_v10  ;;  %v13873_v10 = vsel %vm2045_vm2, %v13694_v30, %v9883_v3  ;;  %v13893_v30 = vsel %vm2045_vm2, %v13698_v40, %v9893_v8  ;;  %v13915_v40 = vsel %vm2045_vm2, %v13738_v56, %v9909_v55  ;;  %v13932_v56 = vsel %vm2045_vm2, %v13752_v26, %v9914_v9  ;;  %v19255_v8 = vld [vmem:[#allocation50_spill] sm:$0xff] }
 0x142   : > { %v13889_v2 = vpop.permute.xlu1 %10186  ;;  %v9933_v3 = vunpack.i.l.bf16 %v13524_v32  ;;  %v9943_v36 = vunpack.i.l.bf16 %v19255_v8  ;;  %v13946_v26 = vsel %vm2045_vm2, %v13770_v24, %v9919_v54  ;;  %v9944_v42 = vunpack.i.h.bf16 %v19255_v8  ;;  %v19261_v8 = vld [vmem:[#allocation56_spill] sm:$0xff] }
 0x143   : > { %v9949_v1 = vunpack.i.h.bf16 %v19256_v0  ;;  %v9948_v55 = vunpack.i.l.bf16 %v19256_v0  ;;  %v13953_v32 = vsel %vm2045_vm2, %v13777_v29, %v9918_v22  ;;  %v13957_v60 = vsel %vm2045_vm2, %v13785_v5, %v9923_v61 }
 0x144   : > { %v13907_v41 = vpop.permute.xlu0 %10191  ;;  %v13961_v37 = vsel %vm2045_vm2, %v13781_v39, %v9924_v58  ;;  %v13965_v24 = vsel %vm2045_vm2, %v13789_v15, %v9929_v13  ;;  %v13969_v9 = vsel %vm2045_vm2, %v13793_v14, %v9928_v52  ;;  %v13973_v29 = vsel %vm2045_vm2, %v13805_v38, %v9933_v3 }
 0x145   : > { %19253 = vst [vmem:[#allocation41_spill] sm:$0xff] %v13907_v41  ;;  %v9954_v54 = vunpack.i.h.bf16 %v19257_v59  ;;  %v9953_v5 = vunpack.i.l.bf16 %v19257_v59  ;;  %v13981_v39 = vsel %vm2045_vm2, %v13797_v19, %v9934_v7  ;;  %v13985_v15 = vsel %vm2045_vm2, %v13809_v4, %v9939_v34  ;;  %v19260_v34 = vld [vmem:[#allocation55_spill] sm:$0xff] }
 0x146   : > { %v13936_v33 = vpop.permute.xlu1 %10196  ;;  %v13989_v14 = vsel %vm2045_vm2, %v13813_v16, %v9938_v62  ;;  %v13993_v38 = vsel %vm2045_vm2, %v13823_v47, %v9943_v36  ;;  %v13999_v61 = vsel %vm2045_vm2, %v13817_v21, %v9944_v42  ;;  %v14003_v19 = vsel %vm2045_vm2, %v13827_v50, %v9949_v1  ;;  %v19258_v16 = vld [vmem:[#allocation53_spill] sm:$0xff]  ;;  %v19259_v47 = vld [vmem:[#allocation54_spill] sm:$0xff] }
 0x147   : > { %19254 = vst [vmem:[#allocation40_spill] sm:$0xff] %v13936_v33  ;;  %v14007_v4 = vsel %vm2045_vm2, %v13831_v51, %v9948_v55  ;;  %v9959_v13 = vunpack.i.h.bf16 %v19258_v16  ;;  %v9958_v52 = vunpack.i.l.bf16 %v19258_v16  ;;  %v9964_v3 = vunpack.i.h.bf16 %v19259_v47  ;;  %v19262_v1 = vld [vmem:[#allocation57_spill] sm:$0xff]  ;;  %v19263_v16 = vld [vmem:[#allocation58_spill] sm:$0xff] }
 0x148   : > { %v13942_v43 = vpop.permute.xlu0 %10201  ;;  %v9963_v7 = vunpack.i.l.bf16 %v19259_v47  ;;  %v9968_v62 = vunpack.i.l.bf16 %v19260_v34  ;;  %v14016_v21 = vsel %vm2045_vm2, %v13844_v49, %v9953_v5  ;;  %v14020_v50 = vsel %vm2045_vm2, %v13840_v28, %v9954_v54  ;;  %v19265_v5 = vld [vmem:[#allocation59_spill] sm:$0xff] }
 0x149   : > { %v9969_v51 = vunpack.i.h.bf16 %v19260_v34  ;;  %v9973_v36 = vunpack.i.l.bf16 %v19261_v8  ;;  %v9974_v0 = vunpack.i.h.bf16 %v19261_v8  ;;  %v9979_v55 = vunpack.i.h.bf16 %v19262_v1 }
 0x14a   : > { %v13977_v22 = vpop.permute.xlu1 %10206  ;;  %v9978_v59 = vunpack.i.l.bf16 %v19262_v1  ;;  %v9983_v47 = vunpack.i.l.bf16 %v19263_v16  ;;  %v14034_v28 = vsel %vm2045_vm2, %v13858_v6, %v9959_v13  ;;  %v9984_v54 = vunpack.i.h.bf16 %v19263_v16 }
 0x14b   : > { %19264 = vst [vmem:[#allocation43_spill] sm:$0xff] %v14034_v28  ;;  %v9989_v34 = vunpack.i.h.bf16 %v19265_v5  ;;  %v9988_v33 = vunpack.i.l.bf16 %v19265_v5  ;;  %v14041_v8 = vsel %vm2045_vm2, %v13865_v48, %v9958_v52  ;;  %v14045_v1 = vsel %vm2078_vm4, %v13873_v10, %v9963_v7  ;;  %v19267_v52 = vld [vmem:[#allocation60_spill] sm:$0xff]  ;;  %v19274_v28 = vld [vmem:[#allocation66_spill] sm:$0xff] }
 0x14c   : > { %v13995_v58 = vpop.permute.xlu0 %10211  ;;  %19266 = vst [vmem:[#allocation42_spill] sm:$0xff] %v14041_v8  ;;  %v14049_v41 = vsel %vm2078_vm4, %v13869_v27, %v9964_v3  ;;  %v14053_v6 = vsel %vm2078_vm4, %v13877_v17, %v9968_v62  ;;  %v14057_v13 = vsel %vm2078_vm4, %v13881_v44, %v9969_v51  ;;  %v14061_v48 = vsel %vm2078_vm4, %v13893_v30, %v9973_v36 }
 0x14d   : > { %v9994_v16 = vunpack.i.h.bf16 %v19267_v52  ;;  %v9993_v10 = vunpack.i.l.bf16 %v19267_v52  ;;  %v14069_v27 = vsel %vm2078_vm4, %v13885_v18, %v9974_v0  ;;  %v14073_v17 = vsel %vm2078_vm4, %v13901_v35, %v9978_v59  ;;  %v19270_v59 = vld [vmem:[#allocation63_spill] sm:$0xff]  ;;  %v19273_v52 = vld [vmem:[#allocation65_spill] sm:$0xff] }
 0x14e   : > { %v14024_v42 = vpop.permute.xlu1 %10216  ;;  %v14077_v44 = vsel %vm2078_vm4, %v13897_v57, %v9979_v55  ;;  %v14081_v30 = vsel %vm2078_vm4, %v13905_v46, %v9983_v47  ;;  %v14087_v62 = vsel %vm2078_vm4, %v13911_v11, %v9984_v54  ;;  %v14091_v18 = vsel %vm2078_vm4, %v13919_v45, %v9988_v33  ;;  %v19268_v57 = vld [vmem:[#allocation61_spill] sm:$0xff]  ;;  %v19269_v46 = vld [vmem:[#allocation62_spill] sm:$0xff]  ;;  %v19271_v33 = vld [vmem:[#allocation64_spill] sm:$0xff] }
 0x14f   : > { %v14095_v35 = vsel %vm2078_vm4, %v13915_v40, %v9989_v34  ;;  %v9998_v51 = vunpack.i.l.bf16 %v19268_v57  ;;  %v9999_v36 = vunpack.i.h.bf16 %v19268_v57  ;;  %v10004_v0 = vunpack.i.h.bf16 %v19269_v46 }
 0x150   : > { %v14030_v49 = vpop.permute.xlu0 %10221  ;;  %v10003_v55 = vunpack.i.l.bf16 %v19269_v46  ;;  %v10008_v47 = vunpack.i.l.bf16 %v19270_v59  ;;  %v14104_v11 = vsel %vm2078_vm4, %v13928_v53, %v9993_v10  ;;  %v14108_v45 = vsel %vm2078_vm4, %v13932_v56, %v9994_v16  ;;  %v19276_v10 = vld [vmem:[#allocation67_spill] sm:$0xff] }
 0x151   : > { %v10009_v40 = vunpack.i.h.bf16 %v19270_v59  ;;  %v10013_v54 = vunpack.i.l.bf16 %v19271_v33  ;;  %v10014_v34 = vunpack.i.h.bf16 %v19271_v33  ;;  %v10019_v57 = vunpack.i.h.bf16 %v19273_v52 }
 0x152   : > { %v14065_v7 = vpop.permute.xlu1 %10226  ;;  %v10018_v46 = vunpack.i.l.bf16 %v19273_v52  ;;  %v10023_v8 = vunpack.i.l.bf16 %v19274_v28  ;;  %v14122_v56 = vsel %vm2078_vm4, %v13953_v32, %v9998_v51  ;;  %v10024_v16 = vunpack.i.h.bf16 %v19274_v28  ;;  %v19277_v51 = vld [vmem:[#allocation68_spill] sm:$0xff] }
 0x153   : > { %v10029_v59 = vunpack.i.h.bf16 %v19276_v10  ;;  %v14129_v33 = vsel %vm2078_vm4, %v13946_v26, %v9999_v36  ;;  %v14133_v52 = vsel %vm2078_vm4, %v13957_v60, %v10003_v55  ;;  %v14141_v32 = vsel %vm2078_vm4, %v13969_v9, %v10008_v47 }
 0x154   : > { %v14083_v3 = vpop.permute.xlu0 %10231  ;;  %v14145_v28 = vsel %vm2078_vm4, %v13965_v24, %v10009_v40  ;;  %v14149_v26 = vsel %vm2078_vm4, %v13973_v29, %v10013_v54  ;;  %v10034_v36 = vunpack.i.h.bf16 %v19277_v51  ;;  %v10033_v60 = vunpack.i.l.bf16 %v19277_v51 }
 0x155   : > { %v14161_v9 = vsel %vm2078_vm4, %v13989_v14, %v10018_v46  ;;  %v14165_v24 = vsel %vm2078_vm4, %v13985_v15, %v10019_v57  ;;  %v14169_v29 = vsel %vm2078_vm4, %v13993_v38, %v10023_v8  ;;  %v14175_v47 = vsel %vm2078_vm4, %v13999_v61, %v10024_v16  ;;  %v19280_v15 = vld [vmem:[#allocation70_spill] sm:$0xff]  ;;  %v19281_v38 = vld [vmem:[#allocation71_spill] sm:$0xff]  ;;  %v19282_v57 = vld [vmem:[#allocation72_spill] sm:$0xff] }
 0x156   : > { %v14112_v5 = vpop.permute.xlu1 %10236  ;;  %v14183_v14 = vsel %vm2078_vm4, %v14003_v19, %v10029_v59  ;;  %v10043_v40 = vunpack.i.l.bf16 %v19280_v15  ;;  %v10044_v54 = vunpack.i.h.bf16 %v19280_v15  ;;  %v10049_v8 = vunpack.i.h.bf16 %v19281_v38 }
 0x157   : > { %19272 = vst [vmem:[#allocation45_spill] sm:$0xff] %v14112_v5  ;;  %v10028_v5 = vunpack.i.l.bf16 %v19276_v10  ;;  %v10053_v46 = vunpack.i.l.bf16 %v19282_v57  ;;  %v14192_v61 = vsel %vm2078_vm4, %v14016_v21, %v10033_v60  ;;  %v10054_v19 = vunpack.i.h.bf16 %v19282_v57  ;;  %v19295_v60 = vld [vmem:[#allocation80_spill] sm:$0xff] }
 0x158   : > { %v14118_v53 = vpop.permute.xlu0 %10241  ;;  %v14217_v51 = vsel %vm2111_vm5, %v14049_v41, %v10044_v54  ;;  %v19289_v54 = vld [vmem:[#allocation76_spill] sm:$0xff]  ;;  %v10093_v59 = vunpack.i.l.bf16 %v19295_v60 }
 0x159   : > { %19275 = vst [vmem:[#allocation44_spill] sm:$0xff] %v14118_v53  ;;  %v14137_v53 = vsel %vm2078_vm4, %v13961_v37, %v10004_v0  ;;  %v14157_v37 = vsel %vm2078_vm4, %v13981_v39, %v10014_v34  ;;  %v14179_v39 = vsel %vm2078_vm4, %v14007_v4, %v10028_v5  ;;  %v10048_v34 = vunpack.i.l.bf16 %v19281_v38  ;;  %v19283_v5 = vld [vmem:[#allocation73_spill] sm:$0xff]  ;;  %v19286_v38 = vld [vmem:[#allocation74_spill] sm:$0xff] }
 0x15a   : > { %v14153_v55 = vpop.permute.xlu1 %10246  ;;  %v14196_v4 = vsel %vm2078_vm4, %v14020_v50, %v10034_v36  ;;  %v10058_v16 = vunpack.i.l.bf16 %v19283_v5  ;;  %v10059_v15 = vunpack.i.h.bf16 %v19283_v5  ;;  %v14211_v50 = vsel %vm2111_vm5, %v14045_v1, %v10043_v40  ;;  %v19288_v36 = vld [vmem:[#allocation75_spill] sm:$0xff] }
 0x15b   : > { %19278 = vst [vmem:[#allocation47_spill] sm:$0xff] %v14153_v55  ;;  %v10063_v55 = vunpack.i.l.bf16 %v19286_v38  ;;  %v10069_v57 = vunpack.i.h.bf16 %v19288_v36  ;;  %v14221_v5 = vsel %vm2111_vm5, %v14053_v6, %v10048_v34  ;;  %v14229_v1 = vsel %vm2111_vm5, %v14061_v48, %v10053_v46 }
 0x15c   : > { %v14171_v0 = vpop.permute.xlu0 %10251  ;;  %v14233_v40 = vsel %vm2111_vm5, %v14069_v27, %v10054_v19  ;;  %v14237_v41 = vsel %vm2111_vm5, %v14073_v17, %v10058_v16  ;;  %v10073_v6 = vunpack.i.l.bf16 %v19289_v54  ;;  %v19291_v17 = vld [vmem:[#allocation77_spill] sm:$0xff] }
 0x15d   : > { %19279 = vst [vmem:[#allocation46_spill] sm:$0xff] %v14171_v0  ;;  %v10064_v0 = vunpack.i.h.bf16 %v19286_v38  ;;  %v14225_v38 = vsel %vm2111_vm5, %v14057_v13, %v10049_v8  ;;  %v14245_v13 = vsel %vm2111_vm5, %v14077_v44, %v10059_v15  ;;  %v14249_v48 = vsel %vm2111_vm5, %v14081_v30, %v10063_v55  ;;  %v19293_v30 = vld [vmem:[#allocation78_spill] sm:$0xff] }
 0x15e   : > { %v14200_v10 = vpop.permute.xlu1 %10256  ;;  %v10078_v8 = vunpack.i.l.bf16 %v19291_v17  ;;  %v14264_v44 = vsel %vm2111_vm5, %v14095_v35, %v10069_v57  ;;  %v10079_v16 = vunpack.i.h.bf16 %v19291_v17  ;;  %v10083_v55 = vunpack.i.l.bf16 %v19293_v30  ;;  %v19296_v57 = vld [vmem:[#allocation81_spill] sm:$0xff] }
 0x15f   : > { %19284 = vst [vmem:[#allocation49_spill] sm:$0xff] %v14200_v10  ;;  %v10068_v10 = vunpack.i.l.bf16 %v19288_v36  ;;  %v10074_v36 = vunpack.i.h.bf16 %v19289_v54  ;;  %v14253_v27 = vsel %vm2111_vm5, %v14087_v62, %v10064_v0  ;;  %v10084_v62 = vunpack.i.h.bf16 %v19293_v30  ;;  %v19294_v0 = vld [vmem:[#allocation79_spill] sm:$0xff] }
 0x160   : > { %v14206_v21 = vpop.permute.xlu0 %10261  ;;  %v10089_v15 = vunpack.i.h.bf16 %v19294_v0  ;;  %v10088_v54 = vunpack.i.l.bf16 %v19294_v0  ;;  %v10098_v17 = vunpack.i.l.bf16 %v19296_v57  ;;  %v14286_v30 = vsel %vm2111_vm5, %v14122_v56, %v10078_v8 }
 0x161   : > { %19287 = vst [vmem:[#allocation48_spill] sm:$0xff] %v14206_v21  ;;  %v14260_v19 = vsel %vm2111_vm5, %v14091_v18, %v10068_v10  ;;  %v14274_v18 = vsel %vm2111_vm5, %v14104_v11, %v10073_v6  ;;  %v14278_v35 = vsel %vm2111_vm5, %v14108_v45, %v10074_v36  ;;  %v10094_v10 = vunpack.i.h.bf16 %v19295_v60  ;;  %v19299_v36 = vld [vmem:[#allocation83_spill] sm:$0xff] }
 0x162   : > { %v14241_v34 = vpop.permute.xlu1 %10266  ;;  %v10099_v0 = vunpack.i.h.bf16 %v19296_v57  ;;  %v14295_v45 = vsel %vm2111_vm5, %v14129_v33, %v10079_v16  ;;  %v14299_v60 = vsel %vm2111_vm5, %v14133_v52, %v10083_v55  ;;  %v10108_v56 = vunpack.i.l.bf16 %v19299_v36  ;;  %v19300_v55 = vld [vmem:[#allocation84_spill] sm:$0xff] }
 0x163   : > { %19290 = vst [vmem:[#allocation50_spill] sm:$0xff] %v14241_v34  ;;  %v19298_v34 = vld [vmem:[#allocation82_spill] sm:$0xff]  ;;  %v14305_v8 = vsel %vm2111_vm5, %v14137_v53, %v10084_v62  ;;  %v14313_v33 = vsel %vm2111_vm5, %v14145_v28, %v10089_v15  ;;  %v14317_v52 = vsel %vm2111_vm5, %v14149_v26, %v10093_v59  ;;  %v14321_v16 = vsel %vm2111_vm5, %v14157_v37, %v10094_v10 }
 0x164   : > { %v14256_v46 = vpop.permute.xlu0 %10271  ;;  %v10104_v21 = vunpack.i.h.bf16 %v19298_v34  ;;  %v10103_v11 = vunpack.i.l.bf16 %v19298_v34  ;;  %v14309_v34 = vsel %vm2111_vm5, %v14141_v32, %v10088_v54  ;;  %v14325_v53 = vsel %vm2111_vm5, %v14161_v9, %v10098_v17  ;;  %v19301_v9 = vld [vmem:[#allocation86_spill] sm:$0xff] }
 0x165   : > { %19292 = vst [vmem:[#allocation51_spill] sm:$0xff] %v14256_v46  ;;  %v10114_v62 = vunpack.i.h.bf16 %v19300_v55  ;;  %v10113_v32 = vunpack.i.l.bf16 %v19300_v55  ;;  %v14333_v28 = vsel %vm2111_vm5, %v14165_v24, %v10099_v0  ;;  %v10123_v59 = vunpack.i.l.bf16 %v19301_v9 }
 0x166   : > { %v14282_v46 = vpop.permute.xlu1 %10276  ;;  %v14337_v26 = vsel %vm2111_vm5, %v14169_v29, %v10103_v11  ;;  %v14341_v37 = vsel %vm2111_vm5, %v14175_v47, %v10104_v21  ;;  %v14348_v10 = vsel %vm2111_vm5, %v14179_v39, %v10108_v56  ;;  %v10124_v57 = vunpack.i.h.bf16 %v19301_v9  ;;  %v19304_v29 = vld [vmem:[#allocation87_spill] sm:$0xff]  ;;  %v19305_v47 = vld [vmem:[#allocation88_spill] sm:$0xff] }
 0x167   : > { %19297 = vst [vmem:[#allocation52_spill] sm:$0xff] %v14282_v46  ;;  %v10109_v46 = vunpack.i.h.bf16 %v19299_v36  ;;  %19302 = vst [vmem:[#allocation53_spill] sm:$0xff] %v14348_v10  ;;  %v10128_v17 = vunpack.i.l.bf16 %v19304_v29  ;;  %v10129_v0 = vunpack.i.h.bf16 %v19304_v29  ;;  %v10134_v21 = vunpack.i.h.bf16 %v19305_v47  ;;  %v19306_v36 = vld [vmem:[#allocation89_spill] sm:$0xff] }
 0x168   : > { %v14291_v6 = vpop.permute.xlu0 %10281  ;;  %v10133_v11 = vunpack.i.l.bf16 %v19305_v47  ;;  %v10138_v55 = vunpack.i.l.bf16 %v19306_v36  ;;  %v14362_v39 = vsel %vm2111_vm5, %v14192_v61, %v10113_v32  ;;  %v10143_v56 = vunpack.i.l.bf16 %v13684_v20 }
 0x169   : > { %v14352_v24 = vsel %vm2111_vm5, %v14183_v14, %v10109_v46  ;;  %v14366_v14 = vsel %vm2111_vm5, %v14196_v4, %v10114_v62  ;;  %v10139_v46 = vunpack.i.h.bf16 %v19306_v36  ;;  %v2145_v10 = vsel %vm2144_vm6, %v14211_v50, %v10123_v59 }
 0x16a   : > { %v14329_v54 = vpop.permute.xlu1 %10286  ;;  %19303 = vst [vmem:[#allocation54_spill] sm:$0xff] %v14352_v24  ;;  %v10144_v61 = vunpack.i.h.bf16 %v13684_v20  ;;  %v2146_v4 = vsel %vm2144_vm6, %v14217_v51, %v10124_v57  ;;  %v14383_v62 = vsel %vm2144_vm6, %v14221_v5, %v10128_v17  ;;  %v10149_v36 = vunpack.i.h.bf16 %v13712_v31 }
 0x16b   : > { %v10148_v24 = vunpack.i.l.bf16 %v13712_v31  ;;  %v2148_v47 = vsel %vm2144_vm6, %v14225_v38, %v10129_v0  ;;  %v14391_v50 = vsel %vm2144_vm6, %v14229_v1, %v10133_v11  ;;  %v14395_v20 = vsel %vm2144_vm6, %v14233_v40, %v10134_v21 }
 0x16c   : > { %v14344_v15 = vpop.permute.xlu0 %10291  ;;  %v14399_v51 = vsel %vm2144_vm6, %v14237_v41, %v10138_v55  ;;  %v14403_v5 = vsel %vm2144_vm6, %v14245_v13, %v10139_v46  ;;  %v14407_v31 = vsel %vm2144_vm6, %v14249_v48, %v10143_v56  ;;  %v10154_v38 = vunpack.i.h.bf16 %v13730_v12  ;;  %v19309_v55 = vld [vmem:[#allocation39_spill] sm:$0xff] }
 0x16d   : > { %v10153_v1 = vunpack.i.l.bf16 %v13730_v12  ;;  %v14415_v40 = vsel %vm2144_vm6, %v14253_v27, %v10144_v61  ;;  %v10159_v41 = vunpack.i.h.bf16 %v13760_v25  ;;  %v10158_v57 = vunpack.i.l.bf16 %v13760_v25  ;;  %v19308_v27 = vld [vmem:[#allocation37_spill] sm:$0xff]  ;;  %v19310_v61 = vld [vmem:[#allocation38_spill] sm:$0xff] }
 0x16e   : > { %v14370_v9 = vpop.permute.xlu1 %10296  ;;  %v10163_v13 = vunpack.i.l.bf16 %v13766_v23  ;;  %v14424_v48 = vsel %vm2144_vm6, %v14260_v19, %v10148_v24  ;;  %v14428_v12 = vsel %vm2144_vm6, %v14264_v44, %v10149_v36  ;;  %v10164_v0 = vunpack.i.h.bf16 %v13766_v23 }
 0x16f   : > { %v10168_v21 = vunpack.i.l.bf16 %v19308_v27  ;;  %v10169_v11 = vunpack.i.h.bf16 %v19308_v27  ;;  %v10174_v25 = vunpack.i.h.bf16 %v19309_v55  ;;  %v10173_v46 = vunpack.i.l.bf16 %v19309_v55 }
 0x170   : > { %v14377_v32 = vpop.permute.xlu0 %10301  ;;  %v10178_v56 = vunpack.i.l.bf16 %v13848_v63  ;;  %v2157_v19 = vsel %vm2144_vm6, %v14274_v18, %v10153_v1  ;;  %v2158_v24 = vsel %vm2144_vm6, %v14278_v35, %v10154_v38  ;;  %v10179_v44 = vunpack.i.h.bf16 %v13848_v63 }
 0x171   : > { %v10183_v23 = vunpack.i.l.bf16 %v19310_v61  ;;  %v2159_v27 = vsel %vm2144_vm6, %v14286_v30, %v10158_v57  ;;  %v2160_v55 = vsel %vm2144_vm6, %v14295_v45, %v10159_v41  ;;  %v14450_v29 = vsel %vm2144_vm6, %v14299_v60, %v10163_v13 }
 0x172   : > { %v14411_v59 = vpop.permute.xlu1 %10306  ;;  %v10184_v18 = vunpack.i.h.bf16 %v19310_v61  ;;  %v2162_v63 = vsel %vm2144_vm6, %v14305_v8, %v10164_v0  ;;  %v14459_v35 = vsel %vm2144_vm6, %v14309_v34, %v10168_v21  ;;  %v10204_v30 = vunpack.i.h.bf16 %v13942_v43 }
 0x173   : > { %v10203_v38 = vunpack.i.l.bf16 %v13942_v43  ;;  %v14465_v45 = vsel %vm2144_vm6, %v14313_v33, %v10169_v11  ;;  %v14469_v60 = vsel %vm2144_vm6, %v14317_v52, %v10173_v46  ;;  %v14473_v41 = vsel %vm2144_vm6, %v14321_v16, %v10174_v25 }
 0x174   : > { %v14420_v17 = vpop.permute.xlu0 %10311  ;;  %v14477_v8 = vsel %vm2144_vm6, %v14325_v53, %v10178_v56  ;;  %v14481_v34 = vsel %vm2144_vm6, %v14333_v28, %v10179_v44  ;;  %v14485_v43 = vsel %vm2144_vm6, %v14337_v26, %v10183_v23  ;;  %v10209_v33 = vunpack.i.h.bf16 %v13977_v22 }
 0x175   : > { %v10208_v52 = vunpack.i.l.bf16 %v13977_v22  ;;  %v14493_v16 = vsel %vm2144_vm6, %v14341_v37, %v10184_v18  ;;  %v10214_v13 = vunpack.i.h.bf16 %v13995_v58  ;;  %v10213_v28 = vunpack.i.l.bf16 %v13995_v58  ;;  %v19311_v18 = vld [vmem:[#allocation45_spill] sm:$0xff] }
 0x176   : > { %v14442_v36 = vpop.permute.xlu1 %10316  ;;  %v10218_v21 = vunpack.i.l.bf16 %v14024_v42  ;;  %v2178_v22 = vsel %vm2177_vm7, %v2145_v10, %v10203_v38  ;;  %v2179_v11 = vsel %vm2177_vm7, %v2146_v4, %v10204_v30  ;;  %v10219_v25 = vunpack.i.h.bf16 %v14024_v42  ;;  %v19312_v38 = vld [vmem:[#allocation44_spill] sm:$0xff] }
 0x177   : > { %v10224_v37 = vunpack.i.h.bf16 %v14030_v49  ;;  %v10223_v46 = vunpack.i.l.bf16 %v14030_v49  ;;  %v10228_v56 = vunpack.i.l.bf16 %v14065_v7  ;;  %v2180_v58 = vsel %vm2177_vm7, %v14383_v62, %v10208_v52 }
 0x178   : > { %v14453_v1 = vpop.permute.xlu0 %10321  ;;  %v2181_v44 = vsel %vm2177_vm7, %v2148_v47, %v10209_v33  ;;  %v10229_v61 = vunpack.i.h.bf16 %v14065_v7  ;;  %v10233_v23 = vunpack.i.l.bf16 %v14083_v3  ;;  %v2182_v42 = vsel %vm2177_vm7, %v14391_v50, %v10213_v28 }
 0x179   : > { %v2183_v49 = vsel %vm2177_vm7, %v14395_v20, %v10214_v13  ;;  %v10234_v4 = vunpack.i.h.bf16 %v14083_v3  ;;  %v10238_v30 = vunpack.i.l.bf16 %v19311_v18  ;;  %v14525_v7 = vsel %vm2177_vm7, %v14399_v51, %v10218_v21 }
 0x17a   : > { %v14489_v57 = vpop.permute.xlu1 %10326  ;;  %v10239_v47 = vunpack.i.h.bf16 %v19311_v18  ;;  %v10244_v33 = vunpack.i.h.bf16 %v19312_v38  ;;  %v10243_v50 = vunpack.i.l.bf16 %v19312_v38  ;;  %v14532_v20 = vsel %vm2177_vm7, %v14403_v5, %v10219_v25  ;;  %v19313_v5 = vld [vmem:[#allocation47_spill] sm:$0xff] }
 0x17b   : > { %v14536_v3 = vsel %vm2177_vm7, %v14407_v31, %v10223_v46  ;;  %v14540_v52 = vsel %vm2177_vm7, %v14415_v40, %v10224_v37  ;;  %v14544_v51 = vsel %vm2177_vm7, %v14424_v48, %v10228_v56  ;;  %v14548_v13 = vsel %vm2177_vm7, %v14428_v12, %v10229_v61  ;;  %v19314_v37 = vld [vmem:[#allocation46_spill] sm:$0xff]  ;;  %v19315_v61 = vld [vmem:[#allocation49_spill] sm:$0xff] }
 0x17c   : > { %v14498_v0 = vpop.permute.xlu0 %10331  ;;  %v14551_v28 = vsel %vm2177_vm7, %v2157_v19, %v10233_v23  ;;  %v10249_v21 = vunpack.i.h.bf16 %v19313_v5  ;;  %v10248_v31 = vunpack.i.l.bf16 %v19313_v5  ;;  %v14558_v40 = vsel %vm2177_vm7, %v2158_v24, %v10234_v4 }
 0x17d   : > { %v14561_v48 = vsel %vm2177_vm7, %v2159_v27, %v10238_v30  ;;  %v10254_v46 = vunpack.i.h.bf16 %v19314_v37  ;;  %v10253_v12 = vunpack.i.l.bf16 %v19314_v37  ;;  %v14568_v19 = vsel %vm2177_vm7, %v2160_v55, %v10239_v47 }
 0x17e   : > { %v14513_v10 = vpop.permute.xlu1 %10336  ;;  %v10258_v23 = vunpack.i.l.bf16 %v19315_v61  ;;  %v14573_v18 = vsel %vm2177_vm7, %v14450_v29, %v10243_v50  ;;  %v14576_v24 = vsel %vm2177_vm7, %v2162_v63, %v10244_v33  ;;  %v10284_v27 = vunpack.i.h.bf16 %v14291_v6  ;;  %v19316_v50 = vld [vmem:[#allocation48_spill] sm:$0xff] }
 0x17f   : > { %v10283_v4 = vunpack.i.l.bf16 %v14291_v6  ;;  %v10289_v30 = vunpack.i.h.bf16 %v14329_v54  ;;  %v10288_v38 = vunpack.i.l.bf16 %v14329_v54  ;;  %v14584_v55 = vsel %vm2177_vm7, %v14459_v35, %v10248_v31 }
 0x180   : > { %v14521_v62 = vpop.permute.xlu0 %10341  ;;  %v14588_v47 = vsel %vm2177_vm7, %v14465_v45, %v10249_v21  ;;  %v10294_v29 = vunpack.i.h.bf16 %v14344_v15  ;;  %v10293_v63 = vunpack.i.l.bf16 %v14344_v15  ;;  %v14596_v6 = vsel %vm2177_vm7, %v14469_v60, %v10253_v12 }
 0x181   : > { %v14600_v54 = vsel %vm2177_vm7, %v14473_v41, %v10254_v46  ;;  %v14606_v21 = vsel %vm2177_vm7, %v14477_v8, %v10258_v23  ;;  %v2213_v60 = vsel %vm2210_vm8, %v2180_v58, %v10288_v38  ;;  %v2214_v12 = vsel %vm2210_vm8, %v2181_v44, %v10289_v30 }
 0x182   : > { %v14555_v25 = vpop.permute.xlu1 %10346  ;;  %v2211_v41 = vsel %vm2210_vm8, %v2178_v22, %v10283_v4  ;;  %v2212_v46 = vsel %vm2210_vm8, %v2179_v11, %v10284_v27  ;;  %v2215_v53 = vsel %vm2210_vm8, %v2182_v42, %v10293_v63  ;;  %v2216_v26 = vsel %vm2210_vm8, %v2183_v49, %v10294_v29 }
 0x183   : > { %v10298_v15 = vunpack.i.l.bf16 %v14370_v9  ;;  %v10299_v44 = vunpack.i.h.bf16 %v14370_v9  ;;  %v10304_v22 = vunpack.i.h.bf16 %v14377_v32  ;;  %v10303_v42 = vunpack.i.l.bf16 %v14377_v32 }
 0x184   : > { %v14565_v56 = vpop.permute.xlu0 %10351  ;;  %v10309_v49 = vunpack.i.h.bf16 %v14411_v59  ;;  %v10308_v29 = vunpack.i.l.bf16 %v14411_v59 }
 0x185   : > { %v2218_v59 = vsel %vm2210_vm8, %v14532_v20, %v10299_v44  ;;  %v10329_v20 = vunpack.i.h.bf16 %v14489_v57 }
 0x186   : > { %v14592_v33 = vpop.permute.xlu1 %10356 }
 0x188   : > { %v10362_v45 = vpop.permute.xlu0 %10361 }
 0x189   : > { %v10364_v31 = vunpack.i.h.bf16 %v10362_v45  ;;  %v10363_v37 = vunpack.i.l.bf16 %v10362_v45 }
 0x18a   : > { %v10367_v5 = vpop.permute.xlu1 %10366 }
 0x18b   : > { %v2244_v8 = vsel %vm2243_vm9, %v2211_v41, %v10363_v37  ;;  %v2245_v23 = vsel %vm2243_vm9, %v2212_v46, %v10364_v31  ;;  %v10369_v45 = vunpack.i.h.bf16 %v10367_v5  ;;  %v10368_v35 = vunpack.i.l.bf16 %v10367_v5 }
 0x18c   : > { %v10372_v58 = vpop.permute.xlu0 %10371  ;;  %v2276_v38 = vpack.c.bf16 %v2245_v23, %v2244_v8  ;;  %v2217_v37 = vsel %vm2210_vm8, %v14525_v7, %v10298_v15  ;;  %v10323_v7 = vunpack.i.l.bf16 %v14453_v1  ;;  %v2222_v15 = vsel %vm2210_vm8, %v14548_v13, %v10309_v49 }
 0x18d   : > { %v10374_v11 = vunpack.i.h.bf16 %v10372_v58  ;;  %v10373_v27 = vunpack.i.l.bf16 %v10372_v58  ;;  %v2246_v4 = vsel %vm2243_vm9, %v2213_v60, %v10368_v35  ;;  %v2247_v30 = vsel %vm2243_vm9, %v2214_v12, %v10369_v45 }
 0x18e   : > { %9570 = vmatprep.mubr.msk.bf16.mxu0 %vm2312_vm10, %v2276_v38  ;;  %v10377_v5 = vpop.permute.xlu1 %10376  ;;  %v2277_v31 = vpack.c.bf16 %v2247_v30, %v2246_v4  ;;  %v10314_v35 = vunpack.i.h.bf16 %v14420_v17  ;;  %v10313_v60 = vunpack.i.l.bf16 %v14420_v17  ;;  %v2221_v17 = vsel %vm2210_vm8, %v14544_v51, %v10308_v29 }
 0x18f   : > { %v2248_v63 = vsel %vm2243_vm9, %v2215_v53, %v10373_v27  ;;  %v2249_v9 = vsel %vm2243_vm9, %v2216_v26, %v10374_v11  ;;  %v10379_v32 = vunpack.i.h.bf16 %v10377_v5  ;;  %v10378_v41 = vunpack.i.l.bf16 %v10377_v5 }
 0x190   : > { %v10382_v46 = vpop.permute.xlu0 %10381  ;;  %v2278_v8 = vpack.c.bf16 %v2249_v9, %v2248_v63  ;;  %9571 = vmatmul.mubr.msk.bf16.vlgmr.msra.gmra.mrb[0].mxu0 %vm2312_vm10, %v2277_v31  ;;  %v2219_v53 = vsel %vm2210_vm8, %v14536_v3, %v10303_v42  ;;  %v2220_v26 = vsel %vm2210_vm8, %v14540_v52, %v10304_v22  ;;  %v10324_v45 = vunpack.i.h.bf16 %v14453_v1 }
 0x191   : > { %v10384_v12 = vunpack.i.h.bf16 %v10382_v46  ;;  %v10383_v23 = vunpack.i.l.bf16 %v10382_v46  ;;  %v10328_v3 = vunpack.i.l.bf16 %v14489_v57  ;;  %v10333_v38 = vunpack.i.l.bf16 %v14498_v0 }
 0x192   : > { %9574 = vmatprep.mubr.msk.bf16.mxu0 %vm2312_vm10, %v2278_v8  ;;  %v10387_v58 = vpop.permute.xlu1 %10386  ;;  %v2250_v52 = vsel %vm2243_vm9, %v2217_v37, %v10378_v41  ;;  %v2251_v44 = vsel %vm2243_vm9, %v2218_v59, %v10379_v32  ;;  %v2223_v51 = vsel %vm2210_vm8, %v14551_v28, %v10313_v60  ;;  %v2224_v13 = vsel %vm2210_vm8, %v14558_v40, %v10314_v35 }
 0x193   : > { %v2252_v1 = vsel %vm2243_vm9, %v2219_v53, %v10383_v23  ;;  %v2253_v11 = vsel %vm2243_vm9, %v2220_v26, %v10384_v12  ;;  %v10319_v27 = vunpack.i.h.bf16 %v14442_v36  ;;  %v10318_v57 = vunpack.i.l.bf16 %v14442_v36 }
 0x194   : > { %v10392_v22 = vpop.permute.xlu0 %10391  ;;  %v10334_v42 = vunpack.i.h.bf16 %v14498_v0  ;;  %v2227_v49 = vsel %vm2210_vm8, %v14573_v18, %v10323_v7  ;;  %v10389_v4 = vunpack.i.h.bf16 %v10387_v58  ;;  %v10388_v30 = vunpack.i.l.bf16 %v10387_v58 }
 0x195   : > { %v2279_v28 = vpack.c.bf16 %v2251_v44, %v2250_v52  ;;  %v2228_v40 = vsel %vm2210_vm8, %v14576_v24, %v10324_v45  ;;  %v2229_v63 = vsel %vm2210_vm8, %v14584_v55, %v10328_v3  ;;  %v2230_v9 = vsel %vm2210_vm8, %v14588_v47, %v10329_v20 }
 0x196   : > { %v14662_v29 = vpop.permute.xlu1 %10396  ;;  %v2231_v0 = vsel %vm2210_vm8, %v14596_v6, %v10333_v38  ;;  %v2280_v31 = vpack.c.bf16 %v2253_v11, %v2252_v1  ;;  %v10394_v18 = vunpack.i.h.bf16 %v10392_v22  ;;  %v10393_v37 = vunpack.i.l.bf16 %v10392_v22 }
 0x197   : > { %v2232_v24 = vsel %vm2210_vm8, %v14600_v54, %v10334_v42  ;;  %v10339_v46 = vunpack.i.h.bf16 %v14513_v10  ;;  %v10338_v55 = vunpack.i.l.bf16 %v14513_v10  ;;  %v10344_v47 = vunpack.i.h.bf16 %v14521_v62 }
 0x198   : > { %v10402_v5 = vpop.permute.xlu0 %10401  ;;  %9575 = vmatmul.mubr.msk.bf16.gmra.mrb[4].mxu0 %vm2312_vm10, %v2279_v28  ;;  %v2254_v6 = vsel %vm2243_vm9, %v2221_v17, %v10388_v30  ;;  %v2255_v8 = vsel %vm2243_vm9, %v2222_v15, %v10389_v4  ;;  %v10343_v23 = vunpack.i.l.bf16 %v14521_v62  ;;  %v2256_v10 = vsel %vm2243_vm9, %v2223_v51, %v10393_v37 }
 0x199   : > { %v10404_v32 = vunpack.i.h.bf16 %v10402_v5  ;;  %v10403_v41 = vunpack.i.l.bf16 %v10402_v5  ;;  %9578 = vmatprep.mubr.msk.bf16.mxu0 %vm2312_vm10, %v2280_v31  ;;  %v2257_v7 = vsel %vm2243_vm9, %v2224_v13, %v10394_v18  ;;  %v10399_v17 = vunpack.i.h.bf16 %v14662_v29  ;;  %v19321_v18 = vld [vmem:[#allocation50_spill] sm:$0xff] }
 0x19a   : > { %v10407_v35 = vpop.permute.xlu1 %10406  ;;  %v2281_v3 = vpack.c.bf16 %v2255_v8, %v2254_v6  ;;  %v10398_v62 = vunpack.i.l.bf16 %v14662_v29  ;;  %v2282_v11 = vpack.c.bf16 %v2257_v7, %v2256_v10  ;;  %v19318_v30 = vunpack.i.l.bf16 %v19316_v50  ;;  %v19324_v7 = vld [vmem:[#allocation53_spill] sm:$0xff] }
 0x19b   : > { %v2260_v60 = vsel %vm2243_vm9, %v2227_v49, %v10403_v41  ;;  %v2261_v12 = vsel %vm2243_vm9, %v2228_v40, %v10404_v32  ;;  %v10409_v54 = vunpack.i.h.bf16 %v10407_v35  ;;  %v10408_v59 = vunpack.i.l.bf16 %v10407_v35 }
 0x19c   : > { %v10412_v53 = vpop.permute.xlu0 %10411  ;;  %v2284_v26 = vpack.c.bf16 %v2261_v12, %v2260_v60  ;;  %v19317_v49 = vunpack.i.h.bf16 %v19315_v61  ;;  %v2202_v29 = vsel %vm2177_vm7, %v14485_v43, %v19318_v30  ;;  %v2226_v43 = vsel %vm2210_vm8, %v14568_v19, %v10319_v27 }
 0x19d   : > { %v10414_v45 = vunpack.i.h.bf16 %v10412_v53  ;;  %v10413_v20 = vunpack.i.l.bf16 %v10412_v53  ;;  %v2262_v15 = vsel %vm2243_vm9, %v2229_v63, %v10408_v59  ;;  %v2263_v58 = vsel %vm2243_vm9, %v2230_v9, %v10409_v54  ;;  %v19319_v63 = vld [vmem:[#allocation41_spill] sm:$0xff] }
 0x19e   : > { %9586 = vmatprep.mubr.msk.bf16.mxu1 %vm2312_vm10, %v2284_v26  ;;  %v10417_v44 = vpop.permute.xlu1 %10416  ;;  %v2285_v22 = vpack.c.bf16 %v2263_v58, %v2262_v15  ;;  %v2201_v4 = vsel %vm2177_vm7, %v14481_v34, %v19317_v49  ;;  %v10194_v9 = vunpack.i.h.bf16 %v19319_v63  ;;  %v2225_v34 = vsel %vm2210_vm8, %v14561_v48, %v10318_v57 }
 0x19f   : > { %v2264_v38 = vsel %vm2243_vm9, %v2231_v0, %v10413_v20  ;;  %v2265_v52 = vsel %vm2243_vm9, %v2232_v24, %v10414_v45  ;;  %v10419_v51 = vunpack.i.h.bf16 %v10417_v44  ;;  %v10418_v13 = vunpack.i.l.bf16 %v10417_v44 }
 0x1a0   : > { %v10422_v1 = vpop.permute.xlu0 %10421  ;;  %v2286_v42 = vpack.c.bf16 %v2265_v52, %v2264_v38  ;;  %9579 = vmatmul.mubr.msk.bf16.gmra.mrb[8].mxu0 %vm2312_vm10, %v2281_v3  ;;  %9587 = vmatmul.mubr.msk.bf16.vlgmr.msra.gmra.mrb[0].mxu1 %vm2312_vm10, %v2285_v22  ;;  %v19320_v0 = vunpack.i.h.bf16 %v19316_v50  ;;  %v2233_v5 = vsel %vm2210_vm8, %v14606_v21, %v10338_v55  ;;  %v2234_v50 = vsel %vm2210_vm8, %v2201_v4, %v10339_v46  ;;  %v19322_v46 = vld [vmem:[#allocation51_spill] sm:$0xff] }
 0x1a1   : > { %v10424_v28 = vunpack.i.h.bf16 %v10422_v1  ;;  %v10423_v40 = vunpack.i.l.bf16 %v10422_v1  ;;  %9582 = vmatprep.mubr.msk.bf16.mxu0 %vm2312_vm10, %v2282_v11  ;;  %v2235_v31 = vsel %vm2210_vm8, %v2202_v29, %v10343_v23  ;;  %v2258_v48 = vsel %vm2243_vm9, %v2225_v34, %v10398_v62  ;;  %v19327_v1 = vld [vmem:[#allocation40_spill] sm:$0xff]  ;;  %v19328_v29 = vld [vmem:[#allocation69_spill] sm:$0xff] }
 0x1a2   : > { %v2203_v61 = vsel %vm2177_vm7, %v14493_v16, %v19320_v0  ;;  %9590 = vmatprep.mubr.msk.bf16.mxu1 %vm2312_vm10, %v2286_v42  ;;  %v2259_v36 = vsel %vm2243_vm9, %v2226_v43, %v10399_v17  ;;  %v2266_v57 = vsel %vm2243_vm9, %v2233_v5, %v10418_v13  ;;  %v2267_v19 = vsel %vm2243_vm9, %v2234_v50, %v10419_v51  ;;  %v10427_v41 = vpop.permute.xlu1 %10426  ;;  %v19326_v17 = vld [vmem:[#allocation54_spill] sm:$0xff]  ;;  %v19332_v0 = vld [vmem:[#allocation43_spill] sm:$0xff]  ;;  %v19333_v34 = vld [vmem:[#allocation52_spill] sm:$0xff] }
 0x1a3   : > { %v2236_v16 = vsel %vm2210_vm8, %v2203_v61, %v10344_v47  ;;  %v10193_v27 = vunpack.i.l.bf16 %v19319_v63  ;;  %v10269_v37 = vunpack.i.h.bf16 %v19321_v18  ;;  %v2268_v21 = vsel %vm2243_vm9, %v2235_v31, %v10423_v40  ;;  %v19330_v40 = vld [vmem:[#allocation42_spill] sm:$0xff]  ;;  %v19334_v50 = vld [vmem:[#allocation85_spill] sm:$0xff] }
 0x1a4   : > { %v2269_v32 = vsel %vm2243_vm9, %v2236_v16, %v10424_v28  ;;  %v10268_v24 = vunpack.i.l.bf16 %v19321_v18  ;;  %v10274_v55 = vunpack.i.h.bf16 %v19322_v46  ;;  %v10273_v47 = vunpack.i.l.bf16 %v19322_v46  ;;  %v10432_v8 = vpop.permute.xlu0 %10431 }
 0x1a5   : > { %v10349_v6 = vunpack.i.h.bf16 %v14555_v25  ;;  %v10348_v35 = vunpack.i.l.bf16 %v14555_v25  ;;  %v10354_v60 = vunpack.i.h.bf16 %v14565_v56  ;;  %v2283_v12 = vpack.c.bf16 %v2259_v36, %v2258_v48 }
 0x1a6   : > { %v2287_v23 = vpack.c.bf16 %v2267_v19, %v2266_v57  ;;  %v10353_v54 = vunpack.i.l.bf16 %v14565_v56  ;;  %v10429_v59 = vunpack.i.h.bf16 %v10427_v41  ;;  %v10428_v53 = vunpack.i.l.bf16 %v10427_v41  ;;  %v10437_v30 = vpop.permute.xlu1 %10436 }
 0x1a7   : > { %v2288_v26 = vpack.c.bf16 %v2269_v32, %v2268_v21  ;;  %v19323_v10 = vunpack.i.l.bf16 %v13889_v2  ;;  %v19325_v20 = vunpack.i.h.bf16 %v13889_v2  ;;  %v10434_v25 = vunpack.i.h.bf16 %v10432_v8 }
 0x1a8   : > { %v10433_v58 = vunpack.i.l.bf16 %v10432_v8  ;;  %9583 = vmatmul.mubr.msk.bf16.gmra.mrb[12].mxu0 %vm2312_vm10, %v2283_v12  ;;  %9591 = vmatmul.mubr.msk.bf16.gmra.mrb[4].mxu1 %vm2312_vm10, %v2287_v23  ;;  %v2173_v56 = vsel %vm2144_vm6, %v14362_v39, %v10193_v27  ;;  %v2174_v3 = vsel %vm2144_vm6, %v14366_v14, %v10194_v9  ;;  %v10199_v11 = vunpack.i.h.bf16 %v19327_v1 }
 0x1a9   : > { %v2171_v45 = vsel %vm2144_vm6, %v19324_v7, %v19323_v10  ;;  %v2172_v15 = vsel %vm2144_vm6, %v19326_v17, %v19325_v20  ;;  %9594 = vmatprep.mubr.msk.bf16.mxu1 %vm2312_vm10, %v2288_v26  ;;  %v2206_v2 = vsel %vm2177_vm7, %v2173_v56, %v10273_v47  ;;  %v2207_v52 = vsel %vm2177_vm7, %v2174_v3, %v10274_v55  ;;  %v14835_v26 = vld [vmem:[%s19338_s21] ss:$0 sm:$0xff] }
 0x1aa   : > { %v2204_v62 = vsel %vm2177_vm7, %v2171_v45, %v10268_v24  ;;  %v2205_v38 = vsel %vm2177_vm7, %v2172_v15, %v10269_v37  ;;  %v2239_v51 = vsel %vm2210_vm8, %v2206_v2, %v10353_v54  ;;  %v2240_v39 = vsel %vm2210_vm8, %v2207_v52, %v10354_v60  ;;  %v2756_v60 = vld [vmem:[#allocation3 + $0x1] sm:$0xff]  ;;  %v14840_v7 = vld [vmem:[%s18872_s3] ss:$0 sm:$0xff] }
 0x1ab   : > { %v2237_v44 = vsel %vm2210_vm8, %v2204_v62, %v10348_v35  ;;  %v2238_v22 = vsel %vm2210_vm8, %v2205_v38, %v10349_v6  ;;  %v10198_v42 = vunpack.i.l.bf16 %v19327_v1  ;;  %v2272_v49 = vsel %vm2243_vm9, %v2239_v51, %v10433_v58  ;;  %v2788_v54 = vld [vmem:[#allocation3 + $0x2] sm:$0xff] }
 0x1ac   : > { %v2270_v14 = vsel %vm2243_vm9, %v2237_v44, %v10428_v53  ;;  %v2271_v13 = vsel %vm2243_vm9, %v2238_v22, %v10429_v59  ;;  %v2273_v4 = vsel %vm2243_vm9, %v2240_v39, %v10434_v25  ;;  %v19329_v28 = vunpack.i.l.bf16 %v19328_v29 }
 0x1ad   : > { %v19331_v9 = vunpack.i.h.bf16 %v19328_v29  ;;  %v10279_v43 = vunpack.i.h.bf16 %v19333_v34  ;;  %v10278_v5 = vunpack.i.l.bf16 %v19333_v34  ;;  %v19335_v31 = vunpack.i.l.bf16 %v19334_v50 }
 0x1ae   : > { %v2109_v63 = vsel %vm2078_vm4, %v19330_v40, %v19329_v28  ;;  %v10359_v48 = vunpack.i.h.bf16 %v14592_v33  ;;  %v10358_v36 = vunpack.i.l.bf16 %v14592_v33  ;;  %v2289_v57 = vpack.c.bf16 %v2271_v13, %v2270_v14 }
 0x1af   : > { %v2110_v61 = vsel %vm2078_vm4, %v19332_v0, %v19331_v9  ;;  %v2142_v16 = vsel %vm2111_vm5, %v2109_v63, %v19335_v31  ;;  %v19336_v19 = vunpack.i.h.bf16 %v19334_v50  ;;  %v10439_v18 = vunpack.i.h.bf16 %v10437_v30 }
 0x1b0   : > { %v10438_v37 = vunpack.i.l.bf16 %v10437_v30  ;;  %v2290_v21 = vpack.c.bf16 %v2273_v4, %v2272_v49  ;;  %v2175_v32 = vsel %vm2144_vm6, %v2142_v16, %v10198_v42  ;;  %9595 = vmatmul.mubr.msk.bf16.gmra.mrb[8].mxu1 %vm2312_vm10, %v2289_v57  ;;  %v19337_v35 = vmov 0.0  }
 0x1b1   : > { %v2143_v27 = vsel %vm2111_vm5, %v2110_v61, %v19336_v19  ;;  %v2208_v24 = vsel %vm2177_vm7, %v2175_v32, %v10278_v5  ;;  %2645 = vst.msk [vmem:[#allocation3 + $0x40] sm:$0x3] %vm2638_vm11, %v19337_v35  ;;  %2639 = vst.msk [vmem:[#allocation3 + $0x10] sm:$0x3] %vm2638_vm11, %v19337_v35 }
 0x1b2   : > { %v2176_v41 = vsel %vm2144_vm6, %v2143_v27, %v10199_v11  ;;  %9598 = vmatprep.mubr.msk.bf16.mxu1 %vm2312_vm10, %v2290_v21  ;;  %v2241_v33 = vsel %vm2210_vm8, %v2208_v24, %v10358_v36  ;;  %2642 = vst.msk [vmem:[#allocation3 + $0x28] sm:$0x3] %vm2638_vm11, %v19337_v35  ;;  %2648 = vst.msk [vmem:[#allocation3 + $0x58] sm:$0x3] %vm2638_vm11, %v19337_v35 }
 0x1b3   : > { %v2209_v46 = vsel %vm2177_vm7, %v2176_v41, %v10279_v43  ;;  %v2274_v47 = vsel %vm2243_vm9, %v2241_v33, %v10438_v37  ;;  %2651 = vst.msk [vmem:[#allocation3 + $0x70] sm:$0x3] %vm2638_vm11, %v19337_v35  ;;  %2654 = vst.msk [vmem:[#allocation3 + $0x88] sm:$0x3] %vm2638_vm11, %v19337_v35 }
 0x1b4   : > { %v2242_v55 = vsel %vm2210_vm8, %v2209_v46, %v10359_v48  ;;  %2657 = vst.msk [vmem:[#allocation3 + $0xa0] sm:$0x3] %vm2638_vm11, %v19337_v35  ;;  %2660 = vst.msk [vmem:[#allocation3 + $0xb8] sm:$0x3] %vm2638_vm11, %v19337_v35 }
 0x1b5   : > { %v2275_v6 = vsel %vm2243_vm9, %v2242_v55, %v10439_v18  ;;  %2663 = vst.msk [vmem:[#allocation3 + $0xd0] sm:$0x3] %vm2638_vm11, %v19337_v35  ;;  %2666 = vst.msk [vmem:[#allocation3 + $0xe8] sm:$0x3] %vm2638_vm11, %v19337_v35 }
 0x1b6   : > { %v2291_v8 = vpack.c.bf16 %v2275_v6, %v2274_v47  ;;  %2669 = vst.msk [vmem:[#allocation3 + $0x100] sm:$0x3] %vm2638_vm11, %v19337_v35  ;;  %2672 = vst.msk [vmem:[#allocation3 + $0x118] sm:$0x3] %vm2638_vm11, %v19337_v35 }
 0x1b7   : > { %2675 = vst.msk [vmem:[#allocation3 + $0x130] sm:$0x3] %vm2638_vm11, %v19337_v35  ;;  %2678 = vst.msk [vmem:[#allocation3 + $0x148] sm:$0x3] %vm2638_vm11, %v19337_v35 }
 0x1b8   : > { %9599 = vmatmul.mubr.msk.bf16.gmra.mrb[12].mxu1 %vm2312_vm10, %v2291_v8  ;;  %2681 = vst.msk [vmem:[#allocation3 + $0x160] sm:$0x3] %vm2638_vm11, %v19337_v35  ;;  %2684 = vst.msk [vmem:[#allocation3 + $0x178] sm:$0x3] %vm2638_vm11, %v19337_v35  ;;  %v2757_v12 = vld [vmem:[#allocation3 + $0x9] sm:$0xff] }
 0x1b9   : > { %2687 = vst.msk [vmem:[#allocation3 + $0x190] sm:$0x3] %vm2638_vm11, %v19337_v35  ;;  %2690 = vst.msk [vmem:[#allocation3 + $0x1a8] sm:$0x3] %vm2638_vm11, %v19337_v35  ;;  %v10440_v23 = vpack.i.bf16 %v2757_v12, %v2756_v60  ;;  %v2789_v59 = vld [vmem:[#allocation3 + $0xa] sm:$0xff] }
 0x1ba   : > { %v10445_v53 = vpack.i.bf16 %v2789_v59, %v2788_v54 }
 0x1bb   : > { %10441 = vrot.lane.b32.xlu0 %v10440_v23, %s12644_s22 }
 0x1bf   : > { %10446 = vrot.lane.b32.xlu0 %v10445_v53, %s12645_s2 }
 0x263   : > { %v9572_v10 = vpop.f32.mrb[0].mxu0 }
 0x264   : > { %v2535_v45 = vmul.f32 %v9572_v10, %v14835_v26  ;;  %v2399_v20 = vpop.f32.mrb[1].mxu0 }
 0x265   : > { %v2533_v17 = vmul.f32 %v14835_v26, %v2399_v20  ;;  %v9573_v15 = vpop.f32.mrb[2].mxu0 }
 0x266   : > { %v2574_v25 = vadd.f32 %v14840_v7, %v2535_v45  ;;  %v2536_v58 = vmul.f32 %v9573_v15, %v14835_v26  ;;  %v2402_v56 = vpop.f32.mrb[3].mxu0 }
 0x267   : > { %v2572_v3 = vadd.f32 %v14840_v7, %v2533_v17  ;;  %v2534_v62 = vmul.f32 %v14835_v26, %v2402_v56 }
 0x268   : > { %v2606_v38 = vmax.f32 %v2574_v25, 0.0  ;;  %v2575_v2 = vadd.f32 %v14840_v7, %v2536_v58 }
 0x269   : > { %v2604_v52 = vmax.f32 %v2572_v3, 0.0  ;;  %v2573_v44 = vadd.f32 %v14840_v7, %v2534_v62 }
 0x26a   : > { %2694 = vst.msk [vmem:[#allocation3 + $0x31] sm:$0xff] %vm2045_vm2, %v2606_v38  ;;  %v2607_v22 = vmax.f32 %v2575_v2, 0.0 }
 0x26b   : > { %2692 = vst.msk [vmem:[#allocation3 + $0x19] sm:$0xff] %vm2045_vm2, %v2604_v52  ;;  %v2605_v51 = vmax.f32 %v2573_v44, 0.0  ;;  %v9576_v39 = vpop.f32.mrb[4].mxu0 }
 0x26c   : > { %2695 = vst.msk [vmem:[#allocation3 + $0x39] sm:$0xff] %vm2045_vm2, %v2607_v22  ;;  %v2539_v14 = vmul.f32 %v9576_v39, %v14835_v26  ;;  %v2415_v13 = vpop.f32.mrb[5].mxu0 }
 0x26d   : > { %2693 = vst.msk [vmem:[#allocation3 + $0x21] sm:$0xff] %vm2045_vm2, %v2605_v51  ;;  %v2537_v1 = vmul.f32 %v14835_v26, %v2415_v13  ;;  %v9577_v11 = vpop.f32.mrb[6].mxu0 }
 0x26e   : > { %v2578_v42 = vadd.f32 %v14840_v7, %v2539_v14  ;;  %v2540_v49 = vmul.f32 %v9577_v11, %v14835_v26  ;;  %v2418_v4 = vpop.f32.mrb[7].mxu0 }
 0x26f   : > { %v2576_v30 = vadd.f32 %v14840_v7, %v2537_v1  ;;  %v2538_v29 = vmul.f32 %v14835_v26, %v2418_v4 }
 0x270   : > { %v2610_v28 = vmax.f32 %v2578_v42, 0.0  ;;  %v2579_v40 = vadd.f32 %v14840_v7, %v2540_v49 }
 0x271   : > { %v2608_v63 = vmax.f32 %v2576_v30, 0.0  ;;  %v2577_v9 = vadd.f32 %v14840_v7, %v2538_v29  ;;  %v2822_v61 = vld [vmem:[#allocation3 + $0x30] sm:$0xff] }
 0x272   : > { %2698 = vst.msk [vmem:[#allocation3 + $0x61] sm:$0xff] %vm2045_vm2, %v2610_v28  ;;  %v2611_v0 = vmax.f32 %v2579_v40, 0.0  ;;  %v2760_v34 = vld [vmem:[#allocation3 + $0x31] sm:$0xff]  ;;  %v2758_v1 = vld [vmem:[#allocation3 + $0x19] sm:$0xff] }
 0x273   : > { %2696 = vst.msk [vmem:[#allocation3 + $0x49] sm:$0xff] %vm2045_vm2, %v2608_v63  ;;  %v2609_v43 = vmax.f32 %v2577_v9, 0.0  ;;  %v9580_v5 = vpop.f32.mrb[8].mxu0  ;;  %v9588_v50 = vpop.f32.mrb[0].mxu1  ;;  %v2823_v31 = vld [vmem:[#allocation3 + $0x38] sm:$0xff] }
 0x274   : > { %v2761_v16 = vld [vmem:[#allocation3 + $0x39] sm:$0xff]  ;;  %2699 = vst.msk [vmem:[#allocation3 + $0x69] sm:$0xff] %vm2045_vm2, %v2611_v0  ;;  %v2543_v36 = vmul.f32 %v9580_v5, %v14835_v26  ;;  %v2551_v57 = vmul.f32 %v9588_v50, %v14835_v26  ;;  %v2431_v19 = vpop.f32.mrb[9].mxu0  ;;  %v2463_v27 = vpop.f32.mrb[1].mxu1  ;;  %v10460_v18 = vpack.i.bf16 %v2823_v31, %v2822_v61  ;;  %v2759_v38 = vld [vmem:[#allocation3 + $0x21] sm:$0xff] }
 0x275   : > { %v2792_v48 = vld [vmem:[#allocation3 + $0x32] sm:$0xff]  ;;  %v10450_v37 = vpack.i.bf16 %v2761_v16, %v2760_v34  ;;  %v2793_v21 = vld [vmem:[#allocation3 + $0x3a] sm:$0xff]  ;;  %2697 = vst.msk [vmem:[#allocation3 + $0x51] sm:$0xff] %vm2045_vm2, %v2609_v43  ;;  %v2541_v32 = vmul.f32 %v14835_v26, %v2431_v19  ;;  %v2549_v41 = vmul.f32 %v14835_v26, %v2463_v27  ;;  %v9581_v24 = vpop.f32.mrb[10].mxu0  ;;  %v9589_v46 = vpop.f32.mrb[2].mxu1  ;;  %v14898_v30 = vpack.i.bf16 %v2759_v38, %v2758_v1 }
 0x276   : > { %v10455_v33 = vpack.i.bf16 %v2793_v21, %v2792_v48  ;;  %v2582_v55 = vadd.f32 %v14840_v7, %v2543_v36  ;;  %v2590_v47 = vadd.f32 %v14840_v7, %v2551_v57  ;;  %v2544_v6 = vmul.f32 %v9581_v24, %v14835_v26  ;;  %v2466_v60 = vpop.f32.mrb[3].mxu1  ;;  %10461 = vrot.lane.b32.xlu1 %v10460_v18, %s12646_s23  ;;  %v2434_v12 = vpop.f32.mrb[11].mxu0  ;;  %v2790_v18 = vld [vmem:[#allocation3 + $0x1a] sm:$0xff] }
 0x277   : > { %v2552_v8 = vmul.f32 %v9589_v46, %v14835_v26  ;;  %v2580_v23 = vadd.f32 %v14840_v7, %v2541_v32  ;;  %v2588_v54 = vadd.f32 %v14840_v7, %v2549_v41  ;;  %v2550_v59 = vmul.f32 %v14835_v26, %v2466_v60  ;;  %10451 = vrot.lane.b32.xlu0 %v10450_v37, %s12644_s22 }
 0x278   : > { %v2542_v53 = vmul.f32 %v14835_v26, %v2434_v12  ;;  %v2614_v10 = vmax.f32 %v2582_v55, 0.0  ;;  %v2622_v45 = vmax.f32 %v2590_v47, 0.0  ;;  %v2583_v20 = vadd.f32 %v14840_v7, %v2544_v6 }
 0x279   : > { %v2591_v17 = vadd.f32 %v14840_v7, %v2552_v8  ;;  %v2612_v15 = vmax.f32 %v2580_v23, 0.0  ;;  %v2620_v25 = vmax.f32 %v2588_v54, 0.0  ;;  %v2589_v58 = vadd.f32 %v14840_v7, %v2550_v59 }
 0x27a   : > { %v2581_v56 = vadd.f32 %v14840_v7, %v2542_v53  ;;  %2702 = vst.msk [vmem:[#allocation3 + $0x91] sm:$0xff] %vm2045_vm2, %v2614_v10  ;;  %2710 = vst.msk [vmem:[#allocation3 + $0xf1] sm:$0xff] %vm2045_vm2, %v2622_v45  ;;  %v2615_v3 = vmax.f32 %v2583_v20, 0.0  ;;  %10466 = vrot.lane.b32.xlu1 %v10450_v37, %s12647_s24  ;;  %v2791_v37 = vld [vmem:[#allocation3 + $0x22] sm:$0xff] }
 0x27b   : > { %v2623_v62 = vmax.f32 %v2591_v17, 0.0  ;;  %2700 = vst.msk [vmem:[#allocation3 + $0x79] sm:$0xff] %vm2045_vm2, %v2612_v15  ;;  %2708 = vst.msk [vmem:[#allocation3 + $0xd9] sm:$0xff] %vm2045_vm2, %v2620_v25  ;;  %v2621_v2 = vmax.f32 %v2589_v58, 0.0  ;;  %10456 = vrot.lane.b32.xlu0 %v10455_v33, %s12645_s2  ;;  %v9584_v44 = vpop.f32.mrb[12].mxu0  ;;  %v9592_v22 = vpop.f32.mrb[4].mxu1  ;;  %v14922_v60 = vpack.i.bf16 %v2791_v37, %v2790_v18 }
 0x27c   : > { %v2613_v52 = vmax.f32 %v2581_v56, 0.0  ;;  %2703 = vst.msk [vmem:[#allocation3 + $0x99] sm:$0xff] %vm2045_vm2, %v2615_v3  ;;  %v2547_v51 = vmul.f32 %v9584_v44, %v14835_v26  ;;  %v2555_v39 = vmul.f32 %v9592_v22, %v14835_v26  ;;  %v2447_v14 = vpop.f32.mrb[13].mxu0  ;;  %v2479_v13 = vpop.f32.mrb[5].mxu1  ;;  %v2859_v18 = vld [vmem:[#allocation3 + $0x69] sm:$0xff]  ;;  %v2858_v37 = vld [vmem:[#allocation3 + $0x61] sm:$0xff] }
 0x27d   : > { %2711 = vst.msk [vmem:[#allocation3 + $0xf9] sm:$0xff] %vm2045_vm2, %v2623_v62  ;;  %2709 = vst.msk [vmem:[#allocation3 + $0xe1] sm:$0xff] %vm2045_vm2, %v2621_v2  ;;  %v2545_v11 = vmul.f32 %v14835_v26, %v2447_v14  ;;  %v2553_v42 = vmul.f32 %v14835_v26, %v2479_v13  ;;  %v9585_v49 = vpop.f32.mrb[14].mxu0  ;;  %v9593_v4 = vpop.f32.mrb[6].mxu1 }
 0x27e   : > { %2701 = vst.msk [vmem:[#allocation3 + $0x81] sm:$0xff] %vm2045_vm2, %v2613_v52  ;;  %v2586_v29 = vadd.f32 %v14840_v7, %v2547_v51  ;;  %v2594_v28 = vadd.f32 %v14840_v7, %v2555_v39  ;;  %v2548_v40 = vmul.f32 %v9585_v49, %v14835_v26  ;;  %v2556_v63 = vmul.f32 %v9593_v4, %v14835_v26  ;;  %v2482_v9 = vpop.f32.mrb[7].mxu1  ;;  %v2450_v0 = vpop.f32.mrb[15].mxu0  ;;  %v14940_v52 = vld [vmem:[#allocation3 + $0x20] sm:$0xff]  ;;  %v14948_v39 = vld [vmem:[#allocation3 + $0x18] sm:$0xff] }
 0x27f   : > { %10471 = vrot.lane.b32.xlu1 %v10455_v33, %s12648_s25  ;;  %v2584_v61 = vadd.f32 %v14840_v7, %v2545_v11  ;;  %v2592_v34 = vadd.f32 %v14840_v7, %v2553_v42  ;;  %v2554_v43 = vmul.f32 %v14835_v26, %v2482_v9  ;;  %v2546_v5 = vmul.f32 %v14835_v26, %v2450_v0 }
 0x280   : > { %v2618_v50 = vmax.f32 %v2586_v29, 0.0  ;;  %v2626_v31 = vmax.f32 %v2594_v28, 0.0  ;;  %v2587_v16 = vadd.f32 %v14840_v7, %v2548_v40  ;;  %v2595_v48 = vadd.f32 %v14840_v7, %v2556_v63  ;;  %19339 = vst [vmem:[#allocation55_spill] sm:$0xff] %v14922_v60 }
 0x281   : > { %v2616_v36 = vmax.f32 %v2584_v61, 0.0  ;;  %v2624_v57 = vmax.f32 %v2592_v34, 0.0  ;;  %v2593_v19 = vadd.f32 %v14840_v7, %v2554_v43  ;;  %v2585_v27 = vadd.f32 %v14840_v7, %v2546_v5  ;;  %v2776_v33 = vld [vmem:[#allocation3 + $0xf1] sm:$0xff] }
 0x282   : > { %2706 = vst.msk [vmem:[#allocation3 + $0xc1] sm:$0xff] %vm2045_vm2, %v2618_v50  ;;  %2714 = vst.msk [vmem:[#allocation3 + $0x121] sm:$0xff] %vm2045_vm2, %v2626_v31  ;;  %v2619_v21 = vmax.f32 %v2587_v16, 0.0  ;;  %v2627_v32 = vmax.f32 %v2595_v48, 0.0  ;;  %v2838_v25 = vld [vmem:[#allocation3 + $0xf0] sm:$0xff]  ;;  %v14954_v1 = vpack.i.bf16 %v14940_v52, %v14948_v39  ;;  %v2774_v9 = vld [vmem:[#allocation3 + $0xd9] sm:$0xff] }
 0x283   : > { %10476 = vrot.lane.b32.xlu1 %v14898_v30, %s12644_s22  ;;  %2704 = vst.msk [vmem:[#allocation3 + $0xa9] sm:$0xff] %vm2045_vm2, %v2616_v36  ;;  %2712 = vst.msk [vmem:[#allocation3 + $0x109] sm:$0xff] %vm2045_vm2, %v2624_v57  ;;  %v2625_v41 = vmax.f32 %v2593_v19, 0.0  ;;  %v2617_v24 = vmax.f32 %v2585_v27, 0.0  ;;  %v9596_v46 = vpop.f32.mrb[8].mxu1  ;;  %v2827_v36 = vld [vmem:[#allocation3 + $0x68] sm:$0xff] }
 0x284   : > { %v2777_v55 = vld [vmem:[#allocation3 + $0xf9] sm:$0xff]  ;;  %2707 = vst.msk [vmem:[#allocation3 + $0xc9] sm:$0xff] %vm2045_vm2, %v2619_v21  ;;  %2715 = vst.msk [vmem:[#allocation3 + $0x129] sm:$0xff] %vm2045_vm2, %v2627_v32  ;;  %v2559_v47 = vmul.f32 %v9596_v46, %v14835_v26  ;;  %v2495_v6 = vpop.f32.mrb[9].mxu1  ;;  %v2775_v49 = vld [vmem:[#allocation3 + $0xe1] sm:$0xff]  ;;  %v14994_v21 = vpack.i.bf16 %v2859_v18, %v2858_v37 }
 0x285   : > { %v10480_v8 = vpack.i.bf16 %v2777_v55, %v2776_v33  ;;  %2713 = vst.msk [vmem:[#allocation3 + $0x111] sm:$0xff] %vm2045_vm2, %v2625_v41  ;;  %2705 = vst.msk [vmem:[#allocation3 + $0xb1] sm:$0xff] %vm2045_vm2, %v2617_v24  ;;  %v2557_v12 = vmul.f32 %v14835_v26, %v2495_v6  ;;  %v9597_v23 = vpop.f32.mrb[10].mxu1  ;;  %v2808_v54 = vld [vmem:[#allocation3 + $0xf2] sm:$0xff]  ;;  %v2809_v59 = vld [vmem:[#allocation3 + $0xfa] sm:$0xff]  ;;  %v10520_v34 = vpack.i.bf16 %v2775_v49, %v2774_v9 }
 0x286   : > { %v2839_v53 = vld [vmem:[#allocation3 + $0xf8] sm:$0xff]  ;;  %v2598_v10 = vadd.f32 %v14840_v7, %v2559_v47  ;;  %v2560_v45 = vmul.f32 %v9597_v23, %v14835_v26  ;;  %v2498_v20 = vpop.f32.mrb[11].mxu1  ;;  %v14935_v3 = vpack.i.bf16 %v2809_v59, %v2808_v54  ;;  %v2807_v31 = vld [vmem:[#allocation3 + $0xe2] sm:$0xff]  ;;  %19343 = vst [vmem:[#allocation59_spill] sm:$0xff] %v14994_v21  ;;  %v2891_v41 = vld [vmem:[#allocation3 + $0x6a] sm:$0xff] }
 0x287   : > { %10481 = vrot.lane.b32.xlu0 %v10480_v8, %s12644_s22  ;;  %10486 = vrot.lane.b32.xlu1 %v14922_v60, %s12645_s2  ;;  %v2596_v17 = vadd.f32 %v14840_v7, %v2557_v12  ;;  %v2558_v15 = vmul.f32 %v14835_v26, %v2498_v20  ;;  %v14937_v62 = vpack.i.bf16 %v2839_v53, %v2838_v25  ;;  %v2806_v50 = vld [vmem:[#allocation3 + $0xda] sm:$0xff]  ;;  %v2890_v32 = vld [vmem:[#allocation3 + $0x62] sm:$0xff]  ;;  %v2763_v46 = vld [vmem:[#allocation3 + $0x51] sm:$0xff] }
 0x288   : > { %v2630_v58 = vmax.f32 %v2598_v10, 0.0  ;;  %v2599_v56 = vadd.f32 %v14840_v7, %v2560_v45  ;;  %19340 = vst [vmem:[#allocation56_spill] sm:$0xff] %v14935_v3  ;;  %v14973_v48 = vpack.i.bf16 %v2807_v31, %v2806_v50  ;;  %v2826_v57 = vld [vmem:[#allocation3 + $0x60] sm:$0xff]  ;;  %v14999_v24 = vpack.i.bf16 %v2891_v41, %v2890_v32  ;;  %v2762_v33 = vld [vmem:[#allocation3 + $0x49] sm:$0xff] }
 0x289   : > { %v2628_v38 = vmax.f32 %v2596_v17, 0.0  ;;  %v2597_v2 = vadd.f32 %v14840_v7, %v2558_v15  ;;  %v14988_v27 = vpack.i.bf16 %v2827_v36, %v2826_v57  ;;  %v15005_v55 = vpack.i.bf16 %v2763_v46, %v2762_v33  ;;  %v2794_v6 = vld [vmem:[#allocation3 + $0x4a] sm:$0xff]  ;;  %v2780_v12 = vld [vmem:[#allocation3 + $0x121] sm:$0xff] }
 0x28a   : > { %2718 = vst.msk [vmem:[#allocation3 + $0x151] sm:$0xff] %vm2045_vm2, %v2630_v58  ;;  %v2631_v44 = vmax.f32 %v2599_v56, 0.0  ;;  %19341 = vst [vmem:[#allocation57_spill] sm:$0xff] %v14973_v48  ;;  %v2842_v45 = vld [vmem:[#allocation3 + $0x120] sm:$0xff]  ;;  %v15020_v15 = vld [vmem:[#allocation3 + $0x50] sm:$0xff] }
 0x28b   : > { %10491 = vrot.lane.b32.xlu0 %v14935_v3, %s12645_s2  ;;  %10501 = vrot.lane.b32.xlu1 %v14937_v62, %s12646_s23  ;;  %2716 = vst.msk [vmem:[#allocation3 + $0x139] sm:$0xff] %vm2045_vm2, %v2628_v38  ;;  %v2629_v22 = vmax.f32 %v2597_v2, 0.0  ;;  %v9600_v51 = vpop.f32.mrb[12].mxu1  ;;  %19342 = vst [vmem:[#allocation58_spill] sm:$0xff] %v14988_v27  ;;  %v2781_v47 = vld [vmem:[#allocation3 + $0x129] sm:$0xff]  ;;  %v2895_v9 = vld [vmem:[#allocation3 + $0x9a] sm:$0xff] }
 0x28c   : > { %2719 = vst.msk [vmem:[#allocation3 + $0x159] sm:$0xff] %vm2045_vm2, %v2631_v44  ;;  %v2563_v14 = vmul.f32 %v9600_v51, %v14835_v26  ;;  %v2511_v13 = vpop.f32.mrb[13].mxu1  ;;  %19344 = vst [vmem:[#allocation60_spill] sm:$0xff] %v14999_v24  ;;  %v10570_v23 = vpack.i.bf16 %v2781_v47, %v2780_v12  ;;  %v2812_v59 = vld [vmem:[#allocation3 + $0x122] sm:$0xff]  ;;  %v2813_v53 = vld [vmem:[#allocation3 + $0x12a] sm:$0xff] }
 0x28d   : > { %2717 = vst.msk [vmem:[#allocation3 + $0x141] sm:$0xff] %vm2045_vm2, %v2629_v22  ;;  %v2561_v11 = vmul.f32 %v14835_v26, %v2511_v13  ;;  %v9601_v42 = vpop.f32.mrb[14].mxu1  ;;  %19345 = vst [vmem:[#allocation61_spill] sm:$0xff] %v15005_v55  ;;  %v2843_v10 = vld [vmem:[#allocation3 + $0x128] sm:$0xff]  ;;  %v15016_v20 = vpack.i.bf16 %v2813_v53, %v2812_v59  ;;  %v2779_v56 = vld [vmem:[#allocation3 + $0x111] sm:$0xff] }
 0x28e   : > { %v2602_v4 = vadd.f32 %v14840_v7, %v2563_v14  ;;  %v2564_v29 = vmul.f32 %v9601_v42, %v14835_v26  ;;  %v2514_v28 = vpop.f32.mrb[15].mxu1  ;;  %v15018_v17 = vpack.i.bf16 %v2843_v10, %v2842_v45  ;;  %19348 = vst [vmem:[#allocation64_spill] sm:$0xff] %v15020_v15  ;;  %v15026_v25 = vld [vmem:[#allocation3 + $0x48] sm:$0xff]  ;;  %v2811_v22 = vld [vmem:[#allocation3 + $0x112] sm:$0xff]  ;;  %v2798_v50 = vld [vmem:[#allocation3 + $0x7a] sm:$0xff] }
 0x28f   : > { %10496 = vrot.lane.b32.xlu0 %v14954_v1, %s12646_s23  ;;  %10511 = vrot.lane.b32.xlu1 %v10480_v8, %s12647_s24  ;;  %v2600_v40 = vadd.f32 %v14840_v7, %v2561_v11  ;;  %v2562_v63 = vmul.f32 %v14835_v26, %v2514_v28  ;;  %v2795_v8 = vld [vmem:[#allocation3 + $0x52] sm:$0xff]  ;;  %19347 = vst [vmem:[#allocation63_spill] sm:$0xff] %v15016_v20  ;;  %v2778_v38 = vld [vmem:[#allocation3 + $0x109] sm:$0xff]  ;;  %v2829_v33 = vld [vmem:[#allocation3 + $0x80] sm:$0xff] }
 0x290   : > { %v2634_v0 = vmax.f32 %v2602_v4, 0.0  ;;  %v2603_v61 = vadd.f32 %v14840_v7, %v2564_v29  ;;  %v15011_v54 = vpack.i.bf16 %v2795_v8, %v2794_v6  ;;  %v15030_v58 = vpack.i.bf16 %v15020_v15, %v15026_v25  ;;  %v2810_v44 = vld [vmem:[#allocation3 + $0x10a] sm:$0xff]  ;;  %v2831_v13 = vld [vmem:[#allocation3 + $0x98] sm:$0xff]  ;;  %v2799_v31 = vld [vmem:[#allocation3 + $0x82] sm:$0xff] }
 0x291   : > { %v2632_v43 = vmax.f32 %v2600_v40, 0.0  ;;  %v2601_v5 = vadd.f32 %v14840_v7, %v2562_v63  ;;  %v14976_v7 = vld [vmem:[#allocation3 + $0xe0] sm:$0xff]  ;;  %v10610_v2 = vpack.i.bf16 %v2779_v56, %v2778_v38  ;;  %v15038_v51 = vpack.i.bf16 %v2811_v22, %v2810_v44  ;;  %v2841_v14 = vld [vmem:[#allocation3 + $0x110] sm:$0xff]  ;;  %v2840_v11 = vld [vmem:[#allocation3 + $0x108] sm:$0xff] }
 0x292   : > { %2722 = vst.msk [vmem:[#allocation3 + $0x181] sm:$0xff] %vm2045_vm2, %v2634_v0  ;;  %v2635_v16 = vmax.f32 %v2603_v61, 0.0  ;;  %19346 = vst [vmem:[#allocation62_spill] sm:$0xff] %v15011_v54  ;;  %v2830_v42 = vld [vmem:[#allocation3 + $0x90] sm:$0xff]  ;;  %v15044_v49 = vpack.i.bf16 %v2841_v14, %v2840_v11  ;;  %v2863_v29 = vld [vmem:[#allocation3 + $0x99] sm:$0xff]  ;;  %v15069_v36 = vpack.i.bf16 %v2799_v31, %v2798_v50 }
 0x293   : > { %10506 = vrot.lane.b32.xlu0 %v14898_v30, %s12647_s24  ;;  %10521 = vrot.lane.b32.xlu1 %v10520_v34, %s12644_s22  ;;  %2720 = vst.msk [vmem:[#allocation3 + $0x169] sm:$0xff] %vm2045_vm2, %v2632_v43  ;;  %v2633_v26 = vmax.f32 %v2601_v5, 0.0  ;;  %v14982_v30 = vld [vmem:[#allocation3 + $0xd8] sm:$0xff]  ;;  %19349 = vst [vmem:[#allocation65_spill] sm:$0xff] %v15030_v58  ;;  %v15046_v4 = vpack.i.bf16 %v2831_v13, %v2830_v42  ;;  %v2767_v61 = vld [vmem:[#allocation3 + $0x81] sm:$0xff]  ;;  %v15103_v13 = vpop.permute.xlu0 %10441 }
 0x294   : > { %2723 = vst.msk [vmem:[#allocation3 + $0x189] sm:$0xff] %vm2045_vm2, %v2635_v16  ;;  %v14986_v19 = vpack.i.bf16 %v14976_v7, %v14982_v30  ;;  %19350 = vst [vmem:[#allocation66_spill] sm:$0xff] %v15038_v51  ;;  %v2862_v28 = vld [vmem:[#allocation3 + $0x91] sm:$0xff]  ;;  %v2785_v5 = vld [vmem:[#allocation3 + $0x159] sm:$0xff] }
 0x295   : > { %2721 = vst.msk [vmem:[#allocation3 + $0x171] sm:$0xff] %vm2045_vm2, %v2633_v26  ;;  %19351 = vst [vmem:[#allocation67_spill] sm:$0xff] %v15046_v4  ;;  %v15052_v40 = vpack.i.bf16 %v2863_v29, %v2862_v28  ;;  %v2894_v63 = vld [vmem:[#allocation3 + $0x92] sm:$0xff]  ;;  %v2817_v18 = vld [vmem:[#allocation3 + $0x15a] sm:$0xff] }
 0x296   : > { %v15057_v0 = vpack.i.bf16 %v2895_v9, %v2894_v63  ;;  %v2784_v16 = vld [vmem:[#allocation3 + $0x151] sm:$0xff]  ;;  %19355 = vst [vmem:[#allocation72_spill] sm:$0xff] %v15069_v36  ;;  %v2783_v8 = vld [vmem:[#allocation3 + $0x141] sm:$0xff]  ;;  %v2782_v12 = vld [vmem:[#allocation3 + $0x139] sm:$0xff] }
 0x297   : > { %10516 = vrot.lane.b32.xlu0 %v14922_v60, %s12648_s25  ;;  %10526 = vrot.lane.b32.xlu1 %v14973_v48, %s12645_s2  ;;  %19352 = vst [vmem:[#allocation68_spill] sm:$0xff] %v15052_v40  ;;  %v10660_v26 = vpack.i.bf16 %v2785_v5, %v2784_v16  ;;  %v2816_v57 = vld [vmem:[#allocation3 + $0x152] sm:$0xff]  ;;  %v2814_v59 = vld [vmem:[#allocation3 + $0x13a] sm:$0xff]  ;;  %v2815_v53 = vld [vmem:[#allocation3 + $0x142] sm:$0xff]  ;;  %v15115_v63 = vpop.permute.xlu0 %10446 }
 0x298   : > { %19353 = vst [vmem:[#allocation70_spill] sm:$0xff] %v15057_v0  ;;  %v2847_v37 = vld [vmem:[#allocation3 + $0x158] sm:$0xff]  ;;  %v2846_v32 = vld [vmem:[#allocation3 + $0x150] sm:$0xff]  ;;  %v15074_v41 = vpack.i.bf16 %v2817_v18, %v2816_v57  ;;  %v15093_v10 = vpack.i.bf16 %v2815_v53, %v2814_v59  ;;  %v2845_v45 = vld [vmem:[#allocation3 + $0x140] sm:$0xff] }
 0x299   : > { %v15076_v46 = vpack.i.bf16 %v2847_v37, %v2846_v32  ;;  %v2828_v47 = vld [vmem:[#allocation3 + $0x78] sm:$0xff]  ;;  %v2835_v56 = vld [vmem:[#allocation3 + $0xc8] sm:$0xff]  ;;  %v2833_v18 = vld [vmem:[#allocation3 + $0xb0] sm:$0xff] }
 0x29a   : > { %19356 = vst [vmem:[#allocation73_spill] sm:$0xff] %v15074_v41  ;;  %v15082_v6 = vpack.i.bf16 %v2829_v33, %v2828_v47  ;;  %19359 = vst [vmem:[#allocation76_spill] sm:$0xff] %v15093_v10  ;;  %v2844_v38 = vld [vmem:[#allocation3 + $0x138] sm:$0xff]  ;;  %v2867_v14 = vld [vmem:[#allocation3 + $0xc9] sm:$0xff] }
 0x29b   : > { %10531 = vrot.lane.b32.xlu0 %v14986_v19, %s12646_s23  ;;  %10551 = vrot.lane.b32.xlu1 %v14988_v27, %s12646_s23  ;;  %19357 = vst [vmem:[#allocation74_spill] sm:$0xff] %v15076_v46  ;;  %v15099_v44 = vpack.i.bf16 %v2845_v45, %v2844_v38  ;;  %v2866_v11 = vld [vmem:[#allocation3 + $0xc1] sm:$0xff]  ;;  %v2771_v29 = vld [vmem:[#allocation3 + $0xb1] sm:$0xff]  ;;  %v2770_v28 = vld [vmem:[#allocation3 + $0xa9] sm:$0xff] }
 0x29c   : > { %19358 = vst [vmem:[#allocation75_spill] sm:$0xff] %v15082_v6  ;;  %v15109_v42 = vpack.i.bf16 %v2867_v14, %v2866_v11  ;;  %v2805_v5 = vld [vmem:[#allocation3 + $0xca] sm:$0xff]  ;;  %v2803_v31 = vld [vmem:[#allocation3 + $0xb2] sm:$0xff]  ;;  %v2850_v47 = vld [vmem:[#allocation3 + $0x180] sm:$0xff] }
 0x29d   : > { %v2802_v50 = vld [vmem:[#allocation3 + $0xaa] sm:$0xff]  ;;  %v2882_v45 = vld [vmem:[#allocation3 + $0x181] sm:$0xff] }
 0x29e   : > { %v15129_v57 = vpack.i.bf16 %v2803_v31, %v2802_v50  ;;  %v2851_v37 = vld [vmem:[#allocation3 + $0x188] sm:$0xff]  ;;  %v2849_v14 = vld [vmem:[#allocation3 + $0x170] sm:$0xff] }
 0x29f   : > { %10536 = vrot.lane.b32.xlu0 %v10520_v34, %s12647_s24  ;;  %10556 = vrot.lane.b32.xlu1 %v14994_v21, %s12647_s24  ;;  %v2766_v34 = vld [vmem:[#allocation3 + $0x79] sm:$0xff]  ;;  %v2832_v33 = vld [vmem:[#allocation3 + $0xa8] sm:$0xff]  ;;  %v15141_v59 = vpack.i.bf16 %v2851_v37, %v2850_v47  ;;  %v2787_v11 = vld [vmem:[#allocation3 + $0x171] sm:$0xff] }
 0x2a0   : > { %v15063_v43 = vpack.i.bf16 %v2767_v61, %v2766_v34  ;;  %v15119_v61 = vpack.i.bf16 %v2771_v29, %v2770_v28  ;;  %v2804_v34 = vld [vmem:[#allocation3 + $0xc2] sm:$0xff]  ;;  %19363 = vst [vmem:[#allocation80_spill] sm:$0xff] %v15129_v57  ;;  %v2819_v37 = vld [vmem:[#allocation3 + $0x172] sm:$0xff] }
 0x2a1   : > { %v2883_v53 = vld [vmem:[#allocation3 + $0x189] sm:$0xff] }
 0x2a2   : > { %19354 = vst [vmem:[#allocation71_spill] sm:$0xff] %v15063_v43  ;;  %19361 = vst [vmem:[#allocation78_spill] sm:$0xff] %v15119_v61  ;;  %v2848_v29 = vld [vmem:[#allocation3 + $0x168] sm:$0xff] }
 0x2a3   : > { %10561 = vrot.lane.b32.xlu1 %v14999_v24, %s12648_s25  ;;  %10541 = vrot.lane.b32.xlu0 %v14994_v21, %s12644_s22  ;;  %v2786_v28 = vld [vmem:[#allocation3 + $0x169] sm:$0xff]  ;;  %v15161_v50 = vpack.i.bf16 %v2849_v14, %v2848_v29 }
 0x2a4   : > { %v15163_v31 = vpack.i.bf16 %v2787_v11, %v2786_v28  ;;  %v2914_v35 = vld [vmem:[#allocation3 + $0x182] sm:$0xff] }
 0x2a5   : > { %v2954_v15 = vld [vmem:[#allocation3 + $0x69] sm:$0xff] }
 0x2a7   : > { %10546 = vrot.lane.b32.xlu0 %v14999_v24, %s12645_s2  ;;  %10566 = vrot.lane.b32.xlu1 %v15005_v55, %s12644_s22 }
 0x2ab   : > { %10571 = vrot.lane.b32.xlu0 %v10570_v23, %s12644_s22  ;;  %10576 = vrot.lane.b32.xlu1 %v15011_v54, %s12645_s2 }
 0x2af   : > { %10581 = vrot.lane.b32.xlu0 %v15016_v20, %s12645_s2  ;;  %10591 = vrot.lane.b32.xlu1 %v15018_v17, %s12646_s23 }
 0x2b3   : > { %10586 = vrot.lane.b32.xlu0 %v15030_v58, %s12646_s23  ;;  %10601 = vrot.lane.b32.xlu1 %v10570_v23, %s12647_s24  ;;  %v15087_v23 = vpack.i.bf16 %v2783_v8, %v2782_v12  ;;  %v15139_v12 = vpack.i.bf16 %v2833_v18, %v2832_v33  ;;  %v2818_v18 = vld [vmem:[#allocation3 + $0x16a] sm:$0xff] }
 0x2b5   : > { %19364 = vst [vmem:[#allocation81_spill] sm:$0xff] %v15139_v12 }
 0x2b7   : > { %10596 = vrot.lane.b32.xlu0 %v15005_v55, %s12647_s24  ;;  %10611 = vrot.lane.b32.xlu1 %v10610_v2, %s12644_s22 }
 0x2bb   : > { %10606 = vrot.lane.b32.xlu0 %v15011_v54, %s12648_s25  ;;  %10616 = vrot.lane.b32.xlu1 %v15038_v51, %s12645_s2 }
 0x2bf   : > { %10621 = vrot.lane.b32.xlu0 %v15044_v49, %s12646_s23  ;;  %10641 = vrot.lane.b32.xlu1 %v15046_v4, %s12646_s23 }
 0x2c3   : > { %10626 = vrot.lane.b32.xlu0 %v10610_v2, %s12647_s24  ;;  %10646 = vrot.lane.b32.xlu1 %v15052_v40, %s12647_s24  ;;  %v2834_v2 = vld [vmem:[#allocation3 + $0xc0] sm:$0xff] }
 0x2c4   : > { %v15101_v22 = vpack.i.bf16 %v2835_v56, %v2834_v2  ;;  %v15151_v2 = vpack.i.bf16 %v2883_v53, %v2882_v45  ;;  %v15173_v53 = vpack.i.bf16 %v2819_v37, %v2818_v18 }
 0x2c6   : > { %19360 = vst [vmem:[#allocation77_spill] sm:$0xff] %v15101_v22 }
 0x2c7   : > { %10651 = vrot.lane.b32.xlu1 %v15057_v0, %s12648_s25  ;;  %10631 = vrot.lane.b32.xlu0 %v15052_v40, %s12644_s22 }
 0x2cb   : > { %10636 = vrot.lane.b32.xlu0 %v15057_v0, %s12645_s2  ;;  %10656 = vrot.lane.b32.xlu1 %v15063_v43, %s12644_s22  ;;  %v2918_v0 = vld [vmem:[#allocation3 + $0x38] sm:$0xff] }
 0x2cf   : > { %10661 = vrot.lane.b32.xlu0 %v10660_v26, %s12644_s22  ;;  %10666 = vrot.lane.b32.xlu1 %v15069_v36, %s12645_s2 }
 0x2d3   : > { %10671 = vrot.lane.b32.xlu0 %v15074_v41, %s12645_s2  ;;  %10681 = vrot.lane.b32.xlu1 %v15076_v46, %s12646_s23 }
 0x2d7   : > { %10676 = vrot.lane.b32.xlu0 %v15082_v6, %s12646_s23  ;;  %10691 = vrot.lane.b32.xlu1 %v10660_v26, %s12647_s24  ;;  %v15127_v26 = vpack.i.bf16 %v2805_v5, %v2804_v34 }
 0x2d9   : > { %19362 = vst [vmem:[#allocation79_spill] sm:$0xff] %v15127_v26 }
 0x2db   : > { %10686 = vrot.lane.b32.xlu0 %v15063_v43, %s12647_s24  ;;  %10701 = vrot.lane.b32.xlu1 %v15087_v23, %s12644_s22 }
 0x2df   : > { %10696 = vrot.lane.b32.xlu0 %v15069_v36, %s12648_s25  ;;  %10706 = vrot.lane.b32.xlu1 %v15093_v10, %s12645_s2 }
 0x2e3   : > { %10711 = vrot.lane.b32.xlu0 %v15099_v44, %s12646_s23  ;;  %10731 = vrot.lane.b32.xlu1 %v15101_v22, %s12646_s23 }
 0x2e7   : > { %10716 = vrot.lane.b32.xlu0 %v15087_v23, %s12647_s24  ;;  %10736 = vrot.lane.b32.xlu1 %v15109_v42, %s12647_s24 }
 0x2e8   : > { %v15117_v9 = vpop.permute.xlu1 %10461 }
 0x2e9   : > { %v15131_v32 = vpop.permute.xlu0 %10451 }
 0x2eb   : > { %10721 = vrot.lane.b32.xlu0 %v15109_v42, %s12644_s22  ;;  %10741 = vrot.lane.b32.xlu1 %v15119_v61, %s12644_s22 }
 0x2ec   : > { %v15125_v16 = vpop.permute.xlu1 %10466 }
 0x2ed   : > { %v15147_v56 = vpop.permute.xlu0 %10456 }
 0x2ef   : > { %10726 = vrot.lane.b32.xlu0 %v15127_v26, %s12645_s2  ;;  %10746 = vrot.lane.b32.xlu1 %v15129_v57, %s12645_s2 }
 0x2f1   : > { %v15137_v8 = vpop.permute.xlu1 %10471 }
 0x2f3   : > { %10751 = vrot.lane.b32.xlu0 %v15139_v12, %s12646_s23  ;;  %10756 = vrot.lane.b32.xlu1 %v15141_v59, %s12646_s23 }
 0x2f5   : > { %v15149_v38 = vpop.permute.xlu1 %10476 }
 0x2f7   : > { %10761 = vrot.lane.b32.xlu0 %v15119_v61, %s12647_s24  ;;  %10766 = vrot.lane.b32.xlu1 %v15151_v2, %s12647_s24 }
 0x2f9   : > { %v15157_v34 = vpop.permute.xlu0 %10481  ;;  %v15159_v5 = vpop.permute.xlu1 %10486 }
 0x2fb   : > { %10781 = vrot.lane.b32.xlu0 %v15161_v50, %s12646_s23  ;;  %10771 = vrot.lane.b32.xlu1 %v15163_v31, %s12644_s22 }
 0x2fd   : > { %v15169_v33 = vpop.permute.xlu0 %10491  ;;  %v15171_v47 = vpop.permute.xlu1 %10501 }
 0x2ff   : > { %10786 = vrot.lane.b32.xlu0 %v15163_v31, %s12647_s24  ;;  %10776 = vrot.lane.b32.xlu1 %v15173_v53, %s12645_s2 }
 0x301   : > { %v15179_v45 = vpop.permute.xlu0 %10496  ;;  %v15181_v14 = vpop.permute.xlu1 %10511 }
 0x303   : > { %10791 = vrot.lane.b32.xlu0 %v15129_v57, %s12648_s25  ;;  %10796 = vrot.lane.b32.xlu1 %v15127_v26, %s12648_s25  ;;  %v2915_v26 = vld [vmem:[#allocation3 + $0x18a] sm:$0xff] }
 0x305   : > { %v15187_v11 = vpop.permute.xlu0 %10506  ;;  %v15189_v29 = vpop.permute.xlu1 %10521 }
 0x307   : > { %10801 = vrot.lane.b32.xlu0 %v14973_v48, %s12648_s25  ;;  %10806 = vrot.lane.b32.xlu1 %v14935_v3, %s12648_s25 }
 0x309   : > { %v15195_v28 = vpop.permute.xlu0 %10516  ;;  %v15197_v18 = vpop.permute.xlu1 %10526 }
 0x30b   : > { %10811 = vrot.lane.b32.xlu0 %v15038_v51, %s12648_s25  ;;  %10816 = vrot.lane.b32.xlu1 %v15016_v20, %s12648_s25  ;;  %v15215_v51 = vpack.i.bf16 %v2915_v26, %v2914_v35  ;;  %v2917_v20 = vld [vmem:[#allocation3 + $0x30] sm:$0xff] }
 0x30c   : > { %v15225_v24 = vpack.i.bf16 %v2918_v0, %v2917_v20 }
 0x30d   : > { %v15203_v37 = vpop.permute.xlu0 %10531  ;;  %v15205_v21 = vpop.permute.xlu1 %10551 }
 0x30e   : > { %19368 = vst [vmem:[#allocation86_spill] sm:$0xff] %v15225_v24 }
 0x30f   : > { %10821 = vrot.lane.b32.xlu0 %v15093_v10, %s12648_s25  ;;  %10826 = vrot.lane.b32.xlu1 %v15074_v41, %s12648_s25 }
 0x311   : > { %v15211_v3 = vpop.permute.xlu0 %10536  ;;  %v15213_v48 = vpop.permute.xlu1 %10556 }
 0x312   : > { %19365 = vst [vmem:[#allocation82_spill] sm:$0xff] %v15211_v3  ;;  %19366 = vst [vmem:[#allocation83_spill] sm:$0xff] %v15213_v48  ;;  %v2950_v48 = vld [vmem:[#allocation3 + $0x39] sm:$0xff] }
 0x313   : > { %10831 = vrot.lane.b32.xlu0 %v15173_v53, %s12648_s25  ;;  %10836 = vrot.lane.b32.xlu1 %v15215_v51, %s12648_s25 }
 0x315   : > { %v15221_v36 = vpop.permute.xlu1 %10561  ;;  %v15223_v10 = vpop.permute.xlu0 %10541 }
 0x316   : > { %19367 = vst [vmem:[#allocation84_spill] sm:$0xff] %v15221_v36 }
 0x317   : > { %10841 = vrot.lane.b32.xlu0 %v15225_v24, %s12649_s26  ;;  %10846 = vrot.lane.b32.xlu1 %v15030_v58, %s12649_s26 }
 0x319   : > { %v15231_v35 = vpop.permute.xlu0 %10546  ;;  %v15233_v26 = vpop.permute.xlu1 %10566 }
 0x31b   : > { %10851 = vrot.lane.b32.xlu0 %v14988_v27, %s12649_s26  ;;  %10856 = vrot.lane.b32.xlu1 %v15082_v6, %s12649_s26 }
 0x31d   : > { %v15239_v41 = vpop.permute.xlu0 %10571  ;;  %v15241_v20 = vpop.permute.xlu1 %10576 }
 0x31e   : > { %19369 = vst [vmem:[#allocation87_spill] sm:$0xff] %v15239_v41 }
 0x31f   : > { %10861 = vrot.lane.b32.xlu0 %v15046_v4, %s12649_s26  ;;  %10866 = vrot.lane.b32.xlu1 %v15139_v12, %s12649_s26 }
 0x321   : > { %v15247_v0 = vpop.permute.xlu0 %10581  ;;  %v15249_v24 = vpop.permute.xlu1 %10591 }
 0x322   : > { %19370 = vst [vmem:[#allocation88_spill] sm:$0xff] %v15247_v0  ;;  %19371 = vst [vmem:[#allocation89_spill] sm:$0xff] %v15249_v24 }
 0x323   : > { %10871 = vrot.lane.b32.xlu0 %v15101_v22, %s12649_s26  ;;  %10876 = vrot.lane.b32.xlu1 %v14986_v19, %s12649_s26  ;;  %v2947_v22 = vld [vmem:[#allocation3 + $0x198] sm:$0xff] }
 0x325   : > { %v15255_v54 = vpop.permute.xlu0 %10586  ;;  %v15257_v60 = vpop.permute.xlu1 %10601 }
 0x326   : > { %19372 = vst [vmem:[#allocation37_spill] sm:$0xff] %v15255_v54  ;;  %19373 = vst [vmem:[#allocation39_spill] sm:$0xff] %v15257_v60  ;;  %v2948_v54 = vld [vmem:[#allocation3 + $0x1a0] sm:$0xff] }
 0x327   : > { %10881 = vrot.lane.b32.xlu0 %v14937_v62, %s12649_s26  ;;  %10886 = vrot.lane.b32.xlu1 %v15044_v49, %s12649_s26 }
 0x329   : > { %v15263_v36 = vpop.permute.xlu0 %10596  ;;  %v15265_v0 = vpop.permute.xlu1 %10611 }
 0x32a   : > { %19374 = vst [vmem:[#allocation38_spill] sm:$0xff] %v15263_v36  ;;  %19375 = vst [vmem:[#allocation45_spill] sm:$0xff] %v15265_v0  ;;  %v10915_v36 = vpack.i.bf16 %v2948_v54, %v2947_v22  ;;  %v2953_v54 = vld [vmem:[#allocation3 + $0x61] sm:$0xff] }
 0x32b   : > { %10891 = vrot.lane.b32.xlu0 %v15018_v17, %s12649_s26  ;;  %10896 = vrot.lane.b32.xlu1 %v15099_v44, %s12649_s26 }
 0x32d   : > { %v15271_v24 = vpop.permute.xlu0 %10606  ;;  %v15273_v60 = vpop.permute.xlu1 %10616 }
 0x32e   : > { %19376 = vst [vmem:[#allocation44_spill] sm:$0xff] %v15271_v24  ;;  %19377 = vst [vmem:[#allocation47_spill] sm:$0xff] %v15273_v60  ;;  %v2949_v24 = vld [vmem:[#allocation3 + $0x31] sm:$0xff] }
 0x32f   : > { %10901 = vrot.lane.b32.xlu0 %v15076_v46, %s12649_s26  ;;  %10906 = vrot.lane.b32.xlu1 %v15161_v50, %s12649_s26  ;;  %v15290_v46 = vpack.i.bf16 %v2950_v48, %v2949_v24  ;;  %v2964_v50 = vld [vmem:[#allocation3 + $0xe1] sm:$0xff] }
 0x331   : > { %v15279_v0 = vpop.permute.xlu0 %10621  ;;  %v15281_v41 = vpop.permute.xlu1 %10641  ;;  %19380 = vst [vmem:[#allocation48_spill] sm:$0xff] %v15290_v46 }
 0x333   : > { %10911 = vrot.lane.b32.xlu0 %v15141_v59, %s12649_s26  ;;  %10916 = vrot.lane.b32.xlu1 %v10915_v36, %s12649_s26  ;;  %v15300_v36 = vpack.i.bf16 %v2954_v15, %v2953_v54 }
 0x335   : > { %v15286_v3 = vpop.permute.xlu0 %10626  ;;  %v15288_v60 = vpop.permute.xlu1 %10646  ;;  %19383 = vst [vmem:[#allocation51_spill] sm:$0xff] %v15300_v36 }
 0x336   : > { %19378 = vst [vmem:[#allocation46_spill] sm:$0xff] %v15286_v3  ;;  %19379 = vst [vmem:[#allocation49_spill] sm:$0xff] %v15288_v60  ;;  %v2967_v60 = vld [vmem:[#allocation3 + $0x109] sm:$0xff] }
 0x337   : > { %10921 = vrot.lane.b32.xlu0 %v15290_v46, %s12650_s27  ;;  %10926 = vrot.lane.b32.xlu1 %v15005_v55, %s12650_s27  ;;  %v2963_v55 = vld [vmem:[#allocation3 + $0xd9] sm:$0xff] }
 0x338   : > { %v2966_v46 = vld [vmem:[#allocation3 + $0xf9] sm:$0xff] }
 0x339   : > { %v15296_v22 = vpop.permute.xlu1 %10651  ;;  %v15298_v59 = vpop.permute.xlu0 %10631 }
 0x33a   : > { %19381 = vst [vmem:[#allocation41_spill] sm:$0xff] %v15296_v22  ;;  %19382 = vst [vmem:[#allocation50_spill] sm:$0xff] %v15298_v59  ;;  %v2968_v22 = vld [vmem:[#allocation3 + $0x111] sm:$0xff] }
 0x33b   : > { %10931 = vrot.lane.b32.xlu0 %v15300_v36, %s12650_s27  ;;  %10936 = vrot.lane.b32.xlu1 %v15063_v43, %s12650_s27  ;;  %v10955_v36 = vpack.i.bf16 %v2964_v50, %v2963_v55  ;;  %v2965_v43 = vld [vmem:[#allocation3 + $0xf1] sm:$0xff]  ;;  %v10965_v59 = vpack.i.bf16 %v2968_v22, %v2967_v60  ;;  %v2970_v55 = vld [vmem:[#allocation3 + $0x129] sm:$0xff] }
 0x33c   : > { %v2973_v60 = vld [vmem:[#allocation3 + $0x151] sm:$0xff] }
 0x33d   : > { %v15306_v48 = vpop.permute.xlu0 %10636  ;;  %v15308_v24 = vpop.permute.xlu1 %10656 }
 0x33e   : > { %19384 = vst [vmem:[#allocation53_spill] sm:$0xff] %v15306_v48 }
 0x33f   : > { %10941 = vrot.lane.b32.xlu0 %v15052_v40, %s12650_s27  ;;  %10946 = vrot.lane.b32.xlu1 %v15119_v61, %s12650_s27  ;;  %v12365_v40 = vld [vmem:[%s18873_s4] sm:$0xff]  }
 0x340   : > { %9602 = vmatprep.subr.bf16.mxu1 %v12365_v40 }
 0x341   : > { %v15314_v15 = vpop.permute.xlu0 %10661  ;;  %v15316_v54 = vpop.permute.xlu1 %10666  ;;  %9603 = vmatpush3.bf16.msra.mxu1 %v12365_v40 }
 0x342   : > { %19385 = vst [vmem:[#allocation54_spill] sm:$0xff] %v15314_v15  ;;  %v10960_v15 = vpack.i.bf16 %v2966_v46, %v2965_v43  ;;  %v2979_v43 = vld [vmem:[#allocation3 + $0x199] sm:$0xff]  ;;  %v2980_v46 = vld [vmem:[#allocation3 + $0x1a1] sm:$0xff] }
 0x343   : > { %10951 = vrot.lane.b32.xlu0 %v15109_v42, %s12650_s27  ;;  %10956 = vrot.lane.b32.xlu1 %v10955_v36, %s12650_s27  ;;  %v2969_v42 = vld [vmem:[#allocation3 + $0x121] sm:$0xff]  ;;  %v12366_v36 = vld [vmem:[%s18873_s4 + $0x8] sm:$0xff]  }
 0x344   : > { %9604 = vmatprep.subr.bf16.mxu1 %v12366_v36 }
 0x345   : > { %v15324_v61 = vpop.permute.xlu0 %10671  ;;  %v15326_v48 = vpop.permute.xlu1 %10681  ;;  %9605 = vmatpush3.bf16.msra.mxu1 %v12366_v36  ;;  %v2981_v36 = vld [vmem:[#allocation3 + $0x32] sm:$0xff] }
 0x346   : > { %19386 = vst [vmem:[#allocation40_spill] sm:$0xff] %v15324_v61  ;;  %19387 = vst [vmem:[#allocation69_spill] sm:$0xff] %v15326_v48  ;;  %v10970_v61 = vpack.i.bf16 %v2970_v55, %v2969_v42  ;;  %v2974_v48 = vld [vmem:[#allocation3 + $0x159] sm:$0xff] }
 0x347   : > { %10961 = vrot.lane.b32.xlu0 %v10960_v15, %s12650_s27  ;;  %10966 = vrot.lane.b32.xlu1 %v10965_v59, %s12650_s27  ;;  %v10980_v59 = vpack.i.bf16 %v2974_v48, %v2973_v60  ;;  %v12367_v15 = vld [vmem:[%s18873_s4 + $0x10] ss:$0 sps:$4 sm:$0x33]   ;;  %v2983_v60 = vld [vmem:[#allocation3 + $0x4a] sm:$0xff] }
 0x348   : > { %9772 = vmatprep.subr.msk.bf16.mxu1 %vm2361_vm3, %v12367_v15  ;;  %v2982_v48 = vld [vmem:[#allocation3 + $0x3a] sm:$0xff] }
 0x349   : > { %v15333_v50 = vpop.permute.xlu0 %10676  ;;  %v15335_v3 = vpop.permute.xlu1 %10691 }
 0x34a   : > { %19388 = vst [vmem:[#allocation42_spill] sm:$0xff] %v15333_v50  ;;  %19389 = vst [vmem:[#allocation43_spill] sm:$0xff] %v15335_v3  ;;  %v2984_v3 = vld [vmem:[#allocation3 + $0x52] sm:$0xff]  ;;  %v3001_v50 = vld [vmem:[#allocation3 + $0x122] sm:$0xff] }
 0x34b   : > { %10971 = vrot.lane.b32.xlu0 %v10970_v61, %s12650_s27  ;;  %10976 = vrot.lane.b32.xlu1 %v15087_v23, %s12650_s27  ;;  %v10995_v61 = vpack.i.bf16 %v2980_v46, %v2979_v43  ;;  %v4378_v23 = vsel %vm2361_vm3, %v12367_v15, 0  ;;  %v15363_v46 = vpack.i.bf16 %v2982_v48, %v2981_v36  ;;  %v2985_v15 = vld [vmem:[#allocation3 + $0x62] sm:$0xff]  ;;  %v2990_v48 = vld [vmem:[#allocation3 + $0x9a] sm:$0xff] }
 0x34c   : > { %9607 = vmatpush3.bf16.msra.mxu1 %v4378_v23  ;;  %v2988_v23 = vld [vmem:[#allocation3 + $0x82] sm:$0xff] }
 0x34d   : > { %v15340_v40 = vpop.permute.xlu0 %10686  ;;  %v15342_v22 = vpop.permute.xlu1 %10701  ;;  %19396 = vst [vmem:[#allocation94_spill] sm:$0xff] %v15363_v46 }
 0x34e   : > { %19390 = vst [vmem:[#allocation52_spill] sm:$0xff] %v15340_v40  ;;  %19391 = vst [vmem:[#allocation85_spill] sm:$0xff] %v15342_v22 }
 0x34f   : > { %10981 = vrot.lane.b32.xlu0 %v10980_v59, %s12650_s27  ;;  %10986 = vrot.lane.b32.xlu1 %v15163_v31, %s12650_s27  ;;  %v15365_v59 = vpack.i.bf16 %v2984_v3, %v2983_v60  ;;  %v2989_v3 = vld [vmem:[#allocation3 + $0x92] sm:$0xff] }
 0x351   : > { %v15352_v55 = vpop.permute.xlu0 %10696  ;;  %v15354_v42 = vpop.permute.xlu1 %10706  ;;  %19397 = vst [vmem:[#allocation95_spill] sm:$0xff] %v15365_v59 }
 0x352   : > { %19392 = vst [vmem:[#allocation90_spill] sm:$0xff] %v15352_v55  ;;  %19393 = vst [vmem:[#allocation91_spill] sm:$0xff] %v15354_v42  ;;  %v2986_v55 = vld [vmem:[#allocation3 + $0x6a] sm:$0xff]  ;;  %v2987_v42 = vld [vmem:[#allocation3 + $0x7a] sm:$0xff] }
 0x353   : > { %10991 = vrot.lane.b32.xlu0 %v15151_v2, %s12650_s27  ;;  %10996 = vrot.lane.b32.xlu1 %v10995_v61, %s12650_s27  ;;  %v15377_v36 = vpack.i.bf16 %v2988_v23, %v2987_v42 }
 0x355   : > { %v15359_v31 = vpop.permute.xlu0 %10711  ;;  %v15361_v43 = vpop.permute.xlu1 %10731  ;;  %19401 = vst [vmem:[#allocation99_spill] sm:$0xff] %v15377_v36 }
 0x356   : > { %19394 = vst [vmem:[#allocation92_spill] sm:$0xff] %v15359_v31  ;;  %19395 = vst [vmem:[#allocation93_spill] sm:$0xff] %v15361_v43  ;;  %v15375_v31 = vpack.i.bf16 %v2986_v55, %v2985_v15  ;;  %v2995_v55 = vld [vmem:[#allocation3 + $0xda] sm:$0xff]  ;;  %v2996_v15 = vld [vmem:[#allocation3 + $0xe2] sm:$0xff] }
 0x357   : > { %11001 = vrot.lane.b32.xlu0 %v15363_v46, %s12651_s15  ;;  %11006 = vrot.lane.b32.xlu1 %v15365_v59, %s12651_s15  ;;  %v15387_v59 = vpack.i.bf16 %v2990_v48, %v2989_v3  ;;  %v2997_v43 = vld [vmem:[#allocation3 + $0xf2] sm:$0xff]  ;;  %v2999_v3 = vld [vmem:[#allocation3 + $0x10a] sm:$0xff] }
 0x358   : > { %19400 = vst [vmem:[#allocation98_spill] sm:$0xff] %v15375_v31  ;;  %v3000_v48 = vld [vmem:[#allocation3 + $0x112] sm:$0xff] }
 0x359   : > { %v15371_v2 = vpop.permute.xlu0 %10716  ;;  %v15373_v61 = vpop.permute.xlu1 %10736  ;;  %19404 = vst [vmem:[#allocation102_spill] sm:$0xff] %v15387_v59  ;;  %v11045_v22 = vpack.i.bf16 %v3000_v48, %v2999_v3  ;;  %v10444_v3 = vunpack.i.h.bf16 %v15103_v13 }
 0x35a   : > { %19398 = vst [vmem:[#allocation96_spill] sm:$0xff] %v15371_v2  ;;  %19399 = vst [vmem:[#allocation97_spill] sm:$0xff] %v15373_v61  ;;  %v2993_v2 = vld [vmem:[#allocation3 + $0xc2] sm:$0xff]  ;;  %v2994_v61 = vld [vmem:[#allocation3 + $0xca] sm:$0xff] }
 0x35b   : > { %11011 = vrot.lane.b32.xlu0 %v15375_v31, %s12651_s15  ;;  %11016 = vrot.lane.b32.xlu1 %v15377_v36, %s12651_s15  ;;  %v11030_v36 = vpack.i.bf16 %v2994_v61, %v2993_v2  ;;  %v11035_v31 = vpack.i.bf16 %v2996_v15, %v2995_v55  ;;  %v3005_v55 = vld [vmem:[#allocation3 + $0x152] sm:$0xff]  ;;  %v3006_v15 = vld [vmem:[#allocation3 + $0x15a] sm:$0xff] }
 0x35d   : > { %v15383_v60 = vpop.permute.xlu0 %10721  ;;  %v15385_v46 = vpop.permute.xlu1 %10741 }
 0x35e   : > { %19402 = vst [vmem:[#allocation100_spill] sm:$0xff] %v15383_v60  ;;  %19403 = vst [vmem:[#allocation101_spill] sm:$0xff] %v15385_v46  ;;  %v2998_v46 = vld [vmem:[#allocation3 + $0xfa] sm:$0xff] }
 0x35f   : > { %11021 = vrot.lane.b32.xlu0 %v15387_v59, %s12651_s15  ;;  %11026 = vrot.lane.b32.xlu1 %v15129_v57, %s12651_s15  ;;  %v11040_v40 = vpack.i.bf16 %v2998_v46, %v2997_v43  ;;  %v3003_v57 = vld [vmem:[#allocation3 + $0x13a] sm:$0xff]  ;;  %v3012_v46 = vld [vmem:[#allocation3 + $0x1a2] sm:$0xff] }
 0x360   : > { %v3011_v43 = vld [vmem:[#allocation3 + $0x19a] sm:$0xff] }
 0x361   : > { %v15393_v42 = vpop.permute.xlu0 %10726  ;;  %v15395_v23 = vpop.permute.xlu1 %10746 }
 0x362   : > { %19405 = vst [vmem:[#allocation103_spill] sm:$0xff] %v15393_v42  ;;  %19406 = vst [vmem:[#allocation104_spill] sm:$0xff] %v15395_v23  ;;  %v3002_v42 = vld [vmem:[#allocation3 + $0x12a] sm:$0xff]  ;;  %v3004_v23 = vld [vmem:[#allocation3 + $0x142] sm:$0xff] }
 0x363   : > { %11031 = vrot.lane.b32.xlu0 %v11030_v36, %s12651_s15  ;;  %11036 = vrot.lane.b32.xlu1 %v11035_v31, %s12651_s15  ;;  %v11050_v36 = vpack.i.bf16 %v3002_v42, %v3001_v50  ;;  %v11055_v31 = vpack.i.bf16 %v3004_v23, %v3003_v57  ;;  %v2725_v50 = vld [vmem:[#allocation3 + $0x8] sm:$0xff]  ;;  %v11075_v57 = vpack.i.bf16 %v3012_v46, %v3011_v43  ;;  %v10449_v42 = vunpack.i.h.bf16 %v15115_v63  ;;  %v12508_v43 = vld [vmem:[#allocation3 + $0x30] sm:$0xff]  ;;  %v12509_v46 = vld [vmem:[#allocation3 + $0x38] sm:$0xff] }
 0x364   : > { %v10448_v23 = vunpack.i.l.bf16 %v15115_v63 }
 0x365   : > { %v15399_v60 = vpop.permute.xlu0 %10751  ;;  %v15401_v59 = vpop.permute.xlu1 %10756 }
 0x366   : > { %19407 = vst [vmem:[#allocation105_spill] sm:$0xff] %v15399_v60  ;;  %19408 = vst [vmem:[#allocation106_spill] sm:$0xff] %v15401_v59  ;;  %v10458_v59 = vunpack.i.l.bf16 %v15147_v56  ;;  %v10464_v60 = vunpack.i.h.bf16 %v15117_v9 }
 0x367   : > { %11041 = vrot.lane.b32.xlu0 %v11040_v40, %s12651_s15  ;;  %11046 = vrot.lane.b32.xlu1 %v11045_v22, %s12651_s15  ;;  %v10443_v40 = vunpack.i.l.bf16 %v15103_v13 }
 0x369   : > { %v15405_v2 = vpop.permute.xlu0 %10761  ;;  %v15407_v61 = vpop.permute.xlu1 %10766 }
 0x36a   : > { %19409 = vst [vmem:[#allocation107_spill] sm:$0xff] %v15405_v2  ;;  %19410 = vst [vmem:[#allocation108_spill] sm:$0xff] %v15407_v61  ;;  %v11060_v2 = vpack.i.bf16 %v3006_v15, %v3005_v55  ;;  %v2724_v61 = vld [vmem:[#allocation3] sm:$0xff] }
 0x36b   : > { %11051 = vrot.lane.b32.xlu0 %v11050_v36, %s12651_s15  ;;  %11056 = vrot.lane.b32.xlu1 %v11055_v31, %s12651_s15  ;;  %v4038_v36 = vsel %vm611_vm0, %v2725_v50, %v10444_v3  ;;  %v4037_v13 = vsel %vm611_vm0, %v2724_v61, %v10443_v40  ;;  %v15441_v3 = vpack.i.bf16 %v12509_v46, %v12508_v43  ;;  %v12511_v40 = vld [vmem:[#allocation3 + $0x3a] sm:$0xff] }
 0x36c   : > { %v15435_v55 = vsel %vm2045_vm2, %v4038_v36, %v10449_v42 }
 0x36d   : > { %v15413_v48 = vpop.permute.xlu0 %10781  ;;  %v15415_v22 = vpop.permute.xlu1 %10771 }
 0x36e   : > { %19411 = vst [vmem:[#allocation109_spill] sm:$0xff] %v15413_v48  ;;  %19412 = vst [vmem:[#allocation110_spill] sm:$0xff] %v15415_v22  ;;  %v10488_v22 = vunpack.i.l.bf16 %v15159_v5 }
 0x36f   : > { %11061 = vrot.lane.b32.xlu0 %v11060_v2, %s12651_s15  ;;  %11066 = vrot.lane.b32.xlu1 %v15173_v53, %s12651_s15  ;;  %v11080_v2 = vpack.i.bf16 %v2725_v50, %v2724_v61  ;;  %v15432_v53 = vsel %vm2045_vm2, %v4037_v13, %v10448_v23  ;;  %v12510_v61 = vld [vmem:[#allocation3 + $0x32] sm:$0xff]  ;;  %v15454_v23 = vld [vmem:[#allocation3 + $0xc0] sm:$0xff] }
 0x370   : > { %v15448_v50 = vpack.i.bf16 %v12511_v40, %v12510_v61  ;;  %v15462_v13 = vld [vmem:[#allocation3 + $0x21] sm:$0xff]  ;;  %v15468_v40 = vld [vmem:[#allocation3 + $0x31] sm:$0xff] }
 0x371   : > { %v15424_v31 = vpop.permute.xlu0 %10786  ;;  %v15426_v48 = vpop.permute.xlu1 %10776  ;;  %19420 = vst [vmem:[#allocation118_spill] sm:$0xff] %v15468_v40  ;;  %v15482_v61 = vld [vmem:[#allocation3 + $0x170] sm:$0xff]  ;;  %v15492_v40 = vld [vmem:[#allocation3 + $0x168] sm:$0xff] }
 0x372   : > { %19413 = vst [vmem:[#allocation111_spill] sm:$0xff] %v15424_v31  ;;  %19414 = vst [vmem:[#allocation112_spill] sm:$0xff] %v15426_v48  ;;  %v10453_v31 = vunpack.i.l.bf16 %v15131_v32  ;;  %v10479_v48 = vunpack.i.h.bf16 %v15149_v38 }
 0x373   : > { %11071 = vrot.lane.b32.xlu0 %v15215_v51, %s12651_s15  ;;  %11076 = vrot.lane.b32.xlu1 %v11075_v57, %s12651_s15  ;;  %v15446_v51 = vld [vmem:[#allocation3 + $0xc8] sm:$0xff] }
 0x374   : > { %v11120_v36 = vpack.i.bf16 %v15446_v51, %v15454_v23 }
 0x375   : > { %v15437_v63 = vpop.permute.xlu0 %10791  ;;  %v15439_v15 = vpop.permute.xlu1 %10796 }
 0x376   : > { %19415 = vst [vmem:[#allocation113_spill] sm:$0xff] %v15437_v63  ;;  %19416 = vst [vmem:[#allocation114_spill] sm:$0xff] %v15439_v15 }
 0x377   : > { %11081 = vrot.lane.b32.xlu0 %v11080_v2, %s12652_s1  ;;  %11086 = vrot.lane.b32.xlu1 %v14954_v1, %s12652_s1  ;;  %v15464_v2 = vld [vmem:[#allocation3 + $0x19] sm:$0xff] }
 0x378   : > { %19419 = vst [vmem:[#allocation117_spill] sm:$0xff] %v15464_v2 }
 0x379   : > { %v15450_v57 = vpop.permute.xlu0 %10801  ;;  %v15452_v42 = vpop.permute.xlu1 %10806 }
 0x37a   : > { %19417 = vst [vmem:[#allocation115_spill] sm:$0xff] %v15450_v57  ;;  %19418 = vst [vmem:[#allocation116_spill] sm:$0xff] %v15452_v42  ;;  %v15470_v42 = vld [vmem:[#allocation3 + $0x39] sm:$0xff]  ;;  %v10454_v57 = vunpack.i.h.bf16 %v15131_v32  ;;  %v10483_v32 = vunpack.i.l.bf16 %v15157_v34 }
 0x37b   : > { %11091 = vrot.lane.b32.xlu0 %v15441_v3, %s12652_s1  ;;  %11096 = vrot.lane.b32.xlu1 %v15030_v58, %s12652_s1  ;;  %19421 = vst [vmem:[#allocation119_spill] sm:$0xff] %v15470_v42  ;;  %v10478_v58 = vunpack.i.l.bf16 %v15149_v38 }
 0x37d   : > { %v15474_v15 = vpop.permute.xlu0 %10811  ;;  %v15476_v63 = vpop.permute.xlu1 %10816 }
 0x37e   : > { %19422 = vst [vmem:[#allocation120_spill] sm:$0xff] %v15474_v15  ;;  %19423 = vst [vmem:[#allocation121_spill] sm:$0xff] %v15476_v63  ;;  %v10489_v63 = vunpack.i.h.bf16 %v15159_v5  ;;  %v10459_v15 = vunpack.i.h.bf16 %v15147_v56  ;;  %v10463_v5 = vunpack.i.l.bf16 %v15117_v9  ;;  %v4040_v56 = vsel %vm611_vm0, %v14940_v52, %v10479_v48 }
 0x37f   : > { %11101 = vrot.lane.b32.xlu0 %v14988_v27, %s12652_s1  ;;  %11106 = vrot.lane.b32.xlu1 %v15082_v6, %s12652_s1  ;;  %v4039_v27 = vsel %vm611_vm0, %v14948_v39, %v10478_v58  ;;  %v4041_v6 = vsel %vm611_vm0, %v12508_v43, %v10453_v31  ;;  %v4042_v39 = vsel %vm611_vm0, %v12509_v46, %v10454_v57  ;;  %v10484_v58 = vunpack.i.h.bf16 %v15157_v34 }
 0x380   : > { %v4071_v2 = vsel %vm2045_vm2, %v4039_v27, %v10488_v22  ;;  %v4072_v9 = vsel %vm2045_vm2, %v4040_v56, %v10489_v63  ;;  %v10469_v31 = vunpack.i.h.bf16 %v15125_v16  ;;  %v10468_v52 = vunpack.i.l.bf16 %v15125_v16  ;;  %v12516_v56 = vld [vmem:[#allocation3 + $0xf8] sm:$0xff] }
 0x381   : > { %v15494_v38 = vpop.permute.xlu0 %10821  ;;  %v15496_v42 = vpop.permute.xlu1 %10826  ;;  %v15519_v27 = vsel %vm2045_vm2, %v4041_v6, %v10458_v59  ;;  %v15522_v48 = vsel %vm2045_vm2, %v4042_v39, %v10459_v15  ;;  %v10474_v46 = vunpack.i.h.bf16 %v15137_v8  ;;  %v10473_v34 = vunpack.i.l.bf16 %v15137_v8  ;;  %v12517_v39 = vld [vmem:[#allocation3 + $0xf0] sm:$0xff] }
 0x382   : > { %19424 = vst [vmem:[#allocation122_spill] sm:$0xff] %v15494_v38  ;;  %19425 = vst [vmem:[#allocation123_spill] sm:$0xff] %v15496_v42  ;;  %v4103_v63 = vsel %vm2078_vm4, %v4071_v2, %v10463_v5  ;;  %v10493_v57 = vunpack.i.l.bf16 %v15169_v33  ;;  %v4104_v16 = vsel %vm2078_vm4, %v4072_v9, %v10464_v60  ;;  %v10494_v6 = vunpack.i.h.bf16 %v15169_v33 }
 0x383   : > { %11111 = vrot.lane.b32.xlu0 %v15046_v4, %s12652_s1  ;;  %11116 = vrot.lane.b32.xlu1 %v15139_v12, %s12652_s1  ;;  %v10524_v59 = vunpack.i.h.bf16 %v15189_v29  ;;  %v10523_v15 = vunpack.i.l.bf16 %v15189_v29  ;;  %v4058_v8 = vsel %vm611_vm0, %v12516_v56, %v10484_v58  ;;  %v4057_v2 = vsel %vm611_vm0, %v12517_v39, %v10483_v32  ;;  %v19449_v4 = vld [vmem:[#allocation62_spill] sm:$0xff] }
 0x384   : > { %v10529_v5 = vunpack.i.h.bf16 %v15197_v18  ;;  %v10528_v60 = vunpack.i.l.bf16 %v15197_v18  ;;  %v10504_v33 = vunpack.i.h.bf16 %v15171_v47  ;;  %v10499_v9 = vunpack.i.h.bf16 %v15179_v45 }
 0x385   : > { %v15524_v22 = vpop.permute.xlu0 %10831  ;;  %v15526_v43 = vpop.permute.xlu1 %10836  ;;  %v10498_v29 = vunpack.i.l.bf16 %v15179_v45  ;;  %v15552_v58 = vsel %vm2045_vm2, %v4057_v2, %v10493_v57  ;;  %v10509_v32 = vunpack.i.h.bf16 %v15187_v11  ;;  %v10508_v56 = vunpack.i.l.bf16 %v15187_v11 }
 0x386   : > { %19426 = vst [vmem:[#allocation124_spill] sm:$0xff] %v15524_v22  ;;  %19427 = vst [vmem:[#allocation125_spill] sm:$0xff] %v15526_v43  ;;  %v4136_v18 = vsel %vm2111_vm5, %v4104_v16, %v10469_v31  ;;  %v15558_v39 = vsel %vm2045_vm2, %v4058_v8, %v10494_v6  ;;  %v10503_v45 = vunpack.i.l.bf16 %v15171_v47  ;;  %v4056_v22 = vsel %vm611_vm0, %v14976_v7, %v10524_v59 }
 0x387   : > { %11121 = vrot.lane.b32.xlu0 %v11120_v36, %s12652_s1  ;;  %11126 = vrot.lane.b32.xlu1 %v14986_v19, %s12652_s1  ;;  %v4135_v19 = vsel %vm2111_vm5, %v4103_v63, %v10468_v52  ;;  %v4055_v52 = vsel %vm611_vm0, %v14982_v30, %v10523_v15  ;;  %v10519_v11 = vunpack.i.h.bf16 %v15195_v28  ;;  %v10518_v31 = vunpack.i.l.bf16 %v15195_v28 }
 0x388   : > { %v4087_v63 = vsel %vm2045_vm2, %v4055_v52, %v10528_v60  ;;  %v4088_v47 = vsel %vm2045_vm2, %v4056_v22, %v10529_v5  ;;  %v4102_v7 = vsel %vm2078_vm4, %v15435_v55, %v10499_v9  ;;  %v4101_v30 = vsel %vm2078_vm4, %v15432_v53, %v10498_v29  ;;  %v12518_v52 = vld [vmem:[#allocation3 + $0x2] sm:$0xff] }
 0x389   : > { %v15546_v36 = vpop.permute.xlu0 %10841  ;;  %v15549_v43 = vpop.permute.xlu1 %10846  ;;  %v15578_v57 = vsel %vm2144_vm6, %v4135_v19, %v10473_v34  ;;  %v10514_v28 = vunpack.i.h.bf16 %v15181_v14  ;;  %v10513_v22 = vunpack.i.l.bf16 %v15181_v14  ;;  %v4133_v6 = vsel %vm2111_vm5, %v4101_v30, %v10508_v56  ;;  %v12523_v5 = vld [vmem:[#allocation3 + $0x120] sm:$0xff] }
 0x38a   : > { %v4134_v55 = vsel %vm2111_vm5, %v4102_v7, %v10509_v32  ;;  %v4119_v53 = vsel %vm2078_vm4, %v4087_v63, %v10503_v45  ;;  %v4120_v34 = vsel %vm2078_vm4, %v4088_v47, %v10504_v33  ;;  %v10569_v59 = vunpack.i.h.bf16 %v15233_v26  ;;  %v19432_v45 = vld [vmem:[#allocation74_spill] sm:$0xff]  ;;  %v19440_v47 = vld [vmem:[#allocation55_spill] sm:$0xff] }
 0x38b   : > { %11131 = vrot.lane.b32.xlu0 %v14937_v62, %s12652_s1  ;;  %11136 = vrot.lane.b32.xlu1 %v15044_v49, %s12652_s1  ;;  %v15581_v62 = vsel %vm2144_vm6, %v4136_v18, %v10474_v46  ;;  %v10568_v46 = vunpack.i.l.bf16 %v15233_v26  ;;  %v15600_v14 = vsel %vm2144_vm6, %v4133_v6, %v10518_v31  ;;  %v15603_v15 = vsel %vm2144_vm6, %v4134_v55, %v10519_v11  ;;  %v12519_v11 = vld [vmem:[#allocation3 + $0xa] sm:$0xff]  ;;  %v19434_v63 = vld [vmem:[#allocation82_spill] sm:$0xff] }
 0x38c   : > { %v10579_v8 = vunpack.i.h.bf16 %v15241_v20  ;;  %v10578_v2 = vunpack.i.l.bf16 %v15241_v20  ;;  %v10554_v60 = vunpack.i.h.bf16 %v15205_v21  ;;  %v10544_v9 = vunpack.i.h.bf16 %v15223_v10  ;;  %v19446_v26 = vld [vmem:[#allocation89_spill] sm:$0xff] }
 0x38d   : > { %v15583_v49 = vpop.permute.xlu0 %10851  ;;  %v15585_v16 = vpop.permute.xlu1 %10856  ;;  %v10543_v29 = vunpack.i.l.bf16 %v15223_v10  ;;  %v15618_v19 = vsel %vm2111_vm5, %v4119_v53, %v10513_v22  ;;  %v15621_v20 = vsel %vm2111_vm5, %v4120_v34, %v10514_v28  ;;  %v10548_v32 = vunpack.i.l.bf16 %v15231_v35  ;;  %v19435_v28 = vld [vmem:[#allocation83_spill] sm:$0xff] }
 0x38e   : > { %19429 = vst [vmem:[#allocation127_spill] sm:$0xff] %v15618_v19  ;;  %19430 = vst [vmem:[#allocation128_spill] sm:$0xff] %v15621_v20  ;;  %v4043_v56 = vsel %vm611_vm0, %v15026_v25, %v10568_v46  ;;  %v19433_v10 = vpack.i.bf16 %v15482_v61, %v15492_v40  ;;  %v11160_v31 = vpack.i.bf16 %v12519_v11, %v12518_v52  ;;  %v10559_v22 = vunpack.i.h.bf16 %v19435_v28  ;;  %v19436_v53 = vld [vmem:[#allocation87_spill] sm:$0xff] }
 0x38f   : > { %11141 = vrot.lane.b32.xlu0 %v15018_v17, %s12652_s1  ;;  %11146 = vrot.lane.b32.xlu1 %v15099_v44, %s12652_s1  ;;  %v10553_v17 = vunpack.i.l.bf16 %v15205_v21  ;;  %v19431_v21 = vld [vmem:[#allocation64_spill] sm:$0xff]  ;;  %v4075_v25 = vsel %vm2045_vm2, %v4043_v56, %v10578_v2  ;;  %v10558_v6 = vunpack.i.l.bf16 %v19435_v28  ;;  %v10549_v55 = vunpack.i.h.bf16 %v15231_v35 }
 0x390   : > { %v4044_v18 = vsel %vm611_vm0, %v19431_v21, %v10569_v59  ;;  %v10574_v34 = vunpack.i.h.bf16 %v19436_v53  ;;  %v19439_v21 = vld [vmem:[#allocation84_spill] sm:$0xff]  ;;  %v10573_v56 = vunpack.i.l.bf16 %v19436_v53  ;;  %v10594_v12 = vunpack.i.h.bf16 %v19446_v26 }
 0x391   : > { %v15611_v33 = vpop.permute.xlu0 %10861  ;;  %v15613_v44 = vpop.permute.xlu1 %10866  ;;  %v4076_v30 = vsel %vm2045_vm2, %v4044_v18, %v10579_v8  ;;  %v12521_v2 = vld [vmem:[#allocation3 + $0x68] sm:$0xff]  ;;  %v10563_v18 = vunpack.i.l.bf16 %v19439_v21  ;;  %v4107_v11 = vsel %vm2078_vm4, %v4075_v25, %v10553_v17 }
 0x392   : > { %19428 = vst [vmem:[#allocation126_spill] sm:$0xff] %v15613_v44  ;;  %v4046_v8 = vsel %vm611_vm0, %v12521_v2, %v10544_v9  ;;  %v4108_v28 = vsel %vm2078_vm4, %v4076_v30, %v10554_v60  ;;  %v19442_v2 = vld [vmem:[#allocation45_spill] sm:$0xff]  ;;  %v19443_v60 = vld [vmem:[#allocation47_spill] sm:$0xff]  ;;  %v4139_v38 = vsel %vm2111_vm5, %v4107_v11, %v10558_v6  ;;  %v19450_v11 = vld [vmem:[#allocation44_spill] sm:$0xff] }
 0x393   : > { %11151 = vrot.lane.b32.xlu0 %v19432_v45, %s12652_s1  ;;  %11156 = vrot.lane.b32.xlu1 %v19433_v10, %s12652_s1  ;;  %v10564_v45 = vunpack.i.h.bf16 %v19439_v21  ;;  %v12520_v10 = vld [vmem:[#allocation3 + $0x60] sm:$0xff]  ;;  %v10614_v53 = vunpack.i.h.bf16 %v19442_v2  ;;  %v10613_v21 = vunpack.i.l.bf16 %v19442_v2  ;;  %v10619_v25 = vunpack.i.h.bf16 %v19443_v60  ;;  %v12535_v44 = vld [vmem:[#allocation3 + $0xb0] sm:$0xff]  ;;  %s12655_s1 = smov 56  }
 0x394   : > { %v4045_v52 = vsel %vm611_vm0, %v12520_v10, %v10543_v29  ;;  %v19441_v29 = vld [vmem:[#allocation88_spill] sm:$0xff]  ;;  %v10593_v2 = vunpack.i.l.bf16 %v19446_v26 }
 0x395   : > { %v15642_v59 = vpop.permute.xlu0 %10871  ;;  %v15644_v46 = vpop.permute.xlu1 %10876  ;;  %v15652_v35 = vsel %vm2045_vm2, %v4045_v52, %v10548_v32  ;;  %v10584_v10 = vunpack.i.h.bf16 %v19441_v29  ;;  %v10583_v9 = vunpack.i.l.bf16 %v19441_v29  ;;  %v15664_v32 = vsel %vm2045_vm2, %v4046_v8, %v10549_v55  ;;  %v12522_v52 = vld [vmem:[#allocation3 + $0x128] sm:$0xff]  ;;  %v19447_v55 = vld [vmem:[#allocation37_spill] sm:$0xff] }
 0x396   : > { %19437 = vst [vmem:[#allocation64_spill] sm:$0xff] %v15642_v59  ;;  %19438 = vst [vmem:[#allocation74_spill] sm:$0xff] %v15644_v46  ;;  %v4062_v17 = vsel %vm611_vm0, %v12522_v52, %v10574_v34  ;;  %v4061_v29 = vsel %vm611_vm0, %v12523_v5, %v10573_v56  ;;  %v10588_v8 = vunpack.i.l.bf16 %v19447_v55  ;;  %v10589_v42 = vunpack.i.h.bf16 %v19447_v55  ;;  %v19448_v34 = vld [vmem:[#allocation38_spill] sm:$0xff]  ;;  %v12524_v56 = vld [vmem:[#allocation3 + $0x110] sm:$0xff] }
 0x397   : > { %11161 = vrot.lane.b32.xlu0 %v11160_v31, %s12644_s22  ;;  %11166 = vrot.lane.b32.xlu1 %v19440_v47, %s12644_s22  ;;  %v10618_v31 = vunpack.i.l.bf16 %v19443_v60  ;;  %v10598_v52 = vunpack.i.l.bf16 %v19448_v34  ;;  %v4140_v60 = vsel %vm2111_vm5, %v4108_v28, %v10559_v22  ;;  %v15686_v5 = vsel %vm2045_vm2, %v4061_v29, %v10583_v9  ;;  %v19483_v46 = vld [vmem:[#allocation43_spill] sm:$0xff] }
 0x398   : > { %v15689_v26 = vsel %vm2045_vm2, %v4062_v17, %v10584_v10  ;;  %v4060_v55 = vsel %vm611_vm0, %v12524_v56, %v10614_v53  ;;  %v10599_v22 = vunpack.i.h.bf16 %v19448_v34  ;;  %v10608_v28 = vunpack.i.l.bf16 %v19450_v11  ;;  %v19454_v56 = vld [vmem:[#allocation60_spill] sm:$0xff] }
 0x399   : > { %v15669_v30 = vpop.permute.xlu0 %10881  ;;  %v15671_v7 = vpop.permute.xlu1 %10886  ;;  %v4092_v20 = vsel %vm2045_vm2, %v4060_v55, %v10619_v25  ;;  %v4105_v10 = vsel %vm2078_vm4, %v15519_v27, %v10588_v8  ;;  %v10609_v53 = vunpack.i.h.bf16 %v19450_v11  ;;  %v15705_v17 = vsel %vm2144_vm6, %v4139_v38, %v10563_v18  ;;  %v19455_v27 = vld [vmem:[#allocation72_spill] sm:$0xff]  ;;  %v19458_v11 = vld [vmem:[#allocation46_spill] sm:$0xff] }
 0x39a   : > { %19444 = vst [vmem:[#allocation82_spill] sm:$0xff] %v15669_v30  ;;  %19445 = vst [vmem:[#allocation83_spill] sm:$0xff] %v15671_v7  ;;  %v12525_v7 = vld [vmem:[#allocation3 + $0x108] sm:$0xff]  ;;  %v4137_v34 = vsel %vm2111_vm5, %v4105_v10, %v10598_v52  ;;  %v10624_v18 = vunpack.i.h.bf16 %v15279_v0  ;;  %v10659_v52 = vunpack.i.h.bf16 %v15308_v24 }
 0x39b   : > { %11171 = vrot.lane.b32.xlu0 %v15448_v50, %s12644_s22  ;;  %11176 = vrot.lane.b32.xlu1 %v19449_v4, %s12644_s22  ;;  %v4059_v6 = vsel %vm611_vm0, %v12525_v7, %v10613_v21  ;;  %v15708_v7 = vsel %vm2144_vm6, %v4140_v60, %v10564_v45  ;;  %v4106_v21 = vsel %vm2078_vm4, %v15522_v48, %v10589_v42  ;;  %v10658_v42 = vunpack.i.l.bf16 %v15308_v24 }
 0x39c   : > { %v4091_v19 = vsel %vm2045_vm2, %v4059_v6, %v10618_v31  ;;  %v19453_v31 = vld [vmem:[#allocation39_spill] sm:$0xff]  ;;  %v4124_v45 = vsel %vm2078_vm4, %v4092_v20, %v10594_v12  ;;  %v4138_v48 = vsel %vm2111_vm5, %v4106_v21, %v10599_v22  ;;  %v15725_v8 = vsel %vm2144_vm6, %v4137_v34, %v10608_v28  ;;  %v19461_v21 = vld [vmem:[#allocation70_spill] sm:$0xff] }
 0x39d   : > { %v15697_v30 = vpop.permute.xlu0 %10891  ;;  %v15699_v9 = vpop.permute.xlu1 %10896  ;;  %v10604_v25 = vunpack.i.h.bf16 %v19453_v31  ;;  %v10603_v29 = vunpack.i.l.bf16 %v19453_v31  ;;  %v4123_v38 = vsel %vm2078_vm4, %v4091_v19, %v10593_v2  ;;  %v10668_v60 = vunpack.i.l.bf16 %v15316_v54  ;;  %v12526_v34 = vld [vmem:[#allocation3 + $0x78] sm:$0xff] }
 0x39e   : > { %19451 = vst [vmem:[#allocation87_spill] sm:$0xff] %v15697_v30  ;;  %19452 = vst [vmem:[#allocation84_spill] sm:$0xff] %v15699_v9  ;;  %v15734_v19 = vsel %vm2144_vm6, %v4138_v48, %v10609_v53  ;;  %v10623_v12 = vunpack.i.l.bf16 %v15279_v0  ;;  %v10644_v20 = vunpack.i.h.bf16 %v15281_v41  ;;  %v10669_v2 = vunpack.i.h.bf16 %v15316_v54  ;;  %v19462_v53 = vld [vmem:[#allocation80_spill] sm:$0xff]  ;;  %v12527_v48 = vld [vmem:[#allocation3 + $0x80] sm:$0xff] }
 0x39f   : > { %11181 = vrot.lane.b32.xlu0 %v19454_v56, %s12644_s22  ;;  %11186 = vrot.lane.b32.xlu1 %v19455_v27, %s12644_s22  ;;  %v10643_v22 = vunpack.i.l.bf16 %v15281_v41  ;;  %v10628_v28 = vunpack.i.l.bf16 %v19458_v11  ;;  %v15742_v24 = vsel %vm2111_vm5, %v4123_v38, %v10603_v29  ;;  %v15745_v10 = vsel %vm2111_vm5, %v4124_v45, %v10604_v25  ;;  %v19463_v41 = vld [vmem:[#allocation50_spill] sm:$0xff]  ;;  %v19464_v25 = vld [vmem:[#allocation53_spill] sm:$0xff]  ;;  %v19476_v27 = vld [vmem:[#allocation56_spill] sm:$0xff] }
 0x3a0   : > { %19459 = vst [vmem:[#allocation45_spill] sm:$0xff] %v15742_v24  ;;  %19460 = vst [vmem:[#allocation47_spill] sm:$0xff] %v15745_v10  ;;  %v4122_v0 = vsel %vm2078_vm4, %v15558_v39, %v10624_v18  ;;  %v10629_v54 = vunpack.i.h.bf16 %v19458_v11  ;;  %v10633_v31 = vunpack.i.l.bf16 %v19463_v41  ;;  %v4047_v29 = vsel %vm611_vm0, %v12526_v34, %v10658_v42  ;;  %v19467_v11 = vld [vmem:[#allocation54_spill] sm:$0xff]  ;;  %v19469_v9 = vld [vmem:[#allocation49_spill] sm:$0xff] }
 0x3a1   : > { %v15729_v55 = vpop.permute.xlu0 %10901  ;;  %v15731_v6 = vpop.permute.xlu1 %10906  ;;  %v10634_v38 = vunpack.i.h.bf16 %v19463_v41  ;;  %v10638_v45 = vunpack.i.l.bf16 %v19464_v25  ;;  %v4121_v39 = vsel %vm2078_vm4, %v15552_v58, %v10623_v12  ;;  %v10639_v18 = vunpack.i.h.bf16 %v19464_v25  ;;  %v19471_v58 = vld [vmem:[#allocation57_spill] sm:$0xff]  ;;  %v19482_v30 = vld [vmem:[#allocation90_spill] sm:$0xff] }
 0x3a2   : > { %19456 = vst [vmem:[#allocation55_spill] sm:$0xff] %v15729_v55  ;;  %19457 = vst [vmem:[#allocation88_spill] sm:$0xff] %v15731_v6  ;;  %v4048_v6 = vsel %vm611_vm0, %v12527_v48, %v10659_v52  ;;  %v10664_v42 = vunpack.i.h.bf16 %v19467_v11  ;;  %v15770_v34 = vsel %vm2111_vm5, %v4121_v39, %v10628_v28  ;;  %v10649_v52 = vunpack.i.h.bf16 %v19469_v9  ;;  %v19470_v48 = vld [vmem:[#allocation79_spill] sm:$0xff]  ;;  %v19473_v25 = vld [vmem:[#allocation41_spill] sm:$0xff] }
 0x3a3   : > { %11191 = vrot.lane.b32.xlu0 %v19461_v21, %s12644_s22  ;;  %11196 = vrot.lane.b32.xlu1 %v19462_v53, %s12644_s22  ;;  %v4079_v21 = vsel %vm2045_vm2, %v4047_v29, %v10668_v60  ;;  %v4080_v41 = vsel %vm2045_vm2, %v4048_v6, %v10669_v2  ;;  %19468 = vst [vmem:[#allocation38_spill] sm:$0xff] %v15770_v34  ;;  %v10648_v60 = vunpack.i.l.bf16 %v19469_v9  ;;  %v10663_v29 = vunpack.i.l.bf16 %v19467_v11  ;;  %v12528_v2 = vld [vmem:[#allocation3 + $0x90] sm:$0xff] }
 0x3a4   : > { %v15780_v12 = vsel %vm2111_vm5, %v4122_v0, %v10629_v54  ;;  %v10654_v6 = vunpack.i.h.bf16 %v19473_v25  ;;  %v4049_v28 = vsel %vm611_vm0, %v12528_v2, %v10633_v31  ;;  %v4111_v39 = vsel %vm2078_vm4, %v4079_v21, %v10643_v22  ;;  %v12530_v31 = vld [vmem:[#allocation3 + $0x158] sm:$0xff]  ;;  %v19474_v21 = vld [vmem:[#allocation40_spill] sm:$0xff] }
 0x3a5   : > { %v15760_v53 = vpop.permute.xlu0 %10911  ;;  %v15762_v55 = vpop.permute.xlu1 %10916  ;;  %19472 = vst [vmem:[#allocation62_spill] sm:$0xff] %v15780_v12  ;;  %v10653_v9 = vunpack.i.l.bf16 %v19473_v25  ;;  %v4066_v22 = vsel %vm611_vm0, %v12530_v31, %v10664_v42  ;;  %v10674_v25 = vunpack.i.h.bf16 %v19474_v21  ;;  %v10673_v2 = vunpack.i.l.bf16 %v19474_v21  ;;  %v19478_v42 = vld [vmem:[#allocation42_spill] sm:$0xff]  ;;  %v19479_v21 = vld [vmem:[#allocation85_spill] sm:$0xff] }
 0x3a6   : > { %19465 = vst [vmem:[#allocation89_spill] sm:$0xff] %v15760_v53  ;;  %19466 = vst [vmem:[#allocation37_spill] sm:$0xff] %v15762_v55  ;;  %v12529_v55 = vld [vmem:[#allocation3 + $0x98] sm:$0xff]  ;;  %v10678_v31 = vunpack.i.l.bf16 %v19478_v42  ;;  %v10703_v24 = vunpack.i.l.bf16 %v19479_v21 }
 0x3a7   : > { %11201 = vrot.lane.b32.xlu0 %v19470_v48, %s12644_s22  ;;  %11206 = vrot.lane.b32.xlu1 %v19471_v58, %s12644_s22  ;;  %v4050_v11 = vsel %vm611_vm0, %v12529_v55, %v10634_v38  ;;  %v15788_v48 = vsel %vm2045_vm2, %v4049_v28, %v10638_v45  ;;  %v4112_v58 = vsel %vm2078_vm4, %v4080_v41, %v10644_v20  ;;  %v12531_v55 = vld [vmem:[#allocation3 + $0x150] sm:$0xff] }
 0x3a8   : > { %v15796_v54 = vsel %vm2045_vm2, %v4050_v11, %v10639_v18  ;;  %v4065_v38 = vsel %vm611_vm0, %v12531_v55, %v10663_v29  ;;  %v19475_v45 = vld [vmem:[#allocation69_spill] sm:$0xff]  ;;  %v4143_v41 = vsel %vm2111_vm5, %v4111_v39, %v10648_v60  ;;  %v19477_v18 = vld [vmem:[#allocation66_spill] sm:$0xff]  ;;  %v10679_v11 = vunpack.i.h.bf16 %v19478_v42  ;;  %v19480_v55 = vld [vmem:[#allocation52_spill] sm:$0xff] }
 0x3a9   : > { %v15791_v53 = vpop.permute.xlu0 %10921  ;;  %v15793_v0 = vpop.permute.xlu1 %10926  ;;  %v10684_v28 = vunpack.i.h.bf16 %v19475_v45  ;;  %v10683_v20 = vunpack.i.l.bf16 %v19475_v45  ;;  %v4144_v29 = vsel %vm2111_vm5, %v4112_v58, %v10649_v52  ;;  %v10689_v10 = vunpack.i.h.bf16 %v19480_v55  ;;  %v19481_v39 = vld [vmem:[#allocation91_spill] sm:$0xff] }
 0x3aa   : > { %v10688_v45 = vunpack.i.l.bf16 %v19480_v55  ;;  %v10704_v60 = vunpack.i.h.bf16 %v19479_v21  ;;  %v10708_v34 = vunpack.i.l.bf16 %v19481_v39  ;;  %v15825_v42 = vsel %vm2045_vm2, %v4066_v22, %v10674_v25  ;;  %v19487_v22 = vld [vmem:[#allocation76_spill] sm:$0xff] }
 0x3ab   : > { %11211 = vrot.lane.b32.xlu0 %v19476_v27, %s12644_s22  ;;  %11216 = vrot.lane.b32.xlu1 %v19477_v18, %s12644_s22  ;;  %v15822_v18 = vsel %vm2045_vm2, %v4065_v38, %v10673_v2  ;;  %v10698_v52 = vunpack.i.l.bf16 %v19482_v30  ;;  %v10709_v58 = vunpack.i.h.bf16 %v19481_v39  ;;  %v10694_v55 = vunpack.i.h.bf16 %v19483_v46  ;;  %v19486_v2 = vld [vmem:[#allocation63_spill] sm:$0xff]  ;;  %v15846_v39 = vld [vmem:[#allocation3 + $0x138] sm:$0xff] }
 0x3ac   : > { %v10699_v21 = vunpack.i.h.bf16 %v19482_v30  ;;  %v15832_v56 = vsel %vm2144_vm6, %v4143_v41, %v10653_v9  ;;  %v15835_v59 = vsel %vm2144_vm6, %v4144_v29, %v10654_v6  ;;  %v4110_v25 = vsel %vm2078_vm4, %v15664_v32, %v10679_v11  ;;  %19488 = vst [vmem:[#allocation46_spill] sm:$0xff] %v15846_v39  ;;  %v15852_v29 = vld [vmem:[#allocation3 + $0x140] sm:$0xff] }
 0x3ad   : > { %v15817_v27 = vpop.permute.xlu0 %10931  ;;  %v15819_v12 = vpop.permute.xlu1 %10936  ;;  %19484 = vst [vmem:[#allocation44_spill] sm:$0xff] %v15832_v56  ;;  %19485 = vst [vmem:[#allocation39_spill] sm:$0xff] %v15835_v59  ;;  %v4109_v38 = vsel %vm2078_vm4, %v15652_v35, %v10678_v31  ;;  %v10693_v30 = vunpack.i.l.bf16 %v19483_v46  ;;  %v4063_v6 = vsel %vm611_vm0, %v15846_v39, %v10703_v24  ;;  %v4142_v41 = vsel %vm2111_vm5, %v4110_v25, %v10689_v10  ;;  %v19491_v31 = vld [vmem:[#allocation100_spill] sm:$0xff]  ;;  %v19492_v25 = vld [vmem:[#allocation101_spill] sm:$0xff] }
 0x3ae   : > { %v4141_v9 = vsel %vm2111_vm5, %v4109_v38, %v10688_v45  ;;  %19489 = vst [vmem:[#allocation50_spill] sm:$0xff] %v15852_v29  ;;  %v4095_v32 = vsel %vm2045_vm2, %v4063_v6, %v10708_v34  ;;  %v10724_v45 = vunpack.i.h.bf16 %v19491_v31  ;;  %v10723_v10 = vunpack.i.l.bf16 %v19491_v31  ;;  %v19493_v38 = vld [vmem:[#allocation103_spill] sm:$0xff]  ;;  %v19496_v31 = vld [vmem:[#allocation92_spill] sm:$0xff]  ;;  %v19497_v56 = vld [vmem:[#allocation93_spill] sm:$0xff] }
 0x3af   : > { %11221 = vrot.lane.b32.xlu0 %v19486_v2, %s12644_s22  ;;  %11226 = vrot.lane.b32.xlu1 %v19487_v22, %s12644_s22  ;;  %v4064_v2 = vsel %vm611_vm0, %v15852_v29, %v10704_v60  ;;  %v15862_v46 = vsel %vm2144_vm6, %v4141_v9, %v10698_v52  ;;  %v15868_v22 = vsel %vm2144_vm6, %v4142_v41, %v10699_v21  ;;  %v10744_v60 = vunpack.i.h.bf16 %v19492_v25  ;;  %v19494_v29 = vld [vmem:[#allocation73_spill] sm:$0xff]  ;;  %v19495_v9 = vld [vmem:[#allocation104_spill] sm:$0xff] }
 0x3b0   : > { %v4096_v24 = vsel %vm2045_vm2, %v4064_v2, %v10709_v58  ;;  %v10743_v34 = vunpack.i.l.bf16 %v19492_v25  ;;  %v10728_v6 = vunpack.i.l.bf16 %v19493_v38  ;;  %v4127_v52 = vsel %vm2078_vm4, %v4095_v32, %v10683_v20 }
 0x3b1   : > { %v15857_v11 = vpop.permute.xlu0 %10941  ;;  %v15859_v35 = vpop.permute.xlu1 %10946  ;;  %v10729_v58 = vunpack.i.h.bf16 %v19493_v38  ;;  %v10749_v2 = vunpack.i.h.bf16 %v19495_v9  ;;  %v10748_v21 = vunpack.i.l.bf16 %v19495_v9  ;;  %v4128_v41 = vsel %vm2078_vm4, %v4096_v24, %v10684_v28  ;;  %v12534_v9 = vld [vmem:[#allocation3 + $0xa8] sm:$0xff] }
 0x3b2   : > { %19490 = vst [vmem:[#allocation53_spill] sm:$0xff] %v15859_v35  ;;  %v10714_v25 = vunpack.i.h.bf16 %v19496_v31  ;;  %v10713_v39 = vunpack.i.l.bf16 %v19496_v31  ;;  %v10734_v59 = vunpack.i.h.bf16 %v19497_v56  ;;  %v4053_v38 = vsel %vm611_vm0, %v15454_v23, %v10723_v10 }
 0x3b3   : > { %11231 = vrot.lane.b32.xlu0 %v19494_v29, %s12644_s22  ;;  %11236 = vrot.lane.b32.xlu1 %v14954_v1, %s12645_s2  ;;  %v19500_v1 = vld [vmem:[#allocation96_spill] sm:$0xff]  ;;  %v4054_v28 = vsel %vm611_vm0, %v15446_v51, %v10724_v45  ;;  %v10733_v24 = vunpack.i.l.bf16 %v19497_v56  ;;  %v4051_v31 = vsel %vm611_vm0, %v12534_v9, %v10743_v34  ;;  %v15909_v10 = vsel %vm2111_vm5, %v4127_v52, %v10693_v30  ;;  %v19511_v9 = vld [vmem:[#allocation106_spill] sm:$0xff] }
 0x3b4   : > { %v10719_v20 = vunpack.i.h.bf16 %v19500_v1  ;;  %v10718_v32 = vunpack.i.l.bf16 %v19500_v1  ;;  %v19501_v1 = vld [vmem:[#allocation117_spill] sm:$0xff]  ;;  %v4086_v51 = vsel %vm2045_vm2, %v4054_v28, %v10729_v58  ;;  %v4083_v56 = vsel %vm2045_vm2, %v4051_v31, %v10748_v21  ;;  %19503 = vst [vmem:[#allocation41_spill] sm:$0xff] %v15909_v10  ;;  %v19512_v31 = vld [vmem:[#allocation110_spill] sm:$0xff] }
 0x3b5   : > { %v15885_v29 = vpop.permute.xlu0 %10951  ;;  %v15887_v35 = vpop.permute.xlu1 %10956  ;;  %v19502_v23 = vpack.i.bf16 %v15462_v13, %v19501_v1  ;;  %v4125_v13 = vsel %vm2078_vm4, %v15686_v5, %v10713_v39  ;;  %v19505_v21 = vunpack.i.l.bf16 %v15203_v37  ;;  %v10774_v1 = vunpack.i.h.bf16 %v19512_v31 }
 0x3b6   : > { %19498 = vst [vmem:[#allocation54_spill] sm:$0xff] %v15885_v29  ;;  %19499 = vst [vmem:[#allocation49_spill] sm:$0xff] %v15887_v35  ;;  %v4052_v29 = vsel %vm611_vm0, %v12535_v44, %v10744_v60  ;;  %v4085_v35 = vsel %vm2045_vm2, %v4053_v38, %v10728_v6  ;;  %v12368_v44 = vld [vmem:[%s18873_s4 + $0x14] sm:$0xff]   ;;  %v19504_v60 = vld [vmem:[#allocation97_spill] sm:$0xff]  ;;  %v15920_v6 = vsel %vm2111_vm5, %v4128_v41, %v10694_v55  ;;  %v19506_v55 = vunpack.i.h.bf16 %v15203_v37 }
 0x3b7   : > { %11241 = vrot.lane.b32.xlu0 %v15441_v3, %s12645_s2  ;;  %11246 = vrot.lane.b32.xlu1 %v19502_v23, %s12646_s23  ;;  %v4084_v45 = vsel %vm2045_vm2, %v4052_v29, %v10749_v2  ;;  %v4126_v3 = vsel %vm2078_vm4, %v15689_v26, %v10714_v25  ;;  %v10739_v34 = vunpack.i.h.bf16 %v19504_v60  ;;  %v15927_v30 = vsel %vm2111_vm5, %v4125_v13, %v10718_v32  ;;  %v19507_v29 = vld [vmem:[#allocation105_spill] sm:$0xff]  ;;  %v19509_v38 = vld [vmem:[#allocation118_spill] sm:$0xff] }
 0x3b8   : > { %v15930_v52 = vsel %vm2111_vm5, %v4126_v3, %v10719_v20  ;;  %v10738_v26 = vunpack.i.l.bf16 %v19504_v60  ;;  %v4117_v5 = vsel %vm2078_vm4, %v4085_v35, %v19505_v21  ;;  %9640 = vmatprep.subr.bf16.mxu0 %v12368_v44  ;;  %v4118_v39 = vsel %vm2078_vm4, %v4086_v51, %v19506_v55  ;;  %v19508_v20 = vld [vmem:[#allocation119_spill] sm:$0xff]  ;;  %v19513_v51 = vld [vmem:[#allocation109_spill] sm:$0xff] }
 0x3b9   : > { %v15922_v58 = vpop.permute.xlu0 %10961  ;;  %v15924_v2 = vpop.permute.xlu1 %10966  ;;  %v4115_v41 = vsel %vm2078_vm4, %v4083_v56, %v10733_v24  ;;  %v4116_v25 = vsel %vm2078_vm4, %v4084_v45, %v10734_v59  ;;  %v10754_v32 = vunpack.i.h.bf16 %v19507_v29  ;;  %v19510_v28 = vpack.i.bf16 %v19508_v20, %v19509_v38  ;;  %9641 = vmatpush3.bf16.msra.mxu0 %v12368_v44  ;;  %v12369_v59 = vld [vmem:[%s18873_s4 + $0x1c] sm:$0xff]   ;;  %v19515_v21 = vld [vmem:[#allocation107_spill] sm:$0xff] }
 0x3ba   : > { %v10753_v35 = vunpack.i.l.bf16 %v19507_v29  ;;  %v10759_v37 = vunpack.i.h.bf16 %v19511_v9  ;;  %v10773_v24 = vunpack.i.l.bf16 %v19512_v31  ;;  %v10758_v23 = vunpack.i.l.bf16 %v19511_v9  ;;  %v19514_v45 = vld [vmem:[#allocation112_spill] sm:$0xff]  ;;  %v19516_v20 = vld [vmem:[#allocation111_spill] sm:$0xff]  ;;  %9642 = vmatprep.subr.bf16.mxu0 %v12369_v59 }
 0x3bb   : > { %11251 = vrot.lane.b32.xlu0 %v19510_v28, %s12646_s23  ;;  %11256 = vrot.lane.b32.xlu1 %v19440_v47, %s12647_s24  ;;  %v10783_v56 = vunpack.i.l.bf16 %v19513_v51  ;;  %v10779_v3 = vunpack.i.h.bf16 %v19514_v45  ;;  %v10778_v47 = vunpack.i.l.bf16 %v19514_v45  ;;  %v10764_v55 = vunpack.i.h.bf16 %v19515_v21 }
 0x3bc   : > { %v10763_v44 = vunpack.i.l.bf16 %v19515_v21  ;;  %v10784_v29 = vunpack.i.h.bf16 %v19513_v51  ;;  %v10788_v38 = vunpack.i.l.bf16 %v19516_v20  ;;  %v10789_v28 = vunpack.i.h.bf16 %v19516_v20  ;;  %v19518_v51 = vld [vmem:[#allocation86_spill] sm:$0xff] }
 0x3bd   : > { %v15959_v13 = vpop.permute.xlu0 %10971  ;;  %v15961_v60 = vpop.permute.xlu1 %10976  ;;  %v15969_v9 = vsel %vm2111_vm5, %v4115_v41, %v10738_v26  ;;  %v15972_v31 = vsel %vm2111_vm5, %v4116_v25, %v10739_v34  ;;  %v19517_v45 = vunpack.i.l.bf16 %v19434_v63  ;;  %v4114_v21 = vsel %vm2078_vm4, %v15796_v54, %v10754_v32  ;;  %9643 = vmatpush3.bf16.msra.mxu0 %v12369_v59  ;;  %v19520_v59 = vld [vmem:[#allocation65_spill] sm:$0xff] }
 0x3be   : > { %v4113_v26 = vsel %vm2078_vm4, %v15788_v48, %v10753_v35  ;;  %v4068_v34 = vsel %vm611_vm0, %v15482_v61, %v10774_v1  ;;  %v4067_v41 = vsel %vm611_vm0, %v15492_v40, %v10773_v24  ;;  %v19519_v20 = vunpack.i.h.bf16 %v19434_v63  ;;  %v12370_v61 = vld [vmem:[%s18873_s4 + $0x24] ss:$0 sps:$4 sm:$0x33]  }
 0x3bf   : > { %v15977_v10 = vsel %vm2111_vm5, %v4117_v5, %v19517_v45  ;;  %11261 = vrot.lane.b32.xlu0 %v15448_v50, %s12647_s24  ;;  %11266 = vrot.lane.b32.xlu1 %v19518_v51, %s12648_s25  ;;  %v4129_v5 = vsel %vm2078_vm4, %v15822_v18, %v10783_v56  ;;  %v4099_v50 = vsel %vm2045_vm2, %v4067_v41, %v10778_v47  ;;  %v10844_v1 = vunpack.i.h.bf16 %v15546_v36  ;;  %v19521_v56 = vld [vmem:[#allocation48_spill] sm:$0xff] }
 0x3c0   : > { %v4100_v25 = vsel %vm2045_vm2, %v4068_v34, %v10779_v3  ;;  %v15998_v54 = vsel %vm2111_vm5, %v4118_v39, %v19519_v20  ;;  %v16008_v40 = vsel %vm2111_vm5, %v4113_v26, %v10763_v44  ;;  %v16011_v18 = vsel %vm2111_vm5, %v4114_v21, %v10764_v55  ;;  %9773 = vmatprep.subr.msk.bf16.mxu0 %vm2361_vm3, %v12370_v61  ;;  %v19526_v20 = vld [vmem:[#allocation94_spill] sm:$0xff] }
 0x3c1   : > { %v16000_v48 = vpop.permute.xlu0 %10981  ;;  %v16002_v32 = vpop.permute.xlu1 %10986  ;;  %v4130_v63 = vsel %vm2078_vm4, %v15825_v42, %v10784_v29  ;;  %v16016_v39 = vsel %vm2111_vm5, %v4129_v5, %v10788_v38  ;;  %v10843_v24 = vunpack.i.l.bf16 %v15546_v36  ;;  %v5683_v3 = vsel %vm2361_vm3, %v12370_v61, 0 }
 0x3c2   : > { %v16019_v35 = vsel %vm2111_vm5, %v4130_v63, %v10789_v28  ;;  %v16029_v42 = vsel %vm2078_vm4, %v4099_v50, %v10758_v23  ;;  %v16032_v47 = vsel %vm2078_vm4, %v4100_v25, %v10759_v37  ;;  %v10849_v55 = vunpack.i.h.bf16 %v15549_v43  ;;  %9645 = vmatpush3.bf16.msra.mxu0 %v5683_v3  ;;  %v19522_v37 = vld [vmem:[#allocation113_spill] sm:$0xff] }
 0x3c3   : > { %11271 = vrot.lane.b32.xlu0 %v19520_v59, %s12648_s25  ;;  %11276 = vrot.lane.b32.xlu1 %v19521_v56, %s12649_s26  ;;  %v10848_v44 = vunpack.i.l.bf16 %v15549_v43  ;;  %v10854_v36 = vunpack.i.h.bf16 %v15583_v49  ;;  %v10853_v29 = vunpack.i.l.bf16 %v15583_v49  ;;  %v10924_v38 = vunpack.i.h.bf16 %v15791_v53  ;;  %v19523_v43 = vld [vmem:[#allocation114_spill] sm:$0xff]  ;;  %v19525_v25 = vld [vmem:[#allocation61_spill] sm:$0xff] }
 0x3c4   : > { %v10923_v28 = vunpack.i.l.bf16 %v15791_v53  ;;  %v10794_v51 = vunpack.i.h.bf16 %v19522_v37  ;;  %v10793_v21 = vunpack.i.l.bf16 %v19522_v37  ;;  %v10798_v34 = vunpack.i.l.bf16 %v19523_v43 }
 0x3c5   : > { %v16041_v45 = vpop.permute.xlu0 %10991  ;;  %v16043_v23 = vpop.permute.xlu1 %10996  ;;  %v19524_v41 = vmov 0.0   ;;  %v4198_v49 = vsel %vm2177_vm7, %v15603_v15, %v10844_v1  ;;  %v4197_v53 = vsel %vm2177_vm7, %v15600_v14, %v10843_v24  ;;  %v10929_v5 = vunpack.i.h.bf16 %v15793_v0 }
 0x3c6   : > { %9720 = vmatprep.subr.mxu0 %v19524_v41  ;;  %v10928_v50 = vunpack.i.l.bf16 %v15793_v0  ;;  %v4200_v61 = vsel %vm2177_vm7, %v15581_v62, %v10849_v55  ;;  %v4199_v63 = vsel %vm2177_vm7, %v15578_v57, %v10848_v44  ;;  %v10859_v15 = vunpack.i.h.bf16 %v15585_v16 }
 0x3c7   : > { %11281 = vrot.lane.b32.xlu0 %v19525_v25, %s12649_s26  ;;  %11286 = vrot.lane.b32.xlu1 %v19526_v20, %s12650_s27  ;;  %v10858_v14 = vunpack.i.l.bf16 %v15585_v16  ;;  %v4202_v1 = vsel %vm2177_vm7, %v15734_v19, %v10854_v36  ;;  %v4201_v0 = vsel %vm2177_vm7, %v15725_v8, %v10853_v29  ;;  %v4229_v24 = vsel %vm2210_vm8, %v4197_v53, %v10923_v28  ;;  %v19527_v8 = vld [vmem:[#allocation95_spill] sm:$0xff] }
 0x3c8   : > { %v4230_v56 = vsel %vm2210_vm8, %v4198_v49, %v10924_v38  ;;  %v4231_v44 = vsel %vm2210_vm8, %v4199_v63, %v10928_v50  ;;  %v4232_v16 = vsel %vm2210_vm8, %v4200_v61, %v10929_v5  ;;  %v10934_v26 = vunpack.i.h.bf16 %v15817_v27 }
 0x3c9   : > { %v11002_v3 = vpop.permute.xlu0 %11001  ;;  %v11007_v37 = vpop.permute.xlu1 %11006  ;;  %v10933_v19 = vunpack.i.l.bf16 %v15817_v27  ;;  %v10864_v49 = vunpack.i.h.bf16 %v15611_v33  ;;  %v10863_v53 = vunpack.i.l.bf16 %v15611_v33  ;;  %v10939_v63 = vunpack.i.h.bf16 %v15819_v12  ;;  %v19528_v33 = vld [vmem:[#allocation58_spill] sm:$0xff] }
 0x3ca   : > { %v11004_v62 = vunpack.i.h.bf16 %v11002_v3  ;;  %v11003_v55 = vunpack.i.l.bf16 %v11002_v3  ;;  %v11009_v20 = vunpack.i.h.bf16 %v11007_v37  ;;  %v11008_v57 = vunpack.i.l.bf16 %v11007_v37 }
 0x3cb   : > { %11291 = vrot.lane.b32.xlu0 %v19527_v8, %s12650_s27  ;;  %11296 = vrot.lane.b32.xlu1 %v19520_v59, %s12645_s2  ;;  %v10938_v59 = vunpack.i.l.bf16 %v15819_v12  ;;  %v4234_v37 = vsel %vm2210_vm8, %v4202_v1, %v10934_v26  ;;  %v4177_v26 = vsel %vm2144_vm6, %v16008_v40, %v10793_v21  ;;  %v4204_v1 = vsel %vm2177_vm7, %v15708_v7, %v10859_v15  ;;  %v19529_v40 = vld [vmem:[#allocation108_spill] sm:$0xff]  ;;  %v19530_v15 = vld [vmem:[#allocation59_spill] sm:$0xff] }
 0x3cc   : > { %v4261_v36 = vsel %vm2243_vm9, %v4229_v24, %v11003_v55  ;;  %v4262_v29 = vsel %vm2243_vm9, %v4230_v56, %v11004_v62  ;;  %v4263_v38 = vsel %vm2243_vm9, %v4231_v44, %v11008_v57  ;;  %v4264_v28 = vsel %vm2243_vm9, %v4232_v16, %v11009_v20 }
 0x3cd   : > { %v4294_v5 = vpack.c.bf16 %v4264_v28, %v4263_v38  ;;  %v11012_v27 = vpop.permute.xlu0 %11011  ;;  %v11017_v50 = vpop.permute.xlu1 %11016  ;;  %v4293_v61 = vpack.c.bf16 %v4262_v29, %v4261_v36  ;;  %v4233_v56 = vsel %vm2210_vm8, %v4201_v0, %v10933_v19  ;;  %v10944_v62 = vunpack.i.h.bf16 %v15857_v11 }
 0x3ce   : > { %v11014_v3 = vunpack.i.h.bf16 %v11012_v27  ;;  %v11013_v24 = vunpack.i.l.bf16 %v11012_v27  ;;  %v10943_v55 = vunpack.i.l.bf16 %v15857_v11  ;;  %v11019_v12 = vunpack.i.h.bf16 %v11017_v50 }
 0x3cf   : > { %11301 = vrot.lane.b32.xlu0 %v19528_v33, %s12645_s2  ;;  %9608 = vmatprep.mubr.msk.bf16.mxu1 %vm2312_vm10, %v4293_v61  ;;  %v11018_v44 = vunpack.i.l.bf16 %v11017_v50  ;;  %v4178_v11 = vsel %vm2144_vm6, %v16011_v18, %v10794_v51  ;;  %v4203_v8 = vsel %vm2177_vm7, %v15705_v17, %v10858_v14  ;;  %v10768_v21 = vunpack.i.l.bf16 %v19529_v40 }
 0x3d0   : > { %v4265_v20 = vsel %vm2243_vm9, %v4233_v56, %v11013_v24  ;;  %v4266_v57 = vsel %vm2243_vm9, %v4234_v37, %v11014_v3  ;;  %11306 = vrot.lane.b32.xlu1 %v19525_v25, %s12646_s23  ;;  %9609 = vmatmul.mubr.msk.bf16.vlgmr.msra.gmra.mrb[16].mxu1 %vm2312_vm10, %v4294_v5  ;;  %v4206_v25 = vsel %vm2177_vm7, %v15868_v22, %v10864_v49  ;;  %v19531_v28 = vunpack.i.h.bf16 %v19523_v43  ;;  %v19534_v43 = vld [vmem:[#allocation53_spill] sm:$0xff]  ;;  %v19535_v24 = vld [vmem:[#allocation54_spill] sm:$0xff]  ;;  %v19536_v37 = vld [vmem:[#allocation60_spill] sm:$0xff] }
 0x3d1   : > { %v11022_v0 = vpop.permute.xlu0 %11021  ;;  %v11027_v16 = vpop.permute.xlu1 %11026  ;;  %v4295_v19 = vpack.c.bf16 %v4266_v57, %v4265_v20  ;;  %v4205_v18 = vsel %vm2177_vm7, %v15862_v46, %v10863_v53  ;;  %v4235_v7 = vsel %vm2210_vm8, %v4203_v8, %v10938_v59  ;;  %v4236_v51 = vsel %vm2210_vm8, %v4204_v1, %v10939_v63  ;;  %v19533_v59 = vld [vmem:[#allocation64_spill] sm:$0xff] }
 0x3d2   : > { %v11024_v36 = vunpack.i.h.bf16 %v11022_v0  ;;  %v11023_v29 = vunpack.i.l.bf16 %v11022_v0  ;;  %v4237_v17 = vsel %vm2210_vm8, %v4205_v18, %v10943_v55  ;;  %v4238_v22 = vsel %vm2210_vm8, %v4206_v25, %v10944_v62 }
 0x3d3   : > { %11311 = vrot.lane.b32.xlu0 %v19530_v15, %s12646_s23  ;;  %9612 = vmatprep.mubr.msk.bf16.mxu1 %vm2312_vm10, %v4295_v19  ;;  %v4267_v14 = vsel %vm2243_vm9, %v4235_v7, %v11018_v44  ;;  %v4268_v38 = vsel %vm2243_vm9, %v4236_v51, %v11019_v12  ;;  %v16128_v46 = vsel %vm2144_vm6, %v15969_v9, %v10798_v34  ;;  %v10874_v9 = vunpack.i.h.bf16 %v19533_v59  ;;  %v19537_v44 = vld [vmem:[#allocation115_spill] sm:$0xff]  ;;  %v19540_v51 = vld [vmem:[#allocation44_spill] sm:$0xff] }
 0x3d4   : > { %11316 = vrot.lane.b32.xlu1 %v19449_v4, %s12647_s24  ;;  %v16134_v49 = vsel %vm2144_vm6, %v15972_v31, %v19531_v28  ;;  %v4269_v53 = vsel %vm2243_vm9, %v4237_v17, %v11023_v29  ;;  %v4270_v5 = vsel %vm2243_vm9, %v4238_v22, %v11024_v36  ;;  %v19532_v4 = vld [vmem:[#allocation126_spill] sm:$0xff]  ;;  %v10873_v34 = vunpack.i.l.bf16 %v19533_v59  ;;  %v19538_v29 = vld [vmem:[#allocation116_spill] sm:$0xff]  ;;  %v19539_v7 = vld [vmem:[#allocation39_spill] sm:$0xff] }
 0x3d5   : > { %v11032_v27 = vpop.permute.xlu0 %11031  ;;  %v16138_v50 = vpop.permute.xlu1 %11036  ;;  %v10869_v61 = vunpack.i.h.bf16 %v19532_v4  ;;  %v10868_v63 = vunpack.i.l.bf16 %v19532_v4  ;;  %v10949_v3 = vunpack.i.h.bf16 %v19534_v43  ;;  %v10948_v31 = vunpack.i.l.bf16 %v19534_v43  ;;  %v19541_v28 = vld [vmem:[#allocation75_spill] sm:$0xff]  ;;  %v19543_v43 = vld [vmem:[#allocation74_spill] sm:$0xff] }
 0x3d6   : > { %v10954_v56 = vunpack.i.h.bf16 %v19535_v24  ;;  %v4296_v62 = vpack.c.bf16 %v4268_v38, %v4267_v14  ;;  %v10953_v55 = vunpack.i.l.bf16 %v19535_v24  ;;  %v11029_v20 = vunpack.i.h.bf16 %v11027_v16  ;;  %v19544_v24 = vld [vmem:[#allocation82_spill] sm:$0xff] }
 0x3d7   : > { %11321 = vrot.lane.b32.xlu0 %v19536_v37, %s12647_s24  ;;  %v11028_v57 = vunpack.i.l.bf16 %v11027_v16  ;;  %v4297_v12 = vpack.c.bf16 %v4270_v5, %v4269_v53  ;;  %v10804_v1 = vunpack.i.h.bf16 %v19537_v44  ;;  %v10803_v0 = vunpack.i.l.bf16 %v19537_v44 }
 0x3d8   : > { %11326 = vrot.lane.b32.xlu1 %v19528_v33, %s12648_s25  ;;  %v11034_v19 = vunpack.i.h.bf16 %v11032_v27  ;;  %v11033_v8 = vunpack.i.l.bf16 %v11032_v27  ;;  %9613 = vmatmul.mubr.msk.bf16.gmra.mrb[20].mxu1 %vm2312_vm10, %v4296_v62  ;;  %v10809_v18 = vunpack.i.h.bf16 %v19538_v29  ;;  %v10808_v16 = vunpack.i.l.bf16 %v19538_v29 }
 0x3d9   : > { %v16155_v25 = vpop.permute.xlu0 %11041  ;;  %v16157_v36 = vpop.permute.xlu1 %11046  ;;  %v4208_v33 = vsel %vm2177_vm7, %v19539_v7, %v10869_v61  ;;  %v4207_v15 = vsel %vm2177_vm7, %v19540_v51, %v10868_v63  ;;  %9616 = vmatprep.mubr.msk.bf16.mxu1 %vm2312_vm10, %v4297_v12  ;;  %v4209_v17 = vsel %vm2177_vm7, %v4177_v26, %v10873_v34  ;;  %v4210_v22 = vsel %vm2177_vm7, %v4178_v11, %v10874_v9  ;;  %v19542_v61 = vld [vmem:[#allocation51_spill] sm:$0xff] }
 0x3da   : > { %v4239_v14 = vsel %vm2210_vm8, %v4207_v15, %v10948_v31  ;;  %v4240_v38 = vsel %vm2210_vm8, %v4208_v33, %v10949_v3  ;;  %v4241_v53 = vsel %vm2210_vm8, %v4209_v17, %v10953_v55  ;;  %v4242_v5 = vsel %vm2210_vm8, %v4210_v22, %v10954_v56  ;;  %v19549_v7 = vld [vmem:[#allocation127_spill] sm:$0xff] }
 0x3db   : > { %11331 = vrot.lane.b32.xlu0 %v19541_v28, %s12648_s25  ;;  %v4271_v27 = vsel %vm2243_vm9, %v4239_v14, %v11028_v57  ;;  %v4272_v4 = vsel %vm2243_vm9, %v4240_v38, %v11029_v20  ;;  %v4182_v26 = vsel %vm2144_vm6, %v15998_v54, %v10804_v1  ;;  %v4181_v11 = vsel %vm2144_vm6, %v15977_v10, %v10803_v0  ;;  %v19545_v54 = vld [vmem:[#allocation49_spill] sm:$0xff]  ;;  %v19546_v20 = vld [vmem:[#allocation71_spill] sm:$0xff]  ;;  %v19547_v0 = vld [vmem:[#allocation98_spill] sm:$0xff] }
 0x3dc   : > { %11336 = vrot.lane.b32.xlu1 %v19542_v61, %s12649_s26  ;;  %v4273_v63 = vsel %vm2243_vm9, %v4241_v53, %v11033_v8  ;;  %v4274_v59 = vsel %vm2243_vm9, %v4242_v5, %v11034_v19  ;;  %v10879_v3 = vunpack.i.h.bf16 %v19543_v43  ;;  %v10878_v31 = vunpack.i.l.bf16 %v19543_v43  ;;  %v19548_v8 = vld [vmem:[#allocation128_spill] sm:$0xff] }
 0x3dd   : > { %v16184_v9 = vpop.permute.xlu0 %11051  ;;  %v16186_v34 = vpop.permute.xlu1 %11056  ;;  %v10884_v56 = vunpack.i.h.bf16 %v19544_v24  ;;  %v10883_v37 = vunpack.i.l.bf16 %v19544_v24  ;;  %v10959_v62 = vunpack.i.h.bf16 %v19545_v54  ;;  %v10958_v10 = vunpack.i.l.bf16 %v19545_v54  ;;  %v19553_v24 = vld [vmem:[#allocation83_spill] sm:$0xff] }
 0x3de   : > { %v10964_v55 = vunpack.i.h.bf16 %v15922_v58  ;;  %v4298_v57 = vpack.c.bf16 %v4272_v4, %v4271_v27  ;;  %v10963_v12 = vunpack.i.l.bf16 %v15922_v58  ;;  %v11039_v44 = vunpack.i.h.bf16 %v16138_v50  ;;  %v19551_v27 = vld [vmem:[#allocation99_spill] sm:$0xff] }
 0x3df   : > { %11341 = vrot.lane.b32.xlu0 %v19546_v20, %s12649_s26  ;;  %v11038_v1 = vunpack.i.l.bf16 %v16138_v50  ;;  %v4299_v19 = vpack.c.bf16 %v4274_v59, %v4273_v63  ;;  %v4184_v29 = vsel %vm2144_vm6, %v19548_v8, %v10809_v18  ;;  %v4183_v33 = vsel %vm2144_vm6, %v19549_v7, %v10808_v16  ;;  %v19550_v50 = vld [vmem:[#allocation120_spill] sm:$0xff]  ;;  %v19554_v54 = vld [vmem:[#allocation87_spill] sm:$0xff]  ;;  %v19556_v7 = vld [vmem:[#allocation62_spill] sm:$0xff] }
 0x3e0   : > { %11346 = vrot.lane.b32.xlu1 %v19547_v0, %s12650_s27  ;;  %v11044_v51 = vunpack.i.h.bf16 %v16155_v25  ;;  %v11043_v15 = vunpack.i.l.bf16 %v16155_v25  ;;  %9617 = vmatmul.mubr.msk.bf16.gmra.mrb[24].mxu1 %vm2312_vm10, %v4298_v57  ;;  %v10814_v22 = vunpack.i.h.bf16 %v19550_v50  ;;  %v10813_v14 = vunpack.i.l.bf16 %v19550_v50 }
 0x3e1   : > { %v16209_v58 = vpop.permute.xlu0 %11061  ;;  %v16211_v17 = vpop.permute.xlu1 %11066  ;;  %v4211_v18 = vsel %vm2177_vm7, %v16128_v46, %v10878_v31  ;;  %v4212_v16 = vsel %vm2177_vm7, %v16134_v49, %v10879_v3  ;;  %9620 = vmatprep.mubr.msk.bf16.mxu1 %vm2312_vm10, %v4299_v19  ;;  %v4213_v25 = vsel %vm2177_vm7, %v4181_v11, %v10883_v37  ;;  %v4214_v38 = vsel %vm2177_vm7, %v4182_v26, %v10884_v56  ;;  %v19552_v11 = vld [vmem:[#allocation121_spill] sm:$0xff] }
 0x3e2   : > { %v4243_v53 = vsel %vm2210_vm8, %v4211_v18, %v10958_v10  ;;  %v4244_v5 = vsel %vm2210_vm8, %v4212_v16, %v10959_v62  ;;  %v4245_v4 = vsel %vm2210_vm8, %v4213_v25, %v10963_v12  ;;  %v4246_v46 = vsel %vm2210_vm8, %v4214_v38, %v10964_v55  ;;  %v19555_v12 = vld [vmem:[#allocation67_spill] sm:$0xff]  ;;  %v19559_v25 = vld [vmem:[#allocation45_spill] sm:$0xff] }
 0x3e3   : > { %11351 = vrot.lane.b32.xlu0 %v19551_v27, %s12650_s27  ;;  %v4275_v61 = vsel %vm2243_vm9, %v4243_v53, %v11038_v1  ;;  %v4276_v49 = vsel %vm2243_vm9, %v4244_v5, %v11039_v44  ;;  %v10819_v26 = vunpack.i.h.bf16 %v19552_v11  ;;  %v10818_v63 = vunpack.i.l.bf16 %v19552_v11  ;;  %v19562_v11 = vld [vmem:[#allocation122_spill] sm:$0xff] }
 0x3e4   : > { %11356 = vrot.lane.b32.xlu1 %v19541_v28, %s12645_s2  ;;  %v4277_v59 = vsel %vm2243_vm9, %v4245_v4, %v11043_v15  ;;  %v4278_v43 = vsel %vm2243_vm9, %v4246_v46, %v11044_v51  ;;  %v10889_v56 = vunpack.i.h.bf16 %v19553_v24  ;;  %v10888_v37 = vunpack.i.l.bf16 %v19553_v24  ;;  %v19560_v4 = vld [vmem:[#allocation68_spill] sm:$0xff] }
 0x3e5   : > { %v16236_v3 = vpop.permute.xlu0 %11071  ;;  %v16238_v31 = vpop.permute.xlu1 %11076  ;;  %v10894_v62 = vunpack.i.h.bf16 %v19554_v54  ;;  %v10893_v28 = vunpack.i.l.bf16 %v19554_v54  ;;  %v10969_v10 = vunpack.i.h.bf16 %v15924_v2  ;;  %v10968_v55 = vunpack.i.l.bf16 %v15924_v2  ;;  %v19557_v2 = vld [vmem:[#allocation38_spill] sm:$0xff] }
 0x3e6   : > { %v10974_v57 = vunpack.i.h.bf16 %v15959_v13  ;;  %v4300_v44 = vpack.c.bf16 %v4276_v49, %v4275_v61  ;;  %v10973_v1 = vunpack.i.l.bf16 %v15959_v13  ;;  %v11049_v0 = vunpack.i.h.bf16 %v16157_v36  ;;  %v19561_v49 = vld [vmem:[#allocation72_spill] sm:$0xff] }
 0x3e7   : > { %11361 = vrot.lane.b32.xlu0 %v19555_v12, %s12645_s2  ;;  %v11048_v19 = vunpack.i.l.bf16 %v16157_v36  ;;  %v4301_v8 = vpack.c.bf16 %v4278_v43, %v4277_v59  ;;  %v4186_v51 = vsel %vm2144_vm6, %v19556_v7, %v10814_v22  ;;  %v4185_v15 = vsel %vm2144_vm6, %v19557_v2, %v10813_v14  ;;  %v19558_v36 = vld [vmem:[#allocation47_spill] sm:$0xff] }
 0x3e8   : > { %11366 = vrot.lane.b32.xlu1 %v19546_v20, %s12646_s23  ;;  %v11054_v50 = vunpack.i.h.bf16 %v16184_v9  ;;  %v11053_v18 = vunpack.i.l.bf16 %v16184_v9  ;;  %9621 = vmatmul.mubr.msk.bf16.gmra.mrb[28].mxu1 %vm2312_vm10, %v4300_v44  ;;  %v4188_v20 = vsel %vm2144_vm6, %v19558_v36, %v10819_v26  ;;  %v4187_v38 = vsel %vm2144_vm6, %v19559_v25, %v10818_v63 }
 0x3e9   : > { %v16261_v13 = vpop.permute.xlu0 %11081  ;;  %v16263_v16 = vpop.permute.xlu1 %11086  ;;  %v4215_v22 = vsel %vm2177_vm7, %v4183_v33, %v10888_v37  ;;  %v4216_v14 = vsel %vm2177_vm7, %v4184_v29, %v10889_v56  ;;  %9624 = vmatprep.mubr.msk.bf16.mxu1 %vm2312_vm10, %v4301_v8  ;;  %v4217_v9 = vsel %vm2177_vm7, %v4185_v15, %v10893_v28  ;;  %v4218_v53 = vsel %vm2177_vm7, %v4186_v51, %v10894_v62  ;;  %v19563_v37 = vld [vmem:[#allocation84_spill] sm:$0xff]  ;;  %v19564_v28 = vld [vmem:[#allocation55_spill] sm:$0xff] }
 0x3ea   : > { %v4247_v5 = vsel %vm2210_vm8, %v4215_v22, %v10968_v55  ;;  %v4248_v27 = vsel %vm2210_vm8, %v4216_v14, %v10969_v10  ;;  %v4249_v46 = vsel %vm2210_vm8, %v4217_v9, %v10973_v1  ;;  %v4250_v61 = vsel %vm2210_vm8, %v4218_v53, %v10974_v57  ;;  %v19566_v15 = vld [vmem:[#allocation123_spill] sm:$0xff] }
 0x3eb   : > { %11371 = vrot.lane.b32.xlu0 %v19560_v4, %s12646_s23  ;;  %v4279_v33 = vsel %vm2243_vm9, %v4247_v5, %v11048_v19  ;;  %v4280_v29 = vsel %vm2243_vm9, %v4248_v27, %v11049_v0  ;;  %v10824_v26 = vunpack.i.h.bf16 %v19562_v11  ;;  %v10823_v63 = vunpack.i.l.bf16 %v19562_v11  ;;  %v19565_v0 = vld [vmem:[#allocation70_spill] sm:$0xff]  ;;  %v19567_v27 = vld [vmem:[#allocation81_spill] sm:$0xff] }
 0x3ec   : > { %11376 = vrot.lane.b32.xlu1 %v19561_v49, %s12647_s24  ;;  %v4281_v59 = vsel %vm2243_vm9, %v4249_v46, %v11053_v18  ;;  %v4282_v43 = vsel %vm2243_vm9, %v4250_v61, %v11054_v50  ;;  %v10899_v54 = vunpack.i.h.bf16 %v19563_v37  ;;  %v10898_v62 = vunpack.i.l.bf16 %v19563_v37  ;;  %v19568_v46 = vld [vmem:[#allocation124_spill] sm:$0xff]  ;;  %v19570_v37 = vld [vmem:[#allocation89_spill] sm:$0xff] }
 0x3ed   : > { %v16288_v24 = vpop.permute.xlu0 %11091  ;;  %v16290_v56 = vpop.permute.xlu1 %11096  ;;  %v10904_v10 = vunpack.i.h.bf16 %v19564_v28  ;;  %v10903_v55 = vunpack.i.l.bf16 %v19564_v28  ;;  %v10979_v57 = vunpack.i.h.bf16 %v15961_v60  ;;  %v10978_v44 = vunpack.i.l.bf16 %v15961_v60 }
 0x3ee   : > { %v10984_v1 = vunpack.i.h.bf16 %v16000_v48  ;;  %v4302_v19 = vpack.c.bf16 %v4280_v29, %v4279_v33  ;;  %v10983_v8 = vunpack.i.l.bf16 %v16000_v48  ;;  %v11059_v7 = vunpack.i.h.bf16 %v16186_v34 }
 0x3ef   : > { %11381 = vrot.lane.b32.xlu0 %v19565_v0, %s12647_s24  ;;  %v11058_v51 = vunpack.i.l.bf16 %v16186_v34  ;;  %v4303_v2 = vpack.c.bf16 %v4282_v43, %v4281_v59  ;;  %v10829_v50 = vunpack.i.h.bf16 %v19566_v15  ;;  %v10828_v60 = vunpack.i.l.bf16 %v19566_v15 }
 0x3f0   : > { %11386 = vrot.lane.b32.xlu1 %v19555_v12, %s12648_s25  ;;  %v11064_v18 = vunpack.i.h.bf16 %v16209_v58  ;;  %v11063_v36 = vunpack.i.l.bf16 %v16209_v58  ;;  %9625 = vmatmul.mubr.msk.bf16.gmra.mrb[32].mxu1 %vm2312_vm10, %v4302_v19  ;;  %v4190_v34 = vsel %vm2144_vm6, %v15930_v52, %v10824_v26  ;;  %v4189_v12 = vsel %vm2144_vm6, %v15927_v30, %v10823_v63  ;;  %v19569_v63 = vld [vmem:[#allocation88_spill] sm:$0xff]  ;;  %v19572_v19 = vld [vmem:[#allocation102_spill] sm:$0xff] }
 0x3f1   : > { %v16311_v25 = vpop.permute.xlu0 %11101  ;;  %v16313_v48 = vpop.permute.xlu1 %11106  ;;  %v4219_v22 = vsel %vm2177_vm7, %v4187_v38, %v10898_v62  ;;  %v4220_v14 = vsel %vm2177_vm7, %v4188_v20, %v10899_v54  ;;  %9628 = vmatprep.mubr.msk.bf16.mxu1 %vm2312_vm10, %v4303_v2  ;;  %v4221_v58 = vsel %vm2177_vm7, %v4189_v12, %v10903_v55  ;;  %v4222_v9 = vsel %vm2177_vm7, %v4190_v34, %v10904_v10  ;;  %v19571_v55 = vld [vmem:[#allocation78_spill] sm:$0xff] }
 0x3f2   : > { %v4251_v53 = vsel %vm2210_vm8, %v4219_v22, %v10978_v44  ;;  %v4252_v5 = vsel %vm2210_vm8, %v4220_v14, %v10979_v57  ;;  %v4253_v52 = vsel %vm2210_vm8, %v4221_v58, %v10983_v8  ;;  %v4254_v30 = vsel %vm2210_vm8, %v4222_v9, %v10984_v1  ;;  %v19574_v22 = vld [vmem:[#allocation80_spill] sm:$0xff]  ;;  %v19575_v9 = vld [vmem:[#allocation125_spill] sm:$0xff] }
 0x3f3   : > { %11391 = vrot.lane.b32.xlu0 %v19567_v27, %s12648_s25  ;;  %v4283_v38 = vsel %vm2243_vm9, %v4251_v53, %v11058_v51  ;;  %v4284_v20 = vsel %vm2243_vm9, %v4252_v5, %v11059_v7  ;;  %v10834_v61 = vunpack.i.h.bf16 %v19568_v46  ;;  %v10833_v33 = vunpack.i.l.bf16 %v19568_v46 }
 0x3f4   : > { %11396 = vrot.lane.b32.xlu1 %v19560_v4, %s12649_s26  ;;  %v4285_v29 = vsel %vm2243_vm9, %v4253_v52, %v11063_v36  ;;  %v4286_v49 = vsel %vm2243_vm9, %v4254_v30, %v11064_v18  ;;  %v10909_v59 = vunpack.i.h.bf16 %v19569_v63  ;;  %v10908_v43 = vunpack.i.l.bf16 %v19569_v63 }
 0x3f5   : > { %v16338_v11 = vpop.permute.xlu0 %11111  ;;  %v16340_v26 = vpop.permute.xlu1 %11116  ;;  %v10914_v54 = vunpack.i.h.bf16 %v19570_v37  ;;  %v10913_v4 = vunpack.i.l.bf16 %v19570_v37  ;;  %v10989_v62 = vunpack.i.h.bf16 %v16002_v32  ;;  %v10988_v28 = vunpack.i.l.bf16 %v16002_v32  ;;  %v19573_v32 = vld [vmem:[#allocation41_spill] sm:$0xff] }
 0x3f6   : > { %v10994_v10 = vunpack.i.h.bf16 %v16041_v45  ;;  %v4304_v57 = vpack.c.bf16 %v4284_v20, %v4283_v38  ;;  %v10993_v44 = vunpack.i.l.bf16 %v16041_v45  ;;  %v11069_v1 = vunpack.i.h.bf16 %v16211_v17 }
 0x3f7   : > { %11401 = vrot.lane.b32.xlu0 %v19571_v55, %s12649_s26  ;;  %v11068_v0 = vunpack.i.l.bf16 %v16211_v17  ;;  %v4305_v8 = vpack.c.bf16 %v4286_v49, %v4285_v29  ;;  %v4192_v7 = vsel %vm2144_vm6, %v15920_v6, %v10829_v50  ;;  %v4191_v51 = vsel %vm2144_vm6, %v19573_v32, %v10828_v60 }
 0x3f8   : > { %11406 = vrot.lane.b32.xlu1 %v19572_v19, %s12650_s27  ;;  %v11074_v2 = vunpack.i.h.bf16 %v16236_v3  ;;  %v11073_v15 = vunpack.i.l.bf16 %v16236_v3  ;;  %9629 = vmatmul.mubr.msk.bf16.gmra.mrb[36].mxu1 %vm2312_vm10, %v4304_v57  ;;  %v4193_v17 = vsel %vm2144_vm6, %v16016_v39, %v10833_v33  ;;  %v4194_v36 = vsel %vm2144_vm6, %v16019_v35, %v10834_v61  ;;  %v19576_v61 = vld [vmem:[#allocation37_spill] sm:$0xff] }
 0x3f9   : > { %v16363_v45 = vpop.permute.xlu0 %11121  ;;  %v16365_v18 = vpop.permute.xlu1 %11126  ;;  %v4223_v6 = vsel %vm2177_vm7, %v4191_v51, %v10908_v43  ;;  %v4224_v50 = vsel %vm2177_vm7, %v4192_v7, %v10909_v59  ;;  %9632 = vmatprep.mubr.msk.bf16.mxu1 %vm2312_vm10, %v4305_v8  ;;  %v4225_v3 = vsel %vm2177_vm7, %v4193_v17, %v10913_v4  ;;  %v4226_v60 = vsel %vm2177_vm7, %v4194_v36, %v10914_v54  ;;  %v19577_v59 = vld [vmem:[#allocation77_spill] sm:$0xff]  ;;  %v19582_v7 = vld [vmem:[#allocation79_spill] sm:$0xff] }
 0x3fa   : > { %v4255_v34 = vsel %vm2210_vm8, %v4223_v6, %v10988_v28  ;;  %v4256_v12 = vsel %vm2210_vm8, %v4224_v50, %v10989_v62  ;;  %v4257_v39 = vsel %vm2210_vm8, %v4225_v3, %v10993_v44  ;;  %v4258_v35 = vsel %vm2210_vm8, %v4226_v60, %v10994_v10  ;;  %v16418_v28 = vld [vmem:[#allocation3 + $0xc9] sm:$0xff]  ;;  %v12539_v17 = vld [vmem:[#allocation3 + $0xd8] sm:$0xff]  ;;  %v12540_v3 = vld [vmem:[#allocation3 + $0xe1] sm:$0xff] }
 0x3fb   : > { %11411 = vrot.lane.b32.xlu0 %v19574_v22, %s12650_s27  ;;  %v4287_v14 = vsel %vm2243_vm9, %v4255_v34, %v11068_v0  ;;  %v4288_v58 = vsel %vm2243_vm9, %v4256_v12, %v11069_v1  ;;  %v10839_v53 = vunpack.i.h.bf16 %v19575_v9  ;;  %v10838_v5 = vunpack.i.l.bf16 %v19575_v9  ;;  %v12541_v60 = vld [vmem:[#allocation3 + $0xd9] sm:$0xff]  ;;  %v12542_v12 = vld [vmem:[#allocation3 + $0xc2] sm:$0xff] }
 0x3fc   : > { %11416 = vrot.lane.b32.xlu1 %v19567_v27, %s12645_s2  ;;  %v4289_v52 = vsel %vm2243_vm9, %v4257_v39, %v11073_v15  ;;  %v4290_v30 = vsel %vm2243_vm9, %v4258_v35, %v11074_v2  ;;  %v10769_v46 = vunpack.i.h.bf16 %v19529_v40  ;;  %v10919_v33 = vunpack.i.h.bf16 %v19576_v61  ;;  %v12538_v15 = vld [vmem:[#allocation3 + $0xe0] sm:$0xff] }
 0x3fd   : > { %v16390_v38 = vpop.permute.xlu0 %11131  ;;  %v16392_v20 = vpop.permute.xlu1 %11136  ;;  %v10918_v29 = vunpack.i.l.bf16 %v19576_v61  ;;  %v4163_v27 = vsel %vm2111_vm5, %v16029_v42, %v10768_v21  ;;  %v10999_v49 = vunpack.i.h.bf16 %v16043_v23  ;;  %v10998_v63 = vunpack.i.l.bf16 %v16043_v23  ;;  %v12545_v9 = vld [vmem:[#allocation3 + $0xe2] sm:$0xff] }
 0x3fe   : > { %v4306_v43 = vpack.c.bf16 %v4288_v58, %v4287_v14  ;;  %v4164_v37 = vsel %vm2111_vm5, %v16032_v47, %v10769_v46  ;;  %v11079_v54 = vunpack.i.h.bf16 %v16238_v31  ;;  %v11078_v4 = vunpack.i.l.bf16 %v16238_v31  ;;  %v16420_v47 = vld [vmem:[#allocation3 + $0xc1] sm:$0xff]  ;;  %v12547_v46 = vld [vmem:[#allocation3 + $0xf0] sm:$0xff] }
 0x3ff   : > { %11421 = vrot.lane.b32.xlu0 %v19577_v59, %s12645_s2  ;;  %v4307_v40 = vpack.c.bf16 %v4290_v30, %v4289_v52  ;;  %v4195_v42 = vsel %vm2144_vm6, %v4163_v27, %v10838_v5  ;;  %v4196_v21 = vsel %vm2144_vm6, %v4164_v37, %v10839_v53  ;;  %v11430_v31 = vpack.i.bf16 %v16418_v28, %v16420_v47  ;;  %v12544_v58 = vld [vmem:[#allocation3 + $0xda] sm:$0xff] }
 0x400   : > { %11426 = vrot.lane.b32.xlu1 %v19571_v55, %s12646_s23  ;;  %9633 = vmatmul.mubr.msk.bf16.gmra.mrb[40].mxu1 %vm2312_vm10, %v4306_v43  ;;  %v4227_v10 = vsel %vm2177_vm7, %v4195_v42, %v10918_v29  ;;  %v4228_v55 = vsel %vm2177_vm7, %v4196_v21, %v10919_v33  ;;  %v11450_v36 = vpack.i.bf16 %v12538_v15, %v12539_v17  ;;  %v12546_v30 = vld [vmem:[#allocation3 + $0xf8] sm:$0xff]  ;;  %v16465_v33 = vld [vmem:[#allocation3 + $0xe1] sm:$0xff]  ;;  %v19584_v42 = vld [vmem:[#allocation56_spill] sm:$0xff] }
 0x401   : > { %v16414_v23 = vpop.permute.xlu0 %11141  ;;  %v16416_v62 = vpop.permute.xlu1 %11146  ;;  %9636 = vmatprep.mubr.msk.bf16.mxu1 %vm2312_vm10, %v4307_v40  ;;  %v4259_v57 = vsel %vm2210_vm8, %v4227_v10, %v10998_v63  ;;  %v4260_v44 = vsel %vm2210_vm8, %v4228_v55, %v10999_v49  ;;  %v11460_v34 = vpack.i.bf16 %v12540_v3, %v12541_v60  ;;  %v11470_v53 = vpack.i.bf16 %v12545_v9, %v12544_v58  ;;  %v16467_v29 = vld [vmem:[#allocation3 + $0xd9] sm:$0xff]  ;;  %v12552_v10 = vld [vmem:[#allocation3 + $0x110] sm:$0xff]  ;;  %v12553_v55 = vld [vmem:[#allocation3 + $0x108] sm:$0xff] }
 0x402   : > { %19578 = vst [vmem:[#allocation40_spill] sm:$0xff] %v16414_v23  ;;  %19579 = vst [vmem:[#allocation69_spill] sm:$0xff] %v16416_v62  ;;  %v4291_v1 = vsel %vm2243_vm9, %v4259_v57, %v11078_v4  ;;  %v4292_v0 = vsel %vm2243_vm9, %v4260_v44, %v11079_v54  ;;  %v11480_v61 = vpack.i.bf16 %v12546_v30, %v12547_v46  ;;  %v16479_v43 = vld [vmem:[#allocation3 + $0xf9] sm:$0xff]  ;;  %v19583_v54 = vld [vmem:[#allocation57_spill] sm:$0xff]  ;;  %v11083_v30 = vunpack.i.l.bf16 %v16261_v13 }
 0x403   : > { %11431 = vrot.lane.b32.xlu0 %v11430_v31, %s12646_s23  ;;  %v4308_v32 = vpack.c.bf16 %v4292_v0, %v4291_v1  ;;  %v11485_v27 = vpack.i.bf16 %v16465_v33, %v16467_v29  ;;  %v11510_v57 = vpack.i.bf16 %v12552_v10, %v12553_v55  ;;  %v12554_v44 = vld [vmem:[#allocation3 + $0xf9] sm:$0xff]  ;;  %v12555_v1 = vld [vmem:[#allocation3 + $0xf1] sm:$0xff]  ;;  %v12557_v17 = vld [vmem:[#allocation3 + $0x109] sm:$0xff] }
 0x404   : > { %11436 = vrot.lane.b32.xlu1 %v19574_v22, %s12647_s24  ;;  %v12543_v22 = vld [vmem:[#allocation3 + $0xca] sm:$0xff]  ;;  %v11515_v0 = vpack.i.bf16 %v12554_v44, %v12555_v1  ;;  %v12558_v3 = vld [vmem:[#allocation3 + $0xf2] sm:$0xff]  ;;  %v12559_v60 = vld [vmem:[#allocation3 + $0xfa] sm:$0xff] }
 0x405   : > { %v16434_v19 = vpop.permute.xlu0 %11151  ;;  %v16436_v8 = vpop.permute.xlu1 %11156  ;;  %v11465_v39 = vpack.i.bf16 %v12543_v22, %v12542_v12  ;;  %v12556_v15 = vld [vmem:[#allocation3 + $0x111] sm:$0xff]  ;;  %v16521_v10 = vld [vmem:[#allocation3 + $0x109] sm:$0xff]  ;;  %v12567_v44 = vld [vmem:[#allocation3 + $0x121] sm:$0xff] }
 0x406   : > { %19580 = vst [vmem:[#allocation66_spill] sm:$0xff] %v16434_v19  ;;  %19581 = vst [vmem:[#allocation42_spill] sm:$0xff] %v16436_v8  ;;  %v12561_v58 = vld [vmem:[#allocation3 + $0x112] sm:$0xff] }
 0x407   : > { %11441 = vrot.lane.b32.xlu0 %v19582_v7, %s12647_s24 }
 0x408   : > { %11446 = vrot.lane.b32.xlu1 %v19577_v59, %s12648_s25  ;;  %9637 = vmatmul.mubr.msk.bf16.gmra.mrb[44].mxu1 %vm2312_vm10, %v4308_v32  ;;  %v16477_v59 = vld [vmem:[#allocation3 + $0xf1] sm:$0xff] }
 0x409   : > { %v16443_v51 = vpop.permute.xlu0 %11161  ;;  %v16445_v2 = vpop.permute.xlu1 %11166  ;;  %v11490_v37 = vpack.i.bf16 %v16479_v43, %v16477_v59 }
 0x40b   : > { %11451 = vrot.lane.b32.xlu0 %v11450_v36, %s12648_s25 }
 0x40c   : > { %11456 = vrot.lane.b32.xlu1 %v11430_v31, %s12649_s26 }
 0x40d   : > { %v16449_v6 = vpop.permute.xlu0 %11171  ;;  %v16451_v50 = vpop.permute.xlu1 %11176 }
 0x40f   : > { %11461 = vrot.lane.b32.xlu0 %v11460_v34, %s12649_s26  ;;  %v11525_v34 = vpack.i.bf16 %v12559_v60, %v12558_v3  ;;  %v12570_v3 = vld [vmem:[#allocation3 + $0x122] sm:$0xff]  ;;  %v12571_v60 = vld [vmem:[#allocation3 + $0x12a] sm:$0xff] }
 0x410   : > { %11466 = vrot.lane.b32.xlu1 %v11465_v39, %s12650_s27  ;;  %v12560_v39 = vld [vmem:[#allocation3 + $0x10a] sm:$0xff] }
 0x411   : > { %v16455_v35 = vpop.permute.xlu0 %11181  ;;  %v16457_v14 = vpop.permute.xlu1 %11186  ;;  %v11530_v9 = vpack.i.bf16 %v12561_v58, %v12560_v39  ;;  %v19588_v39 = vld [vmem:[#allocation46_spill] sm:$0xff] }
 0x412   : > { %v19589_v58 = vld [vmem:[#allocation50_spill] sm:$0xff] }
 0x413   : > { %11471 = vrot.lane.b32.xlu0 %v11470_v53, %s12650_s27  ;;  %v11084_v53 = vunpack.i.h.bf16 %v16261_v13  ;;  %v12569_v13 = vld [vmem:[#allocation3 + $0x112] sm:$0xff] }
 0x414   : > { %11476 = vrot.lane.b32.xlu1 %v11450_v36, %s12645_s2  ;;  %v11520_v36 = vpack.i.bf16 %v12556_v15, %v12557_v17  ;;  %v11089_v17 = vunpack.i.h.bf16 %v16263_v16 }
 0x415   : > { %v16461_v5 = vpop.permute.xlu0 %11191  ;;  %v16463_v52 = vpop.permute.xlu1 %11196 }
 0x417   : > { %11481 = vrot.lane.b32.xlu0 %v11480_v61, %s12645_s2 }
 0x418   : > { %11486 = vrot.lane.b32.xlu1 %v11485_v27, %s12646_s23  ;;  %v12562_v27 = vld [vmem:[#allocation3 + $0x128] sm:$0xff] }
 0x419   : > { %v16473_v49 = vpop.permute.xlu0 %11201  ;;  %v16475_v63 = vpop.permute.xlu1 %11206 }
 0x41b   : > { %11491 = vrot.lane.b32.xlu0 %v11490_v37, %s12646_s23  ;;  %v12563_v37 = vld [vmem:[#allocation3 + $0x120] sm:$0xff] }
 0x41c   : > { %11496 = vrot.lane.b32.xlu1 %v19583_v54, %s12647_s24  ;;  %v16517_v54 = vpack.i.bf16 %v12562_v27, %v12563_v37  ;;  %v11164_v27 = vunpack.i.h.bf16 %v16443_v51  ;;  %v11163_v37 = vunpack.i.l.bf16 %v16443_v51  ;;  %v11169_v51 = vunpack.i.h.bf16 %v16445_v2 }
 0x41d   : > { %v16486_v4 = vpop.permute.xlu0 %11211  ;;  %v16488_v40 = vpop.permute.xlu1 %11216 }
 0x41f   : > { %11501 = vrot.lane.b32.xlu0 %v19584_v42, %s12647_s24  ;;  %v16519_v42 = vld [vmem:[#allocation3 + $0x111] sm:$0xff] }
 0x420   : > { %11506 = vrot.lane.b32.xlu1 %v11480_v61, %s12648_s25  ;;  %v11545_v55 = vpack.i.bf16 %v16519_v42, %v16521_v10 }
 0x421   : > { %v16493_v21 = vpop.permute.xlu0 %11221  ;;  %v16495_v31 = vpop.permute.xlu1 %11226 }
 0x422   : > { %19585 = vst [vmem:[#allocation85_spill] sm:$0xff] %v16493_v21  ;;  %19586 = vst [vmem:[#allocation52_spill] sm:$0xff] %v16495_v31 }
 0x423   : > { %11511 = vrot.lane.b32.xlu0 %v11510_v57, %s12648_s25 }
 0x424   : > { %11516 = vrot.lane.b32.xlu1 %v11515_v0, %s12649_s26  ;;  %v12568_v0 = vld [vmem:[#allocation3 + $0x10a] sm:$0xff] }
 0x425   : > { %v16499_v7 = vpop.permute.xlu0 %11231  ;;  %v16501_v32 = vpop.permute.xlu1 %11236  ;;  %v11555_v15 = vpack.i.bf16 %v12569_v13, %v12568_v0  ;;  %v12574_v0 = vld [vmem:[#allocation3 + $0x141] sm:$0xff]  ;;  %v12575_v13 = vld [vmem:[#allocation3 + $0x139] sm:$0xff] }
 0x426   : > { %19587 = vst [vmem:[#allocation91_spill] sm:$0xff] %v16499_v7  ;;  %v11239_v19 = vunpack.i.h.bf16 %v16501_v32 }
 0x427   : > { %11521 = vrot.lane.b32.xlu0 %v11520_v36, %s12649_s26  ;;  %v11088_v36 = vunpack.i.l.bf16 %v16263_v16  ;;  %v11238_v16 = vunpack.i.l.bf16 %v16501_v32 }
 0x428   : > { %11526 = vrot.lane.b32.xlu1 %v11525_v34, %s12650_s27  ;;  %v11560_v34 = vpack.i.bf16 %v12571_v60, %v12570_v3  ;;  %v16542_v3 = vpack.i.bf16 %v12574_v0, %v12575_v13  ;;  %v12576_v60 = vld [vmem:[#allocation3 + $0x9] sm:$0xff]  ;;  %v12578_v13 = vld [vmem:[#allocation3 + $0x21] sm:$0xff] }
 0x429   : > { %v16505_v12 = vpop.permute.xlu0 %11241  ;;  %v16507_v22 = vpop.permute.xlu1 %11246 }
 0x42a   : > { %v11244_v31 = vunpack.i.h.bf16 %v16505_v12  ;;  %v11243_v0 = vunpack.i.l.bf16 %v16505_v12 }
 0x42b   : > { %11531 = vrot.lane.b32.xlu0 %v11530_v9, %s12650_s27  ;;  %v16531_v9 = vpack.i.bf16 %v19589_v58, %v19588_v39  ;;  %v5342_v39 = vsel %vm611_vm0, %v11084_v53, %v12576_v60  ;;  %v12577_v58 = vld [vmem:[#allocation3 + $0x1] sm:$0xff]  ;;  %v5344_v53 = vsel %vm611_vm0, %v11089_v17, %v12578_v13  ;;  %v12579_v60 = vld [vmem:[#allocation3 + $0x19] sm:$0xff] }
 0x42c   : > { %11536 = vrot.lane.b32.xlu1 %v11510_v57, %s12645_s2  ;;  %v12566_v57 = vld [vmem:[#allocation3 + $0x129] sm:$0xff]  ;;  %v5341_v41 = vsel %vm611_vm0, %v11083_v30, %v12577_v58  ;;  %v5343_v30 = vsel %vm611_vm0, %v11088_v36, %v12579_v60  ;;  %v11249_v58 = vunpack.i.h.bf16 %v16507_v22  ;;  %v5374_v32 = vsel %vm2045_vm2, %v5342_v39, %v11164_v27 }
 0x42d   : > { %v16513_v46 = vpop.permute.xlu0 %11251  ;;  %v16515_v61 = vpop.permute.xlu1 %11256  ;;  %v11550_v1 = vpack.i.bf16 %v12566_v57, %v12567_v44  ;;  %v16536_v57 = vld [vmem:[#allocation3 + $0x129] sm:$0xff]  ;;  %v16538_v44 = vld [vmem:[#allocation3 + $0x121] sm:$0xff]  ;;  %v5373_v21 = vsel %vm2045_vm2, %v5341_v41, %v11163_v37  ;;  %v5376_v17 = vsel %vm2045_vm2, %v5344_v53, %v11169_v51 }
 0x42e   : > { %v11259_v62 = vunpack.i.h.bf16 %v16515_v61  ;;  %v11258_v12 = vunpack.i.l.bf16 %v16515_v61  ;;  %v5405_v41 = vsel %vm2078_vm4, %v5373_v21, %v11238_v16  ;;  %v5408_v37 = vsel %vm2078_vm4, %v5376_v17, %v11244_v31 }
 0x42f   : > { %11541 = vrot.lane.b32.xlu0 %v16517_v54, %s12645_s2 }
 0x430   : > { %11546 = vrot.lane.b32.xlu1 %v11545_v55, %s12646_s23  ;;  %v11168_v55 = vunpack.i.l.bf16 %v16445_v2  ;;  %v11248_v2 = vunpack.i.l.bf16 %v16507_v22 }
 0x431   : > { %v11262_v7 = vpop.permute.xlu0 %11261  ;;  %v11267_v8 = vpop.permute.xlu1 %11266 }
 0x432   : > { %v5375_v36 = vsel %vm2045_vm2, %v5343_v30, %v11168_v55  ;;  %v11269_v13 = vunpack.i.h.bf16 %v11267_v8  ;;  %v11268_v60 = vunpack.i.l.bf16 %v11267_v8  ;;  %v5437_v61 = vsel %vm2111_vm5, %v5405_v41, %v11248_v2 }
 0x433   : > { %11551 = vrot.lane.b32.xlu0 %v11550_v1, %s12646_s23  ;;  %v5406_v1 = vsel %vm2078_vm4, %v5374_v32, %v11239_v19  ;;  %v5407_v27 = vsel %vm2078_vm4, %v5375_v36, %v11243_v0  ;;  %v11254_v8 = vunpack.i.h.bf16 %v16513_v46  ;;  %v11253_v55 = vunpack.i.l.bf16 %v16513_v46 }
 0x434   : > { %11556 = vrot.lane.b32.xlu1 %v11555_v15, %s12647_s24  ;;  %v5438_v15 = vsel %vm2111_vm5, %v5406_v1, %v11249_v58  ;;  %v5469_v19 = vsel %vm2144_vm6, %v5437_v61, %v11258_v12  ;;  %v11264_v31 = vunpack.i.h.bf16 %v11262_v7  ;;  %v11263_v16 = vunpack.i.l.bf16 %v11262_v7 }
 0x435   : > { %v11272_v23 = vpop.permute.xlu0 %11271  ;;  %v11277_v22 = vpop.permute.xlu1 %11276  ;;  %v5470_v21 = vsel %vm2144_vm6, %v5438_v15, %v11259_v62  ;;  %v5501_v0 = vsel %vm2177_vm7, %v5469_v19, %v11268_v60  ;;  %v5439_v7 = vsel %vm2111_vm5, %v5407_v27, %v11253_v55  ;;  %v12580_v15 = vld [vmem:[#allocation3 + $0x122] sm:$0xff]  ;;  %v12581_v27 = vld [vmem:[#allocation3 + $0x12a] sm:$0xff] }
 0x436   : > { %v11279_v39 = vunpack.i.h.bf16 %v11277_v22  ;;  %v11278_v51 = vunpack.i.l.bf16 %v11277_v22  ;;  %v5502_v53 = vsel %vm2177_vm7, %v5470_v21, %v11269_v13  ;;  %v11273_v2 = vunpack.i.l.bf16 %v11272_v23 }
 0x437   : > { %11561 = vrot.lane.b32.xlu0 %v11560_v34, %s12647_s24  ;;  %v11274_v34 = vunpack.i.h.bf16 %v11272_v23  ;;  %v19590_v23 = vpack.i.bf16 %v16536_v57, %v16538_v44  ;;  %v5471_v22 = vsel %vm2144_vm6, %v5439_v7, %v11263_v16 }
 0x438   : > { %11566 = vrot.lane.b32.xlu1 %v16517_v54, %s12648_s25  ;;  %v5533_v46 = vsel %vm2210_vm8, %v5501_v0, %v11278_v51  ;;  %v5534_v12 = vsel %vm2210_vm8, %v5502_v53, %v11279_v39  ;;  %v5440_v54 = vsel %vm2111_vm5, %v5408_v37, %v11254_v8  ;;  %v11585_v39 = vpack.i.bf16 %v12581_v27, %v12580_v15  ;;  %v12582_v53 = vld [vmem:[#allocation3 + $0x13a] sm:$0xff]  ;;  %v12592_v27 = vld [vmem:[#allocation3 + $0x170] sm:$0xff] }
 0x439   : > { %v11282_v30 = vpop.permute.xlu0 %11281  ;;  %v11287_v58 = vpop.permute.xlu1 %11286  ;;  %v5472_v1 = vsel %vm2144_vm6, %v5440_v54, %v11264_v31  ;;  %v5503_v51 = vsel %vm2177_vm7, %v5471_v22, %v11273_v2  ;;  %v12586_v54 = vld [vmem:[#allocation3 + $0x159] sm:$0xff] }
 0x43a   : > { %v11289_v32 = vunpack.i.h.bf16 %v11287_v58  ;;  %v11288_v17 = vunpack.i.l.bf16 %v11287_v58  ;;  %v11284_v62 = vunpack.i.h.bf16 %v11282_v30  ;;  %v11283_v36 = vunpack.i.l.bf16 %v11282_v30  ;;  %v12583_v30 = vld [vmem:[#allocation3 + $0x142] sm:$0xff] }
 0x43b   : > { %11571 = vrot.lane.b32.xlu0 %v16531_v9, %s12648_s25  ;;  %v5504_v8 = vsel %vm2177_vm7, %v5472_v1, %v11274_v34  ;;  %v11590_v58 = vpack.i.bf16 %v12583_v30, %v12582_v53  ;;  %v12590_v1 = vld [vmem:[#allocation3 + $0x152] sm:$0xff]  ;;  %v12597_v30 = vld [vmem:[#allocation3 + $0x169] sm:$0xff] }
 0x43c   : > { %v5565_v13 = vsel %vm2243_vm9, %v5533_v46, %v11288_v17  ;;  %v5566_v60 = vsel %vm2243_vm9, %v5534_v12, %v11289_v32  ;;  %11576 = vrot.lane.b32.xlu1 %v19590_v23, %s12649_s26  ;;  %v5535_v57 = vsel %vm2210_vm8, %v5503_v51, %v11283_v36  ;;  %v5536_v44 = vsel %vm2210_vm8, %v5504_v8, %v11284_v62  ;;  %v12584_v32 = vld [vmem:[#allocation3 + $0x158] sm:$0xff]  ;;  %v12585_v17 = vld [vmem:[#allocation3 + $0x150] sm:$0xff]  ;;  %v12589_v23 = vld [vmem:[#allocation3 + $0x142] sm:$0xff] }
 0x43d   : > { %v11292_v41 = vpop.permute.xlu0 %11291  ;;  %v16593_v61 = vpop.permute.xlu1 %11296  ;;  %v5597_v37 = vpack.c.bf16 %v5566_v60, %v5565_v13  ;;  %v16615_v46 = vpack.i.bf16 %v12584_v32, %v12585_v17  ;;  %v11094_v12 = vunpack.i.h.bf16 %v16288_v24  ;;  %v11093_v62 = vunpack.i.l.bf16 %v16288_v24  ;;  %v12587_v13 = vld [vmem:[#allocation3 + $0x151] sm:$0xff]  ;;  %v16626_v24 = vld [vmem:[#allocation3 + $0x159] sm:$0xff] }
 0x43e   : > { %v11294_v55 = vunpack.i.h.bf16 %v11292_v41  ;;  %v11293_v19 = vunpack.i.l.bf16 %v11292_v41  ;;  %v11099_v36 = vunpack.i.h.bf16 %v16290_v56  ;;  %v11610_v60 = vpack.i.bf16 %v12586_v54, %v12587_v13  ;;  %v12591_v41 = vld [vmem:[#allocation3 + $0x15a] sm:$0xff]  ;;  %v16628_v51 = vld [vmem:[#allocation3 + $0x151] sm:$0xff] }
 0x43f   : > { %11581 = vrot.lane.b32.xlu0 %v16542_v3, %s12649_s26  ;;  %9646 = vmatprep.mubr.msk.bf16.mxu0 %vm2312_vm10, %v5597_v37  ;;  %v11620_v15 = vpack.i.bf16 %v12591_v41, %v12590_v1  ;;  %v11635_v8 = vpack.i.bf16 %v16626_v24, %v16628_v51  ;;  %v12596_v53 = vld [vmem:[#allocation3 + $0x171] sm:$0xff]  ;;  %v16646_v32 = vld [vmem:[#allocation3 + $0x15a] sm:$0xff] }
 0x440   : > { %v5567_v21 = vsel %vm2243_vm9, %v5535_v57, %v11293_v19  ;;  %v5568_v31 = vsel %vm2243_vm9, %v5536_v44, %v11294_v55  ;;  %11586 = vrot.lane.b32.xlu1 %v11585_v39, %s12650_s27  ;;  %v12593_v39 = vld [vmem:[#allocation3 + $0x168] sm:$0xff]  ;;  %v11098_v55 = vunpack.i.l.bf16 %v16290_v56  ;;  %v11174_v19 = vunpack.i.h.bf16 %v16449_v6  ;;  %v16644_v56 = vld [vmem:[#allocation3 + $0x152] sm:$0xff] }
 0x441   : > { %v5598_v16 = vpack.c.bf16 %v5568_v31, %v5567_v21  ;;  %v16605_v0 = vpop.permute.xlu0 %11301  ;;  %v16624_v37 = vpack.i.bf16 %v12592_v27, %v12593_v39  ;;  %v11173_v57 = vunpack.i.l.bf16 %v16449_v6  ;;  %v11179_v44 = vunpack.i.h.bf16 %v16451_v50  ;;  %v12600_v17 = vld [vmem:[#allocation3 + $0x39] sm:$0xff]  ;;  %v12601_v54 = vld [vmem:[#allocation3 + $0x31] sm:$0xff] }
 0x442   : > { %v16607_v34 = vpop.permute.xlu1 %11306  ;;  %v11178_v21 = vunpack.i.l.bf16 %v16451_v50  ;;  %v11299_v31 = vunpack.i.h.bf16 %v16593_v61  ;;  %v11645_v6 = vpack.i.bf16 %v16646_v32, %v16644_v56  ;;  %v5345_v50 = vsel %vm611_vm0, %v11093_v62, %v12601_v54  ;;  %v12602_v13 = vld [vmem:[#allocation3 + $0x51] sm:$0xff] }
 0x443   : > { %11591 = vrot.lane.b32.xlu0 %v11590_v58, %s12650_s27  ;;  %9647 = vmatmul.mubr.msk.bf16.vlgmr.msra.gmra.mrb[16].mxu0 %vm2312_vm10, %v5598_v16  ;;  %v16642_v58 = vpack.i.bf16 %v12596_v53, %v12597_v30  ;;  %v11304_v41 = vunpack.i.h.bf16 %v16605_v0  ;;  %v11303_v27 = vunpack.i.l.bf16 %v16605_v0  ;;  %v11309_v39 = vunpack.i.h.bf16 %v16607_v34 }
 0x444   : > { %11596 = vrot.lane.b32.xlu1 %v16531_v9, %s12645_s2  ;;  %v12588_v9 = vld [vmem:[#allocation3 + $0x13a] sm:$0xff]  ;;  %v11308_v53 = vunpack.i.l.bf16 %v16607_v34  ;;  %v5377_v62 = vsel %vm2045_vm2, %v5345_v50, %v11173_v57  ;;  %v11104_v32 = vunpack.i.h.bf16 %v16311_v25 }
 0x445   : > { %v16613_v2 = vpop.permute.xlu0 %11311  ;;  %v11615_v22 = vpack.i.bf16 %v12589_v23, %v12588_v9  ;;  %v5348_v9 = vsel %vm611_vm0, %v11099_v36, %v12602_v13  ;;  %v11298_v23 = vunpack.i.l.bf16 %v16593_v61 }
 0x446   : > { %v16620_v7 = vpop.permute.xlu1 %11316  ;;  %v5380_v61 = vsel %vm2045_vm2, %v5348_v9, %v11179_v44 }
 0x447   : > { %11601 = vrot.lane.b32.xlu0 %v16615_v46, %s12645_s2  ;;  %v11319_v54 = vunpack.i.h.bf16 %v16620_v7  ;;  %v11318_v34 = vunpack.i.l.bf16 %v16620_v7  ;;  %v5409_v13 = vsel %vm2078_vm4, %v5377_v62, %v11298_v23  ;;  %v11314_v7 = vunpack.i.h.bf16 %v16613_v2 }
 0x448   : > { %11606 = vrot.lane.b32.xlu1 %v16542_v3, %s12646_s23  ;;  %v5346_v3 = vsel %vm611_vm0, %v11094_v12, %v12600_v17  ;;  %v12603_v12 = vld [vmem:[#allocation3 + $0x49] sm:$0xff] }
 0x449   : > { %v16640_v16 = vpop.permute.xlu0 %11321  ;;  %v5347_v30 = vsel %vm611_vm0, %v11098_v55, %v12603_v12  ;;  %v5378_v36 = vsel %vm2045_vm2, %v5346_v3, %v11174_v19  ;;  %v11313_v55 = vunpack.i.l.bf16 %v16613_v2 }
 0x44a   : > { %v11327_v1 = vpop.permute.xlu1 %11326  ;;  %v5379_v17 = vsel %vm2045_vm2, %v5347_v30, %v11178_v21  ;;  %v5410_v0 = vsel %vm2078_vm4, %v5378_v36, %v11299_v31  ;;  %v5441_v21 = vsel %vm2111_vm5, %v5409_v13, %v11308_v53  ;;  %v11323_v3 = vunpack.i.l.bf16 %v16640_v16 }
 0x44b   : > { %11611 = vrot.lane.b32.xlu0 %v11610_v60, %s12646_s23  ;;  %v11329_v57 = vunpack.i.h.bf16 %v11327_v1  ;;  %v11328_v50 = vunpack.i.l.bf16 %v11327_v1  ;;  %v5411_v44 = vsel %vm2078_vm4, %v5379_v17, %v11303_v27  ;;  %v5442_v31 = vsel %vm2111_vm5, %v5410_v0, %v11309_v39 }
 0x44c   : > { %11616 = vrot.lane.b32.xlu1 %v11615_v22, %s12647_s24  ;;  %v5412_v22 = vsel %vm2078_vm4, %v5380_v61, %v11304_v41  ;;  %v5473_v1 = vsel %vm2144_vm6, %v5441_v21, %v11318_v34  ;;  %v5474_v27 = vsel %vm2144_vm6, %v5442_v31, %v11319_v54  ;;  %v11324_v41 = vunpack.i.h.bf16 %v16640_v16 }
 0x44d   : > { %v11332_v60 = vpop.permute.xlu0 %11331  ;;  %v5443_v39 = vsel %vm2111_vm5, %v5411_v44, %v11313_v55  ;;  %v5506_v2 = vsel %vm2177_vm7, %v5474_v27, %v11329_v57  ;;  %v5444_v0 = vsel %vm2111_vm5, %v5412_v22, %v11314_v7 }
 0x44e   : > { %v11337_v19 = vpop.permute.xlu1 %11336  ;;  %v11333_v53 = vunpack.i.l.bf16 %v11332_v60  ;;  %v11334_v30 = vunpack.i.h.bf16 %v11332_v60  ;;  %v5475_v16 = vsel %vm2144_vm6, %v5443_v39, %v11323_v3  ;;  %v5476_v60 = vsel %vm2144_vm6, %v5444_v0, %v11324_v41  ;;  %v12606_v39 = vld [vmem:[#allocation3 + $0x188] sm:$0xff] }
 0x44f   : > { %11621 = vrot.lane.b32.xlu0 %v11620_v15, %s12647_s24  ;;  %v11339_v9 = vunpack.i.h.bf16 %v11337_v19  ;;  %v11338_v23 = vunpack.i.l.bf16 %v11337_v19  ;;  %v5505_v15 = vsel %vm2177_vm7, %v5473_v1, %v11328_v50  ;;  %v11184_v0 = vunpack.i.h.bf16 %v16455_v35 }
 0x450   : > { %11626 = vrot.lane.b32.xlu1 %v16615_v46, %s12648_s25  ;;  %v5507_v13 = vsel %vm2177_vm7, %v5475_v16, %v11333_v53  ;;  %v5508_v19 = vsel %vm2177_vm7, %v5476_v60, %v11334_v30  ;;  %v11109_v53 = vunpack.i.h.bf16 %v16313_v48  ;;  %v12608_v30 = vld [vmem:[#allocation3 + $0x189] sm:$0xff]  ;;  %v11183_v16 = vunpack.i.l.bf16 %v16455_v35  ;;  %v16757_v35 = vld [vmem:[#allocation3 + $0x1a1] sm:$0xff] }
 0x451   : > { %v11342_v12 = vpop.permute.xlu0 %11341  ;;  %v5537_v54 = vsel %vm2210_vm8, %v5505_v15, %v11338_v23  ;;  %v5538_v34 = vsel %vm2210_vm8, %v5506_v2, %v11339_v9  ;;  %v12604_v9 = vld [vmem:[#allocation3 + $0x16a] sm:$0xff]  ;;  %v12605_v23 = vld [vmem:[#allocation3 + $0x172] sm:$0xff]  ;;  %v12607_v15 = vld [vmem:[#allocation3 + $0x180] sm:$0xff] }
 0x452   : > { %v11347_v62 = vpop.permute.xlu1 %11346  ;;  %v11344_v36 = vunpack.i.h.bf16 %v11342_v12  ;;  %v11343_v61 = vunpack.i.l.bf16 %v11342_v12  ;;  %v16715_v1 = vpack.i.bf16 %v12605_v23, %v12604_v9  ;;  %v16731_v2 = vpack.i.bf16 %v12606_v39, %v12607_v15 }
 0x453   : > { %v11349_v17 = vunpack.i.h.bf16 %v11347_v62  ;;  %v11348_v46 = vunpack.i.l.bf16 %v11347_v62  ;;  %11631 = vrot.lane.b32.xlu0 %v16624_v37, %s12648_s25  ;;  %v12609_v62 = vld [vmem:[#allocation3 + $0x181] sm:$0xff] }
 0x454   : > { %11636 = vrot.lane.b32.xlu1 %v11635_v8, %s12649_s26  ;;  %v5539_v7 = vsel %vm2210_vm8, %v5507_v13, %v11343_v61  ;;  %v5540_v24 = vsel %vm2210_vm8, %v5508_v19, %v11344_v36  ;;  %v16735_v36 = vpack.i.bf16 %v12608_v30, %v12609_v62  ;;  %v12610_v61 = vld [vmem:[#allocation3 + $0x182] sm:$0xff]  ;;  %v16749_v13 = vld [vmem:[#allocation3 + $0x198] sm:$0xff] }
 0x455   : > { %v5569_v55 = vsel %vm2243_vm9, %v5537_v54, %v11348_v46  ;;  %v5570_v57 = vsel %vm2243_vm9, %v5538_v34, %v11349_v17  ;;  %v11352_v50 = vpop.permute.xlu0 %11351  ;;  %v12611_v17 = vld [vmem:[#allocation3 + $0x18a] sm:$0xff]  ;;  %v11189_v54 = vunpack.i.h.bf16 %v16457_v14 }
 0x456   : > { %v11354_v44 = vunpack.i.h.bf16 %v11352_v50  ;;  %v11353_v22 = vunpack.i.l.bf16 %v11352_v50  ;;  %v16700_v21 = vpop.permute.xlu1 %11356  ;;  %v5599_v31 = vpack.c.bf16 %v5570_v57, %v5569_v55  ;;  %v16737_v46 = vpack.i.bf16 %v12611_v17, %v12610_v61  ;;  %v16751_v55 = vld [vmem:[#allocation3 + $0x1a0] sm:$0xff]  ;;  %v12616_v19 = vld [vmem:[#allocation3 + $0x69] sm:$0xff] }
 0x457   : > { %11641 = vrot.lane.b32.xlu0 %v16642_v58, %s12649_s26  ;;  %v11359_v34 = vunpack.i.h.bf16 %v16700_v21  ;;  %v16755_v57 = vld [vmem:[#allocation3 + $0x199] sm:$0xff] }
 0x458   : > { %v5571_v51 = vsel %vm2243_vm9, %v5539_v7, %v11353_v22  ;;  %v5572_v8 = vsel %vm2243_vm9, %v5540_v24, %v11354_v44  ;;  %11646 = vrot.lane.b32.xlu1 %v11645_v6, %s12650_s27  ;;  %9650 = vmatprep.mubr.msk.bf16.mxu0 %vm2312_vm10, %v5599_v31  ;;  %v11103_v6 = vunpack.i.l.bf16 %v16311_v25  ;;  %v11108_v25 = vunpack.i.l.bf16 %v16313_v48  ;;  %v12617_v44 = vld [vmem:[#allocation3 + $0x61] sm:$0xff] }
 0x459   : > { %v16713_v3 = vpop.permute.xlu0 %11361  ;;  %v5600_v27 = vpack.c.bf16 %v5572_v8, %v5571_v51  ;;  %v11695_v48 = vpack.i.bf16 %v16751_v55, %v16749_v13  ;;  %v11705_v50 = vpack.i.bf16 %v16757_v35, %v16755_v57  ;;  %v12618_v31 = vld [vmem:[#allocation3 + $0x81] sm:$0xff]  ;;  %v11358_v24 = vunpack.i.l.bf16 %v16700_v21 }
 0x45a   : > { %v16717_v41 = vpop.permute.xlu1 %11366  ;;  %v5349_v22 = vsel %vm611_vm0, %v11103_v6, %v12617_v44  ;;  %v5352_v7 = vsel %vm611_vm0, %v11109_v53, %v12618_v31  ;;  %v11364_v8 = vunpack.i.h.bf16 %v16713_v3  ;;  %v11363_v9 = vunpack.i.l.bf16 %v16713_v3 }
 0x45b   : > { %11651 = vrot.lane.b32.xlu0 %v16715_v1, %s12650_s27  ;;  %9651 = vmatmul.mubr.msk.bf16.gmra.mrb[20].mxu0 %vm2312_vm10, %v5600_v27  ;;  %v11369_v23 = vunpack.i.h.bf16 %v16717_v41  ;;  %v11368_v27 = vunpack.i.l.bf16 %v16717_v41  ;;  %v5381_v39 = vsel %vm2045_vm2, %v5349_v22, %v11183_v16  ;;  %v5384_v21 = vsel %vm2045_vm2, %v5352_v7, %v11189_v54 }
 0x45c   : > { %11656 = vrot.lane.b32.xlu1 %v16715_v1, %s12644_s22  ;;  %v5413_v62 = vsel %vm2078_vm4, %v5381_v39, %v11358_v24  ;;  %v5416_v54 = vsel %vm2078_vm4, %v5384_v21, %v11364_v8  ;;  %v11114_v57 = vunpack.i.h.bf16 %v16338_v11  ;;  %v11113_v35 = vunpack.i.l.bf16 %v16338_v11 }
 0x45d   : > { %v16724_v56 = vpop.permute.xlu0 %11371 }
 0x45e   : > { %v16729_v12 = vpop.permute.xlu1 %11376  ;;  %v11373_v61 = vunpack.i.l.bf16 %v16724_v56 }
 0x45f   : > { %11661 = vrot.lane.b32.xlu0 %v16624_v37, %s12645_s2  ;;  %v11188_v37 = vunpack.i.l.bf16 %v16457_v14  ;;  %v5350_v14 = vsel %vm611_vm0, %v11104_v32, %v12616_v19  ;;  %v12619_v32 = vld [vmem:[#allocation3 + $0x79] sm:$0xff]  ;;  %v11379_v41 = vunpack.i.h.bf16 %v16729_v12 }
 0x460   : > { %11666 = vrot.lane.b32.xlu1 %v16731_v2, %s12645_s2  ;;  %v5351_v6 = vsel %vm611_vm0, %v11108_v25, %v12619_v32  ;;  %v5382_v53 = vsel %vm2045_vm2, %v5350_v14, %v11184_v0 }
 0x461   : > { %v16747_v60 = vpop.permute.xlu0 %11381  ;;  %v5383_v3 = vsel %vm2045_vm2, %v5351_v6, %v11188_v37  ;;  %v5414_v15 = vsel %vm2078_vm4, %v5382_v53, %v11359_v34  ;;  %v5445_v37 = vsel %vm2111_vm5, %v5413_v62, %v11368_v27 }
 0x462   : > { %v11387_v51 = vpop.permute.xlu1 %11386  ;;  %v5415_v16 = vsel %vm2078_vm4, %v5383_v3, %v11363_v9  ;;  %v5446_v34 = vsel %vm2111_vm5, %v5414_v15, %v11369_v23  ;;  %v11383_v19 = vunpack.i.l.bf16 %v16747_v60  ;;  %v11384_v7 = vunpack.i.h.bf16 %v16747_v60 }
 0x463   : > { %11671 = vrot.lane.b32.xlu0 %v16642_v58, %s12646_s23  ;;  %v11378_v58 = vunpack.i.l.bf16 %v16729_v12  ;;  %v11389_v17 = vunpack.i.h.bf16 %v11387_v51  ;;  %v11388_v25 = vunpack.i.l.bf16 %v11387_v51  ;;  %v11374_v12 = vunpack.i.h.bf16 %v16724_v56 }
 0x464   : > { %11676 = vrot.lane.b32.xlu1 %v16735_v36, %s12646_s23  ;;  %v5478_v31 = vsel %vm2144_vm6, %v5446_v34, %v11379_v41  ;;  %v5447_v8 = vsel %vm2111_vm5, %v5415_v16, %v11373_v61 }
 0x465   : > { %v11392_v30 = vpop.permute.xlu0 %11391  ;;  %v5477_v22 = vsel %vm2144_vm6, %v5445_v37, %v11378_v58  ;;  %v5510_v56 = vsel %vm2177_vm7, %v5478_v31, %v11389_v17  ;;  %v5448_v53 = vsel %vm2111_vm5, %v5416_v54, %v11374_v12  ;;  %v5479_v60 = vsel %vm2144_vm6, %v5447_v8, %v11383_v19  ;;  %v12620_v54 = vld [vmem:[#allocation3 + $0x19a] sm:$0xff]  ;;  %v12621_v37 = vld [vmem:[#allocation3 + $0x1a2] sm:$0xff] }
 0x466   : > { %v11397_v0 = vpop.permute.xlu1 %11396  ;;  %v11393_v24 = vunpack.i.l.bf16 %v11392_v30  ;;  %v11394_v9 = vunpack.i.h.bf16 %v11392_v30  ;;  %v5480_v15 = vsel %vm2144_vm6, %v5448_v53, %v11384_v7  ;;  %v11715_v34 = vpack.i.bf16 %v12621_v37, %v12620_v54 }
 0x467   : > { %11681 = vrot.lane.b32.xlu0 %v16715_v1, %s12647_s24  ;;  %v11399_v14 = vunpack.i.h.bf16 %v11397_v0  ;;  %v11398_v44 = vunpack.i.l.bf16 %v11397_v0  ;;  %v5509_v1 = vsel %vm2177_vm7, %v5477_v22, %v11388_v25  ;;  %v11119_v22 = vunpack.i.h.bf16 %v16340_v26 }
 0x468   : > { %11686 = vrot.lane.b32.xlu1 %v16737_v46, %s12647_s24  ;;  %v5511_v41 = vsel %vm2177_vm7, %v5479_v60, %v11393_v24  ;;  %v5512_v62 = vsel %vm2177_vm7, %v5480_v15, %v11394_v9  ;;  %v11194_v31 = vunpack.i.h.bf16 %v16461_v5  ;;  %v11193_v7 = vunpack.i.l.bf16 %v16461_v5  ;;  %v12623_v9 = vld [vmem:[#allocation3 + $0x91] sm:$0xff] }
 0x469   : > { %v11402_v51 = vpop.permute.xlu0 %11401  ;;  %v5541_v21 = vsel %vm2210_vm8, %v5509_v1, %v11398_v44  ;;  %v5542_v3 = vsel %vm2210_vm8, %v5510_v56, %v11399_v14  ;;  %v11199_v24 = vunpack.i.h.bf16 %v16463_v52  ;;  %v12622_v1 = vld [vmem:[#allocation3 + $0x99] sm:$0xff]  ;;  %v5353_v11 = vsel %vm611_vm0, %v11113_v35, %v12623_v9  ;;  %v12625_v60 = vld [vmem:[#allocation3 + $0xb1] sm:$0xff] }
 0x46a   : > { %v11407_v23 = vpop.permute.xlu1 %11406  ;;  %v11404_v27 = vunpack.i.h.bf16 %v11402_v51  ;;  %v11403_v32 = vunpack.i.l.bf16 %v11402_v51  ;;  %v5354_v56 = vsel %vm611_vm0, %v11114_v57, %v12622_v1 }
 0x46b   : > { %v11409_v6 = vunpack.i.h.bf16 %v11407_v23  ;;  %v11408_v39 = vunpack.i.l.bf16 %v11407_v23  ;;  %11691 = vrot.lane.b32.xlu0 %v16731_v2, %s12648_s25  ;;  %v12624_v23 = vld [vmem:[#allocation3 + $0xa9] sm:$0xff] }
 0x46c   : > { %11696 = vrot.lane.b32.xlu1 %v11695_v48, %s12648_s25  ;;  %v5543_v16 = vsel %vm2210_vm8, %v5511_v41, %v11403_v32  ;;  %v5544_v13 = vsel %vm2210_vm8, %v5512_v62, %v11404_v27  ;;  %s12653_s25 = smov 40  }
 0x46d   : > { %v5573_v58 = vsel %vm2243_vm9, %v5541_v21, %v11408_v39  ;;  %v5574_v2 = vsel %vm2243_vm9, %v5542_v3, %v11409_v6  ;;  %v11412_v30 = vpop.permute.xlu0 %11411  ;;  %v5385_v21 = vsel %vm2045_vm2, %v5353_v11, %v11193_v7  ;;  %v5386_v3 = vsel %vm2045_vm2, %v5354_v56, %v11194_v31 }
 0x46e   : > { %v11414_v61 = vunpack.i.h.bf16 %v11412_v30  ;;  %v11413_v17 = vunpack.i.l.bf16 %v11412_v30  ;;  %v11417_v25 = vpop.permute.xlu1 %11416  ;;  %v5601_v0 = vpack.c.bf16 %v5574_v2, %v5573_v58 }
 0x46f   : > { %11701 = vrot.lane.b32.xlu0 %v16735_v36, %s12649_s26  ;;  %v11419_v51 = vunpack.i.h.bf16 %v11417_v25 }
 0x470   : > { %v5575_v55 = vsel %vm2243_vm9, %v5543_v16, %v11413_v17  ;;  %v5576_v48 = vsel %vm2243_vm9, %v5544_v13, %v11414_v61  ;;  %11706 = vrot.lane.b32.xlu1 %v11705_v50, %s12649_s26  ;;  %9654 = vmatprep.mubr.msk.bf16.mxu0 %vm2312_vm10, %v5601_v0  ;;  %v11118_v50 = vunpack.i.l.bf16 %v16340_v26  ;;  %v11418_v26 = vunpack.i.l.bf16 %v11417_v25 }
 0x471   : > { %v11422_v12 = vpop.permute.xlu0 %11421  ;;  %v5602_v19 = vpack.c.bf16 %v5576_v48, %v5575_v55  ;;  %v5418_v58 = vsel %vm2078_vm4, %v5386_v3, %v11419_v51 }
 0x472   : > { %v11427_v14 = vpop.permute.xlu1 %11426  ;;  %v5355_v27 = vsel %vm611_vm0, %v11118_v50, %v12624_v23  ;;  %v11424_v6 = vunpack.i.h.bf16 %v11422_v12  ;;  %v11423_v39 = vunpack.i.l.bf16 %v11422_v12  ;;  %v5417_v61 = vsel %vm2078_vm4, %v5385_v21, %v11418_v26 }
 0x473   : > { %11711 = vrot.lane.b32.xlu0 %v16737_v46, %s12650_s27  ;;  %9655 = vmatmul.mubr.msk.bf16.gmra.mrb[24].mxu0 %vm2312_vm10, %v5602_v19  ;;  %v11198_v46 = vunpack.i.l.bf16 %v16463_v52  ;;  %v11429_v5 = vunpack.i.h.bf16 %v11427_v14  ;;  %v11428_v53 = vunpack.i.l.bf16 %v11427_v14  ;;  %v5356_v52 = vsel %vm611_vm0, %v11119_v22, %v12625_v60 }
 0x474   : > { %11716 = vrot.lane.b32.xlu1 %v11715_v34, %s12650_s27  ;;  %v5388_v41 = vsel %vm2045_vm2, %v5356_v52, %v11199_v24 }
 0x475   : > { %v16829_v36 = vpop.permute.xlu0 %11431  ;;  %v5387_v15 = vsel %vm2045_vm2, %v5355_v27, %v11198_v46  ;;  %v5420_v55 = vsel %vm2078_vm4, %v5388_v41, %v11424_v6  ;;  %v5449_v48 = vsel %vm2111_vm5, %v5417_v61, %v11428_v53  ;;  %v5450_v54 = vsel %vm2111_vm5, %v5418_v58, %v11429_v5 }
 0x476   : > { %v11437_v44 = vpop.permute.xlu1 %11436  ;;  %v11433_v17 = vunpack.i.l.bf16 %v16829_v36  ;;  %v5419_v13 = vsel %vm2078_vm4, %v5387_v15, %v11423_v39  ;;  %v11434_v37 = vunpack.i.h.bf16 %v16829_v36 }
 0x477   : > { %v11439_v2 = vunpack.i.h.bf16 %v11437_v44  ;;  %v11438_v30 = vunpack.i.l.bf16 %v11437_v44 }
 0x478   : > { %v5451_v22 = vsel %vm2111_vm5, %v5419_v13, %v11433_v17  ;;  %v5452_v9 = vsel %vm2111_vm5, %v5420_v55, %v11434_v37  ;;  %v11124_v17 = vunpack.i.h.bf16 %v16363_v45  ;;  %v11129_v13 = vunpack.i.h.bf16 %v16365_v18 }
 0x479   : > { %v11442_v8 = vpop.permute.xlu0 %11441  ;;  %v5481_v14 = vsel %vm2144_vm6, %v5449_v48, %v11438_v30  ;;  %v5482_v57 = vsel %vm2144_vm6, %v5450_v54, %v11439_v2  ;;  %v11204_v55 = vunpack.i.h.bf16 %v16473_v49  ;;  %v11203_v48 = vunpack.i.l.bf16 %v16473_v49 }
 0x47a   : > { %v11447_v32 = vpop.permute.xlu1 %11446  ;;  %v11443_v34 = vunpack.i.l.bf16 %v11442_v8  ;;  %v11444_v35 = vunpack.i.h.bf16 %v11442_v8  ;;  %v11208_v54 = vunpack.i.l.bf16 %v16475_v63  ;;  %v11209_v37 = vunpack.i.h.bf16 %v16475_v63 }
 0x47b   : > { %v11449_v25 = vunpack.i.h.bf16 %v11447_v32  ;;  %v11448_v0 = vunpack.i.l.bf16 %v11447_v32  ;;  %v5360_v63 = vsel %vm611_vm0, %v11129_v13, %v16465_v33 }
 0x47c   : > { %v5483_v11 = vsel %vm2144_vm6, %v5451_v22, %v11443_v34  ;;  %v5484_v27 = vsel %vm2144_vm6, %v5452_v9, %v11444_v35 }
 0x47d   : > { %v11452_v62 = vpop.permute.xlu0 %11451  ;;  %v5513_v31 = vsel %vm2177_vm7, %v5481_v14, %v11448_v0  ;;  %v5514_v7 = vsel %vm2177_vm7, %v5482_v57, %v11449_v25  ;;  %v11123_v25 = vunpack.i.l.bf16 %v16363_v45  ;;  %v11128_v0 = vunpack.i.l.bf16 %v16365_v18 }
 0x47e   : > { %v11457_v16 = vpop.permute.xlu1 %11456  ;;  %v11453_v50 = vunpack.i.l.bf16 %v11452_v62  ;;  %v11454_v46 = vunpack.i.h.bf16 %v11452_v62 }
 0x47f   : > { %v11459_v12 = vunpack.i.h.bf16 %v11457_v16  ;;  %v11458_v19 = vunpack.i.l.bf16 %v11457_v16  ;;  %v5357_v45 = vsel %vm611_vm0, %v11123_v25, %v16420_v47  ;;  %v5359_v14 = vsel %vm611_vm0, %v11128_v0, %v16467_v29 }
 0x480   : > { %v5515_v26 = vsel %vm2177_vm7, %v5483_v11, %v11453_v50  ;;  %v5516_v5 = vsel %vm2177_vm7, %v5484_v27, %v11454_v46  ;;  %v5389_v22 = vsel %vm2045_vm2, %v5357_v45, %v11203_v48  ;;  %v5392_v47 = vsel %vm2045_vm2, %v5360_v63, %v11209_v37 }
 0x481   : > { %v11462_v44 = vpop.permute.xlu0 %11461  ;;  %v5545_v8 = vsel %vm2210_vm8, %v5513_v31, %v11458_v19  ;;  %v5546_v23 = vsel %vm2210_vm8, %v5514_v7, %v11459_v12  ;;  %v5358_v19 = vsel %vm611_vm0, %v11124_v17, %v16418_v28  ;;  %v5391_v28 = vsel %vm2045_vm2, %v5359_v14, %v11208_v54 }
 0x482   : > { %v11467_v24 = vpop.permute.xlu1 %11466  ;;  %v11464_v51 = vunpack.i.h.bf16 %v11462_v44  ;;  %v11463_v36 = vunpack.i.l.bf16 %v11462_v44  ;;  %v5390_v31 = vsel %vm2045_vm2, %v5358_v19, %v11204_v55 }
 0x483   : > { %v11469_v1 = vunpack.i.h.bf16 %v11467_v24  ;;  %v11468_v56 = vunpack.i.l.bf16 %v11467_v24 }
 0x484   : > { %v5547_v3 = vsel %vm2210_vm8, %v5515_v26, %v11463_v36  ;;  %v5548_v15 = vsel %vm2210_vm8, %v5516_v5, %v11464_v51 }
 0x485   : > { %v5577_v32 = vsel %vm2243_vm9, %v5545_v8, %v11468_v56  ;;  %v5578_v6 = vsel %vm2243_vm9, %v5546_v23, %v11469_v1  ;;  %v11472_v39 = vpop.permute.xlu0 %11471 }
 0x486   : > { %v11474_v53 = vunpack.i.h.bf16 %v11472_v39  ;;  %v11473_v60 = vunpack.i.l.bf16 %v11472_v39  ;;  %v11477_v52 = vpop.permute.xlu1 %11476  ;;  %v5603_v21 = vpack.c.bf16 %v5578_v6, %v5577_v32 }
 0x487   : > { %v11479_v34 = vunpack.i.h.bf16 %v11477_v52  ;;  %v11478_v18 = vunpack.i.l.bf16 %v11477_v52 }
 0x488   : > { %v5579_v41 = vsel %vm2243_vm9, %v5547_v3, %v11473_v60  ;;  %v5580_v58 = vsel %vm2243_vm9, %v5548_v15, %v11474_v53  ;;  %9658 = vmatprep.mubr.msk.bf16.mxu0 %vm2312_vm10, %v5603_v21 }
 0x489   : > { %v11482_v2 = vpop.permute.xlu0 %11481  ;;  %v5604_v30 = vpack.c.bf16 %v5580_v58, %v5579_v41  ;;  %v5422_v7 = vsel %vm2078_vm4, %v5390_v31, %v11479_v34  ;;  %v5421_v51 = vsel %vm2078_vm4, %v5389_v22, %v11478_v18 }
 0x48a   : > { %v11487_v62 = vpop.permute.xlu1 %11486  ;;  %v11484_v35 = vunpack.i.h.bf16 %v11482_v2  ;;  %v11483_v50 = vunpack.i.l.bf16 %v11482_v2 }
 0x48b   : > { %9659 = vmatmul.mubr.msk.bf16.gmra.mrb[28].mxu0 %vm2312_vm10, %v5604_v30  ;;  %v11489_v49 = vunpack.i.h.bf16 %v11487_v62  ;;  %v11488_v44 = vunpack.i.l.bf16 %v11487_v62 }
 0x48c   : > { %v5423_v33 = vsel %vm2078_vm4, %v5391_v28, %v11483_v50  ;;  %v5424_v11 = vsel %vm2078_vm4, %v5392_v47, %v11484_v35  ;;  %v11134_v47 = vunpack.i.h.bf16 %v16390_v38 }
 0x48d   : > { %v11492_v61 = vpop.permute.xlu0 %11491  ;;  %v5453_v8 = vsel %vm2111_vm5, %v5421_v51, %v11488_v44  ;;  %v5454_v23 = vsel %vm2111_vm5, %v5422_v7, %v11489_v49  ;;  %v11133_v7 = vunpack.i.l.bf16 %v16390_v38 }
 0x48e   : > { %v11497_v16 = vpop.permute.xlu1 %11496  ;;  %v11493_v36 = vunpack.i.l.bf16 %v11492_v61  ;;  %v11494_v27 = vunpack.i.h.bf16 %v11492_v61  ;;  %v5362_v38 = vsel %vm611_vm0, %v11134_v47, %v16479_v43 }
 0x48f   : > { %v11499_v29 = vunpack.i.h.bf16 %v11497_v16  ;;  %v11498_v46 = vunpack.i.l.bf16 %v11497_v16 }
 0x490   : > { %v5455_v21 = vsel %vm2111_vm5, %v5423_v33, %v11493_v36  ;;  %v5456_v17 = vsel %vm2111_vm5, %v5424_v11, %v11494_v27  ;;  %v11139_v36 = vunpack.i.h.bf16 %v16392_v20  ;;  %v11219_v33 = vunpack.i.h.bf16 %v16488_v40 }
 0x491   : > { %v11502_v12 = vpop.permute.xlu0 %11501  ;;  %v5485_v39 = vsel %vm2144_vm6, %v5453_v8, %v11498_v46  ;;  %v5486_v5 = vsel %vm2144_vm6, %v5454_v23, %v11499_v29  ;;  %v11138_v29 = vunpack.i.l.bf16 %v16392_v20  ;;  %v5361_v23 = vsel %vm611_vm0, %v11133_v7, %v16477_v59 }
 0x492   : > { %v11507_v57 = vpop.permute.xlu1 %11506  ;;  %v11503_v26 = vunpack.i.l.bf16 %v11502_v12  ;;  %v11504_v53 = vunpack.i.h.bf16 %v11502_v12 }
 0x493   : > { %v11509_v1 = vunpack.i.h.bf16 %v11507_v57  ;;  %v11508_v56 = vunpack.i.l.bf16 %v11507_v57  ;;  %v5363_v27 = vsel %vm611_vm0, %v11138_v29, %v16521_v10 }
 0x494   : > { %v5487_v25 = vsel %vm2144_vm6, %v5455_v21, %v11503_v26  ;;  %v5488_v13 = vsel %vm2144_vm6, %v5456_v17, %v11504_v53 }
 0x495   : > { %v11512_v24 = vpop.permute.xlu0 %11511  ;;  %v5517_v3 = vsel %vm2177_vm7, %v5485_v39, %v11508_v56  ;;  %v5518_v15 = vsel %vm2177_vm7, %v5486_v5, %v11509_v1  ;;  %v11214_v1 = vunpack.i.h.bf16 %v16486_v4  ;;  %v11213_v56 = vunpack.i.l.bf16 %v16486_v4 }
 0x496   : > { %v11517_v9 = vpop.permute.xlu1 %11516  ;;  %v11513_v60 = vunpack.i.l.bf16 %v11512_v24  ;;  %v11514_v41 = vunpack.i.h.bf16 %v11512_v24 }
 0x497   : > { %v11519_v32 = vunpack.i.h.bf16 %v11517_v9  ;;  %v11518_v6 = vunpack.i.l.bf16 %v11517_v9  ;;  %v11218_v9 = vunpack.i.l.bf16 %v16488_v40  ;;  %v5364_v40 = vsel %vm611_vm0, %v11139_v36, %v16519_v42 }
 0x498   : > { %v5519_v55 = vsel %vm2177_vm7, %v5487_v25, %v11513_v60  ;;  %v5520_v34 = vsel %vm2177_vm7, %v5488_v13, %v11514_v41  ;;  %v5393_v5 = vsel %vm2045_vm2, %v5361_v23, %v11213_v56  ;;  %v5394_v53 = vsel %vm2045_vm2, %v5362_v38, %v11214_v1 }
 0x499   : > { %v11522_v52 = vpop.permute.xlu0 %11521  ;;  %v5549_v0 = vsel %vm2210_vm8, %v5517_v3, %v11518_v6  ;;  %v5550_v16 = vsel %vm2210_vm8, %v5518_v15, %v11519_v32  ;;  %v5395_v43 = vsel %vm2045_vm2, %v5363_v27, %v11218_v9  ;;  %v5396_v59 = vsel %vm2045_vm2, %v5364_v40, %v11219_v33 }
 0x49a   : > { %v11527_v58 = vpop.permute.xlu1 %11526  ;;  %v11524_v2 = vunpack.i.h.bf16 %v11522_v52  ;;  %v11523_v30 = vunpack.i.l.bf16 %v11522_v52 }
 0x49b   : > { %v11529_v62 = vunpack.i.h.bf16 %v11527_v58  ;;  %v11528_v61 = vunpack.i.l.bf16 %v11527_v58 }
 0x49c   : > { %v5551_v18 = vsel %vm2210_vm8, %v5519_v55, %v11523_v30  ;;  %v5552_v57 = vsel %vm2210_vm8, %v5520_v34, %v11524_v2 }
 0x49d   : > { %v5581_v48 = vsel %vm2243_vm9, %v5549_v0, %v11528_v61  ;;  %v5582_v54 = vsel %vm2243_vm9, %v5550_v16, %v11529_v62  ;;  %v11532_v37 = vpop.permute.xlu0 %11531 }
 0x49e   : > { %v11534_v12 = vunpack.i.h.bf16 %v11532_v37  ;;  %v11533_v19 = vunpack.i.l.bf16 %v11532_v37  ;;  %v11537_v45 = vpop.permute.xlu1 %11536  ;;  %v5605_v14 = vpack.c.bf16 %v5582_v54, %v5581_v48 }
 0x49f   : > { %v11539_v11 = vunpack.i.h.bf16 %v11537_v45  ;;  %v11538_v20 = vunpack.i.l.bf16 %v11537_v45 }
 0x4a0   : > { %v5583_v35 = vsel %vm2243_vm9, %v5551_v18, %v11533_v19  ;;  %v5584_v50 = vsel %vm2243_vm9, %v5552_v57, %v11534_v12  ;;  %9662 = vmatprep.mubr.msk.bf16.mxu0 %vm2312_vm10, %v5605_v14 }
 0x4a1   : > { %v11542_v49 = vpop.permute.xlu0 %11541  ;;  %v5606_v44 = vpack.c.bf16 %v5584_v50, %v5583_v35  ;;  %v5426_v10 = vsel %vm2078_vm4, %v5394_v53, %v11539_v11  ;;  %v5425_v41 = vsel %vm2078_vm4, %v5393_v5, %v11538_v20 }
 0x4a2   : > { %v11547_v63 = vpop.permute.xlu1 %11546  ;;  %v11544_v32 = vunpack.i.h.bf16 %v11542_v49  ;;  %v11543_v6 = vunpack.i.l.bf16 %v11542_v49 }
 0x4a3   : > { %9663 = vmatmul.mubr.msk.bf16.gmra.mrb[32].mxu0 %vm2312_vm10, %v5606_v44  ;;  %v16921_v22 = vpop.f32.mrb[16].mxu1  ;;  %v11549_v4 = vunpack.i.h.bf16 %v11547_v63  ;;  %v11548_v39 = vunpack.i.l.bf16 %v11547_v63 }
 0x4a4   : > { %v16923_v31 = vpop.f32.mrb[17].mxu1  ;;  %v5427_v61 = vsel %vm2078_vm4, %v5395_v43, %v11543_v6  ;;  %v5428_v17 = vsel %vm2078_vm4, %v5396_v59, %v11544_v32 }
 0x4a5   : > { %v16925_v28 = vpop.permute.xlu0 %11551  ;;  %v16930_v46 = vpop.f32.mrb[18].mxu1  ;;  %v5457_v25 = vsel %vm2111_vm5, %v5425_v41, %v11548_v39  ;;  %v5458_v0 = vsel %vm2111_vm5, %v5426_v10, %v11549_v4 }
 0x4a6   : > { %v11557_v24 = vpop.permute.xlu1 %11556  ;;  %v16932_v51 = vpop.f32.mrb[19].mxu1  ;;  %v11553_v42 = vunpack.i.l.bf16 %v16925_v28  ;;  %v11554_v13 = vunpack.i.h.bf16 %v16925_v28 }
 0x4a7   : > { %v11559_v52 = vunpack.i.h.bf16 %v11557_v24  ;;  %v11558_v21 = vunpack.i.l.bf16 %v11557_v24 }
 0x4a8   : > { %v5459_v14 = vsel %vm2111_vm5, %v5427_v61, %v11553_v42  ;;  %v5460_v47 = vsel %vm2111_vm5, %v5428_v17, %v11554_v13 }
 0x4a9   : > { %v11562_v8 = vpop.permute.xlu0 %11561  ;;  %v5489_v37 = vsel %vm2144_vm6, %v5457_v25, %v11558_v21  ;;  %v5490_v34 = vsel %vm2144_vm6, %v5458_v0, %v11559_v52  ;;  %v19593_v0 = vld [vmem:[#allocation85_spill] sm:$0xff] }
 0x4aa   : > { %v11567_v26 = vpop.permute.xlu1 %11566  ;;  %v11563_v55 = vunpack.i.l.bf16 %v11562_v8  ;;  %v11564_v12 = vunpack.i.h.bf16 %v11562_v8  ;;  %v11224_v13 = vunpack.i.h.bf16 %v19593_v0 }
 0x4ab   : > { %v16950_v60 = vpop.f32.mrb[20].mxu1  ;;  %v11569_v58 = vunpack.i.h.bf16 %v11567_v26  ;;  %v11568_v2 = vunpack.i.l.bf16 %v11567_v26 }
 0x4ac   : > { %v16954_v3 = vpop.f32.mrb[21].mxu1  ;;  %v5491_v7 = vsel %vm2144_vm6, %v5459_v14, %v11563_v55  ;;  %v5492_v1 = vsel %vm2144_vm6, %v5460_v47, %v11564_v12  ;;  %v11223_v55 = vunpack.i.l.bf16 %v19593_v0  ;;  %v12627_v14 = vld [vmem:[#allocation3 + $0x121] sm:$0xff] }
 0x4ad   : > { %v11572_v15 = vpop.permute.xlu0 %11571  ;;  %v16958_v30 = vpop.f32.mrb[22].mxu1  ;;  %v5521_v18 = vsel %vm2177_vm7, %v5489_v37, %v11568_v2  ;;  %v5522_v57 = vsel %vm2177_vm7, %v5490_v34, %v11569_v58  ;;  %v19592_v58 = vld [vmem:[#allocation69_spill] sm:$0xff] }
 0x4ae   : > { %v11577_v62 = vpop.permute.xlu1 %11576  ;;  %v16964_v16 = vpop.f32.mrb[23].mxu1  ;;  %v11573_v19 = vunpack.i.l.bf16 %v11572_v15  ;;  %v11574_v35 = vunpack.i.h.bf16 %v11572_v15  ;;  %v19591_v15 = vld [vmem:[#allocation40_spill] sm:$0xff]  ;;  %v11148_v2 = vunpack.i.l.bf16 %v19592_v58  ;;  %v11149_v25 = vunpack.i.h.bf16 %v19592_v58 }
 0x4af   : > { %v11579_v48 = vunpack.i.h.bf16 %v11577_v62  ;;  %v11578_v54 = vunpack.i.l.bf16 %v11577_v62  ;;  %v11144_v41 = vunpack.i.h.bf16 %v19591_v15  ;;  %v11143_v42 = vunpack.i.l.bf16 %v19591_v15 }
 0x4b0   : > { %v5523_v56 = vsel %vm2177_vm7, %v5491_v7, %v11573_v19  ;;  %v5524_v38 = vsel %vm2177_vm7, %v5492_v1, %v11574_v35  ;;  %v12626_v19 = vld [vmem:[#allocation3 + $0x129] sm:$0xff]  ;;  %v12629_v7 = vld [vmem:[#allocation3 + $0x141] sm:$0xff] }
 0x4b1   : > { %v11582_v45 = vpop.permute.xlu0 %11581  ;;  %v5553_v29 = vsel %vm2210_vm8, %v5521_v18, %v11578_v54  ;;  %v5554_v24 = vsel %vm2210_vm8, %v5522_v57, %v11579_v48  ;;  %v19594_v48 = vld [vmem:[#allocation52_spill] sm:$0xff]  ;;  %v5365_v18 = vsel %vm611_vm0, %v11143_v42, %v12627_v14  ;;  %v12628_v57 = vld [vmem:[#allocation3 + $0x139] sm:$0xff] }
 0x4b2   : > { %v11587_v50 = vpop.permute.xlu1 %11586  ;;  %v11584_v49 = vunpack.i.h.bf16 %v11582_v45  ;;  %v11583_v44 = vunpack.i.l.bf16 %v11582_v45  ;;  %v11228_v54 = vunpack.i.l.bf16 %v19594_v48  ;;  %v11229_v37 = vunpack.i.h.bf16 %v19594_v48 }
 0x4b3   : > { %v11589_v63 = vunpack.i.h.bf16 %v11587_v50  ;;  %v11588_v28 = vunpack.i.l.bf16 %v11587_v50  ;;  %v16976_v36 = vpop.f32.mrb[24].mxu1  ;;  %v5366_v45 = vsel %vm611_vm0, %v11144_v41, %v12626_v19  ;;  %v5367_v35 = vsel %vm611_vm0, %v11148_v2, %v12628_v57 }
 0x4b4   : > { %v16982_v11 = vpop.f32.mrb[25].mxu1  ;;  %v5555_v6 = vsel %vm2210_vm8, %v5523_v56, %v11583_v44  ;;  %v5556_v4 = vsel %vm2210_vm8, %v5524_v38, %v11584_v49  ;;  %v5398_v1 = vsel %vm2045_vm2, %v5366_v45, %v11224_v13  ;;  %v5399_v56 = vsel %vm2045_vm2, %v5367_v35, %v11228_v54 }
 0x4b5   : > { %v5585_v9 = vsel %vm2243_vm9, %v5553_v29, %v11588_v28  ;;  %v5586_v33 = vsel %vm2243_vm9, %v5554_v24, %v11589_v63  ;;  %v11592_v8 = vpop.permute.xlu0 %11591  ;;  %v16985_v20 = vpop.f32.mrb[26].mxu1  ;;  %v5368_v29 = vsel %vm611_vm0, %v11149_v25, %v12629_v7  ;;  %v5397_v24 = vsel %vm2045_vm2, %v5365_v18, %v11223_v55 }
 0x4b6   : > { %v11594_v23 = vunpack.i.h.bf16 %v11592_v8  ;;  %v11593_v27 = vunpack.i.l.bf16 %v11592_v8  ;;  %v11597_v26 = vpop.permute.xlu1 %11596  ;;  %v5607_v32 = vpack.c.bf16 %v5586_v33, %v5585_v9  ;;  %v16989_v39 = vpop.f32.mrb[27].mxu1  ;;  %v5400_v33 = vsel %vm2045_vm2, %v5368_v29, %v11229_v37 }
 0x4b7   : > { %v11599_v34 = vunpack.i.h.bf16 %v11597_v26  ;;  %v11598_v50 = vunpack.i.l.bf16 %v11597_v26 }
 0x4b8   : > { %v5587_v40 = vsel %vm2243_vm9, %v5555_v6, %v11593_v27  ;;  %v5588_v5 = vsel %vm2243_vm9, %v5556_v4, %v11594_v23  ;;  %9666 = vmatprep.mubr.msk.bf16.mxu0 %vm2312_vm10, %v5607_v32 }
 0x4b9   : > { %v11602_v53 = vpop.permute.xlu0 %11601  ;;  %v5608_v43 = vpack.c.bf16 %v5588_v5, %v5587_v40  ;;  %v5430_v8 = vsel %vm2078_vm4, %v5398_v1, %v11599_v34  ;;  %v5429_v32 = vsel %vm2078_vm4, %v5397_v24, %v11598_v50 }
 0x4ba   : > { %v11607_v59 = vpop.permute.xlu1 %11606  ;;  %v11604_v44 = vunpack.i.h.bf16 %v11602_v53  ;;  %v11603_v63 = vunpack.i.l.bf16 %v11602_v53 }
 0x4bb   : > { %9667 = vmatmul.mubr.msk.bf16.gmra.mrb[36].mxu0 %vm2312_vm10, %v5608_v43  ;;  %v16995_v10 = vpop.f32.mrb[28].mxu1  ;;  %v11609_v28 = vunpack.i.h.bf16 %v11607_v59  ;;  %v11608_v47 = vunpack.i.l.bf16 %v11607_v59 }
 0x4bc   : > { %v16997_v52 = vpop.f32.mrb[29].mxu1  ;;  %v5431_v43 = vsel %vm2078_vm4, %v5399_v56, %v11603_v63  ;;  %v5432_v59 = vsel %vm2078_vm4, %v5400_v33, %v11604_v44 }
 0x4bd   : > { %v16999_v21 = vpop.permute.xlu0 %11611  ;;  %v17004_v61 = vpop.f32.mrb[30].mxu1  ;;  %v5461_v15 = vsel %vm2111_vm5, %v5429_v32, %v11608_v47  ;;  %v5462_v41 = vsel %vm2111_vm5, %v5430_v8, %v11609_v28 }
 0x4be   : > { %v11617_v62 = vpop.permute.xlu1 %11616  ;;  %v17006_v17 = vpop.f32.mrb[31].mxu1  ;;  %v11613_v6 = vunpack.i.l.bf16 %v16999_v21  ;;  %v11614_v58 = vunpack.i.h.bf16 %v16999_v21 }
 0x4bf   : > { %v11619_v38 = vunpack.i.h.bf16 %v11617_v62  ;;  %v11618_v23 = vunpack.i.l.bf16 %v11617_v62 }
 0x4c0   : > { %v5463_v37 = vsel %vm2111_vm5, %v5431_v43, %v11613_v6  ;;  %v5464_v50 = vsel %vm2111_vm5, %v5432_v59, %v11614_v58 }
 0x4c1   : > { %v11622_v12 = vpop.permute.xlu0 %11621  ;;  %v5493_v0 = vsel %vm2144_vm6, %v5461_v15, %v11618_v23  ;;  %v5494_v13 = vsel %vm2144_vm6, %v5462_v41, %v11619_v38 }
 0x4c2   : > { %v11627_v49 = vpop.permute.xlu1 %11626  ;;  %v11623_v2 = vunpack.i.l.bf16 %v11622_v12  ;;  %v11624_v55 = vunpack.i.h.bf16 %v11622_v12 }
 0x4c3   : > { %v17020_v9 = vpop.f32.mrb[32].mxu1  ;;  %v11629_v4 = vunpack.i.h.bf16 %v11627_v49  ;;  %v11628_v40 = vunpack.i.l.bf16 %v11627_v49 }
 0x4c4   : > { %v17024_v27 = vpop.f32.mrb[33].mxu1  ;;  %v5495_v49 = vsel %vm2144_vm6, %v5463_v37, %v11623_v2  ;;  %v5496_v28 = vsel %vm2144_vm6, %v5464_v50, %v11624_v55 }
 0x4c5   : > { %v11632_v26 = vpop.permute.xlu0 %11631  ;;  %v17028_v53 = vpop.f32.mrb[34].mxu1  ;;  %v5525_v34 = vsel %vm2177_vm7, %v5493_v0, %v11628_v40  ;;  %v5526_v19 = vsel %vm2177_vm7, %v5494_v13, %v11629_v4  ;;  %v19595_v13 = vld [vmem:[#allocation66_spill] sm:$0xff] }
 0x4c6   : > { %v11637_v5 = vpop.permute.xlu1 %11636  ;;  %v17034_v42 = vpop.f32.mrb[35].mxu1  ;;  %v11633_v48 = vunpack.i.l.bf16 %v11632_v26  ;;  %v11634_v45 = vunpack.i.h.bf16 %v11632_v26  ;;  %v11154_v55 = vunpack.i.h.bf16 %v19595_v13 }
 0x4c7   : > { %v11639_v62 = vunpack.i.h.bf16 %v11637_v5  ;;  %v11638_v25 = vunpack.i.l.bf16 %v11637_v5 }
 0x4c8   : > { %v5527_v47 = vsel %vm2177_vm7, %v5495_v49, %v11633_v48  ;;  %v5528_v56 = vsel %vm2177_vm7, %v5496_v28, %v11634_v45  ;;  %v11153_v48 = vunpack.i.l.bf16 %v19595_v13  ;;  %v12631_v28 = vld [vmem:[#allocation3 + $0x151] sm:$0xff] }
 0x4c9   : > { %v11642_v54 = vpop.permute.xlu0 %11641  ;;  %v5557_v12 = vsel %vm2210_vm8, %v5525_v34, %v11638_v25  ;;  %v5558_v44 = vsel %vm2210_vm8, %v5526_v19, %v11639_v62  ;;  %v19597_v19 = vld [vmem:[#allocation91_spill] sm:$0xff] }
 0x4ca   : > { %v11647_v14 = vpop.permute.xlu1 %11646  ;;  %v11644_v18 = vunpack.i.h.bf16 %v11642_v54  ;;  %v11643_v21 = vunpack.i.l.bf16 %v11642_v54  ;;  %v19596_v54 = vld [vmem:[#allocation42_spill] sm:$0xff]  ;;  %v11234_v45 = vunpack.i.h.bf16 %v19597_v19 }
 0x4cb   : > { %v11649_v57 = vunpack.i.h.bf16 %v11647_v14  ;;  %v11648_v35 = vunpack.i.l.bf16 %v11647_v14  ;;  %v17046_v63 = vpop.f32.mrb[36].mxu1  ;;  %v11159_v37 = vunpack.i.h.bf16 %v19596_v54  ;;  %v11158_v34 = vunpack.i.l.bf16 %v19596_v54 }
 0x4cc   : > { %v17052_v24 = vpop.f32.mrb[37].mxu1  ;;  %v5559_v32 = vsel %vm2210_vm8, %v5527_v47, %v11643_v21  ;;  %v5560_v6 = vsel %vm2210_vm8, %v5528_v56, %v11644_v18  ;;  %v11233_v14 = vunpack.i.l.bf16 %v19597_v19  ;;  %v5369_v47 = vsel %vm611_vm0, %v11153_v48, %v12631_v28  ;;  %v12632_v56 = vld [vmem:[#allocation3 + $0x171] sm:$0xff] }
 0x4cd   : > { %v5589_v7 = vsel %vm2243_vm9, %v5557_v12, %v11648_v35  ;;  %v5590_v29 = vsel %vm2243_vm9, %v5558_v44, %v11649_v57  ;;  %v11652_v1 = vpop.permute.xlu0 %11651  ;;  %v17055_v23 = vpop.f32.mrb[38].mxu1  ;;  %v12630_v12 = vld [vmem:[#allocation3 + $0x159] sm:$0xff] }
 0x4ce   : > { %v11654_v33 = vunpack.i.h.bf16 %v11652_v1  ;;  %v11653_v8 = vunpack.i.l.bf16 %v11652_v1  ;;  %v11657_v38 = vpop.permute.xlu1 %11656  ;;  %v5609_v26 = vpack.c.bf16 %v5590_v29, %v5589_v7  ;;  %v17059_v4 = vpop.f32.mrb[39].mxu1  ;;  %v5370_v44 = vsel %vm611_vm0, %v11154_v55, %v12630_v12 }
 0x4cf   : > { %v11659_v21 = vunpack.i.h.bf16 %v11657_v38  ;;  %v11658_v57 = vunpack.i.l.bf16 %v11657_v38  ;;  %v5401_v38 = vsel %vm2045_vm2, %v5369_v47, %v11233_v14 }
 0x4d0   : > { %v5591_v40 = vsel %vm2243_vm9, %v5559_v32, %v11653_v8  ;;  %v5592_v5 = vsel %vm2243_vm9, %v5560_v6, %v11654_v33  ;;  %9670 = vmatprep.mubr.msk.bf16.mxu0 %vm2312_vm10, %v5609_v26  ;;  %v5372_v33 = vsel %vm611_vm0, %v11159_v37, %v12632_v56  ;;  %v12633_v8 = vld [vmem:[#allocation3 + $0x169] sm:$0xff]  ;;  %v5402_v32 = vsel %vm2045_vm2, %v5370_v44, %v11234_v45 }
 0x4d1   : > { %v11662_v43 = vpop.permute.xlu0 %11661  ;;  %v5610_v59 = vpack.c.bf16 %v5592_v5, %v5591_v40  ;;  %v5371_v26 = vsel %vm611_vm0, %v11158_v34, %v12633_v8 }
 0x4d2   : > { %v11667_v15 = vpop.permute.xlu1 %11666  ;;  %v11664_v50 = vunpack.i.h.bf16 %v11662_v43  ;;  %v11663_v49 = vunpack.i.l.bf16 %v11662_v43  ;;  %v5403_v5 = vsel %vm2045_vm2, %v5371_v26, %v11658_v57  ;;  %v5404_v43 = vsel %vm2045_vm2, %v5372_v33, %v11659_v21 }
 0x4d3   : > { %9671 = vmatmul.mubr.msk.bf16.gmra.mrb[40].mxu0 %vm2312_vm10, %v5610_v59  ;;  %v17065_v41 = vpop.f32.mrb[40].mxu1  ;;  %v11669_v7 = vunpack.i.h.bf16 %v11667_v15  ;;  %v11668_v29 = vunpack.i.l.bf16 %v11667_v15 }
 0x4d4   : > { %v17067_v58 = vpop.f32.mrb[41].mxu1  ;;  %v5433_v48 = vsel %vm2078_vm4, %v5401_v38, %v11663_v49  ;;  %v5434_v54 = vsel %vm2078_vm4, %v5402_v32, %v11664_v50 }
 0x4d5   : > { %v11672_v2 = vpop.permute.xlu0 %11671  ;;  %v17069_v25 = vpop.f32.mrb[42].mxu1  ;;  %v5435_v45 = vsel %vm2078_vm4, %v5403_v5, %v11668_v29  ;;  %v5436_v14 = vsel %vm2078_vm4, %v5404_v43, %v11669_v7  ;;  %vm7772_vm4 = vcmask 588800  }
 0x4d6   : > { %v11677_v62 = vpop.permute.xlu1 %11676  ;;  %v17071_v0 = vpop.f32.mrb[43].mxu1  ;;  %v11674_v59 = vunpack.i.h.bf16 %v11672_v2  ;;  %v11673_v15 = vunpack.i.l.bf16 %v11672_v2 }
 0x4d7   : > { %v11679_v37 = vunpack.i.h.bf16 %v11677_v62  ;;  %v11678_v34 = vunpack.i.l.bf16 %v11677_v62 }
 0x4d8   : > { %v5465_v56 = vsel %vm2111_vm5, %v5433_v48, %v11673_v15  ;;  %v5466_v49 = vsel %vm2111_vm5, %v5434_v54, %v11674_v59 }
 0x4d9   : > { %v11682_v18 = vpop.permute.xlu0 %11681  ;;  %v5467_v8 = vsel %vm2111_vm5, %v5435_v45, %v11678_v34  ;;  %v5468_v29 = vsel %vm2111_vm5, %v5436_v14, %v11679_v37 }
 0x4da   : > { %v11687_v35 = vpop.permute.xlu1 %11686  ;;  %v11684_v57 = vunpack.i.h.bf16 %v11682_v18  ;;  %v11683_v12 = vunpack.i.l.bf16 %v11682_v18 }
 0x4db   : > { %v17081_v1 = vpop.f32.mrb[44].mxu1  ;;  %v11689_v21 = vunpack.i.h.bf16 %v11687_v35  ;;  %v11688_v44 = vunpack.i.l.bf16 %v11687_v35 }
 0x4dc   : > { %v17087_v6 = vpop.f32.mrb[45].mxu1  ;;  %v5497_v18 = vsel %vm2144_vm6, %v5465_v56, %v11683_v12  ;;  %v5498_v35 = vsel %vm2144_vm6, %v5466_v49, %v11684_v57 }
 0x4dd   : > { %v11692_v40 = vpop.permute.xlu0 %11691  ;;  %v17091_v55 = vpop.f32.mrb[46].mxu1  ;;  %v5500_v5 = vsel %vm2144_vm6, %v5468_v29, %v11689_v21 }
 0x4de   : > { %v11697_v13 = vpop.permute.xlu1 %11696  ;;  %v17095_v19 = vpop.f32.mrb[47].mxu1  ;;  %v11694_v2 = vunpack.i.h.bf16 %v11692_v40  ;;  %v11693_v28 = vunpack.i.l.bf16 %v11692_v40  ;;  %v5499_v40 = vsel %vm2144_vm6, %v5467_v8, %v11688_v44 }
 0x4df   : > { %v11699_v50 = vunpack.i.h.bf16 %v11697_v13  ;;  %v11698_v33 = vunpack.i.l.bf16 %v11697_v13 }
 0x4e0   : > { %v5529_v43 = vsel %vm2177_vm7, %v5497_v18, %v11693_v28  ;;  %v5530_v59 = vsel %vm2177_vm7, %v5498_v35, %v11694_v2 }
 0x4e1   : > { %v11702_v47 = vpop.permute.xlu0 %11701  ;;  %v5531_v13 = vsel %vm2177_vm7, %v5499_v40, %v11698_v33  ;;  %v5532_v48 = vsel %vm2177_vm7, %v5500_v5, %v11699_v50 }
 0x4e2   : > { %v11707_v62 = vpop.permute.xlu1 %11706  ;;  %v11704_v26 = vunpack.i.h.bf16 %v11702_v47  ;;  %v11703_v7 = vunpack.i.l.bf16 %v11702_v47 }
 0x4e3   : > { %v11709_v38 = vunpack.i.h.bf16 %v11707_v62  ;;  %v11708_v32 = vunpack.i.l.bf16 %v11707_v62 }
 0x4e4   : > { %v5561_v45 = vsel %vm2210_vm8, %v5529_v43, %v11703_v7  ;;  %v5562_v14 = vsel %vm2210_vm8, %v5530_v59, %v11704_v26 }
 0x4e5   : > { %v11712_v15 = vpop.permute.xlu0 %11711  ;;  %v5563_v21 = vsel %vm2210_vm8, %v5531_v13, %v11708_v32  ;;  %v5564_v44 = vsel %vm2210_vm8, %v5532_v48, %v11709_v38 }
 0x4e6   : > { %v11714_v54 = vunpack.i.h.bf16 %v11712_v15  ;;  %v11713_v37 = vunpack.i.l.bf16 %v11712_v15  ;;  %v11717_v34 = vpop.permute.xlu1 %11716 }
 0x4e7   : > { %v11719_v57 = vunpack.i.h.bf16 %v11717_v34  ;;  %v11718_v12 = vunpack.i.l.bf16 %v11717_v34 }
 0x4e8   : > { %v5593_v2 = vsel %vm2243_vm9, %v5561_v45, %v11713_v37  ;;  %v5594_v28 = vsel %vm2243_vm9, %v5562_v14, %v11714_v54  ;;  %v17144_v45 = vld [vmem:[%s18874_s5] ss:$0 sm:$0xff] }
 0x4e9   : > { %v5595_v47 = vsel %vm2243_vm9, %v5563_v21, %v11718_v12  ;;  %v5596_v56 = vsel %vm2243_vm9, %v5564_v44, %v11719_v57  ;;  %v5611_v49 = vpack.c.bf16 %v5594_v28, %v5593_v2  ;;  %v17149_v57 = vld [vmem:[%s18875_s6] ss:$0 sm:$0xff] }
 0x4ea   : > { %v5612_v50 = vpack.c.bf16 %v5596_v56, %v5595_v47 }
 0x4eb   : > { %9674 = vmatprep.mubr.msk.bf16.mxu0 %vm2312_vm10, %v5611_v49 }
 0x4ec   : > { %9675 = vmatmul.mubr.msk.bf16.gmra.mrb[44].mxu0 %vm2312_vm10, %v5612_v50 }
 0x516   : > { %v9648_v33 = vpop.f32.mrb[16].mxu0 }
 0x517   : > { %v5719_v62 = vpop.f32.mrb[17].mxu0 }
 0x518   : > { %5878 = vrot.lane.b32.xlu0 %v5719_v62, %s12644_s22  ;;  %v9649_v8 = vpop.f32.mrb[18].mxu0 }
 0x519   : > { %v5722_v29 = vpop.f32.mrb[19].mxu0 }
 0x51a   : > { %5880 = vrot.lane.b32.xlu1 %v5722_v29, %s12644_s22 }
 0x51c   : > { %5882 = vrot.lane.b32.xlu0 %v9648_v33, %s12644_s22 }
 0x51e   : > { %5884 = vrot.lane.b32.xlu1 %v9649_v8, %s12644_s22 }
 0x52e   : > { %v9652_v26 = vpop.f32.mrb[20].mxu0 }
 0x52f   : > { %v5735_v7 = vpop.f32.mrb[21].mxu0 }
 0x530   : > { %5886 = vrot.lane.b32.xlu0 %v5735_v7, %s12644_s22  ;;  %v9653_v18 = vpop.f32.mrb[22].mxu0 }
 0x531   : > { %v5738_v35 = vpop.f32.mrb[23].mxu0 }
 0x532   : > { %5888 = vrot.lane.b32.xlu1 %v5738_v35, %s12644_s22 }
 0x534   : > { %5890 = vrot.lane.b32.xlu0 %v9652_v26, %s12644_s22 }
 0x536   : > { %5892 = vrot.lane.b32.xlu1 %v9653_v18, %s12644_s22 }
 0x546   : > { %v9656_v38 = vpop.f32.mrb[24].mxu0 }
 0x547   : > { %v5751_v32 = vpop.f32.mrb[25].mxu0 }
 0x548   : > { %5894 = vrot.lane.b32.xlu0 %v5751_v32, %s12644_s22  ;;  %v9657_v40 = vpop.f32.mrb[26].mxu0 }
 0x549   : > { %v5754_v5 = vpop.f32.mrb[27].mxu0 }
 0x54a   : > { %5896 = vrot.lane.b32.xlu1 %v5754_v5, %s12644_s22 }
 0x54c   : > { %5898 = vrot.lane.b32.xlu0 %v9656_v38, %s12644_s22 }
 0x54e   : > { %5900 = vrot.lane.b32.xlu1 %v9657_v40, %s12644_s22 }
 0x55e   : > { %v9660_v43 = vpop.f32.mrb[28].mxu0 }
 0x55f   : > { %v5767_v59 = vpop.f32.mrb[29].mxu0 }
 0x560   : > { %5902 = vrot.lane.b32.xlu0 %v5767_v59, %s12644_s22  ;;  %v9661_v15 = vpop.f32.mrb[30].mxu0 }
 0x561   : > { %v5770_v13 = vpop.f32.mrb[31].mxu0 }
 0x562   : > { %5904 = vrot.lane.b32.xlu1 %v5770_v13, %s12644_s22 }
 0x564   : > { %5906 = vrot.lane.b32.xlu0 %v9660_v43, %s12644_s22 }
 0x566   : > { %5908 = vrot.lane.b32.xlu1 %v9661_v15, %s12644_s22 }
 0x576   : > { %v9664_v48 = vpop.f32.mrb[32].mxu0 }
 0x577   : > { %v5783_v54 = vpop.f32.mrb[33].mxu0 }
 0x578   : > { %5910 = vrot.lane.b32.xlu0 %v5783_v54, %s12644_s22  ;;  %v9665_v37 = vpop.f32.mrb[34].mxu0 }
 0x579   : > { %v5786_v34 = vpop.f32.mrb[35].mxu0 }
 0x57a   : > { %5912 = vrot.lane.b32.xlu1 %v5786_v34, %s12644_s22 }
 0x57c   : > { %5914 = vrot.lane.b32.xlu0 %v9664_v48, %s12644_s22 }
 0x57e   : > { %5916 = vrot.lane.b32.xlu1 %v9665_v37, %s12644_s22 }
 0x58a   : > { %v5879_v14 = vpop.permute.xlu0 %5878 }
 0x58b   : > { %v5974_v12 = vsel %vm611_vm0, %v16923_v31, %v5879_v14 }
 0x58c   : > { %v6013_v21 = vmul.f32 %v17144_v45, %v5974_v12  ;;  %v5881_v44 = vpop.permute.xlu1 %5880 }
 0x58d   : > { %v5975_v2 = vsel %vm611_vm0, %v16932_v51, %v5881_v44 }
 0x58e   : > { %v6052_v28 = vadd.f32 %v17149_v57, %v6013_v21  ;;  %v6014_v47 = vmul.f32 %v17144_v45, %v5975_v2  ;;  %v5883_v56 = vpop.permute.xlu0 %5882  ;;  %v9668_v49 = vpop.f32.mrb[36].mxu0 }
 0x58f   : > { %v5976_v50 = vsel %vm611_vm0, %v16921_v22, %v5883_v56  ;;  %v5799_v33 = vpop.f32.mrb[37].mxu0 }
 0x590   : > { %v6084_v62 = vmax.f32 %v6052_v28, 0.0  ;;  %v6053_v8 = vadd.f32 %v17149_v57, %v6014_v47  ;;  %v6015_v31 = vmul.f32 %v17144_v45, %v5976_v50  ;;  %v5885_v29 = vpop.permute.xlu1 %5884  ;;  %5918 = vrot.lane.b32.xlu0 %v5799_v33, %s12644_s22  ;;  %v9669_v26 = vpop.f32.mrb[38].mxu0 }
 0x591   : > { %v5977_v51 = vsel %vm611_vm0, %v16930_v46, %v5885_v29  ;;  %v5802_v7 = vpop.f32.mrb[39].mxu0 }
 0x592   : > { %6116 = vst.msk [vmem:[#allocation3 + $0x19] sm:$0xff] %vm2045_vm2, %v6084_v62  ;;  %v6085_v18 = vmax.f32 %v6053_v8, 0.0  ;;  %v6054_v35 = vadd.f32 %v17149_v57, %v6015_v31  ;;  %v6016_v22 = vmul.f32 %v17144_v45, %v5977_v51  ;;  %5920 = vrot.lane.b32.xlu1 %v5802_v7, %s12644_s22 }
 0x594   : > { %6117 = vst.msk [vmem:[#allocation3 + $0x21] sm:$0xff] %vm2045_vm2, %v6085_v18  ;;  %v6086_v38 = vmax.f32 %v6054_v35, 0.0  ;;  %v6055_v32 = vadd.f32 %v17149_v57, %v6016_v22  ;;  %5922 = vrot.lane.b32.xlu0 %v9668_v49, %s12644_s22 }
 0x596   : > { %6118 = vst.msk [vmem:[#allocation3 + $0x31] sm:$0xff] %vm2045_vm2, %v6086_v38  ;;  %v6087_v46 = vmax.f32 %v6055_v32, 0.0  ;;  %5924 = vrot.lane.b32.xlu1 %v9669_v26, %s12644_s22 }
 0x598   : > { %6119 = vst.msk [vmem:[#allocation3 + $0x39] sm:$0xff] %vm2045_vm2, %v6087_v46 }
 0x5a2   : > { %v5887_v40 = vpop.permute.xlu0 %5886 }
 0x5a3   : > { %v5978_v5 = vsel %vm611_vm0, %v16954_v3, %v5887_v40 }
 0x5a4   : > { %v6017_v43 = vmul.f32 %v17144_v45, %v5978_v5  ;;  %v5889_v59 = vpop.permute.xlu1 %5888 }
 0x5a5   : > { %v5979_v15 = vsel %vm611_vm0, %v16964_v16, %v5889_v59 }
 0x5a6   : > { %v6056_v13 = vadd.f32 %v17149_v57, %v6017_v43  ;;  %v6018_v48 = vmul.f32 %v17144_v45, %v5979_v15  ;;  %v5891_v54 = vpop.permute.xlu0 %5890  ;;  %v9672_v37 = vpop.f32.mrb[40].mxu0  ;;  %v6180_v15 = vld [vmem:[#allocation3 + $0x1] sm:$0xff] }
 0x5a7   : > { %v5980_v34 = vsel %vm611_vm0, %v16950_v60, %v5891_v54  ;;  %v5815_v14 = vpop.f32.mrb[41].mxu0 }
 0x5a8   : > { %v6088_v12 = vmax.f32 %v6056_v13, 0.0  ;;  %v6057_v21 = vadd.f32 %v17149_v57, %v6018_v48  ;;  %v6019_v3 = vmul.f32 %v17144_v45, %v5980_v34  ;;  %v5893_v44 = vpop.permute.xlu1 %5892  ;;  %5926 = vrot.lane.b32.xlu0 %v5815_v14, %s12644_s22  ;;  %v9673_v2 = vpop.f32.mrb[42].mxu0  ;;  %v6181_v13 = vld [vmem:[#allocation3 + $0x9] sm:$0xff]  ;;  %v17221_v34 = vld [vmem:[#allocation3 + $0x38] sm:$0xff] }
 0x5a9   : > { %v5981_v16 = vsel %vm611_vm0, %v16958_v30, %v5893_v44  ;;  %v5818_v28 = vpop.f32.mrb[43].mxu0  ;;  %v11720_v54 = vpack.i.bf16 %v6181_v13, %v6180_v15  ;;  %v6212_v14 = vld [vmem:[#allocation3 + $0x2] sm:$0xff] }
 0x5aa   : > { %6120 = vst.msk [vmem:[#allocation3 + $0x49] sm:$0xff] %vm2045_vm2, %v6088_v12  ;;  %v6089_v47 = vmax.f32 %v6057_v21, 0.0  ;;  %v6058_v56 = vadd.f32 %v17149_v57, %v6019_v3  ;;  %v6020_v60 = vmul.f32 %v17144_v45, %v5981_v16  ;;  %5928 = vrot.lane.b32.xlu1 %v5818_v28, %s12644_s22  ;;  %v6213_v12 = vld [vmem:[#allocation3 + $0xa] sm:$0xff]  ;;  %v6182_v16 = vld [vmem:[#allocation3 + $0x19] sm:$0xff] }
 0x5ab   : > { %v17225_v21 = vld [vmem:[#allocation3 + $0x30] sm:$0xff]  ;;  %v11725_v44 = vpack.i.bf16 %v6213_v12, %v6212_v14  ;;  %v17231_v28 = vld [vmem:[#allocation3 + $0x20] sm:$0xff] }
 0x5ac   : > { %6121 = vst.msk [vmem:[#allocation3 + $0x51] sm:$0xff] %vm2045_vm2, %v6089_v47  ;;  %v6090_v49 = vmax.f32 %v6058_v56, 0.0  ;;  %v6059_v50 = vadd.f32 %v17149_v57, %v6020_v60  ;;  %5930 = vrot.lane.b32.xlu0 %v9672_v37, %s12644_s22  ;;  %v11730_v3 = vpack.i.bf16 %v17221_v34, %v17225_v21  ;;  %v17234_v56 = vld [vmem:[#allocation3 + $0x18] sm:$0xff] }
 0x5ad   : > { %v6214_v60 = vld [vmem:[#allocation3 + $0x1a] sm:$0xff] }
 0x5ae   : > { %6122 = vst.msk [vmem:[#allocation3 + $0x61] sm:$0xff] %vm2045_vm2, %v6090_v49  ;;  %v6091_v30 = vmax.f32 %v6059_v50, 0.0  ;;  %5932 = vrot.lane.b32.xlu1 %v9673_v2, %s12644_s22  ;;  %v6183_v2 = vld [vmem:[#allocation3 + $0x21] sm:$0xff]  ;;  %v12371_v50 = vld [vmem:[%s18876_s7] sm:$0xff]  }
 0x5af   : > { %v11735_v47 = vpack.i.bf16 %v6183_v2, %v6182_v16  ;;  %v6215_v49 = vld [vmem:[#allocation3 + $0x22] sm:$0xff]  ;;  %9678 = vmatprep.subr.bf16.mxu1 %v12371_v50  ;;  %v12375_v2 = vld [vmem:[%s18876_s7 + $0x20] ss:$0 sps:$4 sm:$0xff]  }
 0x5b0   : > { %6123 = vst.msk [vmem:[#allocation3 + $0x69] sm:$0xff] %vm2045_vm2, %v6091_v30  ;;  %v11745_v30 = vpack.i.bf16 %v17231_v28, %v17234_v56  ;;  %9679 = vmatpush3.bf16.msra.mxu1 %v12371_v50 }
 0x5b1   : > { %v6374_v16 = vld [vmem:[#allocation3 + $0x49] sm:$0xff] }
 0x5b3   : > { %v6407_v50 = vld [vmem:[#allocation3 + $0x52] sm:$0xff] }
 0x5ba   : > { %v5895_v33 = vpop.permute.xlu0 %5894 }
 0x5bb   : > { %v5982_v62 = vsel %vm611_vm0, %v16982_v11, %v5895_v33  ;;  %v11740_v33 = vpack.i.bf16 %v6215_v49, %v6214_v60  ;;  %v19598_v60 = vmov 0.0   ;;  %v6406_v49 = vld [vmem:[#allocation3 + $0x4a] sm:$0xff] }
 0x5bc   : > { %v6021_v8 = vmul.f32 %v17144_v45, %v5982_v62  ;;  %v5897_v31 = vpop.permute.xlu1 %5896 }
 0x5bd   : > { %v5983_v29 = vsel %vm611_vm0, %v16989_v39, %v5897_v31  ;;  %v12372_v31 = vld [vmem:[%s18876_s7 + $0x8] sm:$0xff]  }
 0x5be   : > { %v6060_v26 = vadd.f32 %v17149_v57, %v6021_v8  ;;  %v6022_v51 = vmul.f32 %v17144_v45, %v5983_v29  ;;  %v5899_v7 = vpop.permute.xlu0 %5898  ;;  %v6279_v8 = vld [vmem:[#allocation3 + $0x39] sm:$0xff]  ;;  %9680 = vmatprep.subr.bf16.mxu1 %v12372_v31 }
 0x5bf   : > { %v5984_v18 = vsel %vm611_vm0, %v16976_v36, %v5899_v7  ;;  %v9676_v35 = vpop.f32.mrb[44].mxu0  ;;  %v6278_v7 = vld [vmem:[#allocation3 + $0x31] sm:$0xff]  ;;  %9681 = vmatpush3.bf16.msra.mxu1 %v12372_v31 }
 0x5c0   : > { %v6092_v22 = vmax.f32 %v6060_v26, 0.0  ;;  %v6061_v38 = vadd.f32 %v17149_v57, %v6022_v51  ;;  %v6023_v11 = vmul.f32 %v17144_v45, %v5984_v18  ;;  %v5901_v32 = vpop.permute.xlu1 %5900  ;;  %v5831_v46 = vpop.f32.mrb[45].mxu0 }
 0x5c1   : > { %v5985_v40 = vsel %vm611_vm0, %v16985_v20, %v5901_v32  ;;  %5934 = vrot.lane.b32.xlu0 %v5831_v46, %s12644_s22  ;;  %v9677_v39 = vpop.f32.mrb[46].mxu0  ;;  %v6311_v32 = vld [vmem:[#allocation3 + $0x3a] sm:$0xff] }
 0x5c2   : > { %6124 = vst.msk [vmem:[#allocation3 + $0x79] sm:$0xff] %vm2045_vm2, %v6092_v22  ;;  %v6093_v5 = vmax.f32 %v6061_v38, 0.0  ;;  %v6062_v43 = vadd.f32 %v17149_v57, %v6023_v11  ;;  %v6024_v36 = vmul.f32 %v17144_v45, %v5985_v40  ;;  %v5834_v59 = vpop.f32.mrb[47].mxu0  ;;  %v12373_v46 = vld [vmem:[%s18876_s7 + $0x10] sm:$0xff]  }
 0x5c3   : > { %5936 = vrot.lane.b32.xlu1 %v5834_v59, %s12644_s22  ;;  %9682 = vmatprep.subr.bf16.mxu1 %v12373_v46 }
 0x5c4   : > { %6125 = vst.msk [vmem:[#allocation3 + $0x81] sm:$0xff] %vm2045_vm2, %v6093_v5  ;;  %v6094_v48 = vmax.f32 %v6062_v43, 0.0  ;;  %v6063_v20 = vadd.f32 %v17149_v57, %v6024_v36  ;;  %9683 = vmatpush3.bf16.msra.mxu1 %v12373_v46 }
 0x5c5   : > { %5938 = vrot.lane.b32.xlu0 %v9676_v35, %s12644_s22  ;;  %v11755_v35 = vpack.i.bf16 %v6279_v8, %v6278_v7 }
 0x5c6   : > { %6126 = vst.msk [vmem:[#allocation3 + $0x91] sm:$0xff] %vm2045_vm2, %v6094_v48  ;;  %v6095_v37 = vmax.f32 %v6063_v20, 0.0  ;;  %v17269_v48 = vld [vmem:[#allocation3 + $0x50] sm:$0xff]  ;;  %v12374_v20 = vld [vmem:[%s18876_s7 + $0x18] sm:$0xff]  }
 0x5c7   : > { %5940 = vrot.lane.b32.xlu1 %v9677_v39, %s12644_s22  ;;  %9684 = vmatprep.subr.bf16.mxu1 %v12374_v20  ;;  %s12654_s22 = smov 48  }
 0x5c8   : > { %6127 = vst.msk [vmem:[#allocation3 + $0x99] sm:$0xff] %vm2045_vm2, %v6095_v37  ;;  %v17277_v37 = vld [vmem:[#allocation3 + $0x48] sm:$0xff]  ;;  %9685 = vmatpush3.bf16.msra.mxu1 %v12374_v20 }
 0x5c9   : > { %11721 = vrot.lane.b32.xlu0 %v11720_v54, %s12645_s2  ;;  %v11775_v14 = vpack.i.bf16 %v17269_v48, %v17277_v37  ;;  %9774 = vmatprep.subr.msk.bf16.mxu1 %vm7821_vm12, %v12375_v2  ;;  %v6346_v20 = vld [vmem:[#allocation3 + $0x78] sm:$0xff] }
 0x5cb   : > { %11731 = vrot.lane.b32.xlu1 %v11730_v3, %s12649_s26 }
 0x5cd   : > { %11726 = vrot.lane.b32.xlu0 %v11725_v44, %s12647_s24  ;;  %v6375_v44 = vld [vmem:[#allocation3 + $0x51] sm:$0xff] }
 0x5cf   : > { %11736 = vrot.lane.b32.xlu1 %v11735_v47, %s12645_s2 }
 0x5d1   : > { %11746 = vrot.lane.b32.xlu0 %v11745_v30, %s12649_s26  ;;  %v11800_v30 = vpack.i.bf16 %v6407_v50, %v6406_v49  ;;  %v6411_v49 = vld [vmem:[#allocation3 + $0x82] sm:$0xff] }
 0x5d2   : > { %v5903_v62 = vpop.permute.xlu0 %5902 }
 0x5d3   : > { %v5986_v29 = vsel %vm611_vm0, %v16997_v52, %v5903_v62  ;;  %11741 = vrot.lane.b32.xlu1 %v11740_v33, %s12647_s24  ;;  %v6310_v52 = vld [vmem:[#allocation3 + $0x32] sm:$0xff] }
 0x5d4   : > { %v6025_v26 = vmul.f32 %v17144_v45, %v5986_v29  ;;  %v5905_v51 = vpop.permute.xlu1 %5904  ;;  %v11765_v59 = vpack.i.bf16 %v6311_v32, %v6310_v52 }
 0x5d5   : > { %v5987_v18 = vsel %vm611_vm0, %v17006_v17, %v5905_v51  ;;  %11751 = vrot.lane.b32.xlu0 %v11735_v47, %s12651_s15  ;;  %v7823_v47 = vsel %vm7821_vm12, %v12375_v2, 0 }
 0x5d6   : > { %v6064_v22 = vadd.f32 %v17149_v57, %v6025_v26  ;;  %v6026_v38 = vmul.f32 %v17144_v45, %v5987_v18  ;;  %v5907_v11 = vpop.permute.xlu0 %5906  ;;  %9687 = vmatpush3.bf16.msra.mxu1 %v7823_v47  ;;  %v6251_v18 = vld [vmem:[#allocation3 + $0x68] sm:$0xff]  ;;  %v6410_v47 = vld [vmem:[#allocation3 + $0x7a] sm:$0xff] }
 0x5d7   : > { %v5988_v40 = vsel %vm611_vm0, %v16995_v10, %v5907_v11  ;;  %11756 = vrot.lane.b32.xlu1 %v11755_v35, %s12651_s15  ;;  %9725 = vmatprep.subr.mxu1 %v19598_v60 }
 0x5d8   : > { %v6096_v17 = vmax.f32 %v6064_v22, 0.0  ;;  %v6065_v39 = vadd.f32 %v17149_v57, %v6026_v38  ;;  %v6027_v5 = vmul.f32 %v17144_v45, %v5988_v40  ;;  %v5909_v43 = vpop.permute.xlu1 %5908 }
 0x5d9   : > { %v5989_v36 = vsel %vm611_vm0, %v17004_v61, %v5909_v43  ;;  %11761 = vrot.lane.b32.xlu0 %v11740_v33, %s12653_s25  ;;  %v6282_v43 = vld [vmem:[#allocation3 + $0x61] sm:$0xff] }
 0x5da   : > { %6128 = vst.msk [vmem:[#allocation3 + $0xa9] sm:$0xff] %vm2045_vm2, %v6096_v17  ;;  %v6097_v10 = vmax.f32 %v6065_v39, 0.0  ;;  %v6066_v15 = vadd.f32 %v17149_v57, %v6027_v5  ;;  %v6028_v13 = vmul.f32 %v17144_v45, %v5989_v36  ;;  %v6283_v17 = vld [vmem:[#allocation3 + $0x69] sm:$0xff] }
 0x5db   : > { %11766 = vrot.lane.b32.xlu1 %v11765_v59, %s12653_s25 }
 0x5dc   : > { %6129 = vst.msk [vmem:[#allocation3 + $0xb1] sm:$0xff] %vm2045_vm2, %v6097_v10  ;;  %v6098_v61 = vmax.f32 %v6066_v15, 0.0  ;;  %v6067_v54 = vadd.f32 %v17149_v57, %v6028_v13  ;;  %v6315_v10 = vld [vmem:[#allocation3 + $0x6a] sm:$0xff]  ;;  %v6347_v13 = vld [vmem:[#allocation3 + $0x80] sm:$0xff] }
 0x5dd   : > { %11771 = vrot.lane.b32.xlu0 %v11730_v3, %s12654_s22  ;;  %v11785_v3 = vpack.i.bf16 %v6375_v44, %v6374_v16 }
 0x5de   : > { %6130 = vst.msk [vmem:[#allocation3 + $0xc1] sm:$0xff] %vm2045_vm2, %v6098_v61  ;;  %v6099_v12 = vmax.f32 %v6067_v54, 0.0  ;;  %v11855_v61 = vpack.i.bf16 %v6347_v13, %v6346_v20  ;;  %v6379_v54 = vld [vmem:[#allocation3 + $0x81] sm:$0xff] }
 0x5df   : > { %11776 = vrot.lane.b32.xlu1 %v11775_v14, %s12654_s22 }
 0x5e0   : > { %6131 = vst.msk [vmem:[#allocation3 + $0xc9] sm:$0xff] %vm2045_vm2, %v6099_v12 }
 0x5e1   : > { %11781 = vrot.lane.b32.xlu0 %v11755_v35, %s12655_s1 }
 0x5e3   : > { %11786 = vrot.lane.b32.xlu1 %v11785_v3, %s12655_s1 }
 0x5e5   : > { %11791 = vrot.lane.b32.xlu0 %v11765_v59, %s12656_s20 }
 0x5e7   : > { %11796 = vrot.lane.b32.xlu1 %v11755_v35, %s12645_s2 }
 0x5e9   : > { %11801 = vrot.lane.b32.xlu0 %v11800_v30, %s12656_s20 }
 0x5ea   : > { %v5911_v33 = vpop.permute.xlu0 %5910 }
 0x5eb   : > { %v5990_v62 = vsel %vm611_vm0, %v17024_v27, %v5911_v33  ;;  %11806 = vrot.lane.b32.xlu1 %v11785_v3, %s12645_s2 }
 0x5ec   : > { %v6029_v8 = vmul.f32 %v17144_v45, %v5990_v62  ;;  %v5913_v31 = vpop.permute.xlu1 %5912 }
 0x5ed   : > { %v5991_v29 = vsel %vm611_vm0, %v17034_v42, %v5913_v31  ;;  %11811 = vrot.lane.b32.xlu0 %v11765_v59, %s12647_s24  ;;  %v6250_v42 = vld [vmem:[#allocation3 + $0x60] sm:$0xff] }
 0x5ee   : > { %v6068_v26 = vadd.f32 %v17149_v57, %v6029_v8  ;;  %v6030_v51 = vmul.f32 %v17144_v45, %v5991_v29  ;;  %v5915_v7 = vpop.permute.xlu0 %5914  ;;  %v11825_v32 = vpack.i.bf16 %v6251_v18, %v6250_v42  ;;  %v6314_v59 = vld [vmem:[#allocation3 + $0x62] sm:$0xff]  ;;  %v11880_v8 = vpack.i.bf16 %v6411_v49, %v6410_v47  ;;  %v6287_v42 = vld [vmem:[#allocation3 + $0x99] sm:$0xff] }
 0x5ef   : > { %v5992_v35 = vsel %vm611_vm0, %v17020_v9, %v5915_v7  ;;  %11816 = vrot.lane.b32.xlu1 %v11800_v30, %s12647_s24  ;;  %v11845_v15 = vpack.i.bf16 %v6315_v10, %v6314_v59 }
 0x5f0   : > { %v6100_v27 = vmax.f32 %v6068_v26, 0.0  ;;  %v6069_v22 = vadd.f32 %v17149_v57, %v6030_v51  ;;  %v6031_v38 = vmul.f32 %v17144_v45, %v5992_v35  ;;  %v5917_v11 = vpop.permute.xlu1 %5916 }
 0x5f1   : > { %v5993_v52 = vsel %vm611_vm0, %v17028_v53, %v5917_v11  ;;  %11821 = vrot.lane.b32.xlu0 %v11775_v14, %s12649_s26  ;;  %v11835_v53 = vpack.i.bf16 %v6283_v17, %v6282_v43  ;;  %v6378_v14 = vld [vmem:[#allocation3 + $0x79] sm:$0xff] }
 0x5f2   : > { %6132 = vst.msk [vmem:[#allocation3 + $0xd9] sm:$0xff] %vm2045_vm2, %v6100_v27  ;;  %v6101_v46 = vmax.f32 %v6069_v22, 0.0  ;;  %v6070_v9 = vadd.f32 %v17149_v57, %v6031_v38  ;;  %v6032_v40 = vmul.f32 %v17144_v45, %v5993_v52  ;;  %v11865_v12 = vpack.i.bf16 %v6379_v54, %v6378_v14  ;;  %v6255_v22 = vld [vmem:[#allocation3 + $0x98] sm:$0xff]  ;;  %v6254_v38 = vld [vmem:[#allocation3 + $0x90] sm:$0xff] }
 0x5f3   : > { %11826 = vrot.lane.b32.xlu1 %v11825_v32, %s12649_s26  ;;  %v11905_v11 = vpack.i.bf16 %v6255_v22, %v6254_v38  ;;  %v6286_v52 = vld [vmem:[#allocation3 + $0x91] sm:$0xff] }
 0x5f4   : > { %6133 = vst.msk [vmem:[#allocation3 + $0xe1] sm:$0xff] %vm2045_vm2, %v6101_v46  ;;  %v6102_v39 = vmax.f32 %v6070_v9, 0.0  ;;  %v6071_v5 = vadd.f32 %v17149_v57, %v6032_v40  ;;  %v6318_v46 = vld [vmem:[#allocation3 + $0x92] sm:$0xff]  ;;  %v6319_v9 = vld [vmem:[#allocation3 + $0x9a] sm:$0xff] }
 0x5f5   : > { %11831 = vrot.lane.b32.xlu0 %v11785_v3, %s12651_s15  ;;  %v11925_v40 = vpack.i.bf16 %v6319_v9, %v6318_v46 }
 0x5f6   : > { %6134 = vst.msk [vmem:[#allocation3 + $0xf1] sm:$0xff] %vm2045_vm2, %v6102_v39  ;;  %v6103_v36 = vmax.f32 %v6071_v5, 0.0  ;;  %v6351_v39 = vld [vmem:[#allocation3 + $0xb0] sm:$0xff] }
 0x5f7   : > { %11836 = vrot.lane.b32.xlu1 %v11835_v53, %s12651_s15 }
 0x5f8   : > { %6135 = vst.msk [vmem:[#allocation3 + $0xf9] sm:$0xff] %vm2045_vm2, %v6103_v36  ;;  %v6350_v36 = vld [vmem:[#allocation3 + $0xa8] sm:$0xff] }
 0x5f9   : > { %11841 = vrot.lane.b32.xlu0 %v11800_v30, %s12653_s25  ;;  %v11935_v10 = vpack.i.bf16 %v6351_v39, %v6350_v36 }
 0x5fb   : > { %11846 = vrot.lane.b32.xlu1 %v11845_v15, %s12653_s25 }
 0x5fd   : > { %11851 = vrot.lane.b32.xlu0 %v11825_v32, %s12654_s22  ;;  %v11915_v32 = vpack.i.bf16 %v6287_v42, %v6286_v52 }
 0x5ff   : > { %11856 = vrot.lane.b32.xlu1 %v11855_v61, %s12654_s22 }
 0x601   : > { %11861 = vrot.lane.b32.xlu0 %v11835_v53, %s12655_s1 }
 0x602   : > { %v5919_v44 = vpop.permute.xlu0 %5918 }
 0x603   : > { %v5994_v2 = vsel %vm611_vm0, %v17052_v24, %v5919_v44  ;;  %11866 = vrot.lane.b32.xlu1 %v11865_v12, %s12655_s1  ;;  %v6382_v44 = vld [vmem:[#allocation3 + $0xa9] sm:$0xff] }
 0x604   : > { %v6033_v16 = vmul.f32 %v17144_v45, %v5994_v2  ;;  %v5921_v3 = vpop.permute.xlu1 %5920 }
 0x605   : > { %v5995_v50 = vsel %vm611_vm0, %v17059_v4, %v5921_v3  ;;  %11871 = vrot.lane.b32.xlu0 %v11845_v15, %s12656_s20 }
 0x606   : > { %v6072_v30 = vadd.f32 %v17149_v57, %v6033_v16  ;;  %v6034_v33 = vmul.f32 %v17144_v45, %v5995_v50  ;;  %v5923_v62 = vpop.permute.xlu0 %5922 }
 0x607   : > { %v5996_v24 = vsel %vm611_vm0, %v17046_v63, %v5923_v62  ;;  %11876 = vrot.lane.b32.xlu1 %v11835_v53, %s12645_s2 }
 0x608   : > { %v6104_v31 = vmax.f32 %v6072_v30, 0.0  ;;  %v6073_v29 = vadd.f32 %v17149_v57, %v6034_v33  ;;  %v6035_v26 = vmul.f32 %v17144_v45, %v5996_v24  ;;  %v5925_v51 = vpop.permute.xlu1 %5924  ;;  %v6414_v30 = vld [vmem:[#allocation3 + $0xaa] sm:$0xff]  ;;  %v6415_v33 = vld [vmem:[#allocation3 + $0xb2] sm:$0xff] }
 0x609   : > { %v5997_v4 = vsel %vm611_vm0, %v17055_v23, %v5925_v51  ;;  %11881 = vrot.lane.b32.xlu0 %v11880_v8, %s12656_s20  ;;  %v11960_v62 = vpack.i.bf16 %v6415_v33, %v6414_v30  ;;  %v6259_v24 = vld [vmem:[#allocation3 + $0xc8] sm:$0xff]  ;;  %v6148_v30 = vld [vmem:[#allocation3] sm:$0xff] }
 0x60a   : > { %6136 = vst.msk [vmem:[#allocation3 + $0x109] sm:$0xff] %vm2045_vm2, %v6104_v31  ;;  %v6105_v7 = vmax.f32 %v6073_v29, 0.0  ;;  %v6074_v18 = vadd.f32 %v17149_v57, %v6035_v26  ;;  %v6036_v63 = vmul.f32 %v17144_v45, %v5997_v4  ;;  %v6291_v29 = vld [vmem:[#allocation3 + $0xc9] sm:$0xff]  ;;  %v6290_v4 = vld [vmem:[#allocation3 + $0xc1] sm:$0xff] }
 0x60b   : > { %11886 = vrot.lane.b32.xlu1 %v11865_v12, %s12645_s2  ;;  %v6149_v33 = vld [vmem:[#allocation3 + $0x8] sm:$0xff] }
 0x60c   : > { %6137 = vst.msk [vmem:[#allocation3 + $0x111] sm:$0xff] %vm2045_vm2, %v6105_v7  ;;  %v6106_v35 = vmax.f32 %v6074_v18, 0.0  ;;  %v6075_v27 = vadd.f32 %v17149_v57, %v6036_v63  ;;  %v11995_v63 = vpack.i.bf16 %v6291_v29, %v6290_v4  ;;  %v6262_v29 = vld [vmem:[#allocation3 + $0xf0] sm:$0xff] }
 0x60d   : > { %11891 = vrot.lane.b32.xlu0 %v11845_v15, %s12647_s24 }
 0x60e   : > { %6138 = vst.msk [vmem:[#allocation3 + $0x121] sm:$0xff] %vm2045_vm2, %v6106_v35  ;;  %v6107_v23 = vmax.f32 %v6075_v27, 0.0  ;;  %v6322_v27 = vld [vmem:[#allocation3 + $0xc2] sm:$0xff] }
 0x60f   : > { %11896 = vrot.lane.b32.xlu1 %v11880_v8, %s12647_s24 }
 0x610   : > { %6139 = vst.msk [vmem:[#allocation3 + $0x129] sm:$0xff] %vm2045_vm2, %v6107_v23  ;;  %v6323_v23 = vld [vmem:[#allocation3 + $0xca] sm:$0xff] }
 0x611   : > { %11901 = vrot.lane.b32.xlu0 %v11855_v61, %s12649_s26  ;;  %v6383_v61 = vld [vmem:[#allocation3 + $0xb1] sm:$0xff] }
 0x612   : > { %v11945_v16 = vpack.i.bf16 %v6383_v61, %v6382_v44 }
 0x613   : > { %11906 = vrot.lane.b32.xlu1 %v11905_v11, %s12649_s26 }
 0x615   : > { %11911 = vrot.lane.b32.xlu0 %v11865_v12, %s12651_s15 }
 0x617   : > { %11916 = vrot.lane.b32.xlu1 %v11915_v32, %s12651_s15 }
 0x619   : > { %11921 = vrot.lane.b32.xlu0 %v11880_v8, %s12653_s25  ;;  %v6258_v8 = vld [vmem:[#allocation3 + $0xc0] sm:$0xff] }
 0x61a   : > { %v5927_v17 = vpop.permute.xlu0 %5926  ;;  %v11985_v31 = vpack.i.bf16 %v6259_v24, %v6258_v8 }
 0x61b   : > { %v5998_v5 = vsel %vm611_vm0, %v17067_v58, %v5927_v17  ;;  %11926 = vrot.lane.b32.xlu1 %v11925_v40, %s12653_s25 }
 0x61c   : > { %v6037_v43 = vmul.f32 %v17144_v45, %v5998_v5  ;;  %v5929_v53 = vpop.permute.xlu1 %5928 }
 0x61d   : > { %v5999_v59 = vsel %vm611_vm0, %v17071_v0, %v5929_v53  ;;  %11931 = vrot.lane.b32.xlu0 %v11905_v11, %s12654_s22 }
 0x61e   : > { %v6076_v15 = vadd.f32 %v17149_v57, %v6037_v43  ;;  %v6038_v13 = vmul.f32 %v17144_v45, %v5999_v59  ;;  %v5931_v20 = vpop.permute.xlu0 %5930  ;;  %v6354_v43 = vld [vmem:[#allocation3 + $0xd8] sm:$0xff] }
 0x61f   : > { %v6000_v58 = vsel %vm611_vm0, %v17065_v41, %v5931_v20  ;;  %11936 = vrot.lane.b32.xlu1 %v11935_v10, %s12654_s22 }
 0x620   : > { %v6108_v54 = vmax.f32 %v6076_v15, 0.0  ;;  %v6077_v14 = vadd.f32 %v17149_v57, %v6038_v13  ;;  %v6039_v12 = vmul.f32 %v17144_v45, %v6000_v58  ;;  %v5933_v0 = vpop.permute.xlu1 %5932  ;;  %v6418_v58 = vld [vmem:[#allocation3 + $0xda] sm:$0xff] }
 0x621   : > { %v6001_v2 = vsel %vm611_vm0, %v17069_v25, %v5933_v0  ;;  %11941 = vrot.lane.b32.xlu0 %v11915_v32, %s12655_s1 }
 0x622   : > { %6140 = vst.msk [vmem:[#allocation3 + $0x139] sm:$0xff] %vm2045_vm2, %v6108_v54  ;;  %v6109_v3 = vmax.f32 %v6077_v14, 0.0  ;;  %v6078_v41 = vadd.f32 %v17149_v57, %v6039_v12  ;;  %v6040_v47 = vmul.f32 %v17144_v45, %v6001_v2  ;;  %v6419_v54 = vld [vmem:[#allocation3 + $0xe2] sm:$0xff]  ;;  %v6263_v2 = vld [vmem:[#allocation3 + $0xf8] sm:$0xff] }
 0x623   : > { %11946 = vrot.lane.b32.xlu1 %v11945_v16, %s12655_s1  ;;  %v17434_v0 = vpack.i.bf16 %v6419_v54, %v6418_v58 }
 0x624   : > { %6141 = vst.msk [vmem:[#allocation3 + $0x141] sm:$0xff] %vm2045_vm2, %v6109_v3  ;;  %v6110_v49 = vmax.f32 %v6078_v41, 0.0  ;;  %v6079_v50 = vadd.f32 %v17149_v57, %v6040_v47  ;;  %v6295_v47 = vld [vmem:[#allocation3 + $0xf9] sm:$0xff] }
 0x625   : > { %11951 = vrot.lane.b32.xlu0 %v11925_v40, %s12656_s20 }
 0x626   : > { %6142 = vst.msk [vmem:[#allocation3 + $0x151] sm:$0xff] %vm2045_vm2, %v6110_v49  ;;  %v6111_v25 = vmax.f32 %v6079_v50, 0.0  ;;  %v6326_v49 = vld [vmem:[#allocation3 + $0xf2] sm:$0xff]  ;;  %v6327_v50 = vld [vmem:[#allocation3 + $0xfa] sm:$0xff] }
 0x627   : > { %11956 = vrot.lane.b32.xlu1 %v11915_v32, %s12645_s2 }
 0x628   : > { %6143 = vst.msk [vmem:[#allocation3 + $0x159] sm:$0xff] %vm2045_vm2, %v6111_v25 }
 0x629   : > { %11961 = vrot.lane.b32.xlu0 %v11960_v62, %s12656_s20 }
 0x62b   : > { %11966 = vrot.lane.b32.xlu1 %v11945_v16, %s12645_s2 }
 0x62d   : > { %11971 = vrot.lane.b32.xlu0 %v11925_v40, %s12647_s24  ;;  %v6355_v40 = vld [vmem:[#allocation3 + $0xe0] sm:$0xff] }
 0x62f   : > { %11976 = vrot.lane.b32.xlu1 %v11960_v62, %s12647_s24 }
 0x631   : > { %11981 = vrot.lane.b32.xlu0 %v11935_v10, %s12649_s26  ;;  %v6387_v10 = vld [vmem:[#allocation3 + $0xe1] sm:$0xff] }
 0x633   : > { %v5935_v26 = vpop.permute.xlu0 %5934  ;;  %11986 = vrot.lane.b32.xlu1 %v11985_v31, %s12649_s26 }
 0x634   : > { %v6002_v51 = vsel %vm611_vm0, %v17087_v6, %v5935_v26  ;;  %v6294_v26 = vld [vmem:[#allocation3 + $0xf1] sm:$0xff] }
 0x635   : > { %v6041_v7 = vmul.f32 %v17144_v45, %v6002_v51  ;;  %v5937_v18 = vpop.permute.xlu1 %5936  ;;  %11991 = vrot.lane.b32.xlu0 %v11945_v16, %s12651_s15  ;;  %v17447_v51 = vpack.i.bf16 %v6263_v2, %v6262_v29  ;;  %v17449_v4 = vpack.i.bf16 %v6295_v47, %v6294_v26  ;;  %v6359_v26 = vld [vmem:[#allocation3 + $0x110] sm:$0xff] }
 0x636   : > { %v6003_v35 = vsel %vm611_vm0, %v17095_v19, %v5937_v18  ;;  %v12005_v19 = vpack.i.bf16 %v6323_v23, %v6322_v27 }
 0x637   : > { %v6080_v22 = vadd.f32 %v17149_v57, %v6041_v7  ;;  %v6042_v38 = vmul.f32 %v17144_v45, %v6003_v35  ;;  %v5939_v11 = vpop.permute.xlu0 %5938  ;;  %11996 = vrot.lane.b32.xlu1 %v11995_v63, %s12651_s15  ;;  %v17451_v7 = vpack.i.bf16 %v6327_v50, %v6326_v49 }
 0x638   : > { %v6004_v6 = vsel %vm611_vm0, %v17081_v1, %v5939_v11 }
 0x639   : > { %v6112_v42 = vmax.f32 %v6080_v22, 0.0  ;;  %v6081_v52 = vadd.f32 %v17149_v57, %v6042_v38  ;;  %v6043_v32 = vmul.f32 %v17144_v45, %v6004_v6  ;;  %v5941_v46 = vpop.permute.xlu1 %5940  ;;  %12001 = vrot.lane.b32.xlu0 %v11960_v62, %s12653_s25 }
 0x63a   : > { %v6005_v9 = vsel %vm611_vm0, %v17091_v55, %v5941_v46  ;;  %v12015_v55 = vpack.i.bf16 %v6355_v40, %v6354_v43 }
 0x63b   : > { %6144 = vst.msk [vmem:[#allocation3 + $0x169] sm:$0xff] %vm2045_vm2, %v6112_v42  ;;  %v6113_v17 = vmax.f32 %v6081_v52, 0.0  ;;  %v6082_v39 = vadd.f32 %v17149_v57, %v6043_v32  ;;  %v6044_v1 = vmul.f32 %v17144_v45, %v6005_v9  ;;  %v11722_v5 = vpop.permute.xlu0 %11721  ;;  %12006 = vrot.lane.b32.xlu1 %v12005_v19, %s12653_s25  ;;  %v6386_v45 = vld [vmem:[#allocation3 + $0xd9] sm:$0xff] }
 0x63c   : > { %v11724_v16 = vunpack.i.h.bf16 %v11722_v5  ;;  %v11723_v3 = vunpack.i.l.bf16 %v11722_v5 }
 0x63d   : > { %6145 = vst.msk [vmem:[#allocation3 + $0x171] sm:$0xff] %vm2045_vm2, %v6113_v17  ;;  %v6114_v53 = vmax.f32 %v6082_v39, 0.0  ;;  %v6083_v36 = vadd.f32 %v17149_v57, %v6044_v1  ;;  %v17415_v59 = vpop.permute.xlu1 %11731  ;;  %12011 = vrot.lane.b32.xlu0 %v11985_v31, %s12654_s22  ;;  %v17424_v57 = vpack.i.bf16 %v6387_v10, %v6386_v45 }
 0x63e   : > { %v7461_v18 = vsel %vm2045_vm2, %v6149_v33, %v11724_v16  ;;  %v11733_v9 = vunpack.i.l.bf16 %v17415_v59 }
 0x63f   : > { %6146 = vst.msk [vmem:[#allocation3 + $0x181] sm:$0xff] %vm2045_vm2, %v6114_v53  ;;  %v6115_v15 = vmax.f32 %v6083_v36, 0.0  ;;  %v17419_v13 = vpop.permute.xlu0 %11726  ;;  %12016 = vrot.lane.b32.xlu1 %v12015_v55, %s12654_s22 }
 0x640   : > { %v11729_v35 = vunpack.i.h.bf16 %v17419_v13  ;;  %v11728_v27 = vunpack.i.l.bf16 %v17419_v13 }
 0x641   : > { %6147 = vst.msk [vmem:[#allocation3 + $0x189] sm:$0xff] %vm2045_vm2, %v6115_v15  ;;  %v11737_v20 = vpop.permute.xlu1 %11736  ;;  %12021 = vrot.lane.b32.xlu0 %v11995_v63, %s12655_s1 }
 0x642   : > { %v11739_v25 = vunpack.i.h.bf16 %v11737_v20  ;;  %v11738_v62 = vunpack.i.l.bf16 %v11737_v20  ;;  %v7493_v39 = vsel %vm2111_vm5, %v7461_v18, %v11729_v35 }
 0x643   : > { %v17426_v61 = vpop.permute.xlu0 %11746  ;;  %12026 = vrot.lane.b32.xlu1 %v17424_v57, %s12655_s1 }
 0x644   : > { %v7463_v22 = vsel %vm2045_vm2, %v17231_v28, %v11739_v25  ;;  %v7462_v38 = vsel %vm2045_vm2, %v17234_v56, %v11738_v62  ;;  %v11749_v11 = vunpack.i.h.bf16 %v17426_v61  ;;  %v11748_v6 = vunpack.i.l.bf16 %v17426_v61 }
 0x645   : > { %v11742_v14 = vpop.permute.xlu1 %11741  ;;  %12031 = vrot.lane.b32.xlu0 %v12005_v19, %s12656_s20  ;;  %v11734_v28 = vunpack.i.h.bf16 %v17415_v59 }
 0x646   : > { %v11744_v24 = vunpack.i.h.bf16 %v11742_v14  ;;  %v11743_v8 = vunpack.i.l.bf16 %v11742_v14  ;;  %v7525_v36 = vsel %vm2177_vm7, %v7493_v39, %v11749_v11  ;;  %v6358_v11 = vld [vmem:[#allocation3 + $0x108] sm:$0xff] }
 0x647   : > { %v17431_v12 = vpop.permute.xlu0 %11751  ;;  %12036 = vrot.lane.b32.xlu1 %v11995_v63, %s12645_s2  ;;  %v7460_v63 = vsel %vm2045_vm2, %v6148_v30, %v11723_v3 }
 0x648   : > { %v7494_v42 = vsel %vm2111_vm5, %v7462_v38, %v11743_v8  ;;  %v7495_v52 = vsel %vm2111_vm5, %v7463_v22, %v11744_v24  ;;  %v11754_v32 = vunpack.i.h.bf16 %v17431_v12  ;;  %v11753_v46 = vunpack.i.l.bf16 %v17431_v12 }
 0x649   : > { %v17436_v44 = vpop.permute.xlu1 %11756  ;;  %12041 = vrot.lane.b32.xlu0 %v17434_v0, %s12656_s20  ;;  %v7492_v17 = vsel %vm2111_vm5, %v7460_v63, %v11728_v27  ;;  %v7526_v59 = vsel %vm2177_vm7, %v7494_v42, %v11733_v9 }
 0x64a   : > { %v7524_v53 = vsel %vm2177_vm7, %v7492_v17, %v11748_v6  ;;  %v7557_v15 = vsel %vm2243_vm9, %v7525_v36, %v11754_v32  ;;  %v11759_v61 = vunpack.i.h.bf16 %v17436_v44  ;;  %v11758_v58 = vunpack.i.l.bf16 %v17436_v44 }
 0x64b   : > { %v17440_v41 = vpop.permute.xlu0 %11761  ;;  %12046 = vrot.lane.b32.xlu1 %v17424_v57, %s12645_s2  ;;  %v7556_v10 = vsel %vm2243_vm9, %v7524_v53, %v11753_v46  ;;  %v12095_v32 = vpack.i.bf16 %v6359_v26, %v6358_v11 }
 0x64c   : > { %v11764_v56 = vunpack.i.h.bf16 %v17440_v41  ;;  %v11763_v40 = vunpack.i.l.bf16 %v17440_v41  ;;  %v7558_v24 = vsel %vm2243_vm9, %v7526_v59, %v11758_v58 }
 0x64d   : > { %v17444_v31 = vpop.permute.xlu1 %11766  ;;  %12051 = vrot.lane.b32.xlu0 %v12005_v19, %s12647_s24 }
 0x64e   : > { %v7589_v54 = vsel %vm7588_vm13, %v7556_v10, %v11763_v40  ;;  %v7590_v14 = vsel %vm7588_vm13, %v7557_v15, %v11764_v56  ;;  %v11769_v12 = vunpack.i.h.bf16 %v17444_v31  ;;  %v11768_v2 = vunpack.i.l.bf16 %v17444_v31  ;;  %v6390_v40 = vld [vmem:[#allocation3 + $0x109] sm:$0xff] }
 0x64f   : > { %v11772_v23 = vpop.permute.xlu0 %11771  ;;  %12056 = vrot.lane.b32.xlu1 %v17434_v0, %s12647_s24 }
 0x650   : > { %v11774_v1 = vunpack.i.h.bf16 %v11772_v23  ;;  %v11773_v5 = vunpack.i.l.bf16 %v11772_v23  ;;  %v7591_v18 = vsel %vm7588_vm13, %v7558_v24, %v11768_v2  ;;  %v6298_v2 = vld [vmem:[#allocation3 + $0x121] sm:$0xff] }
 0x651   : > { %v11777_v19 = vpop.permute.xlu1 %11776  ;;  %12061 = vrot.lane.b32.xlu0 %v12015_v55, %s12649_s26  ;;  %v7527_v55 = vsel %vm2177_vm7, %v7495_v52, %v11734_v28  ;;  %v6391_v28 = vld [vmem:[#allocation3 + $0x111] sm:$0xff] }
 0x652   : > { %v7622_v16 = vsel %vm7621_vm14, %v7589_v54, %v11773_v5  ;;  %v7623_v3 = vsel %vm7621_vm14, %v7590_v14, %v11774_v1  ;;  %v11778_v47 = vunpack.i.l.bf16 %v11777_v19  ;;  %v7559_v8 = vsel %vm2243_vm9, %v7527_v55, %v11759_v61  ;;  %v6422_v1 = vld [vmem:[#allocation3 + $0x10a] sm:$0xff]  ;;  %v6423_v5 = vld [vmem:[#allocation3 + $0x112] sm:$0xff] }
 0x653   : > { %v11782_v43 = vpop.permute.xlu0 %11781  ;;  %12066 = vrot.lane.b32.xlu1 %v17447_v51, %s12649_s26  ;;  %v7592_v63 = vsel %vm7588_vm13, %v7559_v8, %v11769_v12  ;;  %v17523_v39 = vpack.i.bf16 %v6391_v28, %v6390_v40  ;;  %v17531_v36 = vpack.i.bf16 %v6423_v5, %v6422_v1  ;;  %v6267_v55 = vld [vmem:[#allocation3 + $0x128] sm:$0xff] }
 0x654   : > { %v11784_v13 = vunpack.i.h.bf16 %v11782_v43  ;;  %v11783_v45 = vunpack.i.l.bf16 %v11782_v43  ;;  %v6331_v61 = vld [vmem:[#allocation3 + $0x12a] sm:$0xff] }
 0x655   : > { %v11787_v20 = vpop.permute.xlu1 %11786  ;;  %12071 = vrot.lane.b32.xlu0 %v17424_v57, %s12651_s15  ;;  %v11779_v57 = vunpack.i.h.bf16 %v11777_v19 }
 0x656   : > { %v7655_v50 = vsel %vm7654_vm15, %v7622_v16, %v11783_v45  ;;  %v7656_v30 = vsel %vm7654_vm15, %v7623_v3, %v11784_v13  ;;  %v11789_v33 = vunpack.i.h.bf16 %v11787_v20  ;;  %v11788_v25 = vunpack.i.l.bf16 %v11787_v20  ;;  %v6299_v45 = vld [vmem:[#allocation3 + $0x129] sm:$0xff] }
 0x657   : > { %v11792_v41 = vpop.permute.xlu0 %11791  ;;  %12076 = vrot.lane.b32.xlu1 %v17449_v4, %s12651_s15  ;;  %v7625_v23 = vsel %vm7621_vm14, %v7592_v63, %v11779_v57  ;;  %v6330_v20 = vld [vmem:[#allocation3 + $0x122] sm:$0xff] }
 0x658   : > { %v11794_v49 = vunpack.i.h.bf16 %v11792_v41  ;;  %v11793_v44 = vunpack.i.l.bf16 %v11792_v41  ;;  %v7658_v42 = vsel %vm7654_vm15, %v7625_v23, %v11789_v33  ;;  %v17547_v41 = vpack.i.bf16 %v6299_v45, %v6298_v2 }
 0x659   : > { %v17498_v62 = vpop.permute.xlu1 %11796  ;;  %12081 = vrot.lane.b32.xlu0 %v17434_v0, %s12653_s25  ;;  %v7624_v0 = vsel %vm7621_vm14, %v7591_v18, %v11778_v47  ;;  %v17549_v57 = vpack.i.bf16 %v6331_v61, %v6330_v20 }
 0x65a   : > { %v7688_v31 = vsel %vm7687_vm1, %v7655_v50, %v11793_v44  ;;  %v7689_v29 = vsel %vm7687_vm1, %v7656_v30, %v11794_v49  ;;  %v7657_v6 = vsel %vm7654_vm15, %v7624_v0, %v11788_v25  ;;  %v11799_v10 = vunpack.i.h.bf16 %v17498_v62 }
 0x65b   : > { %v11802_v35 = vpop.permute.xlu0 %11801  ;;  %12086 = vrot.lane.b32.xlu1 %v17451_v7, %s12653_s25  ;;  %v7720_v27 = vpack.c.bf16 %v7689_v29, %v7688_v31  ;;  %v11798_v15 = vunpack.i.l.bf16 %v17498_v62 }
 0x65c   : > { %v11804_v22 = vunpack.i.h.bf16 %v11802_v35  ;;  %v11803_v38 = vunpack.i.l.bf16 %v11802_v35  ;;  %v7465_v47 = vsel %vm2045_vm2, %v17221_v34, %v11799_v10 }
 0x65d   : > { %v11807_v52 = vpop.permute.xlu1 %11806  ;;  %9688 = vmatprep.mubr.msk.bf16.mxu1 %vm7772_vm4, %v7720_v27  ;;  %12091 = vrot.lane.b32.xlu0 %v17447_v51, %s12654_s22  ;;  %v7464_v49 = vsel %vm2045_vm2, %v17225_v21, %v11798_v15 }
 0x65e   : > { %v7690_v46 = vsel %vm7687_vm1, %v7657_v6, %v11803_v38  ;;  %v7691_v19 = vsel %vm7687_vm1, %v7658_v42, %v11804_v22  ;;  %v11809_v58 = vunpack.i.h.bf16 %v11807_v52  ;;  %v11808_v54 = vunpack.i.l.bf16 %v11807_v52 }
 0x65f   : > { %v7721_v9 = vpack.c.bf16 %v7691_v19, %v7690_v46  ;;  %v11812_v56 = vpop.permute.xlu0 %11811  ;;  %12096 = vrot.lane.b32.xlu1 %v12095_v32, %s12654_s22 }
 0x660   : > { %v11814_v16 = vunpack.i.h.bf16 %v11812_v56  ;;  %v11813_v3 = vunpack.i.l.bf16 %v11812_v56  ;;  %v7467_v24 = vsel %vm2045_vm2, %v17269_v48, %v11809_v58  ;;  %v7466_v8 = vsel %vm2045_vm2, %v17277_v37, %v11808_v54  ;;  %v17596_v54 = vld [vmem:[#allocation3 + $0x140] sm:$0xff] }
 0x661   : > { %v11817_v17 = vpop.permute.xlu1 %11816  ;;  %9689 = vmatmul.mubr.msk.bf16.vlgmr.msra.gmra.mrb[48].mxu1 %vm7772_vm4, %v7721_v9  ;;  %12101 = vrot.lane.b32.xlu0 %v17449_v4, %s12655_s1 }
 0x662   : > { %v11819_v44 = vunpack.i.h.bf16 %v11817_v17  ;;  %v11818_v50 = vunpack.i.l.bf16 %v11817_v17  ;;  %v7496_v21 = vsel %vm2111_vm5, %v7464_v49, %v11813_v3  ;;  %v7497_v26 = vsel %vm2111_vm5, %v7465_v47, %v11814_v16 }
 0x663   : > { %v11822_v51 = vpop.permute.xlu0 %11821  ;;  %12106 = vrot.lane.b32.xlu1 %v17523_v39, %s12655_s1 }
 0x664   : > { %v11823_v33 = vunpack.i.l.bf16 %v11822_v51  ;;  %v7498_v35 = vsel %vm2111_vm5, %v7466_v8, %v11818_v50  ;;  %v7499_v27 = vsel %vm2111_vm5, %v7467_v24, %v11819_v44  ;;  %v17604_v50 = vld [vmem:[#allocation3 + $0x138] sm:$0xff]  ;;  %v6395_v8 = vld [vmem:[#allocation3 + $0x141] sm:$0xff] }
 0x665   : > { %v11827_v43 = vpop.permute.xlu1 %11826  ;;  %12111 = vrot.lane.b32.xlu0 %v17451_v7, %s12656_s20 }
 0x666   : > { %v11829_v25 = vunpack.i.h.bf16 %v11827_v43  ;;  %v11828_v62 = vunpack.i.l.bf16 %v11827_v43  ;;  %v7528_v37 = vsel %vm2177_vm7, %v7496_v21, %v11823_v33 }
 0x667   : > { %v11832_v53 = vpop.permute.xlu0 %11831  ;;  %12116 = vrot.lane.b32.xlu1 %v17449_v4, %s12645_s2  ;;  %v6266_v4 = vld [vmem:[#allocation3 + $0x120] sm:$0xff] }
 0x668   : > { %v17545_v12 = vpack.i.bf16 %v6267_v55, %v6266_v4  ;;  %v11834_v34 = vunpack.i.h.bf16 %v11832_v53  ;;  %v11833_v31 = vunpack.i.l.bf16 %v11832_v53  ;;  %v7530_v38 = vsel %vm2177_vm7, %v7498_v35, %v11828_v62 }
 0x669   : > { %v17533_v59 = vpop.permute.xlu1 %11836  ;;  %12121 = vrot.lane.b32.xlu0 %v17531_v36, %s12656_s20  ;;  %v7531_v11 = vsel %vm2177_vm7, %v7499_v27, %v11829_v25  ;;  %v12175_v25 = vpack.i.bf16 %v17596_v54, %v17604_v50 }
 0x66a   : > { %v7560_v6 = vsel %vm2243_vm9, %v7528_v37, %v11833_v31  ;;  %v11839_v19 = vunpack.i.h.bf16 %v17533_v59  ;;  %v11838_v28 = vunpack.i.l.bf16 %v17533_v59 }
 0x66b   : > { %v11842_v13 = vpop.permute.xlu0 %11841  ;;  %12126 = vrot.lane.b32.xlu1 %v17523_v39, %s12645_s2 }
 0x66c   : > { %v11844_v18 = vunpack.i.h.bf16 %v11842_v13  ;;  %v11843_v63 = vunpack.i.l.bf16 %v11842_v13  ;;  %v7562_v20 = vsel %vm2243_vm9, %v7530_v38, %v11838_v28  ;;  %v7563_v61 = vsel %vm2243_vm9, %v7531_v11, %v11839_v19  ;;  %v6303_v11 = vld [vmem:[#allocation3 + $0x159] sm:$0xff]  ;;  %v6302_v28 = vld [vmem:[#allocation3 + $0x151] sm:$0xff] }
 0x66d   : > { %v17541_v14 = vpop.permute.xlu1 %11846  ;;  %12131 = vrot.lane.b32.xlu0 %v17451_v7, %s12647_s24  ;;  %v11824_v7 = vunpack.i.h.bf16 %v11822_v51 }
 0x66e   : > { %v7593_v9 = vsel %vm7588_vm13, %v7560_v6, %v11843_v63  ;;  %v11849_v40 = vunpack.i.h.bf16 %v17541_v14  ;;  %v11848_v17 = vunpack.i.l.bf16 %v17541_v14  ;;  %v6427_v63 = vld [vmem:[#allocation3 + $0x142] sm:$0xff]  ;;  %v6334_v6 = vld [vmem:[#allocation3 + $0x152] sm:$0xff] }
 0x66f   : > { %v11852_v30 = vpop.permute.xlu0 %11851  ;;  %12136 = vrot.lane.b32.xlu1 %v17531_v36, %s12647_s24  ;;  %v7529_v22 = vsel %vm2177_vm7, %v7497_v26, %v11824_v7 }
 0x670   : > { %v11854_v0 = vunpack.i.h.bf16 %v11852_v30  ;;  %v11853_v48 = vunpack.i.l.bf16 %v11852_v30  ;;  %v7561_v42 = vsel %vm2243_vm9, %v7529_v22, %v11834_v34  ;;  %v7595_v14 = vsel %vm7588_vm13, %v7562_v20, %v11848_v17 }
 0x671   : > { %v11857_v29 = vpop.permute.xlu1 %11856  ;;  %12141 = vrot.lane.b32.xlu0 %v12095_v32, %s12649_s26  ;;  %v7594_v56 = vsel %vm7588_vm13, %v7561_v42, %v11844_v18  ;;  %v7596_v2 = vsel %vm7588_vm13, %v7563_v61, %v11849_v40  ;;  %v6426_v18 = vld [vmem:[#allocation3 + $0x13a] sm:$0xff] }
 0x672   : > { %v7626_v51 = vsel %vm7621_vm14, %v7593_v9, %v11853_v48  ;;  %v7627_v1 = vsel %vm7621_vm14, %v7594_v56, %v11854_v0  ;;  %v11858_v43 = vunpack.i.l.bf16 %v11857_v29  ;;  %v17629_v0 = vpack.i.bf16 %v6427_v63, %v6426_v18  ;;  %v6335_v42 = vld [vmem:[#allocation3 + $0x15a] sm:$0xff]  ;;  %v6157_v56 = vld [vmem:[#allocation3 + $0x68] sm:$0xff] }
 0x673   : > { %v11862_v23 = vpop.permute.xlu0 %11861  ;;  %12146 = vrot.lane.b32.xlu1 %v17545_v12, %s12649_s26  ;;  %v6156_v9 = vld [vmem:[#allocation3 + $0x60] sm:$0xff] }
 0x674   : > { %v11864_v52 = vunpack.i.h.bf16 %v11862_v23  ;;  %v11863_v32 = vunpack.i.l.bf16 %v11862_v23  ;;  %v6271_v23 = vld [vmem:[#allocation3 + $0x158] sm:$0xff] }
 0x675   : > { %v11867_v46 = vpop.permute.xlu1 %11866  ;;  %12151 = vrot.lane.b32.xlu0 %v17523_v39, %s12651_s15  ;;  %v11859_v39 = vunpack.i.h.bf16 %v11857_v29  ;;  %v6394_v29 = vld [vmem:[#allocation3 + $0x139] sm:$0xff] }
 0x676   : > { %v7659_v55 = vsel %vm7654_vm15, %v7626_v51, %v11863_v32  ;;  %v7660_v10 = vsel %vm7654_vm15, %v7627_v1, %v11864_v52  ;;  %v11869_v15 = vunpack.i.h.bf16 %v11867_v46  ;;  %v11868_v13 = vunpack.i.l.bf16 %v11867_v46 }
 0x677   : > { %v11872_v5 = vpop.permute.xlu0 %11871  ;;  %12156 = vrot.lane.b32.xlu1 %v17547_v41, %s12651_s15  ;;  %v7629_v47 = vsel %vm7621_vm14, %v7596_v2, %v11859_v39  ;;  %v17648_v51 = vpack.i.bf16 %v6303_v11, %v6302_v28  ;;  %v17650_v1 = vpack.i.bf16 %v6335_v42, %v6334_v6 }
 0x678   : > { %v11874_v53 = vunpack.i.h.bf16 %v11872_v5  ;;  %v11873_v59 = vunpack.i.l.bf16 %v11872_v5  ;;  %v7662_v7 = vsel %vm7654_vm15, %v7629_v47, %v11869_v15 }
 0x679   : > { %v17588_v45 = vpop.permute.xlu1 %11876  ;;  %12161 = vrot.lane.b32.xlu0 %v17531_v36, %s12653_s25  ;;  %v7628_v36 = vsel %vm7621_vm14, %v7595_v14, %v11858_v43 }
 0x67a   : > { %v7692_v4 = vsel %vm7687_vm1, %v7659_v55, %v11873_v59  ;;  %v7693_v58 = vsel %vm7687_vm1, %v7660_v10, %v11874_v53  ;;  %v7661_v30 = vsel %vm7654_vm15, %v7628_v36, %v11868_v13  ;;  %v11879_v37 = vunpack.i.h.bf16 %v17588_v45  ;;  %v6159_v55 = vld [vmem:[#allocation3 + $0x80] sm:$0xff] }
 0x67b   : > { %v11882_v16 = vpop.permute.xlu0 %11881  ;;  %12166 = vrot.lane.b32.xlu1 %v17549_v57, %s12653_s25  ;;  %v7722_v3 = vpack.c.bf16 %v7693_v58, %v7692_v4  ;;  %v11878_v22 = vunpack.i.l.bf16 %v17588_v45 }
 0x67c   : > { %v11884_v49 = vunpack.i.h.bf16 %v11882_v16  ;;  %v11883_v44 = vunpack.i.l.bf16 %v11882_v16  ;;  %v7469_v5 = vsel %vm2045_vm2, %v6157_v56, %v11879_v37 }
 0x67d   : > { %v11887_v33 = vpop.permute.xlu1 %11886  ;;  %9692 = vmatprep.mubr.msk.bf16.mxu1 %vm7772_vm4, %v7722_v3  ;;  %12171 = vrot.lane.b32.xlu0 %v17545_v12, %s12654_s22  ;;  %v17619_v12 = vpack.i.bf16 %v6395_v8, %v6394_v29  ;;  %v7468_v39 = vsel %vm2045_vm2, %v6156_v9, %v11878_v22 }
 0x67e   : > { %v7694_v62 = vsel %vm7687_vm1, %v7661_v30, %v11883_v44  ;;  %v7695_v24 = vsel %vm7687_vm1, %v7662_v7, %v11884_v49  ;;  %v11889_v52 = vunpack.i.h.bf16 %v11887_v33  ;;  %v11888_v32 = vunpack.i.l.bf16 %v11887_v33 }
 0x67f   : > { %v11892_v34 = vpop.permute.xlu0 %11891  ;;  %12176 = vrot.lane.b32.xlu1 %v12175_v25, %s12654_s22  ;;  %v7723_v31 = vpack.c.bf16 %v7695_v24, %v7694_v62 }
 0x680   : > { %v11894_v40 = vunpack.i.h.bf16 %v11892_v34  ;;  %v11893_v17 = vunpack.i.l.bf16 %v11892_v34  ;;  %v7471_v20 = vsel %vm2045_vm2, %v6159_v55, %v11889_v52 }
 0x681   : > { %v11897_v21 = vpop.permute.xlu1 %11896  ;;  %9693 = vmatmul.mubr.msk.bf16.gmra.mrb[52].mxu1 %vm7772_vm4, %v7723_v31  ;;  %12181 = vrot.lane.b32.xlu0 %v17547_v41, %s12655_s1 }
 0x682   : > { %v11899_v43 = vunpack.i.h.bf16 %v11897_v21  ;;  %v11898_v53 = vunpack.i.l.bf16 %v11897_v21  ;;  %v7500_v2 = vsel %vm2111_vm5, %v7468_v39, %v11893_v17  ;;  %v7501_v16 = vsel %vm2111_vm5, %v7469_v5, %v11894_v40  ;;  %v17695_v5 = vld [vmem:[#allocation3 + $0x170] sm:$0xff] }
 0x683   : > { %v17621_v26 = vpop.permute.xlu0 %11901  ;;  %12186 = vrot.lane.b32.xlu1 %v17619_v12, %s12655_s1 }
 0x684   : > { %v11904_v10 = vunpack.i.h.bf16 %v17621_v26  ;;  %v11903_v15 = vunpack.i.l.bf16 %v17621_v26  ;;  %v7503_v49 = vsel %vm2111_vm5, %v7471_v20, %v11899_v43 }
 0x685   : > { %v11907_v35 = vpop.permute.xlu1 %11906  ;;  %12191 = vrot.lane.b32.xlu0 %v17549_v57, %s12656_s20 }
 0x686   : > { %v11909_v13 = vunpack.i.h.bf16 %v11907_v35  ;;  %v11908_v45 = vunpack.i.l.bf16 %v11907_v35  ;;  %v7532_v33 = vsel %vm2177_vm7, %v7500_v2, %v11903_v15  ;;  %v17703_v15 = vld [vmem:[#allocation3 + $0x168] sm:$0xff] }
 0x687   : > { %v11912_v27 = vpop.permute.xlu0 %11911  ;;  %12196 = vrot.lane.b32.xlu1 %v17547_v41, %s12645_s2  ;;  %v17639_v41 = vld [vmem:[#allocation3 + $0x150] sm:$0xff] }
 0x688   : > { %v17646_v19 = vpack.i.bf16 %v6271_v23, %v17639_v41  ;;  %v11914_v4 = vunpack.i.h.bf16 %v11912_v27  ;;  %v11913_v58 = vunpack.i.l.bf16 %v11912_v27  ;;  %v7535_v24 = vsel %vm2177_vm7, %v7503_v49, %v11909_v13  ;;  %v6430_v49 = vld [vmem:[#allocation3 + $0x16a] sm:$0xff] }
 0x689   : > { %v17631_v48 = vpop.permute.xlu1 %11916  ;;  %12201 = vrot.lane.b32.xlu0 %v17629_v0, %s12656_s20 }
 0x68a   : > { %v7564_v8 = vsel %vm2243_vm9, %v7532_v33, %v11913_v58  ;;  %v11919_v26 = vunpack.i.h.bf16 %v17631_v48  ;;  %v11918_v18 = vunpack.i.l.bf16 %v17631_v48 }
 0x68b   : > { %v11922_v38 = vpop.permute.xlu0 %11921  ;;  %12206 = vrot.lane.b32.xlu1 %v17619_v12, %s12645_s2 }
 0x68c   : > { %v11924_v3 = vunpack.i.h.bf16 %v11922_v38  ;;  %v11923_v36 = vunpack.i.l.bf16 %v11922_v38  ;;  %v7567_v56 = vsel %vm2243_vm9, %v7535_v24, %v11919_v26 }
 0x68d   : > { %v17641_v46 = vpop.permute.xlu1 %11926  ;;  %12211 = vrot.lane.b32.xlu0 %v17549_v57, %s12647_s24  ;;  %v6158_v57 = vld [vmem:[#allocation3 + $0x78] sm:$0xff] }
 0x68e   : > { %v7470_v61 = vsel %vm2045_vm2, %v6158_v57, %v11888_v32  ;;  %v7597_v63 = vsel %vm7588_vm13, %v7564_v8, %v11923_v36  ;;  %v11929_v27 = vunpack.i.h.bf16 %v17641_v46  ;;  %v11928_v23 = vunpack.i.l.bf16 %v17641_v46 }
 0x68f   : > { %v11932_v59 = vpop.permute.xlu0 %11931  ;;  %12216 = vrot.lane.b32.xlu1 %v17629_v0, %s12647_s24  ;;  %v7502_v47 = vsel %vm2111_vm5, %v7470_v61, %v11898_v53  ;;  %v12255_v61 = vpack.i.bf16 %v17695_v5, %v17703_v15 }
 0x690   : > { %v11934_v44 = vunpack.i.h.bf16 %v11932_v59  ;;  %v11933_v30 = vunpack.i.l.bf16 %v11932_v59  ;;  %v7534_v62 = vsel %vm2177_vm7, %v7502_v47, %v11908_v45  ;;  %v7600_v43 = vsel %vm7588_vm13, %v7567_v56, %v11929_v27  ;;  %v6306_v27 = vld [vmem:[#allocation3 + $0x181] sm:$0xff] }
 0x691   : > { %v11937_v14 = vpop.permute.xlu1 %11936  ;;  %12221 = vrot.lane.b32.xlu0 %v12175_v25, %s12649_s26  ;;  %v7533_v25 = vsel %vm2177_vm7, %v7501_v16, %v11904_v10  ;;  %v7566_v46 = vsel %vm2243_vm9, %v7534_v62, %v11918_v18  ;;  %v6275_v62 = vld [vmem:[#allocation3 + $0x188] sm:$0xff] }
 0x692   : > { %v7565_v34 = vsel %vm2243_vm9, %v7533_v25, %v11914_v4  ;;  %v7630_v37 = vsel %vm7621_vm14, %v7597_v63, %v11933_v30  ;;  %v11938_v11 = vunpack.i.l.bf16 %v11937_v14  ;;  %v7599_v39 = vsel %vm7588_vm13, %v7566_v46, %v11928_v23  ;;  %v6160_v23 = vld [vmem:[#allocation3 + $0x90] sm:$0xff] }
 0x693   : > { %v11942_v7 = vpop.permute.xlu0 %11941  ;;  %12226 = vrot.lane.b32.xlu1 %v17646_v19, %s12649_s26  ;;  %v7598_v35 = vsel %vm7588_vm13, %v7565_v34, %v11924_v3  ;;  %v6398_v3 = vld [vmem:[#allocation3 + $0x169] sm:$0xff] }
 0x694   : > { %v11944_v31 = vunpack.i.h.bf16 %v11942_v7  ;;  %v11943_v29 = vunpack.i.l.bf16 %v11942_v7  ;;  %v7631_v22 = vsel %vm7621_vm14, %v7598_v35, %v11934_v44  ;;  %v7632_v57 = vsel %vm7621_vm14, %v7599_v39, %v11938_v11  ;;  %v6431_v44 = vld [vmem:[#allocation3 + $0x172] sm:$0xff] }
 0x695   : > { %v11947_v21 = vpop.permute.xlu1 %11946  ;;  %12231 = vrot.lane.b32.xlu0 %v17619_v12, %s12651_s15  ;;  %v11939_v12 = vunpack.i.h.bf16 %v11937_v14  ;;  %v6399_v14 = vld [vmem:[#allocation3 + $0x171] sm:$0xff]  ;;  %v17728_v33 = vpack.i.bf16 %v6431_v44, %v6430_v49 }
 0x696   : > { %v7663_v42 = vsel %vm7654_vm15, %v7630_v37, %v11943_v29  ;;  %v7664_v52 = vsel %vm7654_vm15, %v7631_v22, %v11944_v31  ;;  %v11949_v32 = vunpack.i.h.bf16 %v11947_v21  ;;  %v11948_v28 = vunpack.i.l.bf16 %v11947_v21  ;;  %v6307_v31 = vld [vmem:[#allocation3 + $0x189] sm:$0xff]  ;;  %v6161_v37 = vld [vmem:[#allocation3 + $0x98] sm:$0xff] }
 0x697   : > { %v11952_v38 = vpop.permute.xlu0 %11951  ;;  %12236 = vrot.lane.b32.xlu1 %v17648_v51, %s12651_s15  ;;  %v6338_v29 = vld [vmem:[#allocation3 + $0x182] sm:$0xff]  ;;  %v6339_v21 = vld [vmem:[#allocation3 + $0x18a] sm:$0xff] }
 0x698   : > { %v11954_v6 = vunpack.i.h.bf16 %v11952_v38  ;;  %v11953_v48 = vunpack.i.l.bf16 %v11952_v38  ;;  %v7665_v13 = vsel %vm7654_vm15, %v7632_v57, %v11948_v28  ;;  %v17746_v11 = vpack.i.bf16 %v6339_v21, %v6338_v29  ;;  %v6163_v28 = vld [vmem:[#allocation3 + $0xb0] sm:$0xff] }
 0x699   : > { %v17687_v9 = vpop.permute.xlu1 %11956  ;;  %12241 = vrot.lane.b32.xlu0 %v17629_v0, %s12653_s25  ;;  %v7633_v0 = vsel %vm7621_vm14, %v7600_v43, %v11939_v12  ;;  %v17744_v12 = vpack.i.bf16 %v6307_v31, %v6306_v27  ;;  %v6371_v27 = vld [vmem:[#allocation3 + $0x1a0] sm:$0xff] }
 0x69a   : > { %v7696_v40 = vsel %vm7687_vm1, %v7663_v42, %v11953_v48  ;;  %v7697_v17 = vsel %vm7687_vm1, %v7664_v52, %v11954_v6  ;;  %v7666_v45 = vsel %vm7654_vm15, %v7633_v0, %v11949_v32  ;;  %v11959_v24 = vunpack.i.h.bf16 %v17687_v9 }
 0x69b   : > { %v11962_v53 = vpop.permute.xlu0 %11961  ;;  %12246 = vrot.lane.b32.xlu1 %v17650_v1, %s12653_s25  ;;  %v7724_v59 = vpack.c.bf16 %v7697_v17, %v7696_v40  ;;  %v11958_v8 = vunpack.i.l.bf16 %v17687_v9 }
 0x69c   : > { %v11964_v55 = vunpack.i.h.bf16 %v11962_v53  ;;  %v11963_v10 = vunpack.i.l.bf16 %v11962_v53  ;;  %v7473_v6 = vsel %vm2045_vm2, %v6161_v37, %v11959_v24 }
 0x69d   : > { %9696 = vmatprep.mubr.msk.bf16.mxu1 %vm7772_vm4, %v7724_v59  ;;  %v11967_v20 = vpop.permute.xlu1 %11966  ;;  %12251 = vrot.lane.b32.xlu0 %v17646_v19, %s12654_s22  ;;  %v17718_v19 = vpack.i.bf16 %v6399_v14, %v6398_v3  ;;  %v7472_v48 = vsel %vm2045_vm2, %v6160_v23, %v11958_v8 }
 0x69e   : > { %v7698_v4 = vsel %vm7687_vm1, %v7665_v13, %v11963_v10  ;;  %v7699_v58 = vsel %vm7687_vm1, %v7666_v45, %v11964_v55  ;;  %v11969_v26 = vunpack.i.h.bf16 %v11967_v20  ;;  %v11968_v18 = vunpack.i.l.bf16 %v11967_v20 }
 0x69f   : > { %v11972_v2 = vpop.permute.xlu0 %11971  ;;  %12256 = vrot.lane.b32.xlu1 %v12255_v61, %s12654_s22  ;;  %v7725_v16 = vpack.c.bf16 %v7699_v58, %v7698_v4 }
 0x6a0   : > { %v11974_v22 = vunpack.i.h.bf16 %v11972_v2  ;;  %v11973_v38 = vunpack.i.l.bf16 %v11972_v2  ;;  %v7475_v39 = vsel %vm2045_vm2, %v6163_v28, %v11969_v26 }
 0x6a1   : > { %9697 = vmatmul.mubr.msk.bf16.gmra.mrb[56].mxu1 %vm7772_vm4, %v7725_v16  ;;  %v11977_v36 = vpop.permute.xlu1 %11976  ;;  %12261 = vrot.lane.b32.xlu0 %v17648_v51, %s12655_s1 }
 0x6a2   : > { %v11979_v42 = vunpack.i.h.bf16 %v11977_v36  ;;  %v11978_v52 = vunpack.i.l.bf16 %v11977_v36  ;;  %v7504_v0 = vsel %vm2111_vm5, %v7472_v48, %v11973_v38  ;;  %v7505_v57 = vsel %vm2111_vm5, %v7473_v6, %v11974_v22 }
 0x6a3   : > { %v17720_v47 = vpop.permute.xlu0 %11981  ;;  %12266 = vrot.lane.b32.xlu1 %v17718_v19, %s12655_s1 }
 0x6a4   : > { %v11984_v9 = vunpack.i.h.bf16 %v17720_v47  ;;  %v11983_v46 = vunpack.i.l.bf16 %v17720_v47  ;;  %v7507_v45 = vsel %vm2111_vm5, %v7475_v39, %v11979_v42  ;;  %v6402_v39 = vld [vmem:[#allocation3 + $0x199] sm:$0xff] }
 0x6a5   : > { %v11987_v30 = vpop.permute.xlu1 %11986  ;;  %12271 = vrot.lane.b32.xlu0 %v17650_v1, %s12656_s20 }
 0x6a6   : > { %v11989_v56 = vunpack.i.h.bf16 %v11987_v30  ;;  %v11988_v40 = vunpack.i.l.bf16 %v11987_v30  ;;  %v7537_v14 = vsel %vm2177_vm7, %v7505_v57, %v11984_v9 }
 0x6a7   : > { %v11992_v7 = vpop.permute.xlu0 %11991  ;;  %12276 = vrot.lane.b32.xlu1 %v17648_v51, %s12645_s2  ;;  %v6274_v51 = vld [vmem:[#allocation3 + $0x180] sm:$0xff] }
 0x6a8   : > { %v17742_v35 = vpack.i.bf16 %v6275_v62, %v6274_v51  ;;  %v11994_v43 = vunpack.i.h.bf16 %v11992_v7  ;;  %v11993_v53 = vunpack.i.l.bf16 %v11992_v7  ;;  %v7539_v16 = vsel %vm2177_vm7, %v7507_v45, %v11989_v56 }
 0x6a9   : > { %v17730_v25 = vpop.permute.xlu1 %11996  ;;  %12281 = vrot.lane.b32.xlu0 %v17728_v33, %s12656_s20 }
 0x6aa   : > { %v7569_v36 = vsel %vm2243_vm9, %v7537_v14, %v11994_v43  ;;  %v11999_v30 = vunpack.i.h.bf16 %v17730_v25  ;;  %v11998_v7 = vunpack.i.l.bf16 %v17730_v25  ;;  %v6403_v43 = vld [vmem:[#allocation3 + $0x1a1] sm:$0xff] }
 0x6ab   : > { %v12002_v34 = vpop.permute.xlu0 %12001  ;;  %12286 = vrot.lane.b32.xlu1 %v17718_v19, %s12645_s2  ;;  %v12345_v45 = vpack.i.bf16 %v6403_v43, %v6402_v39 }
 0x6ac   : > { %v12004_v55 = vunpack.i.h.bf16 %v12002_v34  ;;  %v12003_v10 = vunpack.i.l.bf16 %v12002_v34  ;;  %v7571_v48 = vsel %vm2243_vm9, %v7539_v16, %v11999_v30 }
 0x6ad   : > { %v17738_v63 = vpop.permute.xlu1 %12006  ;;  %12291 = vrot.lane.b32.xlu0 %v17650_v1, %s12647_s24  ;;  %v6162_v1 = vld [vmem:[#allocation3 + $0xa8] sm:$0xff] }
 0x6ae   : > { %v7474_v17 = vsel %vm2045_vm2, %v6162_v1, %v11968_v18  ;;  %v7602_v24 = vsel %vm7588_vm13, %v7569_v36, %v12004_v55  ;;  %v12009_v8 = vunpack.i.h.bf16 %v17738_v63  ;;  %v12008_v34 = vunpack.i.l.bf16 %v17738_v63  ;;  %v6370_v18 = vld [vmem:[#allocation3 + $0x198] sm:$0xff] }
 0x6af   : > { %v12012_v32 = vpop.permute.xlu0 %12011  ;;  %12296 = vrot.lane.b32.xlu1 %v17728_v33, %s12647_s24  ;;  %v7506_v13 = vsel %vm2111_vm5, %v7474_v17, %v11978_v52 }
 0x6b0   : > { %v12014_v20 = vunpack.i.h.bf16 %v12012_v32  ;;  %v12013_v4 = vunpack.i.l.bf16 %v12012_v32  ;;  %v7538_v2 = vsel %vm2177_vm7, %v7506_v13, %v11988_v40  ;;  %v7604_v1 = vsel %vm7588_vm13, %v7571_v48, %v12009_v8 }
 0x6b1   : > { %v12017_v59 = vpop.permute.xlu1 %12016  ;;  %12301 = vrot.lane.b32.xlu0 %v12255_v61, %s12649_s26  ;;  %v7536_v61 = vsel %vm2177_vm7, %v7504_v0, %v11983_v46  ;;  %v7570_v6 = vsel %vm2243_vm9, %v7538_v2, %v11998_v7  ;;  %v12335_v46 = vpack.i.bf16 %v6371_v27, %v6370_v18  ;;  %v6165_v7 = vld [vmem:[#allocation3 + $0xc8] sm:$0xff] }
 0x6b2   : > { %v7568_v3 = vsel %vm2243_vm9, %v7536_v61, %v11993_v53  ;;  %v7635_v29 = vsel %vm7621_vm14, %v7602_v24, %v12014_v20  ;;  %v12018_v51 = vunpack.i.l.bf16 %v12017_v59  ;;  %v7603_v32 = vsel %vm7588_vm13, %v7570_v6, %v12008_v34  ;;  %v6434_v20 = vld [vmem:[#allocation3 + $0x19a] sm:$0xff] }
 0x6b3   : > { %v12022_v58 = vpop.permute.xlu0 %12021  ;;  %12306 = vrot.lane.b32.xlu1 %v17742_v35, %s12649_s26  ;;  %v7601_v62 = vsel %vm7588_vm13, %v7568_v3, %v12003_v10 }
 0x6b4   : > { %v12024_v47 = vunpack.i.h.bf16 %v12022_v58  ;;  %v12023_v49 = vunpack.i.l.bf16 %v12022_v58  ;;  %v7634_v31 = vsel %vm7621_vm14, %v7601_v62, %v12013_v4  ;;  %v7636_v56 = vsel %vm7621_vm14, %v7603_v32, %v12018_v51  ;;  %v6435_v4 = vld [vmem:[#allocation3 + $0x1a2] sm:$0xff] }
 0x6b5   : > { %v12027_v44 = vpop.permute.xlu1 %12026  ;;  %12311 = vrot.lane.b32.xlu0 %v17718_v19, %s12651_s15  ;;  %v12019_v19 = vunpack.i.h.bf16 %v12017_v59 }
 0x6b6   : > { %v7667_v23 = vsel %vm7654_vm15, %v7634_v31, %v12023_v49  ;;  %v7668_v37 = vsel %vm7654_vm15, %v7635_v29, %v12024_v47  ;;  %v12029_v22 = vunpack.i.h.bf16 %v12027_v44  ;;  %v12028_v63 = vunpack.i.l.bf16 %v12027_v44 }
 0x6b7   : > { %v12032_v21 = vpop.permute.xlu0 %12031  ;;  %12316 = vrot.lane.b32.xlu1 %v17744_v12, %s12651_s15 }
 0x6b8   : > { %v12034_v26 = vunpack.i.h.bf16 %v12032_v21  ;;  %v12033_v25 = vunpack.i.l.bf16 %v12032_v21  ;;  %v7669_v53 = vsel %vm7654_vm15, %v7636_v56, %v12028_v63  ;;  %v6166_v21 = vld [vmem:[#allocation3 + $0xd8] sm:$0xff] }
 0x6b9   : > { %v12037_v38 = vpop.permute.xlu1 %12036  ;;  %12321 = vrot.lane.b32.xlu0 %v17728_v33, %s12653_s25  ;;  %v7637_v33 = vsel %vm7621_vm14, %v7604_v1, %v12019_v19  ;;  %v6167_v19 = vld [vmem:[#allocation3 + $0xe0] sm:$0xff] }
 0x6ba   : > { %v7700_v42 = vsel %vm7687_vm1, %v7667_v23, %v12033_v25  ;;  %v7701_v52 = vsel %vm7687_vm1, %v7668_v37, %v12034_v26  ;;  %v7670_v59 = vsel %vm7654_vm15, %v7637_v33, %v12029_v22  ;;  %v12039_v3 = vunpack.i.h.bf16 %v12037_v38 }
 0x6bb   : > { %v12042_v28 = vpop.permute.xlu0 %12041  ;;  %12326 = vrot.lane.b32.xlu1 %v17746_v11, %s12653_s25  ;;  %v7726_v9 = vpack.c.bf16 %v7701_v52, %v7700_v42  ;;  %v12038_v36 = vunpack.i.l.bf16 %v12037_v38  ;;  %s19744_s25 = sshll.u32 %s19790_s30, 8 }
 0x6bc   : > { %v12044_v40 = vunpack.i.h.bf16 %v12042_v28  ;;  %v12043_v17 = vunpack.i.l.bf16 %v12042_v28  ;;  %v7477_v8 = vsel %vm2045_vm2, %v6165_v7, %v12039_v3 }
 0x6bd   : > { %9700 = vmatprep.mubr.msk.bf16.mxu1 %vm7772_vm4, %v7726_v9  ;;  %v12047_v0 = vpop.permute.xlu1 %12046  ;;  %12331 = vrot.lane.b32.xlu0 %v17742_v35, %s12654_s22  ;;  %v12355_v35 = vpack.i.bf16 %v6435_v4, %v6434_v20 }
 0x6be   : > { %v7702_v57 = vsel %vm7687_vm1, %v7669_v53, %v12043_v17  ;;  %v7703_v55 = vsel %vm7687_vm1, %v7670_v59, %v12044_v40  ;;  %v12049_v49 = vunpack.i.h.bf16 %v12047_v0  ;;  %v12048_v44 = vunpack.i.l.bf16 %v12047_v0 }
 0x6bf   : > { %v12052_v10 = vpop.permute.xlu0 %12051  ;;  %12336 = vrot.lane.b32.xlu1 %v12335_v46, %s12654_s22  ;;  %v7727_v13 = vpack.c.bf16 %v7703_v55, %v7702_v57  ;;  %s18731_s22 = scalar_lea.vmem %s18887_s18, %s19744_s25 }
 0x6c0   : > { %v12054_v62 = vunpack.i.h.bf16 %v12052_v10  ;;  %v12053_v24 = vunpack.i.l.bf16 %v12052_v10  ;;  %v7478_v27 = vsel %vm2045_vm2, %v6166_v21, %v12048_v44  ;;  %v7479_v23 = vsel %vm2045_vm2, %v6167_v19, %v12049_v49 }
 0x6c1   : > { %9701 = vmatmul.mubr.msk.bf16.gmra.mrb[60].mxu1 %vm7772_vm4, %v7727_v13  ;;  %v12057_v58 = vpop.permute.xlu1 %12056  ;;  %12341 = vrot.lane.b32.xlu0 %v17744_v12, %s12655_s1  ;;  %v6164_v12 = vld [vmem:[#allocation3 + $0xc0] sm:$0xff] }
 0x6c2   : > { %v12059_v34 = vunpack.i.h.bf16 %v12057_v58  ;;  %v12058_v31 = vunpack.i.l.bf16 %v12057_v58  ;;  %v7509_v6 = vsel %vm2111_vm5, %v7477_v8, %v12054_v62 }
 0x6c3   : > { %v12062_v14 = vpop.permute.xlu0 %12061  ;;  %12346 = vrot.lane.b32.xlu1 %v12345_v45, %s12655_s1 }
 0x6c4   : > { %v12064_v51 = vunpack.i.h.bf16 %v12062_v14  ;;  %v12063_v26 = vunpack.i.l.bf16 %v12062_v14  ;;  %v7510_v52 = vsel %vm2111_vm5, %v7478_v27, %v12058_v31  ;;  %v7511_v32 = vsel %vm2111_vm5, %v7479_v23, %v12059_v34 }
 0x6c5   : > { %v12067_v61 = vpop.permute.xlu1 %12066  ;;  %12351 = vrot.lane.b32.xlu0 %v17746_v11, %s12656_s20  ;;  %v7476_v11 = vsel %vm2045_vm2, %v6164_v12, %v12038_v36 }
 0x6c6   : > { %v12069_v25 = vunpack.i.h.bf16 %v12067_v61  ;;  %v12068_v18 = vunpack.i.l.bf16 %v12067_v61  ;;  %v7508_v38 = vsel %vm2111_vm5, %v7476_v11, %v12053_v24  ;;  %v7541_v46 = vsel %vm2177_vm7, %v7509_v6, %v12064_v51 }
 0x6c7   : > { %v12072_v2 = vpop.permute.xlu0 %12071  ;;  %12356 = vrot.lane.b32.xlu1 %v12355_v35, %s12656_s20  ;;  %v7540_v33 = vsel %vm2177_vm7, %v7508_v38, %v12063_v26 }
 0x6c8   : > { %v12074_v37 = vunpack.i.h.bf16 %v12072_v2  ;;  %v12073_v22 = vunpack.i.l.bf16 %v12072_v2  ;;  %v7542_v56 = vsel %vm2177_vm7, %v7510_v52, %v12068_v18  ;;  %v7543_v40 = vsel %vm2177_vm7, %v7511_v32, %v12069_v25 }
 0x6c9   : > { %v17810_v16 = vpop.permute.xlu1 %12076 }
 0x6ca   : > { %v7572_v17 = vsel %vm2243_vm9, %v7540_v33, %v12073_v22  ;;  %v7573_v39 = vsel %vm2243_vm9, %v7541_v46, %v12074_v37  ;;  %v12079_v0 = vunpack.i.h.bf16 %v17810_v16  ;;  %v12078_v57 = vunpack.i.l.bf16 %v17810_v16  ;;  %v6169_v46 = vld [vmem:[#allocation3 + $0xf8] sm:$0xff] }
 0x6cb   : > { %v12082_v47 = vpop.permute.xlu0 %12081 }
 0x6cc   : > { %v12084_v48 = vunpack.i.h.bf16 %v12082_v47  ;;  %v12083_v42 = vunpack.i.l.bf16 %v12082_v47  ;;  %v7574_v44 = vsel %vm2243_vm9, %v7542_v56, %v12078_v57 }
 0x6cd   : > { %v17812_v30 = vpop.permute.xlu1 %12086 }
 0x6ce   : > { %v7605_v55 = vsel %vm7588_vm13, %v7572_v17, %v12083_v42  ;;  %v7606_v10 = vsel %vm7588_vm13, %v7573_v39, %v12084_v48  ;;  %v12089_v13 = vunpack.i.h.bf16 %v17812_v30  ;;  %v12088_v45 = vunpack.i.l.bf16 %v17812_v30 }
 0x6cf   : > { %v12092_v29 = vpop.permute.xlu0 %12091  ;;  %v7575_v30 = vsel %vm2243_vm9, %v7543_v40, %v12079_v0  ;;  %v6171_v0 = vld [vmem:[#allocation3 + $0x110] sm:$0xff] }
 0x6d0   : > { %v12094_v1 = vunpack.i.h.bf16 %v12092_v29  ;;  %v12093_v28 = vunpack.i.l.bf16 %v12092_v29  ;;  %v7607_v62 = vsel %vm7588_vm13, %v7574_v44, %v12088_v45  ;;  %v7608_v24 = vsel %vm7588_vm13, %v7575_v30, %v12089_v13 }
 0x6d1   : > { %v12097_v63 = vpop.permute.xlu1 %12096 }
 0x6d2   : > { %v7638_v20 = vsel %vm7621_vm14, %v7605_v55, %v12093_v28  ;;  %v7639_v4 = vsel %vm7621_vm14, %v7606_v10, %v12094_v1  ;;  %v12099_v14 = vunpack.i.h.bf16 %v12097_v63  ;;  %v12098_v35 = vunpack.i.l.bf16 %v12097_v63 }
 0x6d3   : > { %v12102_v9 = vpop.permute.xlu0 %12101 }
 0x6d4   : > { %v12104_v43 = vunpack.i.h.bf16 %v12102_v9  ;;  %v12103_v53 = vunpack.i.l.bf16 %v12102_v9  ;;  %v7641_v34 = vsel %vm7621_vm14, %v7608_v24, %v12099_v14  ;;  %v7640_v31 = vsel %vm7621_vm14, %v7607_v62, %v12098_v35  ;;  %v6168_v9 = vld [vmem:[#allocation3 + $0xf0] sm:$0xff] }
 0x6d5   : > { %v12107_v59 = vpop.permute.xlu1 %12106 }
 0x6d6   : > { %v7671_v3 = vsel %vm7654_vm15, %v7638_v20, %v12103_v53  ;;  %v7672_v16 = vsel %vm7654_vm15, %v7639_v4, %v12104_v43  ;;  %v12109_v36 = vunpack.i.h.bf16 %v12107_v59  ;;  %v12108_v47 = vunpack.i.l.bf16 %v12107_v59  ;;  %v6170_v59 = vld [vmem:[#allocation3 + $0x108] sm:$0xff] }
 0x6d7   : > { %v12112_v58 = vpop.permute.xlu0 %12111 }
 0x6d8   : > { %v12114_v61 = vunpack.i.h.bf16 %v12112_v58  ;;  %v12113_v2 = vunpack.i.l.bf16 %v12112_v58  ;;  %v7673_v19 = vsel %vm7654_vm15, %v7640_v31, %v12108_v47  ;;  %v7674_v51 = vsel %vm7654_vm15, %v7641_v34, %v12109_v36 }
 0x6d9   : > { %v12117_v49 = vpop.permute.xlu1 %12116 }
 0x6da   : > { %v7704_v12 = vsel %vm7687_vm1, %v7671_v3, %v12113_v2  ;;  %v7705_v7 = vsel %vm7687_vm1, %v7672_v16, %v12114_v61  ;;  %v12119_v48 = vunpack.i.h.bf16 %v12117_v49  ;;  %v12118_v42 = vunpack.i.l.bf16 %v12117_v49 }
 0x6db   : > { %v12122_v8 = vpop.permute.xlu0 %12121  ;;  %v7728_v11 = vpack.c.bf16 %v7705_v7, %v7704_v12 }
 0x6dc   : > { %v12124_v29 = vunpack.i.h.bf16 %v12122_v8  ;;  %v12123_v21 = vunpack.i.l.bf16 %v12122_v8  ;;  %v7481_v40 = vsel %vm2045_vm2, %v6169_v46, %v12119_v48  ;;  %v7480_v17 = vsel %vm2045_vm2, %v6168_v9, %v12118_v42 }
 0x6dd   : > { %9704 = vmatprep.mubr.msk.bf16.mxu1 %vm7772_vm4, %v7728_v11  ;;  %v12127_v26 = vpop.permute.xlu1 %12126 }
 0x6de   : > { %v7706_v25 = vsel %vm7687_vm1, %v7673_v19, %v12123_v21  ;;  %v7707_v18 = vsel %vm7687_vm1, %v7674_v51, %v12124_v29  ;;  %v12129_v32 = vunpack.i.h.bf16 %v12127_v26  ;;  %v12128_v1 = vunpack.i.l.bf16 %v12127_v26 }
 0x6df   : > { %v12132_v27 = vpop.permute.xlu0 %12131  ;;  %v7729_v23 = vpack.c.bf16 %v7707_v18, %v7706_v25 }
 0x6e0   : > { %v12134_v33 = vunpack.i.h.bf16 %v12132_v27  ;;  %v12133_v56 = vunpack.i.l.bf16 %v12132_v27  ;;  %v7482_v45 = vsel %vm2045_vm2, %v6170_v59, %v12128_v1  ;;  %v7483_v20 = vsel %vm2045_vm2, %v6171_v0, %v12129_v32 }
 0x6e1   : > { %9705 = vmatmul.mubr.msk.bf16.gmra.mrb[64].mxu1 %vm7772_vm4, %v7729_v23  ;;  %v12137_v37 = vpop.permute.xlu1 %12136 }
 0x6e2   : > { %v12139_v39 = vunpack.i.h.bf16 %v12137_v37  ;;  %v12138_v43 = vunpack.i.l.bf16 %v12137_v37  ;;  %v7512_v35 = vsel %vm2111_vm5, %v7480_v17, %v12133_v56  ;;  %v7513_v61 = vsel %vm2111_vm5, %v7481_v40, %v12134_v33 }
 0x6e3   : > { %v12142_v22 = vpop.permute.xlu0 %12141 }
 0x6e4   : > { %v12144_v57 = vunpack.i.h.bf16 %v12142_v22  ;;  %v12143_v55 = vunpack.i.l.bf16 %v12142_v22  ;;  %v7514_v16 = vsel %vm2111_vm5, %v7482_v45, %v12138_v43  ;;  %v7515_v36 = vsel %vm2111_vm5, %v7483_v20, %v12139_v39 }
 0x6e5   : > { %v12147_v63 = vpop.permute.xlu1 %12146 }
 0x6e6   : > { %v12149_v10 = vunpack.i.h.bf16 %v12147_v63  ;;  %v12148_v13 = vunpack.i.l.bf16 %v12147_v63  ;;  %v7545_v30 = vsel %vm2177_vm7, %v7513_v61, %v12144_v57  ;;  %v7544_v12 = vsel %vm2177_vm7, %v7512_v35, %v12143_v55 }
 0x6e7   : > { %v12152_v38 = vpop.permute.xlu0 %12151 }
 0x6e8   : > { %v12154_v4 = vunpack.i.h.bf16 %v12152_v38  ;;  %v12153_v58 = vunpack.i.l.bf16 %v12152_v38  ;;  %v7546_v7 = vsel %vm2177_vm7, %v7514_v16, %v12148_v13  ;;  %v7547_v62 = vsel %vm2177_vm7, %v7515_v36, %v12149_v10 }
 0x6e9   : > { %v17852_v6 = vpop.permute.xlu1 %12156 }
 0x6ea   : > { %v7576_v24 = vsel %vm2243_vm9, %v7544_v12, %v12153_v58  ;;  %v7577_v8 = vsel %vm2243_vm9, %v7545_v30, %v12154_v4  ;;  %v12159_v29 = vunpack.i.h.bf16 %v17852_v6  ;;  %v12158_v21 = vunpack.i.l.bf16 %v17852_v6  ;;  %v6173_v30 = vld [vmem:[#allocation3 + $0x128] sm:$0xff] }
 0x6eb   : > { %v12162_v52 = vpop.permute.xlu0 %12161 }
 0x6ec   : > { %v12164_v2 = vunpack.i.h.bf16 %v12162_v52  ;;  %v12163_v3 = vunpack.i.l.bf16 %v12162_v52  ;;  %v7578_v1 = vsel %vm2243_vm9, %v7546_v7, %v12158_v21 }
 0x6ed   : > { %v17854_v28 = vpop.permute.xlu1 %12166 }
 0x6ee   : > { %v7609_v19 = vsel %vm7588_vm13, %v7576_v24, %v12163_v3  ;;  %v7610_v51 = vsel %vm7588_vm13, %v7577_v8, %v12164_v2  ;;  %v12169_v26 = vunpack.i.h.bf16 %v17854_v28  ;;  %v12168_v25 = vunpack.i.l.bf16 %v17854_v28 }
 0x6ef   : > { %v12172_v53 = vpop.permute.xlu0 %12171  ;;  %v7579_v28 = vsel %vm2243_vm9, %v7547_v62, %v12159_v29 }
 0x6f0   : > { %v12174_v47 = vunpack.i.h.bf16 %v12172_v53  ;;  %v12173_v49 = vunpack.i.l.bf16 %v12172_v53  ;;  %v7611_v33 = vsel %vm7588_vm13, %v7578_v1, %v12168_v25  ;;  %v7612_v56 = vsel %vm7588_vm13, %v7579_v28, %v12169_v26 }
 0x6f1   : > { %v12177_v14 = vpop.permute.xlu1 %12176 }
 0x6f2   : > { %v7642_v18 = vsel %vm7621_vm14, %v7609_v19, %v12173_v49  ;;  %v7643_v27 = vsel %vm7621_vm14, %v7610_v51, %v12174_v47  ;;  %v12179_v37 = vunpack.i.h.bf16 %v12177_v14  ;;  %v12178_v22 = vunpack.i.l.bf16 %v12177_v14 }
 0x6f3   : > { %v12182_v44 = vpop.permute.xlu0 %12181 }
 0x6f4   : > { %v12184_v11 = vunpack.i.h.bf16 %v12182_v44  ;;  %v12183_v34 = vunpack.i.l.bf16 %v12182_v44  ;;  %v7645_v39 = vsel %vm7621_vm14, %v7612_v56, %v12179_v37  ;;  %v7644_v43 = vsel %vm7621_vm14, %v7611_v33, %v12178_v22  ;;  %v6172_v44 = vld [vmem:[#allocation3 + $0x120] sm:$0xff] }
 0x6f5   : > { %v12187_v31 = vpop.permute.xlu1 %12186 }
 0x6f6   : > { %v7675_v48 = vsel %vm7654_vm15, %v7642_v18, %v12183_v34  ;;  %v7676_v6 = vsel %vm7654_vm15, %v7643_v27, %v12184_v11  ;;  %v12189_v42 = vunpack.i.h.bf16 %v12187_v31  ;;  %v12188_v52 = vunpack.i.l.bf16 %v12187_v31 }
 0x6f7   : > { %v12192_v23 = vpop.permute.xlu0 %12191 }
 0x6f8   : > { %v12194_v63 = vunpack.i.h.bf16 %v12192_v23  ;;  %v12193_v38 = vunpack.i.l.bf16 %v12192_v23  ;;  %v7677_v0 = vsel %vm7654_vm15, %v7644_v43, %v12188_v52  ;;  %v7678_v57 = vsel %vm7654_vm15, %v7645_v39, %v12189_v42 }
 0x6f9   : > { %v12197_v32 = vpop.permute.xlu1 %12196 }
 0x6fa   : > { %v7708_v9 = vsel %vm7687_vm1, %v7675_v48, %v12193_v38  ;;  %v7709_v46 = vsel %vm7687_vm1, %v7676_v6, %v12194_v63  ;;  %v12199_v2 = vunpack.i.h.bf16 %v12197_v32  ;;  %v12198_v3 = vunpack.i.l.bf16 %v12197_v32 }
 0x6fb   : > { %v7730_v40 = vpack.c.bf16 %v7709_v46, %v7708_v9  ;;  %v12202_v17 = vpop.permute.xlu0 %12201 }
 0x6fc   : > { %v12204_v53 = vunpack.i.h.bf16 %v12202_v17  ;;  %v12203_v59 = vunpack.i.l.bf16 %v12202_v17  ;;  %v7485_v62 = vsel %vm2045_vm2, %v6173_v30, %v12199_v2  ;;  %v7484_v24 = vsel %vm2045_vm2, %v6172_v44, %v12198_v3 }
 0x6fd   : > { %9708 = vmatprep.mubr.msk.bf16.mxu1 %vm7772_vm4, %v7730_v40  ;;  %v12207_v55 = vpop.permute.xlu1 %12206 }
 0x6fe   : > { %v7710_v10 = vsel %vm7687_vm1, %v7677_v0, %v12203_v59  ;;  %v7711_v13 = vsel %vm7687_vm1, %v7678_v57, %v12204_v53  ;;  %v12209_v36 = vunpack.i.h.bf16 %v12207_v55  ;;  %v12208_v47 = vunpack.i.l.bf16 %v12207_v55 }
 0x6ff   : > { %v7731_v45 = vpack.c.bf16 %v7711_v13, %v7710_v10  ;;  %v12212_v20 = vpop.permute.xlu0 %12211 }
 0x700   : > { %v12214_v12 = vunpack.i.h.bf16 %v12212_v20  ;;  %v12213_v7 = vunpack.i.l.bf16 %v12212_v20  ;;  %v7486_v51 = vsel %vm2045_vm2, %v17604_v50, %v12208_v47  ;;  %v7487_v26 = vsel %vm2045_vm2, %v17596_v54, %v12209_v36 }
 0x701   : > { %9709 = vmatmul.mubr.msk.bf16.gmra.mrb[68].mxu1 %vm7772_vm4, %v7731_v45  ;;  %v12217_v4 = vpop.permute.xlu1 %12216 }
 0x702   : > { %v12219_v8 = vunpack.i.h.bf16 %v12217_v4  ;;  %v12218_v11 = vunpack.i.l.bf16 %v12217_v4  ;;  %v7516_v23 = vsel %vm2111_vm5, %v7484_v24, %v12213_v7  ;;  %v7517_v37 = vsel %vm2111_vm5, %v7485_v62, %v12214_v12 }
 0x703   : > { %v12222_v58 = vpop.permute.xlu0 %12221 }
 0x704   : > { %v12224_v31 = vunpack.i.h.bf16 %v12222_v58  ;;  %v12223_v29 = vunpack.i.l.bf16 %v12222_v58  ;;  %v7518_v38 = vsel %vm2111_vm5, %v7486_v51, %v12218_v11  ;;  %v7519_v48 = vsel %vm2111_vm5, %v7487_v26, %v12219_v8 }
 0x705   : > { %v12227_v14 = vpop.permute.xlu1 %12226 }
 0x706   : > { %v12229_v21 = vunpack.i.h.bf16 %v12227_v14  ;;  %v12228_v19 = vunpack.i.l.bf16 %v12227_v14  ;;  %v7549_v50 = vsel %vm2177_vm7, %v7517_v37, %v12224_v31  ;;  %v7548_v54 = vsel %vm2177_vm7, %v7516_v23, %v12223_v29 }
 0x707   : > { %v12232_v35 = vpop.permute.xlu0 %12231 }
 0x708   : > { %v12234_v25 = vunpack.i.h.bf16 %v12232_v35  ;;  %v12233_v18 = vunpack.i.l.bf16 %v12232_v35  ;;  %v7550_v32 = vsel %vm2177_vm7, %v7518_v38, %v12228_v19  ;;  %v7551_v1 = vsel %vm2177_vm7, %v7519_v48, %v12229_v21 }
 0x709   : > { %v17894_v61 = vpop.permute.xlu1 %12236 }
 0x70a   : > { %v7580_v28 = vsel %vm2243_vm9, %v7548_v54, %v12233_v18  ;;  %v7581_v9 = vsel %vm2243_vm9, %v7549_v50, %v12234_v25  ;;  %v12239_v40 = vunpack.i.h.bf16 %v17894_v61  ;;  %v12238_v17 = vunpack.i.l.bf16 %v17894_v61 }
 0x70b   : > { %v12242_v16 = vpop.permute.xlu0 %12241 }
 0x70c   : > { %v12244_v22 = vunpack.i.h.bf16 %v12242_v16  ;;  %v12243_v63 = vunpack.i.l.bf16 %v12242_v16  ;;  %v7582_v2 = vsel %vm2243_vm9, %v7550_v32, %v12238_v17  ;;  %v7583_v3 = vsel %vm2243_vm9, %v7551_v1, %v12239_v40 }
 0x70d   : > { %v12247_v49 = vpop.permute.xlu1 %12246 }
 0x70e   : > { %v7613_v39 = vsel %vm7588_vm13, %v7580_v28, %v12243_v63  ;;  %v7614_v43 = vsel %vm7588_vm13, %v7581_v9, %v12244_v22  ;;  %v12249_v53 = vunpack.i.h.bf16 %v12247_v49  ;;  %v12248_v59 = vunpack.i.l.bf16 %v12247_v49 }
 0x70f   : > { %v12252_v34 = vpop.permute.xlu0 %12251 }
 0x710   : > { %v12254_v6 = vunpack.i.h.bf16 %v12252_v34  ;;  %v12253_v42 = vunpack.i.l.bf16 %v12252_v34  ;;  %v7615_v47 = vsel %vm7588_vm13, %v7582_v2, %v12248_v59  ;;  %v7616_v49 = vsel %vm7588_vm13, %v7583_v3, %v12249_v53 }
 0x711   : > { %v12257_v27 = vpop.permute.xlu1 %12256 }
 0x712   : > { %v7646_v0 = vsel %vm7621_vm14, %v7613_v39, %v12253_v42  ;;  %v7647_v57 = vsel %vm7621_vm14, %v7614_v43, %v12254_v6  ;;  %v12259_v10 = vunpack.i.h.bf16 %v12257_v27  ;;  %v12258_v13 = vunpack.i.l.bf16 %v12257_v27 }
 0x713   : > { %v12262_v52 = vpop.permute.xlu0 %12261 }
 0x714   : > { %v12264_v46 = vunpack.i.h.bf16 %v12262_v52  ;;  %v12263_v33 = vunpack.i.l.bf16 %v12262_v52  ;;  %v7649_v12 = vsel %vm7621_vm14, %v7616_v49, %v12259_v10  ;;  %v7648_v7 = vsel %vm7621_vm14, %v7615_v47, %v12258_v13  ;;  %v12634_v52 = vld [vmem:[#allocation3 + $0x158] sm:$0xff] }
 0x715   : > { %v12267_v56 = vpop.permute.xlu1 %12266 }
 0x716   : > { %v7679_v4 = vsel %vm7654_vm15, %v7646_v0, %v12263_v33  ;;  %v7680_v58 = vsel %vm7654_vm15, %v7647_v57, %v12264_v46  ;;  %v12269_v14 = vunpack.i.h.bf16 %v12267_v56  ;;  %v12268_v35 = vunpack.i.l.bf16 %v12267_v56 }
 0x717   : > { %v12272_v55 = vpop.permute.xlu0 %12271 }
 0x718   : > { %v12274_v45 = vunpack.i.h.bf16 %v12272_v55  ;;  %v12273_v20 = vunpack.i.l.bf16 %v12272_v55  ;;  %v7681_v8 = vsel %vm7654_vm15, %v7648_v7, %v12268_v35  ;;  %v7682_v11 = vsel %vm7654_vm15, %v7649_v12, %v12269_v14 }
 0x719   : > { %v12277_v61 = vpop.permute.xlu1 %12276 }
 0x71a   : > { %v7712_v16 = vsel %vm7687_vm1, %v7679_v4, %v12273_v20  ;;  %v7713_v36 = vsel %vm7687_vm1, %v7680_v58, %v12274_v45  ;;  %v12279_v27 = vunpack.i.h.bf16 %v12277_v61  ;;  %v12278_v23 = vunpack.i.l.bf16 %v12277_v61  ;;  %v17952_v61 = vld [vmem:[%s18877_s8] ss:$0 sm:$0xff] }
 0x71b   : > { %v7732_v44 = vpack.c.bf16 %v7713_v36, %v7712_v16  ;;  %v12282_v30 = vpop.permute.xlu0 %12281 }
 0x71c   : > { %v12284_v62 = vunpack.i.h.bf16 %v12282_v30  ;;  %v12283_v24 = vunpack.i.l.bf16 %v12282_v30  ;;  %v7489_v50 = vsel %vm2045_vm2, %v12634_v52, %v12279_v27  ;;  %v7488_v32 = vsel %vm2045_vm2, %v17639_v41, %v12278_v23  ;;  %v17980_v52 = vld [vmem:[%s18883_s14] ss:$0 sm:$0xff] }
 0x71d   : > { %9712 = vmatprep.mubr.msk.bf16.mxu1 %vm7772_vm4, %v7732_v44  ;;  %v12287_v34 = vpop.permute.xlu1 %12286 }
 0x71e   : > { %v7714_v31 = vsel %vm7687_vm1, %v7681_v8, %v12283_v24  ;;  %v7715_v29 = vsel %vm7687_vm1, %v7682_v11, %v12284_v62  ;;  %v12288_v37 = vunpack.i.l.bf16 %v12287_v34  ;;  %v12289_v63 = vunpack.i.h.bf16 %v12287_v34  ;;  %v17962_v62 = vld [vmem:[%s18878_s9] ss:$0 sm:$0xff] }
 0x71f   : > { %v7733_v21 = vpack.c.bf16 %v7715_v29, %v7714_v31  ;;  %v12292_v19 = vpop.permute.xlu0 %12291 }
 0x720   : > { %v12293_v38 = vunpack.i.l.bf16 %v12292_v19  ;;  %v12294_v48 = vunpack.i.h.bf16 %v12292_v19  ;;  %v7490_v1 = vsel %vm2045_vm2, %v17703_v15, %v12288_v37  ;;  %v7491_v33 = vsel %vm2045_vm2, %v17695_v5, %v12289_v63 }
 0x721   : > { %9713 = vmatmul.mubr.msk.bf16.gmra.mrb[72].mxu1 %vm7772_vm4, %v7733_v21  ;;  %v12297_v51 = vpop.permute.xlu1 %12296 }
 0x722   : > { %v12298_v6 = vunpack.i.l.bf16 %v12297_v51  ;;  %v12299_v54 = vunpack.i.h.bf16 %v12297_v51  ;;  %v7520_v56 = vsel %vm2111_vm5, %v7488_v32, %v12293_v38  ;;  %v7521_v39 = vsel %vm2111_vm5, %v7489_v50, %v12294_v48 }
 0x723   : > { %v12302_v26 = vpop.permute.xlu0 %12301 }
 0x724   : > { %v12304_v28 = vunpack.i.h.bf16 %v12302_v26  ;;  %v12303_v9 = vunpack.i.l.bf16 %v12302_v26  ;;  %v7522_v43 = vsel %vm2111_vm5, %v7490_v1, %v12298_v6  ;;  %v7523_v0 = vsel %vm2111_vm5, %v7491_v33, %v12299_v54 }
 0x725   : > { %v12307_v25 = vpop.permute.xlu1 %12306  ;;  %vm12657_vm5 = vmmov 0  }
 0x726   : > { %v12309_v40 = vunpack.i.h.bf16 %v12307_v25  ;;  %v12308_v17 = vunpack.i.l.bf16 %v12307_v25  ;;  %v7553_v10 = vsel %vm2177_vm7, %v7521_v39, %v12304_v28  ;;  %v7552_v5 = vsel %vm2177_vm7, %v7520_v56, %v12303_v9  ;;  %9722 = vmatprep.mubr.msk.f32.mxu0 %vm12657_vm5, %v19598_v60 }
 0x727   : > { %v12312_v18 = vpop.permute.xlu0 %12311 }
 0x728   : > { %v12314_v53 = vunpack.i.h.bf16 %v12312_v18  ;;  %v12313_v59 = vunpack.i.l.bf16 %v12312_v18  ;;  %v7554_v4 = vsel %vm2177_vm7, %v7522_v43, %v12308_v17  ;;  %v7555_v58 = vsel %vm2177_vm7, %v7523_v0, %v12309_v40 }
 0x729   : > { %v12317_v22 = vpop.permute.xlu1 %12316 }
 0x72a   : > { %v12319_v15 = vunpack.i.h.bf16 %v12317_v22  ;;  %v12318_v57 = vunpack.i.l.bf16 %v12317_v22  ;;  %v7584_v2 = vsel %vm2243_vm9, %v7552_v5, %v12313_v59  ;;  %v7585_v3 = vsel %vm2243_vm9, %v7553_v10, %v12314_v53 }
 0x72b   : > { %v12322_v42 = vpop.permute.xlu0 %12321 }
 0x72c   : > { %v12323_v55 = vunpack.i.l.bf16 %v12322_v42  ;;  %v12324_v13 = vunpack.i.h.bf16 %v12322_v42  ;;  %v7586_v49 = vsel %vm2243_vm9, %v7554_v4, %v12318_v57  ;;  %v7587_v44 = vsel %vm2243_vm9, %v7555_v58, %v12319_v15 }
 0x72d   : > { %v12327_v46 = vpop.permute.xlu1 %12326 }
 0x72e   : > { %v12328_v45 = vunpack.i.l.bf16 %v12327_v46  ;;  %v12329_v14 = vunpack.i.h.bf16 %v12327_v46  ;;  %v7617_v30 = vsel %vm7588_vm13, %v7584_v2, %v12323_v55  ;;  %v7618_v24 = vsel %vm7588_vm13, %v7585_v3, %v12324_v13 }
 0x72f   : > { %v12332_v41 = vpop.permute.xlu0 %12331 }
 0x730   : > { %v12333_v35 = vunpack.i.l.bf16 %v12332_v41  ;;  %v12334_v16 = vunpack.i.h.bf16 %v12332_v41  ;;  %v7619_v8 = vsel %vm7588_vm13, %v7586_v49, %v12328_v45  ;;  %v7620_v21 = vsel %vm7588_vm13, %v7587_v44, %v12329_v14 }
 0x731   : > { %v12337_v20 = vpop.permute.xlu1 %12336 }
 0x732   : > { %v12338_v36 = vunpack.i.l.bf16 %v12337_v20  ;;  %v12339_v12 = vunpack.i.h.bf16 %v12337_v20  ;;  %v7650_v19 = vsel %vm7621_vm14, %v7617_v30, %v12333_v35  ;;  %v7651_v18 = vsel %vm7621_vm14, %v7618_v24, %v12334_v16 }
 0x733   : > { %v12342_v47 = vpop.permute.xlu0 %12341 }
 0x734   : > { %v9690_v7 = vpop.f32.mrb[48].mxu1  ;;  %v12344_v11 = vunpack.i.h.bf16 %v12342_v47  ;;  %v12343_v51 = vunpack.i.l.bf16 %v12342_v47  ;;  %v7652_v27 = vsel %vm7621_vm14, %v7619_v8, %v12338_v36  ;;  %v7653_v38 = vsel %vm7621_vm14, %v7620_v21, %v12339_v12 }
 0x735   : > { %v7995_v34 = vmul.f32 %v9690_v7, %v17952_v61  ;;  %v7859_v31 = vpop.f32.mrb[49].mxu1  ;;  %v12347_v29 = vpop.permute.xlu1 %12346 }
 0x736   : > { %v7993_v26 = vmul.f32 %v17952_v61, %v7859_v31  ;;  %v9691_v25 = vpop.f32.mrb[50].mxu1  ;;  %v12349_v37 = vunpack.i.h.bf16 %v12347_v29  ;;  %v12348_v48 = vunpack.i.l.bf16 %v12347_v29  ;;  %v7684_v50 = vsel %vm7654_vm15, %v7651_v18, %v12344_v11 }
 0x737   : > { %v17973_v23 = vadd.f32 %v17962_v62, %v7995_v34  ;;  %v7862_v22 = vpop.f32.mrb[51].mxu1  ;;  %v12352_v63 = vpop.permute.xlu0 %12351  ;;  %v7996_v32 = vmul.f32 %v9691_v25, %v17952_v61  ;;  %v7683_v9 = vsel %vm7654_vm15, %v7650_v19, %v12343_v51 }
 0x738   : > { %v7994_v6 = vmul.f32 %v17952_v61, %v7862_v22  ;;  %v12354_v42 = vunpack.i.h.bf16 %v12352_v63  ;;  %v17984_v54 = vadd.f32 %v17962_v62, %v7993_v26  ;;  %v12353_v1 = vunpack.i.l.bf16 %v12352_v63 }
 0x739   : > { %v12357_v28 = vpop.permute.xlu1 %12356  ;;  %v7686_v40 = vsel %vm7654_vm15, %v7653_v38, %v12349_v37  ;;  %v8304_v43 = vmul.f32 %v17980_v52, %v17973_v23  ;;  %v7685_v53 = vsel %vm7654_vm15, %v7652_v27, %v12348_v48  ;;  %v18001_v15 = vadd.f32 %v17962_v62, %v7996_v32 }
 0x73a   : > { %v17989_v46 = vadd.f32 %v17962_v62, %v7994_v6  ;;  %v7717_v33 = vsel %vm7687_vm1, %v7684_v50, %v12354_v42  ;;  %v12359_v56 = vunpack.i.h.bf16 %v12357_v28  ;;  %v7716_v17 = vsel %vm7687_vm1, %v7683_v9, %v12353_v1 }
 0x73b   : > { %v12358_v39 = vunpack.i.l.bf16 %v12357_v28  ;;  %v7734_v59 = vpack.c.bf16 %v7717_v33, %v7716_v17  ;;  %v8340_v55 = vsel %vm2045_vm2, %v8304_v43, 0.0  ;;  %v8302_v10 = vmul.f32 %v17980_v52, %v17984_v54 }
 0x73c   : > { %v7719_v41 = vsel %vm7687_vm1, %v7686_v40, %v12359_v56  ;;  %v8303_v0 = vmul.f32 %v17980_v52, %v17989_v46  ;;  %8341 = vadd.xlane.f32.xlu0 %v8340_v55  ;;  %v8305_v20 = vmul.f32 %v17980_v52, %v18001_v15  ;;  %v8135_v56 = vld [vmem:[%s18879_s10] sm:$0xff] }
 0x73d   : > { %v7718_v57 = vsel %vm7687_vm1, %v7685_v53, %v12358_v39  ;;  %9716 = vmatprep.mubr.msk.bf16.mxu1 %vm7772_vm4, %v7734_v59  ;;  %v8334_v45 = vsel %vm2045_vm2, %v8302_v10, 0.0  ;;  %9721 = vmatpush3.msra.mxu0 %v8135_v56  ;;  %v8069_v56 = vsel %vm2045_vm2, %v18001_v15, 0.0 }
 0x73e   : > { %v7735_v5 = vpack.c.bf16 %v7719_v41, %v7718_v57  ;;  %v8337_v13 = vsel %vm2045_vm2, %v8303_v0, 0.0  ;;  %v8343_v4 = vsel %vm2045_vm2, %v8305_v20, 0.0 }
 0x73f   : > { %8338 = vadd.xlane.f32.xlu1 %v8337_v13 }
 0x740   : > { %9717 = vmatmul.mubr.msk.bf16.gmra.mrb[76].mxu1 %vm7772_vm4, %v7735_v5  ;;  %8335 = vadd.xlane.f32.xlu0 %v8334_v45 }
 0x741   : > { %9727 = vmatprep.mubr.msk.f32.mxu1 %vm12657_vm5, %v19598_v60 }
 0x744   : > { %8344 = vadd.xlane.f32.xlu0 %v8343_v4 }
 0x754   : > { %v9694_v58 = vpop.f32.mrb[52].mxu1 }
 0x755   : > { %v7999_v14 = vmul.f32 %v9694_v58, %v17952_v61  ;;  %v7875_v35 = vpop.f32.mrb[53].mxu1 }
 0x756   : > { %v7997_v2 = vmul.f32 %v17952_v61, %v7875_v35  ;;  %v9695_v3 = vpop.f32.mrb[54].mxu1 }
 0x757   : > { %v18017_v16 = vadd.f32 %v17962_v62, %v7999_v14  ;;  %v8000_v36 = vmul.f32 %v9695_v3, %v17952_v61  ;;  %v7878_v47 = vpop.f32.mrb[55].mxu1 }
 0x758   : > { %v18021_v49 = vadd.f32 %v17962_v62, %v7997_v2  ;;  %v7998_v44 = vmul.f32 %v17952_v61, %v7878_v47 }
 0x759   : > { %v18025_v30 = vadd.f32 %v17962_v62, %v8000_v36  ;;  %v8308_v12 = vmul.f32 %v17980_v52, %v18017_v16 }
 0x75a   : > { %v18030_v7 = vadd.f32 %v17962_v62, %v7998_v44  ;;  %v8306_v11 = vmul.f32 %v17980_v52, %v18021_v49 }
 0x75b   : > { %v8352_v24 = vsel %vm2045_vm2, %v8308_v12, 0.0  ;;  %v8309_v8 = vmul.f32 %v17980_v52, %v18025_v30 }
 0x75c   : > { %8353 = vadd.xlane.f32.xlu1 %v8352_v24  ;;  %v8307_v31 = vmul.f32 %v17980_v52, %v18030_v7  ;;  %v8346_v29 = vsel %vm2045_vm2, %v8306_v11, 0.0 }
 0x75d   : > { %v8355_v34 = vsel %vm2045_vm2, %v8309_v8, 0.0 }
 0x75e   : > { %8356 = vadd.xlane.f32.xlu0 %v8355_v34  ;;  %v8349_v21 = vsel %vm2045_vm2, %v8307_v31, 0.0 }
 0x760   : > { %8347 = vadd.xlane.f32.xlu1 %v8346_v29 }
 0x762   : > { %8350 = vadd.xlane.f32.xlu0 %v8349_v21  ;;  %v8065_v21 = vsel %vm2045_vm2, %v17989_v46, 0.0 }
 0x774   : > { %v9698_v19 = vpop.f32.mrb[56].mxu1 }
 0x775   : > { %v8003_v51 = vmul.f32 %v9698_v19, %v17952_v61  ;;  %v7891_v26 = vpop.f32.mrb[57].mxu1 }
 0x776   : > { %v8001_v25 = vmul.f32 %v17952_v61, %v7891_v26  ;;  %v9699_v18 = vpop.f32.mrb[58].mxu1 }
 0x777   : > { %v18045_v27 = vadd.f32 %v17962_v62, %v8003_v51  ;;  %v8004_v37 = vmul.f32 %v9699_v18, %v17952_v61  ;;  %v7894_v22 = vpop.f32.mrb[59].mxu1 }
 0x778   : > { %v18049_v63 = vadd.f32 %v17962_v62, %v8001_v25  ;;  %v8002_v38 = vmul.f32 %v17952_v61, %v7894_v22  ;;  %v8064_v25 = vsel %vm2045_vm2, %v17984_v54, 0.0 }
 0x779   : > { %v18053_v48 = vadd.f32 %v17962_v62, %v8004_v37  ;;  %v8312_v6 = vmul.f32 %v17980_v52, %v18045_v27 }
 0x77a   : > { %v18058_v42 = vadd.f32 %v17962_v62, %v8002_v38  ;;  %v8310_v1 = vmul.f32 %v17980_v52, %v18049_v63  ;;  %v8066_v38 = vadd.f32 %v8065_v21, %v8064_v25  ;;  %v8079_v60 = vsel %vm2045_vm2, %v18049_v63, 0.0 }
 0x77b   : > { %v8364_v50 = vsel %vm2045_vm2, %v8312_v6, 0.0  ;;  %v8313_v32 = vmul.f32 %v17980_v52, %v18053_v48  ;;  %v8083_v21 = vsel %vm2045_vm2, %v18045_v27, 0.0 }
 0x77c   : > { %8365 = vadd.xlane.f32.xlu1 %v8364_v50  ;;  %v8311_v9 = vmul.f32 %v17980_v52, %v18058_v42  ;;  %v8358_v33 = vsel %vm2045_vm2, %v8310_v1, 0.0 }
 0x77d   : > { %v8367_v28 = vsel %vm2045_vm2, %v8313_v32, 0.0  ;;  %v8067_v32 = vsel %vm2045_vm2, %v17973_v23, 0.0 }
 0x77e   : > { %8368 = vadd.xlane.f32.xlu0 %v8367_v28  ;;  %v8361_v40 = vsel %vm2045_vm2, %v8311_v9, 0.0  ;;  %v8068_v28 = vadd.f32 %v8067_v32, %v8066_v38 }
 0x780   : > { %8359 = vadd.xlane.f32.xlu1 %v8358_v33  ;;  %v12658_v33 = vmov 0  }
 0x781   : > { %12360 = vset.pattern.permute.xlu1 %v12658_v33  ;;  %12361 = vset.pattern.permute.xlu0 %v12658_v33 }
 0x782   : > { %8362 = vadd.xlane.f32.xlu0 %v8361_v40  ;;  %v8071_v40 = vsel %vm2045_vm2, %v18021_v49, 0.0 }
 0x794   : > { %v9702_v17 = vpop.f32.mrb[60].mxu1 }
 0x795   : > { %v8007_v39 = vmul.f32 %v9702_v17, %v17952_v61  ;;  %v7907_v43 = vpop.f32.mrb[61].mxu1  ;;  %v8070_v17 = vadd.f32 %v8069_v56, %v8068_v28 }
 0x796   : > { %v8005_v53 = vmul.f32 %v17952_v61, %v7907_v43  ;;  %v9703_v59 = vpop.f32.mrb[62].mxu1  ;;  %v8073_v43 = vsel %vm2045_vm2, %v18030_v7, 0.0 }
 0x797   : > { %v18076_v41 = vadd.f32 %v17962_v62, %v8007_v39  ;;  %v8008_v0 = vmul.f32 %v9703_v59, %v17952_v61  ;;  %v7910_v57 = vpop.f32.mrb[63].mxu1  ;;  %v8072_v39 = vadd.f32 %v8071_v40, %v8070_v17  ;;  %v8075_v59 = vsel %vm2045_vm2, %v18017_v16, 0.0 }
 0x798   : > { %v18080_v55 = vadd.f32 %v17962_v62, %v8005_v53  ;;  %v8006_v10 = vmul.f32 %v17952_v61, %v7910_v57  ;;  %v8077_v57 = vsel %vm2045_vm2, %v18025_v30, 0.0 }
 0x799   : > { %v18084_v5 = vadd.f32 %v17962_v62, %v8008_v0  ;;  %v8316_v13 = vmul.f32 %v17980_v52, %v18076_v41  ;;  %v8074_v53 = vadd.f32 %v8073_v43, %v8072_v39  ;;  %v8091_v40 = vsel %vm2045_vm2, %v18076_v41, 0.0 }
 0x79a   : > { %v18089_v45 = vadd.f32 %v17962_v62, %v8006_v10  ;;  %v8314_v58 = vmul.f32 %v17980_v52, %v18080_v55 }
 0x79b   : > { %v8376_v20 = vsel %vm2045_vm2, %v8316_v13, 0.0  ;;  %v8317_v4 = vmul.f32 %v17980_v52, %v18084_v5  ;;  %v8076_v0 = vadd.f32 %v8075_v59, %v8074_v53  ;;  %v8093_v39 = vsel %vm2045_vm2, %v18084_v5, 0.0 }
 0x79c   : > { %8377 = vadd.xlane.f32.xlu1 %v8376_v20  ;;  %v8315_v35 = vmul.f32 %v17980_v52, %v18089_v45  ;;  %v8370_v2 = vsel %vm2045_vm2, %v8314_v58, 0.0  ;;  %v8089_v33 = vsel %vm2045_vm2, %v18089_v45, 0.0 }
 0x79d   : > { %v8379_v14 = vsel %vm2045_vm2, %v8317_v4, 0.0  ;;  %v8078_v10 = vadd.f32 %v8077_v57, %v8076_v0  ;;  %v8081_v4 = vsel %vm2045_vm2, %v18058_v42, 0.0 }
 0x79e   : > { %8380 = vadd.xlane.f32.xlu0 %v8379_v14  ;;  %v8373_v3 = vsel %vm2045_vm2, %v8315_v35, 0.0 }
 0x79f   : > { %v8080_v13 = vadd.f32 %v8079_v60, %v8078_v10 }
 0x7a0   : > { %8371 = vadd.xlane.f32.xlu1 %v8370_v2 }
 0x7a2   : > { %8374 = vadd.xlane.f32.xlu0 %v8373_v3 }
 0x7b4   : > { %v9706_v36 = vpop.f32.mrb[64].mxu1 }
 0x7b5   : > { %v8011_v47 = vmul.f32 %v9706_v36, %v17952_v61  ;;  %v7923_v44 = vpop.f32.mrb[65].mxu1 }
 0x7b6   : > { %v8009_v12 = vmul.f32 %v17952_v61, %v7923_v44  ;;  %v9707_v24 = vpop.f32.mrb[66].mxu1  ;;  %v8082_v44 = vadd.f32 %v8081_v4, %v8080_v13 }
 0x7b7   : > { %v18104_v8 = vadd.f32 %v17962_v62, %v8011_v47  ;;  %v8012_v11 = vmul.f32 %v9707_v24, %v17952_v61  ;;  %v7926_v34 = vpop.f32.mrb[67].mxu1 }
 0x7b8   : > { %v18108_v31 = vadd.f32 %v17962_v62, %v8009_v12  ;;  %v8010_v29 = vmul.f32 %v17952_v61, %v7926_v34 }
 0x7b9   : > { %v18114_v19 = vadd.f32 %v17962_v62, %v8012_v11  ;;  %v8320_v51 = vmul.f32 %v17980_v52, %v18104_v8 }
 0x7ba   : > { %v18119_v26 = vadd.f32 %v17962_v62, %v8010_v29  ;;  %v8318_v22 = vmul.f32 %v17980_v52, %v18108_v31  ;;  %v8095_v43 = vsel %vm2045_vm2, %v18108_v31, 0.0 }
 0x7bb   : > { %19599 = vst [vmem:[#allocation90_spill] sm:$0xff] %v18114_v19  ;;  %v8388_v18 = vsel %vm2045_vm2, %v8320_v51, 0.0  ;;  %v8321_v37 = vmul.f32 %v17980_v52, %v18114_v19 }
 0x7bc   : > { %19600 = vst [vmem:[#allocation43_spill] sm:$0xff] %v18119_v26  ;;  %8389 = vadd.xlane.f32.xlu1 %v8388_v18  ;;  %v8319_v50 = vmul.f32 %v17980_v52, %v18119_v26  ;;  %v8382_v1 = vsel %vm2045_vm2, %v8318_v22, 0.0  ;;  %v8084_v18 = vadd.f32 %v8083_v21, %v8082_v44  ;;  %v8097_v0 = vsel %vm2045_vm2, %v18119_v26, 0.0 }
 0x7bd   : > { %v8391_v6 = vsel %vm2045_vm2, %v8321_v37, 0.0 }
 0x7be   : > { %8392 = vadd.xlane.f32.xlu0 %v8391_v6  ;;  %v8385_v9 = vsel %vm2045_vm2, %v8319_v50, 0.0  ;;  %v8085_v6 = vsel %vm2045_vm2, %v18053_v48, 0.0  ;;  %v8087_v50 = vsel %vm2045_vm2, %v18080_v55, 0.0 }
 0x7c0   : > { %8383 = vadd.xlane.f32.xlu1 %v8382_v1  ;;  %v8086_v1 = vadd.f32 %v8085_v6, %v8084_v18 }
 0x7c2   : > { %8386 = vadd.xlane.f32.xlu0 %v8385_v9  ;;  %v8088_v28 = vadd.f32 %v8087_v50, %v8086_v1 }
 0x7c4   : > { %v8090_v56 = vadd.f32 %v8089_v33, %v8088_v28 }
 0x7c6   : > { %v8092_v17 = vadd.f32 %v8091_v40, %v8090_v56 }
 0x7c8   : > { %v8094_v53 = vadd.f32 %v8093_v39, %v8092_v17 }
 0x7c9   : > { %v8342_v56 = vpop.xlane.xlu0 %8341 }
 0x7ca   : > { %v8096_v59 = vadd.f32 %v8095_v43, %v8094_v53  ;;  %v18233_v43 = vld [vmem:[#allocation4] ss:$0 sm:$0xff] }
 0x7cc   : > { %v8098_v57 = vadd.f32 %v8097_v0, %v8096_v59  ;;  %v8339_v39 = vpop.xlane.xlu1 %8338 }
 0x7d4   : > { %v9710_v20 = vpop.f32.mrb[68].mxu1 }
 0x7d5   : > { %v8015_v58 = vmul.f32 %v9710_v20, %v17952_v61  ;;  %v7939_v14 = vpop.f32.mrb[69].mxu1 }
 0x7d6   : > { %v8013_v35 = vmul.f32 %v17952_v61, %v7939_v14  ;;  %v9711_v2 = vpop.f32.mrb[70].mxu1 }
 0x7d7   : > { %v18154_v3 = vadd.f32 %v17962_v62, %v8015_v58  ;;  %v8016_v36 = vmul.f32 %v9711_v2, %v17952_v61  ;;  %v7942_v47 = vpop.f32.mrb[71].mxu1  ;;  %v8099_v58 = vsel %vm2045_vm2, %v18104_v8, 0.0 }
 0x7d8   : > { %v18158_v12 = vadd.f32 %v17962_v62, %v8013_v35  ;;  %v8014_v24 = vmul.f32 %v17952_v61, %v7942_v47 }
 0x7d9   : > { %19601 = vst [vmem:[#allocation63_spill] sm:$0xff] %v18154_v3  ;;  %v18162_v11 = vadd.f32 %v17962_v62, %v8016_v36  ;;  %v8324_v34 = vmul.f32 %v17980_v52, %v18154_v3  ;;  %v8100_v36 = vadd.f32 %v8099_v58, %v8098_v57  ;;  %v8107_v40 = vsel %vm2045_vm2, %v18154_v3, 0.0  ;;  %v8336_v57 = vpop.xlane.xlu0 %8335 }
 0x7da   : > { %19602 = vst [vmem:[#allocation76_spill] sm:$0xff] %v18158_v12  ;;  %v18167_v29 = vadd.f32 %v17962_v62, %v8014_v24  ;;  %v8322_v25 = vmul.f32 %v17980_v52, %v18158_v12 }
 0x7db   : > { %19603 = vst [vmem:[#allocation100_spill] sm:$0xff] %v18162_v11  ;;  %v8400_v51 = vsel %vm2045_vm2, %v8324_v34, 0.0  ;;  %v8325_v37 = vmul.f32 %v17980_v52, %v18162_v11  ;;  %v8109_v53 = vsel %vm2045_vm2, %v18162_v11, 0.0 }
 0x7dc   : > { %19604 = vst [vmem:[#allocation101_spill] sm:$0xff] %v18167_v29  ;;  %8401 = vadd.xlane.f32.xlu1 %v8400_v51  ;;  %v8323_v38 = vmul.f32 %v17980_v52, %v18167_v29  ;;  %v8394_v32 = vsel %vm2045_vm2, %v8322_v25, 0.0  ;;  %v8101_v51 = vsel %vm2045_vm2, %v18114_v19, 0.0  ;;  %v8103_v25 = vsel %vm2045_vm2, %v18158_v12, 0.0 }
 0x7dd   : > { %v8403_v22 = vsel %vm2045_vm2, %v8325_v37, 0.0  ;;  %v8102_v18 = vadd.f32 %v8101_v51, %v8100_v36  ;;  %v8105_v1 = vsel %vm2045_vm2, %v18167_v29, 0.0  ;;  %v8345_v36 = vpop.xlane.xlu0 %8344 }
 0x7de   : > { %8404 = vadd.xlane.f32.xlu0 %v8403_v22  ;;  %v8397_v9 = vsel %vm2045_vm2, %v8323_v38, 0.0 }
 0x7df   : > { %v8104_v6 = vadd.f32 %v8103_v25, %v8102_v18  ;;  %v8440_v18 = vadd.f32 %v18233_v43, %v8345_v36 }
 0x7e0   : > { %8395 = vadd.xlane.f32.xlu1 %v8394_v32 }
 0x7e2   : > { %8398 = vadd.xlane.f32.xlu0 %v8397_v9  ;;  %v8106_v9 = vadd.f32 %v8105_v1, %v8104_v6 }
 0x7e4   : > { %v8108_v17 = vadd.f32 %v8107_v40, %v8106_v9 }
 0x7e6   : > { %v8110_v0 = vadd.f32 %v8109_v53, %v8108_v17  ;;  %v9415_v53 = vmul.f32 -1.442695, %v8440_v18 }
 0x7f4   : > { %v9714_v60 = vpop.f32.mrb[72].mxu1 }
 0x7f5   : > { %v8019_v10 = vmul.f32 %v9714_v60, %v17952_v61  ;;  %v7955_v13 = vpop.f32.mrb[73].mxu1  ;;  %v8354_v60 = vpop.xlane.xlu1 %8353 }
 0x7f6   : > { %v8017_v20 = vmul.f32 %v17952_v61, %v7955_v13  ;;  %v9715_v4 = vpop.f32.mrb[74].mxu1 }
 0x7f7   : > { %v18200_v14 = vadd.f32 %v17962_v62, %v8019_v10  ;;  %v8020_v35 = vmul.f32 %v9715_v4, %v17952_v61  ;;  %v7958_v2 = vpop.f32.mrb[75].mxu1  ;;  %v8439_v10 = vadd.f32 %v18233_v43, %v8342_v56  ;;  %v8437_v4 = vadd.f32 %v18233_v43, %v8336_v57 }
 0x7f8   : > { %v18204_v47 = vadd.f32 %v17962_v62, %v8017_v20  ;;  %v8018_v44 = vmul.f32 %v17952_v61, %v7958_v2  ;;  %v8438_v2 = vadd.f32 %v18233_v43, %v8339_v39 }
 0x7f9   : > { %19605 = vst [vmem:[#allocation103_spill] sm:$0xff] %v18200_v14  ;;  %v18208_v24 = vadd.f32 %v17962_v62, %v8020_v35  ;;  %v8328_v34 = vmul.f32 %v17980_v52, %v18200_v14  ;;  %v9414_v58 = vmul.f32 -1.442695, %v8439_v10  ;;  %v8115_v51 = vsel %vm2045_vm2, %v18200_v14, 0.0 }
 0x7fa   : > { %19606 = vst [vmem:[#allocation73_spill] sm:$0xff] %v18204_v47  ;;  %v18213_v21 = vadd.f32 %v17962_v62, %v8018_v44  ;;  %v8326_v38 = vmul.f32 %v17980_v52, %v18204_v47  ;;  %v8111_v59 = vsel %vm2045_vm2, %v18204_v47, 0.0  ;;  %v8348_v44 = vpop.xlane.xlu1 %8347  ;;  %v9413_v6 = vmul.f32 -1.442695, %v8438_v2 }
 0x7fb   : > { %19607 = vst [vmem:[#allocation104_spill] sm:$0xff] %v18208_v24  ;;  %v8412_v37 = vsel %vm2045_vm2, %v8328_v34, 0.0  ;;  %v8329_v22 = vmul.f32 %v17980_v52, %v18208_v24  ;;  %v8112_v13 = vadd.f32 %v8111_v59, %v8110_v0  ;;  %v9412_v34 = vmul.f32 -1.442695, %v8437_v4  ;;  %v8357_v4 = vpop.xlane.xlu0 %8356 }
 0x7fc   : > { %19608 = vst [vmem:[#allocation92_spill] sm:$0xff] %v18213_v21  ;;  %8413 = vadd.xlane.f32.xlu1 %v8412_v37  ;;  %v8327_v32 = vmul.f32 %v17980_v52, %v18213_v21  ;;  %v8406_v28 = vsel %vm2045_vm2, %v8326_v38, 0.0  ;;  %v8113_v20 = vsel %vm2045_vm2, %v18213_v21, 0.0  ;;  %12376 = vpow2.f32 %v9414_v58 }
 0x7fd   : > { %v8415_v50 = vsel %vm2045_vm2, %v8329_v22, 0.0  ;;  %v8114_v35 = vadd.f32 %v8113_v20, %v8112_v13  ;;  %12378 = vpow2.f32 %v9412_v34  ;;  %v8117_v40 = vsel %vm2045_vm2, %v18208_v24, 0.0 }
 0x7fe   : > { %8416 = vadd.xlane.f32.xlu0 %v8415_v50  ;;  %v8409_v33 = vsel %vm2045_vm2, %v8327_v32, 0.0  ;;  %12380 = vpow2.f32 %v9413_v6  ;;  %v8441_v34 = vadd.f32 %v18233_v43, %v8348_v44  ;;  %v8444_v44 = vadd.f32 %v18233_v43, %v8357_v4 }
 0x7ff   : > { %v8116_v37 = vadd.f32 %v8115_v51, %v8114_v35  ;;  %12382 = vpow2.f32 %v9415_v53 }
 0x800   : > { %8407 = vadd.xlane.f32.xlu1 %v8406_v28  ;;  %v8443_v28 = vadd.f32 %v18233_v43, %v8354_v60 }
 0x801   : > { %v8118_v0 = vadd.f32 %v8117_v40, %v8116_v37 }
 0x802   : > { %8410 = vadd.xlane.f32.xlu0 %v8409_v33  ;;  %v9418_v20 = vmul.f32 -1.442695, %v8443_v28 }
 0x804   : > { %12384 = vpow2.f32 %v9418_v20 }
 0x809   : > { %v8366_v50 = vpop.xlane.xlu1 %8365 }
 0x80a   : > { %v8447_v59 = vadd.f32 %v18233_v43, %v8366_v50 }
 0x80d   : > { %v8360_v20 = vpop.xlane.xlu1 %8359 }
 0x813   : > { %v9718_v25 = vpop.f32.mrb[76].mxu1 }
 0x814   : > { %v8023_v22 = vmul.f32 %v9718_v25, %v17952_v61  ;;  %v7971_v38 = vpop.f32.mrb[77].mxu1 }
 0x815   : > { %v8021_v32 = vmul.f32 %v17952_v61, %v7971_v38  ;;  %v9719_v1 = vpop.f32.mrb[78].mxu1 }
 0x816   : > { %v18251_v9 = vadd.f32 %v17962_v62, %v8023_v22  ;;  %v8024_v33 = vmul.f32 %v9719_v1, %v17952_v61  ;;  %v7974_v56 = vpop.f32.mrb[79].mxu1  ;;  %v12377_v22 = vpop.eup %12376 }
 0x817   : > { %v18257_v17 = vadd.f32 %v17962_v62, %v8021_v32  ;;  %v8022_v39 = vmul.f32 %v17952_v61, %v7974_v56  ;;  %v9416_v32 = vmul.f32 -1.442695, %v8441_v34  ;;  %v8351_v1 = vpop.xlane.xlu0 %8350  ;;  %v8567_v56 = vadd.f32 1.0, %v12377_v22 }
 0x818   : > { %19609 = vst [vmem:[#allocation93_spill] sm:$0xff] %v18251_v9  ;;  %v8332_v57 = vmul.f32 %v17980_v52, %v18251_v9  ;;  %v18266_v10 = vadd.f32 %v17962_v62, %v8024_v33  ;;  %v8123_v25 = vsel %vm2045_vm2, %v18251_v9, 0.0  ;;  %v12379_v33 = vpop.eup %12378  ;;  %v8442_v53 = vadd.f32 %v18233_v43, %v8351_v1 }
 0x819   : > { %19610 = vst [vmem:[#allocation96_spill] sm:$0xff] %v18257_v17  ;;  %v8119_v60 = vsel %vm2045_vm2, %v18257_v17, 0.0  ;;  %v18269_v13 = vadd.f32 %v17962_v62, %v8022_v39  ;;  %v8330_v35 = vmul.f32 %v17980_v52, %v18257_v17  ;;  %v9422_v62 = vmul.f32 -1.442695, %v8447_v59  ;;  %v12381_v39 = vpop.eup %12380 }
 0x81a   : > { %19611 = vst [vmem:[#allocation117_spill] sm:$0xff] %v18266_v10  ;;  %v8120_v61 = vadd.f32 %v8119_v60, %v8118_v0  ;;  %v8424_v58 = vsel %vm2045_vm2, %v8332_v57, 0.0  ;;  %v8333_v37 = vmul.f32 %v17980_v52, %v18266_v10  ;;  %v8125_v50 = vsel %vm2045_vm2, %v18266_v10, 0.0  ;;  %v12383_v4 = vpop.eup %12382 }
 0x81b   : > { %19612 = vst [vmem:[#allocation97_spill] sm:$0xff] %v18269_v13  ;;  %v8121_v2 = vsel %vm2045_vm2, %v18269_v13, 0.0  ;;  %8425 = vadd.xlane.f32.xlu1 %v8424_v58  ;;  %v8331_v36 = vmul.f32 %v17980_v52, %v18269_v13  ;;  %v8418_v6 = vsel %vm2045_vm2, %v8330_v35, 0.0  ;;  %12386 = vpow2.f32 %v9422_v62  ;;  %v8369_v60 = vpop.xlane.xlu0 %8368 }
 0x81c   : > { %v8122_v51 = vadd.f32 %v8121_v2, %v8120_v61  ;;  %v8427_v52 = vsel %vm2045_vm2, %v8333_v37, 0.0  ;;  %v9419_v59 = vmul.f32 -1.442695, %v8444_v44  ;;  %12388 = vpow2.f32 %v9416_v32  ;;  %v12385_v2 = vpop.eup %12384 }
 0x81d   : > { %v8421_v18 = vsel %vm2045_vm2, %v8331_v36, 0.0  ;;  %12390 = vrcp.f32 %v8567_v56  ;;  %v8565_v57 = vadd.f32 1.0, %v12379_v33  ;;  %v8566_v61 = vadd.f32 1.0, %v12381_v39 }
 0x81e   : > { %v8124_v38 = vadd.f32 %v8123_v25, %v8122_v51  ;;  %8422 = vadd.xlane.f32.xlu0 %v8421_v18  ;;  %v9417_v35 = vmul.f32 -1.442695, %v8442_v53  ;;  %12392 = vpow2.f32 %v9419_v59  ;;  %v8445_v36 = vadd.f32 %v18233_v43, %v8360_v20 }
 0x81f   : > { %8419 = vadd.xlane.f32.xlu1 %v8418_v6  ;;  %12394 = vrcp.f32 %v8565_v57  ;;  %v8568_v62 = vadd.f32 1.0, %v12383_v4  ;;  %v8571_v22 = vadd.f32 1.0, %v12385_v2  ;;  %v8448_v6 = vadd.f32 %v18233_v43, %v8369_v60 }
 0x820   : > { %v8126_v28 = vadd.f32 %v8125_v50, %v8124_v38  ;;  %12396 = vrcp.f32 %v8566_v61  ;;  %v8363_v38 = vpop.xlane.xlu0 %8362  ;;  %v9420_v50 = vmul.f32 -1.442695, %v8445_v36 }
 0x821   : > { %12398 = vpow2.f32 %v9417_v35  ;;  %v9423_v53 = vmul.f32 -1.442695, %v8448_v6  ;;  %v8446_v59 = vadd.f32 %v18233_v43, %v8363_v38 }
 0x822   : > { %v8127_v40 = vrot.slane %v8126_v28, 4  ;;  %8428 = vadd.xlane.f32.xlu0 %v8427_v52  ;;  %12400 = vrcp.f32 %v8568_v62 }
 0x823   : > { %v9421_v61 = vmul.f32 -1.442695, %v8446_v59 }
 0x824   : > { %v8128_v0 = vadd.f32 %v8127_v40, %v8126_v28 }
 0x825   : > { %v12387_v25 = vpop.eup %12386 }
 0x826   : > { %v8129_v58 = vrot.slane %v8128_v0, 2  ;;  %v8575_v1 = vadd.f32 1.0, %v12387_v25  ;;  %v12389_v33 = vpop.eup %12388 }
 0x827   : > { %v12391_v40 = vpop.eup %12390  ;;  %v8569_v57 = vadd.f32 1.0, %v12389_v33 }
 0x828   : > { %v8130_v34 = vadd.f32 %v8129_v58, %v8128_v0  ;;  %v12393_v60 = vpop.eup %12392 }
 0x829   : > { %v8378_v51 = vpop.xlane.xlu1 %8377  ;;  %v12395_v20 = vpop.eup %12394  ;;  %v8572_v2 = vadd.f32 1.0, %v12393_v60 }
 0x82a   : > { %v8451_v18 = vadd.f32 %v18233_v43, %v8378_v51  ;;  %v8131_v37 = vrot.slane %v8130_v34, 1  ;;  %v12397_v4 = vpop.eup %12396 }
 0x82b   : > { %v8381_v39 = vpop.xlane.xlu0 %8380  ;;  %v12399_v35 = vpop.eup %12398 }
 0x82c   : > { %v9426_v44 = vmul.f32 -1.442695, %v8451_v18  ;;  %v8132_v32 = vadd.f32 %v8131_v37, %v8130_v34  ;;  %v8452_v58 = vadd.f32 %v18233_v43, %v8381_v39  ;;  %v12401_v34 = vpop.eup %12400  ;;  %v8570_v37 = vadd.f32 1.0, %v12399_v35 }
 0x82d   : > { %v8372_v28 = vpop.xlane.xlu1 %8371 }
 0x82e   : > { %12402 = vpow2.f32 %v9426_v44  ;;  %v8449_v56 = vadd.f32 %v18233_v43, %v8372_v28  ;;  %v8134_v52 = vmul.f32 0.00390625, %v8132_v32  ;;  %v9427_v51 = vmul.f32 -1.442695, %v8452_v58 }
 0x82f   : > { %12404 = vrcp.f32 %v8571_v22  ;;  %v8375_v36 = vpop.xlane.xlu0 %8374 }
 0x830   : > { %12406 = vpow2.f32 %v9420_v50  ;;  %v9424_v0 = vmul.f32 -1.442695, %v8449_v56  ;;  %8709 = vperm.xlu1 %12360, %v12391_v40   ;;  %9723 = vmatmul.mubr.msk.f32.vlgmr.msra.gmra.mrb[48].mxu0 %vm2045_vm2, %v8134_v52  ;;  %v8450_v25 = vadd.f32 %v18233_v43, %v8375_v36 }
 0x831   : > { %12408 = vrcp.f32 %v8575_v1 }
 0x832   : > { %12410 = vpow2.f32 %v9424_v0  ;;  %v9425_v44 = vmul.f32 -1.442695, %v8450_v25  ;;  %v8211_v0 = vld [vmem:[%s18881_s12] sm:$0xf] }
 0x833   : > { %12412 = vpow2.f32 %v9423_v53  ;;  %9726 = vmatpush3.msk.msra.mxu1 %vm7821_vm12, %v8211_v0 }
 0x834   : > { %8699 = vperm.xlu1 %12360, %v12395_v20   ;;  %12414 = vrcp.f32 %v8569_v57 }
 0x835   : > { %12416 = vpow2.f32 %v9421_v61 }
 0x836   : > { %12418 = vrcp.f32 %v8572_v2 }
 0x838   : > { %v12403_v62 = vpop.eup %12402  ;;  %8714 = vperm.xlu1 %12360, %v12401_v34   ;;  %8704 = vperm.xlu0 %12361, %v12397_v4  }
 0x839   : > { %v12405_v18 = vpop.eup %12404  ;;  %v8579_v22 = vadd.f32 1.0, %v12403_v62 }
 0x83a   : > { %v12407_v38 = vpop.eup %12406 }
 0x83b   : > { %v12409_v6 = vpop.eup %12408  ;;  %12420 = vrcp.f32 %v8579_v22  ;;  %v8573_v32 = vadd.f32 1.0, %v12407_v38 }
 0x83c   : > { %v12411_v50 = vpop.eup %12410  ;;  %12422 = vpow2.f32 %v9427_v51  ;;  %8729 = vperm.xlu1 %12360, %v12405_v18   ;;  %8749 = vperm.xlu0 %12361, %v12409_v6  }
 0x83d   : > { %12424 = vrcp.f32 %v8570_v37  ;;  %v8577_v1 = vadd.f32 1.0, %v12411_v50  ;;  %v12413_v28 = vpop.eup %12412 }
 0x83e   : > { %v12415_v33 = vpop.eup %12414  ;;  %v8576_v56 = vadd.f32 1.0, %v12413_v28 }
 0x83f   : > { %12426 = vrcp.f32 %v8577_v1  ;;  %v12417_v52 = vpop.eup %12416 }
 0x840   : > { %12428 = vpow2.f32 %v9425_v44  ;;  %8719 = vperm.xlu1 %12360, %v12415_v33   ;;  %v12419_v40 = vpop.eup %12418  ;;  %v8574_v53 = vadd.f32 1.0, %v12417_v52 }
 0x841   : > { %12430 = vrcp.f32 %v8573_v32 }
 0x842   : > { %12432 = vrcp.f32 %v8576_v56 }
 0x843   : > { %12434 = vrcp.f32 %v8574_v53  ;;  %v8937_v53 = vld [vmem:[%s18885_s16] sm:$0x3] }
 0x844   : > { %8734 = vperm.xlu1 %12360, %v12419_v40   ;;  %9775 = vmatprep.subr.msk.bf16.mxu0 %vm2361_vm3, %v8937_v53 }
 0x845   : > { %v12421_v39 = vpop.eup %12420 }
 0x846   : > { %v12423_v59 = vpop.eup %12422  ;;  %8769 = vperm.xlu0 %12361, %v12421_v39  }
 0x847   : > { %v12425_v57 = vpop.eup %12424  ;;  %v8580_v20 = vadd.f32 1.0, %v12423_v59 }
 0x848   : > { %8724 = vperm.xlu1 %12360, %v12425_v57  }
 0x849   : > { %v12427_v60 = vpop.eup %12426  ;;  %v8390_v4 = vpop.xlane.xlu1 %8389  ;;  %12436 = vrcp.f32 %v8580_v20 }
 0x84a   : > { %v12429_v61 = vpop.eup %12428  ;;  %v8455_v58 = vadd.f32 %v18233_v43, %v8390_v4  ;;  %8759 = vperm.xlu0 %12361, %v12427_v60   ;;  %v8994_v60 = vsel %vm2361_vm3, %v8937_v53, 0  ;;  %v19613_v4 = vld [vmem:[#allocation7_spill] sm:$0xff]  ;;  %v19621_v53 = vld [vmem:[#allocation13_spill] sm:$0xff] }
 0x84b   : > { %v12431_v35 = vpop.eup %12430  ;;  %v8393_v2 = vpop.xlane.xlu0 %8392  ;;  %v8578_v62 = vadd.f32 1.0, %v12429_v61  ;;  %9731 = vmatpush3.bf16.msra.mxu0 %v8994_v60  ;;  %v19614_v61 = vld [vmem:[#allocation8_spill] sm:$0xff] }
 0x84c   : > { %v9430_v36 = vmul.f32 -1.442695, %v8455_v58  ;;  %v8456_v34 = vadd.f32 %v18233_v43, %v8393_v2  ;;  %8739 = vperm.xlu1 %12360, %v12431_v35   ;;  %v12433_v37 = vpop.eup %12432  ;;  %v8921_v58 = vpack.c.bf16 %v19614_v61, %v19613_v4  ;;  %v19624_v4 = vld [vmem:[#allocation16_spill] sm:$0xff] }
 0x84d   : > { %v8384_v51 = vpop.xlane.xlu1 %8383  ;;  %v12435_v44 = vpop.eup %12434 }
 0x84e   : > { %12438 = vpow2.f32 %v9430_v36  ;;  %v9431_v25 = vmul.f32 -1.442695, %v8456_v34  ;;  %v8453_v18 = vadd.f32 %v18233_v43, %v8384_v51  ;;  %9732 = vmatprep.mubr.msk.bf16.mxu0 %vm611_vm0, %v8921_v58  ;;  %v19615_v34 = vld [vmem:[#allocation5_spill] sm:$0xff] }
 0x84f   : > { %v8387_v22 = vpop.xlane.xlu0 %8386 }
 0x850   : > { %12440 = vpow2.f32 %v9431_v25  ;;  %v9428_v38 = vmul.f32 -1.442695, %v8453_v18  ;;  %v8454_v6 = vadd.f32 %v18233_v43, %v8387_v22  ;;  %8754 = vperm.xlu1 %12360, %v12433_v37   ;;  %v19617_v22 = vld [vmem:[#allocation9_spill] sm:$0xff] }
 0x851   : > { %12442 = vrcp.f32 %v8578_v62  ;;  %v19616_v62 = vld [vmem:[#allocation6_spill] sm:$0xff] }
 0x852   : > { %12444 = vpow2.f32 %v9428_v38  ;;  %v9429_v50 = vmul.f32 -1.442695, %v8454_v6  ;;  %v8922_v51 = vpack.c.bf16 %v19616_v62, %v19615_v34  ;;  %v19618_v38 = vld [vmem:[#allocation10_spill] sm:$0xff] }
 0x853   : > { %v12437_v32 = vpop.eup %12436  ;;  %v8923_v6 = vpack.c.bf16 %v19618_v38, %v19617_v22  ;;  %v19627_v22 = vld [vmem:[#allocation19_spill] sm:$0xff]  ;;  %v19628_v38 = vld [vmem:[#allocation20_spill] sm:$0xff] }
 0x854   : > { %12446 = vpow2.f32 %v9429_v50  ;;  %8744 = vperm.xlu1 %12360, %v12435_v44   ;;  %9733 = vmatmul.mubr.msk.bf16.vlgmr.msra.gmra.mrb[52].mxu0 %vm611_vm0, %v8922_v51 }
 0x855   : > { %9736 = vmatprep.mubr.msk.bf16.mxu0 %vm611_vm0, %v8923_v6  ;;  %v8928_v6 = vpack.c.bf16 %v19628_v38, %v19627_v22  ;;  %v19638_v22 = vld [vmem:[#allocation30_spill] sm:$0xff] }
 0x858   : > { %v12439_v1 = vpop.eup %12438  ;;  %8774 = vperm.xlu1 %12360, %v12437_v32  }
 0x859   : > { %v8583_v28 = vadd.f32 1.0, %v12439_v1 }
 0x85a   : > { %v12441_v33 = vpop.eup %12440 }
 0x85b   : > { %v12443_v56 = vpop.eup %12442  ;;  %12448 = vrcp.f32 %v8583_v28  ;;  %v8584_v52 = vadd.f32 1.0, %v12441_v33 }
 0x85c   : > { %v12445_v40 = vpop.eup %12444  ;;  %8764 = vperm.xlu1 %12360, %v12443_v56   ;;  %v19619_v56 = vld [vmem:[#allocation11_spill] sm:$0xff] }
 0x85d   : > { %12450 = vrcp.f32 %v8584_v52  ;;  %v8581_v39 = vadd.f32 1.0, %v12445_v40  ;;  %v19620_v52 = vld [vmem:[#allocation12_spill] sm:$0xff] }
 0x85e   : > { %v12447_v59 = vpop.eup %12446  ;;  %v8924_v40 = vpack.c.bf16 %v19620_v52, %v19619_v56  ;;  %v19631_v52 = vld [vmem:[#allocation23_spill] sm:$0xff] }
 0x85f   : > { %12452 = vrcp.f32 %v8581_v39  ;;  %v8582_v0 = vadd.f32 1.0, %v12447_v59  ;;  %v19622_v59 = vld [vmem:[#allocation14_spill] sm:$0xff] }
 0x860   : > { %9737 = vmatmul.mubr.msk.bf16.gmra.mrb[56].mxu0 %vm611_vm0, %v8924_v40  ;;  %v19632_v40 = vld [vmem:[#allocation24_spill] sm:$0xff] }
 0x861   : > { %12454 = vrcp.f32 %v8582_v0  ;;  %v8925_v0 = vpack.c.bf16 %v19622_v59, %v19621_v53 }
 0x863   : > { %9740 = vmatprep.mubr.msk.bf16.mxu0 %vm611_vm0, %v8925_v0 }
 0x865   : > { %v12449_v57 = vpop.eup %12448 }
 0x866   : > { %8789 = vperm.xlu0 %12361, %v12449_v57  }
 0x867   : > { %v12451_v20 = vpop.eup %12450 }
 0x868   : > { %8794 = vperm.xlu1 %12360, %v12451_v20   ;;  %v19623_v20 = vld [vmem:[#allocation15_spill] sm:$0xff] }
 0x869   : > { %v12453_v35 = vpop.eup %12452  ;;  %v8402_v2 = vpop.xlane.xlu1 %8401  ;;  %v8926_v61 = vpack.c.bf16 %v19624_v4, %v19623_v20  ;;  %v19633_v20 = vld [vmem:[#allocation25_spill] sm:$0xff]  ;;  %v19634_v4 = vld [vmem:[#allocation26_spill] sm:$0xff] }
 0x86a   : > { %v8459_v36 = vadd.f32 %v18233_v43, %v8402_v2  ;;  %8779 = vperm.xlu0 %12361, %v12453_v35   ;;  %v19625_v35 = vld [vmem:[#allocation17_spill] sm:$0xff]  ;;  %v19626_v2 = vld [vmem:[#allocation18_spill] sm:$0xff] }
 0x86b   : > { %v12455_v25 = vpop.eup %12454  ;;  %v8405_v37 = vpop.xlane.xlu0 %8404  ;;  %9741 = vmatmul.mubr.msk.bf16.gmra.mrb[60].mxu0 %vm611_vm0, %v8926_v61  ;;  %v8931_v61 = vpack.c.bf16 %v19634_v4, %v19633_v20  ;;  %v19644_v20 = vld [vmem:[#allocation36_spill] sm:$0xff] }
 0x86c   : > { %v9434_v18 = vmul.f32 -1.442695, %v8459_v36  ;;  %8784 = vperm.xlu1 %12360, %v12455_v25   ;;  %v8460_v50 = vadd.f32 %v18233_v43, %v8405_v37  ;;  %v8927_v36 = vpack.c.bf16 %v19626_v2, %v19625_v35 }
 0x86d   : > { %v8396_v44 = vpop.xlane.xlu1 %8395 }
 0x86e   : > { %12456 = vpow2.f32 %v9434_v18  ;;  %v8457_v32 = vadd.f32 %v18233_v43, %v8396_v44  ;;  %v9435_v1 = vmul.f32 -1.442695, %v8460_v50  ;;  %9744 = vmatprep.mubr.msk.bf16.mxu0 %vm611_vm0, %v8927_v36 }
 0x86f   : > { %v8399_v33 = vpop.xlane.xlu0 %8398 }
 0x870   : > { %v9432_v28 = vmul.f32 -1.442695, %v8457_v32  ;;  %12458 = vpow2.f32 %v9435_v1  ;;  %v8458_v39 = vadd.f32 %v18233_v43, %v8399_v33  ;;  %v19629_v1 = vld [vmem:[#allocation21_spill] sm:$0xff] }
 0x872   : > { %12460 = vpow2.f32 %v9432_v28  ;;  %v9433_v57 = vmul.f32 -1.442695, %v8458_v39  ;;  %v19630_v28 = vld [vmem:[#allocation22_spill] sm:$0xff]  ;;  %v8930_v39 = vpack.c.bf16 %v19632_v40, %v19631_v52 }
 0x873   : > { %9745 = vmatmul.mubr.msk.bf16.gmra.mrb[64].mxu0 %vm611_vm0, %v8928_v6  ;;  %v8929_v33 = vpack.c.bf16 %v19630_v28, %v19629_v1  ;;  %v19641_v28 = vld [vmem:[#allocation33_spill] sm:$0xff] }
 0x874   : > { %12462 = vpow2.f32 %v9433_v57 }
 0x875   : > { %9748 = vmatprep.mubr.msk.bf16.mxu0 %vm611_vm0, %v8929_v33  ;;  %v19642_v33 = vld [vmem:[#allocation34_spill] sm:$0xff] }
 0x878   : > { %v12457_v60 = vpop.eup %12456 }
 0x879   : > { %v8587_v58 = vadd.f32 1.0, %v12457_v60 }
 0x87a   : > { %v12459_v34 = vpop.eup %12458 }
 0x87b   : > { %12464 = vrcp.f32 %v8587_v58  ;;  %v8588_v51 = vadd.f32 1.0, %v12459_v34  ;;  %9749 = vmatmul.mubr.msk.bf16.gmra.mrb[68].mxu0 %vm611_vm0, %v8930_v39  ;;  %v19635_v34 = vld [vmem:[#allocation27_spill] sm:$0xff] }
 0x87c   : > { %v12461_v62 = vpop.eup %12460  ;;  %9752 = vmatprep.mubr.msk.bf16.mxu0 %vm611_vm0, %v8931_v61 }
 0x87d   : > { %v8585_v25 = vadd.f32 1.0, %v12461_v62  ;;  %12466 = vrcp.f32 %v8588_v51  ;;  %v19636_v62 = vld [vmem:[#allocation28_spill] sm:$0xff] }
 0x87e   : > { %v12463_v18 = vpop.eup %12462  ;;  %v8932_v51 = vpack.c.bf16 %v19636_v62, %v19635_v34 }
 0x87f   : > { %12468 = vrcp.f32 %v8585_v25  ;;  %v8586_v37 = vadd.f32 1.0, %v12463_v18 }
 0x881   : > { %12470 = vrcp.f32 %v8586_v37  ;;  %v19637_v37 = vld [vmem:[#allocation29_spill] sm:$0xff] }
 0x882   : > { %v8933_v38 = vpack.c.bf16 %v19638_v22, %v19637_v37 }
 0x883   : > { %9753 = vmatmul.mubr.msk.bf16.gmra.mrb[72].mxu0 %vm611_vm0, %v8932_v51 }
 0x884   : > { %9756 = vmatprep.mubr.msk.bf16.mxu0 %vm611_vm0, %v8933_v38 }
 0x885   : > { %v12465_v50 = vpop.eup %12464 }
 0x886   : > { %8809 = vperm.xlu0 %12361, %v12465_v50   ;;  %v19639_v50 = vld [vmem:[#allocation31_spill] sm:$0xff] }
 0x887   : > { %v12467_v44 = vpop.eup %12466 }
 0x888   : > { %8814 = vperm.xlu1 %12360, %v12467_v44   ;;  %v19640_v44 = vld [vmem:[#allocation32_spill] sm:$0xff] }
 0x889   : > { %v12469_v32 = vpop.eup %12468  ;;  %v8414_v56 = vpop.xlane.xlu1 %8413 }
 0x88a   : > { %8799 = vperm.xlu0 %12361, %v12469_v32   ;;  %v8463_v53 = vadd.f32 %v18233_v43, %v8414_v56  ;;  %v8934_v32 = vpack.c.bf16 %v19640_v44, %v19639_v50  ;;  %v8935_v56 = vpack.c.bf16 %v19642_v33, %v19641_v28 }
 0x88b   : > { %v12471_v59 = vpop.eup %12470  ;;  %v8417_v0 = vpop.xlane.xlu0 %8416 }
 0x88c   : > { %v9438_v57 = vmul.f32 -1.442695, %v8463_v53  ;;  %v8464_v60 = vadd.f32 %v18233_v43, %v8417_v0  ;;  %8804 = vperm.xlu1 %12360, %v12471_v59   ;;  %9757 = vmatmul.mubr.msk.bf16.gmra.mrb[76].mxu0 %vm611_vm0, %v8934_v32 }
 0x88d   : > { %v8408_v58 = vpop.xlane.xlu1 %8407  ;;  %9760 = vmatprep.mubr.msk.bf16.mxu0 %vm611_vm0, %v8935_v56 }
 0x88e   : > { %12472 = vpow2.f32 %v9438_v57  ;;  %v9439_v35 = vmul.f32 -1.442695, %v8464_v60  ;;  %v8461_v2 = vadd.f32 %v18233_v43, %v8408_v58  ;;  %v19643_v60 = vld [vmem:[#allocation35_spill] sm:$0xff] }
 0x88f   : > { %v8411_v36 = vpop.xlane.xlu0 %8410  ;;  %v8936_v4 = vpack.c.bf16 %v19644_v20, %v19643_v60 }
 0x890   : > { %12474 = vpow2.f32 %v9439_v35  ;;  %v9436_v25 = vmul.f32 -1.442695, %v8461_v2  ;;  %v8462_v18 = vadd.f32 %v18233_v43, %v8411_v36 }
 0x892   : > { %12476 = vpow2.f32 %v9436_v25  ;;  %v9437_v6 = vmul.f32 -1.442695, %v8462_v18 }
 0x894   : > { %12478 = vpow2.f32 %v9437_v6  ;;  %9761 = vmatmul.mubr.msk.bf16.gmra.mrb[80].mxu0 %vm611_vm0, %v8936_v4 }
 0x898   : > { %v12473_v1 = vpop.eup %12472 }
 0x899   : > { %v8591_v52 = vadd.f32 1.0, %v12473_v1 }
 0x89a   : > { %v12475_v40 = vpop.eup %12474 }
 0x89b   : > { %12480 = vrcp.f32 %v8591_v52  ;;  %v8592_v39 = vadd.f32 1.0, %v12475_v40 }
 0x89c   : > { %v12477_v53 = vpop.eup %12476 }
 0x89d   : > { %12482 = vrcp.f32 %v8592_v39  ;;  %v8589_v59 = vadd.f32 1.0, %v12477_v53 }
 0x89e   : > { %v12479_v0 = vpop.eup %12478 }
 0x89f   : > { %12484 = vrcp.f32 %v8589_v59  ;;  %v8590_v57 = vadd.f32 1.0, %v12479_v0 }
 0x8a1   : > { %12486 = vrcp.f32 %v8590_v57  ;;  %v8136_v57 = vld [vmem:[%s18880_s11] sm:$0x1] }
 0x8a5   : > { %v12481_v61 = vpop.eup %12480 }
 0x8a6   : > { %8829 = vperm.xlu0 %12361, %v12481_v61  }
 0x8a7   : > { %v12483_v58 = vpop.eup %12482 }
 0x8a8   : > { %v8426_v35 = vpop.xlane.xlu1 %8425  ;;  %8834 = vperm.xlu1 %12360, %v12483_v58  }
 0x8a9   : > { %v8467_v2 = vadd.f32 %v18233_v43, %v8426_v35  ;;  %v12485_v36 = vpop.eup %12484 }
 0x8aa   : > { %8819 = vperm.xlu0 %12361, %v12485_v36  }
 0x8ab   : > { %v9442_v34 = vmul.f32 -1.442695, %v8467_v2  ;;  %v8423_v62 = vpop.xlane.xlu0 %8422  ;;  %v12487_v51 = vpop.eup %12486 }
 0x8ac   : > { %v8466_v25 = vadd.f32 %v18233_v43, %v8423_v62  ;;  %v8420_v18 = vpop.xlane.xlu1 %8419  ;;  %8824 = vperm.xlu1 %12360, %v12487_v51  }
 0x8ad   : > { %v8465_v37 = vadd.f32 %v18233_v43, %v8420_v18  ;;  %12488 = vpow2.f32 %v9442_v34 }
 0x8ae   : > { %v9441_v22 = vmul.f32 -1.442695, %v8466_v25 }
 0x8af   : > { %v9440_v38 = vmul.f32 -1.442695, %v8465_v37  ;;  %v8429_v6 = vpop.xlane.xlu0 %8428 }
 0x8b0   : > { %12490 = vpow2.f32 %v9441_v22  ;;  %v8468_v50 = vadd.f32 %v18233_v43, %v8429_v6 }
 0x8b1   : > { %12492 = vpow2.f32 %v9440_v38 }
 0x8b2   : > { %v9443_v44 = vmul.f32 -1.442695, %v8468_v50 }
 0x8b4   : > { %12494 = vpow2.f32 %v9443_v44 }
 0x8b7   : > { %v12489_v32 = vpop.eup %12488 }
 0x8b8   : > { %v8595_v40 = vadd.f32 1.0, %v12489_v32 }
 0x8ba   : > { %v12491_v1 = vpop.eup %12490 }
 0x8bb   : > { %v12493_v28 = vpop.eup %12492  ;;  %v8594_v33 = vadd.f32 1.0, %v12491_v1 }
 0x8bc   : > { %v8593_v56 = vadd.f32 1.0, %v12493_v28  ;;  %v8710_v28 = vpop.permute.xlu1 %8709 }
 0x8bd   : > { %12496 = vrcp.f32 %v8594_v33 }
 0x8be   : > { %v12495_v52 = vpop.eup %12494  ;;  %12498 = vrcp.f32 %v8593_v56 }
 0x8bf   : > { %v8596_v39 = vadd.f32 1.0, %v12495_v52 }
 0x8c1   : > { %12500 = vrcp.f32 %v8596_v39 }
 0x8c2   : > { %12502 = vrcp.f32 %v8595_v40  ;;  %v8700_v40 = vpop.permute.xlu1 %8699 }
 0x8c7   : > { %v12497_v53 = vpop.eup %12496 }
 0x8c8   : > { %v12499_v59 = vpop.eup %12498  ;;  %8844 = vperm.xlu1 %12360, %v12497_v53  }
 0x8c9   : > { %8839 = vperm.xlu0 %12361, %v12499_v59  }
 0x8cb   : > { %v12501_v43 = vpop.eup %12500 }
 0x8cc   : > { %v12503_v0 = vpop.eup %12502  ;;  %8854 = vperm.xlu1 %12360, %v12501_v43  }
 0x8cd   : > { %8849 = vperm.xlu0 %12361, %v12503_v0   ;;  %v8715_v0 = vpop.permute.xlu1 %8714 }
 0x8ce   : > { %v18452_v21 = vmul.f32 %v8715_v0, %v18001_v15 }
 0x903   : > { %v8206_v60 = vpop.f32.mrb[48].mxu0 }
 0x904   : > { %v8207_v20 = vadd.f32 %v8206_v60, %v8136_v57  ;;  %v9724_v4 = vpop.f32.mrb[49].mxu0 }
 0x905   : > { %v8730_v4 = vpop.permute.xlu1 %8729 }
 0x906   : > { %v8210_v61 = vmax.f32 %v8207_v20, 0.0 }
 0x908   : > { %9728 = vmatmul.mubr.msk.f32.vlgmr.msra.gmra.mrb[80].mxu1 %vm611_vm0, %v8210_v61 }
 0x927   : > { %v18375_v58 = vpop.f32.mrb[52].mxu0 }
 0x928   : > { %19645 = vst [vmem:[#allocation105_spill] sm:$0xff] %v18375_v58  ;;  %v18377_v35 = vpop.f32.mrb[53].mxu0 }
 0x929   : > { %19646 = vst [vmem:[#allocation119_spill] sm:$0xff] %v18377_v35  ;;  %v18379_v2 = vpop.f32.mrb[54].mxu0  ;;  %v18446_v35 = vmul.f32 %v8700_v40, %v17984_v54 }
 0x92a   : > { %19647 = vst [vmem:[#allocation118_spill] sm:$0xff] %v18379_v2  ;;  %v18381_v36 = vpop.f32.mrb[55].mxu0  ;;  %v18443_v2 = vmul.f32 %v8710_v28, %v17973_v23 }
 0x92b   : > { %19648 = vst [vmem:[#allocation106_spill] sm:$0xff] %v18381_v36 }
 0x933   : > { %v18383_v34 = vpop.f32.mrb[56].mxu0 }
 0x934   : > { %19649 = vst [vmem:[#allocation110_spill] sm:$0xff] %v18383_v34  ;;  %v18385_v62 = vpop.f32.mrb[57].mxu0 }
 0x935   : > { %19650 = vst [vmem:[#allocation109_spill] sm:$0xff] %v18385_v62  ;;  %v18387_v51 = vpop.f32.mrb[58].mxu0 }
 0x936   : > { %19651 = vst [vmem:[#allocation112_spill] sm:$0xff] %v18387_v51  ;;  %v18389_v25 = vpop.f32.mrb[59].mxu0 }
 0x937   : > { %19652 = vst [vmem:[#allocation107_spill] sm:$0xff] %v18389_v25 }
 0x93e   : > { %v18391_v18 = vpop.f32.mrb[60].mxu0 }
 0x93f   : > { %19653 = vst [vmem:[#allocation111_spill] sm:$0xff] %v18391_v18  ;;  %v18393_v37 = vpop.f32.mrb[61].mxu0 }
 0x940   : > { %19654 = vst [vmem:[#allocation86_spill] sm:$0xff] %v18393_v37  ;;  %v18395_v22 = vpop.f32.mrb[62].mxu0 }
 0x941   : > { %19655 = vst [vmem:[#allocation65_spill] sm:$0xff] %v18395_v22  ;;  %v18397_v38 = vpop.f32.mrb[63].mxu0 }
 0x942   : > { %19656 = vst [vmem:[#allocation48_spill] sm:$0xff] %v18397_v38 }
 0x946   : > { %v18399_v6 = vpop.f32.mrb[64].mxu0 }
 0x947   : > { %19657 = vst [vmem:[#allocation113_spill] sm:$0xff] %v18399_v6  ;;  %v18401_v50 = vpop.f32.mrb[65].mxu0 }
 0x948   : > { %19658 = vst [vmem:[#allocation114_spill] sm:$0xff] %v18401_v50  ;;  %v18403_v44 = vpop.f32.mrb[66].mxu0 }
 0x949   : > { %19659 = vst [vmem:[#allocation61_spill] sm:$0xff] %v18403_v44  ;;  %v18405_v32 = vpop.f32.mrb[67].mxu0 }
 0x94a   : > { %19660 = vst [vmem:[#allocation94_spill] sm:$0xff] %v18405_v32  ;;  %v8705_v32 = vpop.permute.xlu0 %8704 }
 0x94b   : > { %v18449_v58 = vmul.f32 %v8705_v32, %v17989_v46 }
 0x94e   : > { %v18407_v1 = vpop.f32.mrb[68].mxu0  ;;  %v8750_v44 = vpop.permute.xlu0 %8749 }
 0x94f   : > { %19661 = vst [vmem:[#allocation95_spill] sm:$0xff] %v18407_v1  ;;  %v18409_v33 = vpop.f32.mrb[69].mxu0 }
 0x950   : > { %19662 = vst [vmem:[#allocation58_spill] sm:$0xff] %v18409_v33  ;;  %v18411_v56 = vpop.f32.mrb[70].mxu0 }
 0x951   : > { %19663 = vst [vmem:[#allocation108_spill] sm:$0xff] %v18411_v56  ;;  %v18413_v52 = vpop.f32.mrb[71].mxu0 }
 0x952   : > { %19664 = vst [vmem:[#allocation59_spill] sm:$0xff] %v18413_v52 }
 0x956   : > { %v18415_v39 = vpop.f32.mrb[72].mxu0 }
 0x957   : > { %19665 = vst [vmem:[#allocation126_spill] sm:$0xff] %v18415_v39  ;;  %v18417_v53 = vpop.f32.mrb[73].mxu0 }
 0x958   : > { %19666 = vst [vmem:[#allocation64_spill] sm:$0xff] %v18417_v53  ;;  %v18419_v59 = vpop.f32.mrb[74].mxu0  ;;  %v8720_v53 = vpop.permute.xlu1 %8719 }
 0x959   : > { %19667 = vst [vmem:[#allocation53_spill] sm:$0xff] %v18419_v59  ;;  %v18421_v43 = vpop.f32.mrb[75].mxu0 }
 0x95a   : > { %19668 = vst [vmem:[#allocation54_spill] sm:$0xff] %v18421_v43 }
 0x95c   : > { %v8735_v43 = vpop.permute.xlu1 %8734 }
 0x95d   : > { %v18464_v28 = vmul.f32 %v8735_v43, %v18025_v30 }
 0x95f   : > { %v18423_v57 = vpop.f32.mrb[76].mxu0  ;;  %19678 = vst [vmem:[#allocation49_spill] sm:$0xff] %v18464_v28  ;;  %v8661_v28 = vlaneseq }
 0x960   : > { %19669 = vst [vmem:[#allocation60_spill] sm:$0xff] %v18423_v57  ;;  %v18425_v60 = vpop.f32.mrb[77].mxu0  ;;  %v8725_v33 = vpop.permute.xlu1 %8724 }
 0x961   : > { %19670 = vst [vmem:[#allocation115_spill] sm:$0xff] %v18425_v60  ;;  %v18427_v20 = vpop.f32.mrb[78].mxu0  ;;  %v18470_v0 = vmul.f32 %v8725_v33, %v18030_v7 }
 0x962   : > { %19671 = vst [vmem:[#allocation116_spill] sm:$0xff] %v18427_v20  ;;  %v18429_v61 = vpop.f32.mrb[79].mxu0  ;;  %v8770_v20 = vpop.permute.xlu0 %8769 }
 0x963   : > { %19672 = vst [vmem:[#allocation39_spill] sm:$0xff] %v18429_v61  ;;  %v18467_v32 = vmul.f32 %v8770_v20, %v18076_v41 }
 0x964   : > { %v8740_v1 = vpop.permute.xlu1 %8739 }
 0x966   : > { %v8760_v6 = vpop.permute.xlu0 %8759 }
 0x967   : > { %v18431_v52 = vpop.f32.mrb[80].mxu0 }
 0x968   : > { %19673 = vst [vmem:[#allocation44_spill] sm:$0xff] %v18431_v52  ;;  %v18433_v56 = vpop.f32.mrb[81].mxu0  ;;  %v8755_v57 = vpop.permute.xlu1 %8754 }
 0x969   : > { %19674 = vst [vmem:[#allocation75_spill] sm:$0xff] %v18433_v56  ;;  %v18435_v39 = vpop.f32.mrb[82].mxu0 }
 0x96a   : > { %19675 = vst [vmem:[#allocation51_spill] sm:$0xff] %v18435_v39  ;;  %v18437_v59 = vpop.f32.mrb[83].mxu0  ;;  %v8790_v38 = vpop.permute.xlu0 %8789 }
 0x96b   : > { %19676 = vst [vmem:[#allocation74_spill] sm:$0xff] %v18437_v59  ;;  %v8212_v59 = vld [vmem:[%s18882_s13] sm:$0x1] }
 0x96c   : > { %v8745_v60 = vpop.permute.xlu1 %8744 }
 0x96d   : > { %v18482_v43 = vmul.f32 %v8745_v60, %v18058_v42 }
 0x96e   : > { %v8780_v22 = vpop.permute.xlu0 %8779 }
 0x970   : > { %v8775_v50 = vpop.permute.xlu1 %8774 }
 0x971   : > { %v18485_v20 = vmul.f32 %v8775_v50, %v18084_v5  ;;  %v18508_v50 = vld [vmem:[%s18886_s17] ss:$0 sm:$0xff] }
 0x972   : > { %v8810_v37 = vpop.permute.xlu0 %8809  ;;  %19683 = vst [vmem:[#allocation120_spill] sm:$0xff] %v18508_v50 }
 0x974   : > { %v8765_v61 = vpop.permute.xlu1 %8764 }
 0x975   : > { %v18488_v33 = vmul.f32 %v8765_v61, %v18089_v45 }
 0x976   : > { %v8800_v18 = vpop.permute.xlu0 %8799 }
 0x978   : > { %v8795_v52 = vpop.permute.xlu1 %8794 }
 0x97a   : > { %v8830_v34 = vpop.permute.xlu0 %8829 }
 0x97c   : > { %v8785_v56 = vpop.permute.xlu1 %8784 }
 0x97d   : > { %v18500_v60 = vmul.f32 %v8785_v56, %v18119_v26  ;;  %v18520_v56 = vmul.f32 %v8830_v34, %v18200_v14  ;;  %v19717_v14 = vld [vmem:[#allocation58_spill] sm:$0xff]  ;;  %v19725_v26 = vld [vmem:[#allocation64_spill] sm:$0xff] }
 0x97e   : > { %v8820_v13 = vpop.permute.xlu0 %8819 }
 0x97f   : > { %19681 = vst [vmem:[#allocation128_spill] sm:$0xff] %v18500_v60  ;;  %19687 = vst [vmem:[#allocation87_spill] sm:$0xff] %v18520_v56  ;;  %v18526_v61 = vmul.f32 %v8820_v13, %v18204_v47  ;;  %v8662_v60 = vshrl.u32 %v8661_v28, 7  ;;  %v19695_v13 = vld [vmem:[#allocation106_spill] sm:$0xff]  ;;  %v19698_v28 = vld [vmem:[#allocation96_spill] sm:$0xff] }
 0x980   : > { %v8815_v39 = vpop.permute.xlu1 %8814 }
 0x981   : > { %19689 = vst [vmem:[#allocation62_spill] sm:$0xff] %v18526_v61  ;;  %v18545_v61 = vadd.f32 %v18508_v50, %v19695_v13 }
 0x984   : > { %v8805_v51 = vpop.permute.xlu1 %8804 }
 0x988   : > { %v8835_v17 = vpop.permute.xlu1 %8834 }
 0x98c   : > { %v8825_v36 = vpop.permute.xlu1 %8824 }
 0x990   : > { %v8845_v40 = vpop.permute.xlu1 %8844 }
 0x9db   : > { %v8285_v25 = vpop.f32.mrb[80].mxu1 }
 0x9dc   : > { %v8286_v9 = vadd.f32 %v8285_v25, %v8212_v59  ;;  %v9729_v10 = vpop.f32.mrb[81].mxu1  ;;  %v8840_v59 = vpop.permute.xlu0 %8839 }
 0x9dd   : > { %v18458_v10 = vmul.f32 %v8730_v4, %v18017_v16  ;;  %v18476_v4 = vmul.f32 %v8740_v1, %v18049_v63  ;;  %v18494_v1 = vmul.f32 %v8795_v52, %v18114_v19  ;;  %v18514_v52 = vmul.f32 %v8800_v18, %v18158_v12  ;;  %v19692_v18 = vld [vmem:[#allocation105_spill] sm:$0xff]  ;;  %v19721_v12 = vld [vmem:[#allocation59_spill] sm:$0xff] }
 0x9de   : > { %v9409_v62 = vmul.f32 -1.442695, %v8286_v9  ;;  %v18455_v9 = vmul.f32 %v8750_v44, %v18045_v27  ;;  %v18473_v44 = vmul.f32 %v8760_v6, %v18080_v55  ;;  %v18491_v6 = vmul.f32 %v8790_v38, %v18104_v8 }
 0x9df   : > { %19679 = vst [vmem:[#allocation71_spill] sm:$0xff] %v18494_v1  ;;  %v18511_v38 = vmul.f32 %v8815_v39, %v18162_v11  ;;  %19685 = vst [vmem:[#allocation121_spill] sm:$0xff] %v18514_v52  ;;  %v8855_v39 = vpop.permute.xlu1 %8854  ;;  %v18533_v52 = vadd.f32 %v19692_v18, %v18508_v50  ;;  %v19700_v18 = vld [vmem:[#allocation110_spill] sm:$0xff] }
 0x9e0   : > { %12504 = vpow2.f32 %v9409_v62  ;;  %19677 = vst [vmem:[#allocation82_spill] sm:$0xff] %v18455_v9  ;;  %v18461_v62 = vmul.f32 %v8720_v53, %v18021_v49  ;;  %v18479_v53 = vmul.f32 %v8755_v57, %v18053_v48  ;;  %v18497_v57 = vmul.f32 %v8780_v22, %v18108_v31 }
 0x9e1   : > { %19684 = vst [vmem:[#allocation99_spill] sm:$0xff] %v18511_v38  ;;  %v18517_v22 = vmul.f32 %v8805_v51, %v18167_v29  ;;  %v8850_v38 = vpop.permute.xlu0 %8849  ;;  %v19693_v51 = vld [vmem:[#allocation119_spill] sm:$0xff]  ;;  %v19719_v29 = vld [vmem:[#allocation108_spill] sm:$0xff] }
 0x9e2   : > { %19680 = vst [vmem:[#allocation98_spill] sm:$0xff] %v18497_v57  ;;  %v18537_v34 = vadd.f32 %v18508_v50, %v19693_v51  ;;  %v19701_v51 = vld [vmem:[#allocation109_spill] sm:$0xff]  ;;  %v19715_v57 = vld [vmem:[#allocation94_spill] sm:$0xff] }
 0x9e3   : > { %19686 = vst [vmem:[#allocation83_spill] sm:$0xff] %v18517_v22  ;;  %v18559_v47 = vadd.f32 %v18508_v50, %v19701_v51  ;;  %v19704_v22 = vld [vmem:[#allocation93_spill] sm:$0xff]  ;;  %v19709_v51 = vld [vmem:[#allocation86_spill] sm:$0xff] }
 0x9e4   : > { %v18565_v13 = vmul.f32 %v8850_v38, %v19704_v22  ;;  %v19713_v22 = vld [vmem:[#allocation114_spill] sm:$0xff] }
 0x9e6   : > { %19705 = vst [vmem:[#allocation72_spill] sm:$0xff] %v18565_v13  ;;  %v19711_v13 = vld [vmem:[#allocation48_spill] sm:$0xff] }
 0x9ea   : > { %v12505_v25 = vpop.eup %12504 }
 0x9eb   : > { %v8292_v9 = vadd.f32 1.0, %v12505_v25  ;;  %v18503_v25 = vmul.f32 %v8810_v37, %v18154_v3  ;;  %v18523_v37 = vmul.f32 %v8835_v17, %v18208_v24  ;;  %v19694_v17 = vld [vmem:[#allocation118_spill] sm:$0xff]  ;;  %v18555_v24 = vadd.f32 %v19700_v18, %v18508_v50  ;;  %v19708_v18 = vld [vmem:[#allocation111_spill] sm:$0xff] }
 0x9ed   : > { %12506 = vrcp.f32 %v8292_v9  ;;  %19682 = vst [vmem:[#allocation127_spill] sm:$0xff] %v18503_v25  ;;  %19688 = vst [vmem:[#allocation67_spill] sm:$0xff] %v18523_v37  ;;  %v19690_v9 = vld [vmem:[#allocation92_spill] sm:$0xff]  ;;  %v18541_v37 = vadd.f32 %v19694_v17, %v18508_v50  ;;  %v19702_v17 = vld [vmem:[#allocation117_spill] sm:$0xff] }
 0x9ee   : > { %v18529_v25 = vmul.f32 %v8825_v36, %v19690_v9  ;;  %v19696_v36 = vld [vmem:[#allocation97_spill] sm:$0xff]  ;;  %v18551_v9 = vmul.f32 %v8840_v59, %v19698_v28  ;;  %v18562_v56 = vmul.f32 %v8855_v39, %v19702_v17  ;;  %v19707_v59 = vld [vmem:[#allocation107_spill] sm:$0xff]  ;;  %v18581_v28 = vadd.f32 %v18508_v50, %v19709_v51 }
 0x9ef   : > { %v19710_v39 = vld [vmem:[#allocation65_spill] sm:$0xff] }
 0x9f0   : > { %19691 = vst [vmem:[#allocation38_spill] sm:$0xff] %v18529_v25  ;;  %v18548_v25 = vmul.f32 %v8845_v40, %v19696_v36  ;;  %19699 = vst [vmem:[#allocation45_spill] sm:$0xff] %v18551_v9  ;;  %v19706_v40 = vld [vmem:[#allocation112_spill] sm:$0xff]  ;;  %v18573_v9 = vadd.f32 %v18508_v50, %v19707_v59  ;;  %v18577_v36 = vadd.f32 %v19708_v18, %v18508_v50  ;;  %v19712_v59 = vld [vmem:[#allocation113_spill] sm:$0xff] }
 0x9f1   : > { %19703 = vst [vmem:[#allocation68_spill] sm:$0xff] %v18562_v56  ;;  %v18585_v38 = vadd.f32 %v19710_v39, %v18508_v50  ;;  %v8663_v56 = vsub.s32 0, %v8662_v60  ;;  %v18593_v17 = vadd.f32 %v19712_v59, %v18508_v50  ;;  %v18597_v18 = vadd.f32 %v18508_v50, %v19713_v22  ;;  %v19714_v51 = vld [vmem:[#allocation61_spill] sm:$0xff]  ;;  %v19716_v60 = vld [vmem:[#allocation95_spill] sm:$0xff] }
 0x9f2   : > { %19697 = vst [vmem:[#allocation47_spill] sm:$0xff] %v18548_v25  ;;  %v18569_v25 = vadd.f32 %v19706_v40, %v18508_v50  ;;  %v18589_v40 = vadd.f32 %v18508_v50, %v19711_v13  ;;  %v18601_v1 = vadd.f32 %v19714_v51, %v18508_v50  ;;  %v18605_v39 = vadd.f32 %v18508_v50, %v19715_v57  ;;  %v19723_v57 = vld [vmem:[#allocation126_spill] sm:$0xff] }
 0x9f3   : > { %v18609_v13 = vadd.f32 %v19716_v60, %v18508_v50  ;;  %v18613_v59 = vadd.f32 %v18508_v50, %v19717_v14  ;;  %v18617_v22 = vadd.f32 %v19719_v29, %v18508_v50  ;;  %v18621_v51 = vadd.f32 %v18508_v50, %v19721_v12  ;;  %v19727_v14 = vld [vmem:[#allocation53_spill] sm:$0xff]  ;;  %v19728_v29 = vld [vmem:[#allocation54_spill] sm:$0xff]  ;;  %v19730_v12 = vld [vmem:[#allocation60_spill] sm:$0xff] }
 0x9f4   : > { %v18625_v3 = vadd.f32 %v19723_v57, %v18508_v50  ;;  %v18629_v60 = vadd.f32 %v18508_v50, %v19725_v26  ;;  %v19732_v57 = vld [vmem:[#allocation115_spill] sm:$0xff]  ;;  %v19734_v26 = vld [vmem:[#allocation116_spill] sm:$0xff] }
 0x9f5   : > { %19718 = vst [vmem:[#allocation122_spill] sm:$0xff] %v18613_v59  ;;  %19720 = vst [vmem:[#allocation84_spill] sm:$0xff] %v18617_v22  ;;  %v18633_v59 = vadd.f32 %v19727_v14, %v18508_v50  ;;  %v18639_v22 = vadd.f32 %v18508_v50, %v19728_v29  ;;  %v19736_v14 = vld [vmem:[#allocation39_spill] sm:$0xff] }
 0x9f6   : > { %19722 = vst [vmem:[#allocation55_spill] sm:$0xff] %v18621_v51  ;;  %19724 = vst [vmem:[#allocation70_spill] sm:$0xff] %v18625_v3  ;;  %v18643_v51 = vadd.f32 %v19730_v12, %v18508_v50  ;;  %v18647_v3 = vadd.f32 %v18508_v50, %v19732_v57 }
 0x9f7   : > { %v12507_v11 = vpop.eup %12506  ;;  %19726 = vst [vmem:[#allocation123_spill] sm:$0xff] %v18629_v60  ;;  %19729 = vst [vmem:[#allocation81_spill] sm:$0xff] %v18639_v22  ;;  %v18651_v60 = vadd.f32 %v19734_v26, %v18508_v50  ;;  %v19740_v22 = vld [vmem:[#allocation75_spill] sm:$0xff] }
 0x9f8   : > { %v18635_v19 = vrot.slane %v12507_v11, %v8663_v56  ;;  %19731 = vst [vmem:[#allocation124_spill] sm:$0xff] %v18643_v51  ;;  %19733 = vst [vmem:[#allocation88_spill] sm:$0xff] %v18647_v3  ;;  %v18655_v11 = vadd.f32 %v18508_v50, %v19736_v14  ;;  %v19738_v56 = vld [vmem:[#allocation44_spill] sm:$0xff]  ;;  %v18663_v12 = vadd.f32 %v18508_v50, %v19740_v22  ;;  %v19743_v51 = vld [vmem:[#allocation82_spill] sm:$0xff] }
 0x9f9   : > { %19735 = vst [vmem:[#allocation89_spill] sm:$0xff] %v18651_v60  ;;  %v18659_v29 = vadd.f32 %v19738_v56, %v18508_v50  ;;  %v19742_v60 = vld [vmem:[#allocation49_spill] sm:$0xff] }
 0x9fa   : > { %19737 = vst [vmem:[#allocation78_spill] sm:$0xff] %v18655_v11  ;;  %19741 = vst [vmem:[#allocation41_spill] sm:$0xff] %v18663_v12  ;;  %v8665_v57 = vmul.f32 %v18635_v19, %v17984_v54  ;;  %v8666_v3 = vmul.f32 %v18635_v19, %v17989_v46  ;;  %v8667_v26 = vmul.f32 %v18635_v19, %v17973_v23 }
 0x9fb   : > { %19739 = vst [vmem:[#allocation102_spill] sm:$0xff] %v18659_v29  ;;  %v8668_v14 = vmul.f32 %v18635_v19, %v18001_v15  ;;  %v8669_v56 = vmul.f32 %v18635_v19, %v18021_v49  ;;  %v8670_v29 = vmul.f32 %v18635_v19, %v18030_v7  ;;  %v8671_v22 = vmul.f32 %v18635_v19, %v18017_v16 }
 0x9fc   : > { %v8672_v54 = vmul.f32 %v18635_v19, %v18025_v30  ;;  %v8673_v46 = vmul.f32 %v18635_v19, %v18049_v63  ;;  %v8674_v23 = vmul.f32 %v18635_v19, %v18058_v42  ;;  %v8675_v15 = vmul.f32 %v18635_v19, %v18045_v27 }
 0x9fd   : > { %v8676_v49 = vmul.f32 %v18635_v19, %v18053_v48  ;;  %v8677_v7 = vmul.f32 %v18635_v19, %v18080_v55  ;;  %v8678_v16 = vmul.f32 %v18635_v19, %v18089_v45  ;;  %v8679_v30 = vmul.f32 %v18635_v19, %v18076_v41 }
 0x9fe   : > { %v8680_v63 = vmul.f32 %v18635_v19, %v18084_v5  ;;  %v8683_v42 = vmul.f32 %v18635_v19, %v18104_v8  ;;  %v8889_v27 = vadd.f32 %v18446_v35, %v8665_v57  ;;  %v8890_v12 = vadd.f32 %v18449_v58, %v8666_v3 }
 0x9ff   : > { %v8891_v48 = vadd.f32 %v18443_v2, %v8667_v26  ;;  %v8892_v55 = vadd.f32 %v18452_v21, %v8668_v14  ;;  %v8893_v11 = vadd.f32 %v18461_v62, %v8669_v56  ;;  %v8894_v45 = vadd.f32 %v18470_v0, %v8670_v29  ;;  %v19745_v56 = vld [vmem:[#allocation90_spill] sm:$0xff] }
 0xa00   : > { %v8895_v41 = vadd.f32 %v18458_v10, %v8671_v22  ;;  %v8896_v50 = vadd.f32 %v19742_v60, %v8672_v54  ;;  %v8897_v5 = vadd.f32 %v18476_v4, %v8673_v46  ;;  %v8898_v8 = vadd.f32 %v18482_v43, %v8674_v23  ;;  %v19746_v54 = vld [vmem:[#allocation43_spill] sm:$0xff] }
 0xa01   : > { %v8899_v35 = vadd.f32 %v19743_v51, %v8675_v15  ;;  %v8900_v3 = vadd.f32 %v18479_v53, %v8676_v49  ;;  %v8901_v58 = vadd.f32 %v18473_v44, %v8677_v7  ;;  %v8902_v21 = vadd.f32 %v18488_v33, %v8678_v16  ;;  %v19747_v23 = vld [vmem:[#allocation63_spill] sm:$0xff]  ;;  %v19748_v49 = vld [vmem:[#allocation76_spill] sm:$0xff] }
 0xa02   : > { %v8903_v2 = vadd.f32 %v18467_v32, %v8679_v30  ;;  %v8904_v62 = vadd.f32 %v18485_v20, %v8680_v63  ;;  %v8907_v10 = vadd.f32 %v18491_v6, %v8683_v42  ;;  %v9157_v0 = vadd.f32 %v18537_v34, %v8889_v27  ;;  %v19749_v7 = vld [vmem:[#allocation100_spill] sm:$0xff]  ;;  %v19750_v30 = vld [vmem:[#allocation101_spill] sm:$0xff]  ;;  %v19751_v42 = vld [vmem:[#allocation103_spill] sm:$0xff] }
 0xa03   : > { %v9158_v4 = vadd.f32 %v18545_v61, %v8890_v12  ;;  %v9159_v43 = vadd.f32 %v18533_v52, %v8891_v48  ;;  %v9160_v51 = vadd.f32 %v18541_v37, %v8892_v55  ;;  %v9161_v53 = vadd.f32 %v18559_v47, %v8893_v11  ;;  %v19752_v48 = vld [vmem:[#allocation98_spill] sm:$0xff] }
 0xa04   : > { %v9162_v44 = vadd.f32 %v18573_v9, %v8894_v45  ;;  %v9163_v33 = vadd.f32 %v18555_v24, %v8895_v41  ;;  %v9164_v32 = vadd.f32 %v18569_v25, %v8896_v50  ;;  %v9165_v20 = vadd.f32 %v18581_v28, %v8897_v5  ;;  %v19753_v45 = vld [vmem:[#allocation71_spill] sm:$0xff]  ;;  %v19754_v5 = vld [vmem:[#allocation128_spill] sm:$0xff] }
 0xa05   : > { %v9166_v6 = vadd.f32 %v18589_v40, %v8898_v8  ;;  %v9167_v52 = vadd.f32 %v18577_v36, %v8899_v35  ;;  %v9168_v47 = vadd.f32 %v18585_v38, %v8900_v3  ;;  %v9169_v37 = vadd.f32 %v18597_v18, %v8901_v58  ;;  %v19755_v35 = vld [vmem:[#allocation127_spill] sm:$0xff]  ;;  %v19756_v58 = vld [vmem:[#allocation121_spill] sm:$0xff] }
 0xa06   : > { %v9170_v24 = vadd.f32 %v18605_v39, %v8902_v21  ;;  %v9171_v25 = vadd.f32 %v18593_v17, %v8903_v2  ;;  %v9172_v50 = vadd.f32 %v18601_v1, %v8904_v62  ;;  %v9175_v61 = vadd.f32 %v18609_v13, %v8907_v10  ;;  %v19757_v2 = vld [vmem:[#allocation99_spill] sm:$0xff] }
 0xa07   : > { %v9189_v9 = vmax.f32 %v9157_v0, 0.0  ;;  %v9190_v34 = vmax.f32 %v9158_v4, 0.0  ;;  %v9191_v36 = vmax.f32 %v9159_v43, 0.0  ;;  %v9192_v28 = vmax.f32 %v9160_v51, 0.0  ;;  %v19758_v10 = vld [vmem:[#allocation83_spill] sm:$0xff]  ;;  %v19760_v51 = vld [vmem:[#allocation122_spill] sm:$0xff] }
 0xa08   : > { %v9193_v40 = vmax.f32 %v9161_v53, 0.0  ;;  %v9194_v38 = vmax.f32 %v9162_v44, 0.0  ;;  %v9195_v60 = vmax.f32 %v9163_v33, 0.0  ;;  %v9196_v18 = vmax.f32 %v9164_v32, 0.0  ;;  %v19759_v4 = vld [vmem:[#allocation87_spill] sm:$0xff]  ;;  %v19761_v44 = vld [vmem:[#allocation84_spill] sm:$0xff] }
 0xa09   : > { %v9197_v39 = vmax.f32 %v9165_v20, 0.0  ;;  %9221 = vst.msk [vmem:[%s18731_s22] sm:$0xff] %vm2045_vm2, %v9189_v9  ;;  %v9198_v1 = vmax.f32 %v9166_v6, 0.0  ;;  %v9199_v17 = vmax.f32 %v9167_v52, 0.0  ;;  %v9200_v13 = vmax.f32 %v9168_v47, 0.0  ;;  %9222 = vst.msk [vmem:[%s18731_s22 + $0x8] sm:$0xff] %vm2045_vm2, %v9190_v34 }
 0xa0a   : > { %v9201_v11 = vmax.f32 %v9169_v37, 0.0  ;;  %9223 = vst.msk [vmem:[%s18731_s22 + $0x10] sm:$0xff] %vm2045_vm2, %v9191_v36  ;;  %9224 = vst.msk [vmem:[%s18731_s22 + $0x18] sm:$0xff] %vm2045_vm2, %v9192_v28  ;;  %v9202_v29 = vmax.f32 %v9170_v24, 0.0  ;;  %v9203_v12 = vmax.f32 %v9171_v25, 0.0  ;;  %v9204_v57 = vmax.f32 %v9172_v50, 0.0 }
 0xa0b   : > { %9225 = vst.msk [vmem:[%s18731_s22 + $0x20] sm:$0xff] %vm2045_vm2, %v9193_v40  ;;  %v9207_v26 = vmax.f32 %v9175_v61, 0.0  ;;  %9226 = vst.msk [vmem:[%s18731_s22 + $0x28] sm:$0xff] %vm2045_vm2, %v9194_v38  ;;  %v8681_v14 = vmul.f32 %v18635_v19, %v18108_v31  ;;  %v8684_v22 = vmul.f32 %v18635_v19, %v19745_v56  ;;  %v8682_v46 = vmul.f32 %v18635_v19, %v19746_v54  ;;  %v19762_v32 = vld [vmem:[#allocation55_spill] sm:$0xff]  ;;  %v19763_v6 = vld [vmem:[#allocation70_spill] sm:$0xff] }
 0xa0c   : > { %9227 = vst.msk [vmem:[%s18731_s22 + $0x30] sm:$0xff] %vm2045_vm2, %v9195_v60  ;;  %9228 = vst.msk [vmem:[%s18731_s22 + $0x38] sm:$0xff] %vm2045_vm2, %v9196_v18  ;;  %v8687_v15 = vmul.f32 %v18635_v19, %v19747_v23  ;;  %v8685_v31 = vmul.f32 %v18635_v19, %v19748_v49  ;;  %v8688_v16 = vmul.f32 %v18635_v19, %v19749_v7  ;;  %v19764_v47 = vld [vmem:[#allocation123_spill] sm:$0xff]  ;;  %v19765_v25 = vld [vmem:[#allocation81_spill] sm:$0xff] }
 0xa0d   : > { %9229 = vst.msk [vmem:[%s18731_s22 + $0x40] sm:$0xff] %vm2045_vm2, %v9197_v39  ;;  %9230 = vst.msk [vmem:[%s18731_s22 + $0x48] sm:$0xff] %vm2045_vm2, %v9198_v1  ;;  %v8686_v63 = vmul.f32 %v18635_v19, %v19750_v30  ;;  %v8691_v27 = vmul.f32 %v18635_v19, %v19751_v42  ;;  %v8905_v55 = vadd.f32 %v19752_v48, %v8681_v14  ;;  %v19766_v61 = vld [vmem:[#allocation124_spill] sm:$0xff]  ;;  %v19772_v56 = vld [vmem:[#allocation117_spill] sm:$0xff] }
 0xa0e   : > { %9231 = vst.msk [vmem:[%s18731_s22 + $0x50] sm:$0xff] %vm2045_vm2, %v9199_v17  ;;  %9232 = vst.msk [vmem:[%s18731_s22 + $0x58] sm:$0xff] %vm2045_vm2, %v9200_v13  ;;  %v8908_v41 = vadd.f32 %v19753_v45, %v8684_v22  ;;  %v8906_v8 = vadd.f32 %v19754_v5, %v8682_v46  ;;  %v8911_v3 = vadd.f32 %v19755_v35, %v8687_v15  ;;  %v19768_v17 = vld [vmem:[#allocation104_spill] sm:$0xff]  ;;  %v19774_v46 = vld [vmem:[#allocation51_spill] sm:$0xff] }
 0xa0f   : > { %9233 = vst.msk [vmem:[%s18731_s22 + $0x60] sm:$0xff] %vm2045_vm2, %v9201_v11  ;;  %9234 = vst.msk [vmem:[%s18731_s22 + $0x68] sm:$0xff] %vm2045_vm2, %v9202_v29  ;;  %v8909_v21 = vadd.f32 %v19756_v58, %v8685_v31  ;;  %v8912_v62 = vadd.f32 %v19757_v2, %v8688_v16  ;;  %v8910_v0 = vadd.f32 %v19758_v10, %v8686_v63  ;;  %v19769_v11 = vld [vmem:[#allocation92_spill] sm:$0xff]  ;;  %v19775_v15 = vld [vmem:[#allocation97_spill] sm:$0xff] }
 0xa10   : > { %9235 = vst.msk [vmem:[%s18731_s22 + $0x70] sm:$0xff] %vm2045_vm2, %v9203_v12  ;;  %9236 = vst.msk [vmem:[%s18731_s22 + $0x78] sm:$0xff] %vm2045_vm2, %v9204_v57  ;;  %v8915_v43 = vadd.f32 %v19759_v4, %v8691_v27  ;;  %v9173_v53 = vadd.f32 %v19760_v51, %v8905_v55  ;;  %v9176_v33 = vadd.f32 %v19761_v44, %v8908_v41  ;;  %v19770_v12 = vld [vmem:[#allocation93_spill] sm:$0xff]  ;;  %v19773_v54 = vld [vmem:[#allocation120_spill] sm:$0xff] }
 0xa11   : > { %9239 = vst.msk [vmem:[%s18731_s22 + $0x90] sm:$0xff] %vm2045_vm2, %v9207_v26  ;;  %v9174_v20 = vadd.f32 %v19762_v32, %v8906_v8  ;;  %v9179_v52 = vadd.f32 %v19763_v6, %v8911_v3  ;;  %v9177_v37 = vadd.f32 %v19764_v47, %v8909_v21  ;;  %v9180_v24 = vadd.f32 %v18633_v59, %v8912_v62  ;;  %v19767_v59 = vld [vmem:[#allocation73_spill] sm:$0xff]  ;;  %v19771_v26 = vld [vmem:[#allocation96_spill] sm:$0xff]  ;;  %v19776_v31 = vld [vmem:[#allocation62_spill] sm:$0xff] }
 0xa12   : > { %v9178_v50 = vadd.f32 %v19765_v25, %v8910_v0  ;;  %v9183_v9 = vadd.f32 %v19766_v61, %v8915_v43  ;;  %v9205_v34 = vmax.f32 %v9173_v53, 0.0  ;;  %v9208_v36 = vmax.f32 %v9176_v33, 0.0  ;;  %v19777_v16 = vld [vmem:[#allocation67_spill] sm:$0xff]  ;;  %v19778_v63 = vld [vmem:[#allocation38_spill] sm:$0xff]  ;;  %v19779_v27 = vld [vmem:[#allocation72_spill] sm:$0xff] }
 0xa13   : > { %v9206_v28 = vmax.f32 %v9174_v20, 0.0  ;;  %v9211_v40 = vmax.f32 %v9179_v52, 0.0  ;;  %v9209_v38 = vmax.f32 %v9177_v37, 0.0  ;;  %v9212_v60 = vmax.f32 %v9180_v24, 0.0  ;;  %v19780_v55 = vld [vmem:[#allocation45_spill] sm:$0xff]  ;;  %v19781_v41 = vld [vmem:[#allocation68_spill] sm:$0xff] }
 0xa14   : > { %v9210_v18 = vmax.f32 %v9178_v50, 0.0  ;;  %v9215_v39 = vmax.f32 %v9183_v9, 0.0  ;;  %9237 = vst.msk [vmem:[%s18731_s22 + $0x80] sm:$0xff] %vm2045_vm2, %v9205_v34  ;;  %9240 = vst.msk [vmem:[%s18731_s22 + $0x98] sm:$0xff] %vm2045_vm2, %v9208_v36  ;;  %v8689_v1 = vmul.f32 %v18635_v19, %v19767_v59  ;;  %v8692_v13 = vmul.f32 %v18635_v19, %v19768_v17  ;;  %v19782_v8 = vld [vmem:[#allocation47_spill] sm:$0xff]  ;;  %v19783_v3 = vld [vmem:[#allocation74_spill] sm:$0xff] }
 0xa15   : > { %9238 = vst.msk [vmem:[%s18731_s22 + $0x88] sm:$0xff] %vm2045_vm2, %v9206_v28  ;;  %9243 = vst.msk [vmem:[%s18731_s22 + $0xb0] sm:$0xff] %vm2045_vm2, %v9211_v40  ;;  %v8690_v29 = vmul.f32 %v18635_v19, %v19769_v11  ;;  %v8695_v57 = vmul.f32 %v18635_v19, %v19770_v12  ;;  %v8693_v14 = vmul.f32 %v18635_v19, %v19771_v26  ;;  %v19784_v21 = vld [vmem:[#allocation88_spill] sm:$0xff]  ;;  %v19785_v2 = vld [vmem:[#allocation89_spill] sm:$0xff] }
 0xa16   : > { %9241 = vst.msk [vmem:[%s18731_s22 + $0xa0] sm:$0xff] %vm2045_vm2, %v9209_v38  ;;  %9244 = vst.msk [vmem:[%s18731_s22 + $0xb8] sm:$0xff] %vm2045_vm2, %v9212_v60  ;;  %v8696_v22 = vmul.f32 %v18635_v19, %v19772_v56  ;;  %v9154_v23 = vadd.f32 %v19774_v46, %v19773_v54  ;;  %v8694_v49 = vmul.f32 %v18635_v19, %v19775_v15  ;;  %v19786_v10 = vld [vmem:[#allocation78_spill] sm:$0xff]  ;;  %v19788_v51 = vld [vmem:[#allocation41_spill] sm:$0xff] }
 0xa17   : > { %9242 = vst.msk [vmem:[%s18731_s22 + $0xa8] sm:$0xff] %vm2045_vm2, %v9210_v18  ;;  %9247 = vst.msk [vmem:[%s18731_s22 + $0xd0] sm:$0xff] %vm2045_vm2, %v9215_v39  ;;  %v8913_v7 = vadd.f32 %v19776_v31, %v8689_v1  ;;  %v8916_v30 = vadd.f32 %v19777_v16, %v8692_v13  ;;  %v8914_v42 = vadd.f32 %v19778_v63, %v8690_v29  ;;  %v19787_v4 = vld [vmem:[#allocation102_spill] sm:$0xff] }
 0xa18   : > { %v8919_v48 = vadd.f32 %v19779_v27, %v8695_v57  ;;  %v8917_v45 = vadd.f32 %v19780_v55, %v8693_v14  ;;  %v8920_v5 = vadd.f32 %v19781_v41, %v8696_v22  ;;  %v8918_v35 = vadd.f32 %v19782_v8, %v8694_v49 }
 0xa19   : > { %v9146_v58 = vadd.f32 %v19773_v54, %v19783_v3  ;;  %v9181_v19 = vadd.f32 %v19784_v21, %v8913_v7  ;;  %v9184_v62 = vadd.f32 %v19785_v2, %v8916_v30  ;;  %v9182_v0 = vadd.f32 %v19786_v10, %v8914_v42 }
 0xa1a   : > { %v9187_v43 = vadd.f32 %v19787_v4, %v8919_v48  ;;  %v9185_v53 = vadd.f32 %v19788_v51, %v8917_v45  ;;  %v9188_v44 = vadd.f32 %v9154_v23, %v8920_v5 }
 0xa1b   : > { %v9186_v33 = vadd.f32 %v9146_v58, %v8918_v35  ;;  %v9213_v32 = vmax.f32 %v9181_v19, 0.0  ;;  %v9216_v20 = vmax.f32 %v9184_v62, 0.0  ;;  %v9214_v6 = vmax.f32 %v9182_v0, 0.0 }
 0xa1c   : > { %v9219_v52 = vmax.f32 %v9187_v43, 0.0  ;;  %v9217_v47 = vmax.f32 %v9185_v53, 0.0  ;;  %v9220_v37 = vmax.f32 %v9188_v44, 0.0 }
 0xa1d   : > { %v9218_v24 = vmax.f32 %v9186_v33, 0.0  ;;  %9245 = vst.msk [vmem:[%s18731_s22 + $0xc0] sm:$0xff] %vm2045_vm2, %v9213_v32  ;;  %9248 = vst.msk [vmem:[%s18731_s22 + $0xd8] sm:$0xff] %vm2045_vm2, %v9216_v20 }
 0xa1e   : > { %9246 = vst.msk [vmem:[%s18731_s22 + $0xc8] sm:$0xff] %vm2045_vm2, %v9214_v6  ;;  %9251 = vst.msk [vmem:[%s18731_s22 + $0xf0] sm:$0xff] %vm2045_vm2, %v9219_v52 }
 0xa1f   : > { %9249 = vst.msk [vmem:[%s18731_s22 + $0xe0] sm:$0xff] %vm2045_vm2, %v9217_v47  ;;  %9252 = vst.msk [vmem:[%s18731_s22 + $0xf8] sm:$0xff] %vm2045_vm2, %v9220_v37 }
 0xa20   : > { %9250 = vst.msk [vmem:[%s18731_s22 + $0xe8] sm:$0xff] %vm2045_vm2, %v9218_v24 }
 0xa21 PF: > { %s30_s29 = sadd.s32 1, %s12641_s29  }
 0xa22   : > { %p27_p4 = scmp.ge.s32.totalorder %s30_s29, 4  }
 0xa24   :  { %29 = sbr.rel (!%p27_p4) target bundleno = 4 (0x4), region = 127 }

</bundles_post_ra>
